<compile_context>
chip_gen: v7x
topology: tpu7x:2x2x1
jax: 0.10.0
libtpu: 0.0.40
codegen_flags: <defaults>
</compile_context>

<pallas_src>
import jax
import jax.numpy as jnp
from jax import lax
from jax.experimental import pallas as pl
from jax.experimental.pallas import tpu as pltpu

HIDDEN = 2048
OUT = 3
OUT_PAD = 128              # lane-dense output width; real logits are [:, :3]
BN_EPS = 1e-5
VMEM_LIMIT = 32 << 20      # safe on all generations (<= v7x physical 64 MiB)


def _default_tk():
    """Hidden-column / fc2-contraction chunk, per TPU generation."""
    try:
        kind = jax.devices()[0].device_kind.lower()
    except Exception:
        return 512
    # v5e: 2 MiB w2 chunks (~2.4 us at ~0.8 TB/s) already hide per-step
    # overhead.  v6e/v7x: bigger chunks amortize the ~0.35 us/step cost.
    return 512 if "v5" in kind else 1024


def _vmrn_kernel(x_ref,
                 w1_ref, g1_ref, be1_ref,
                 w2_ref, g2_ref, be2_ref,
                 w3_ref, b3_ref,
                 o_ref,
                 acc_ref):
    k = pl.program_id(0)
    nk = pl.num_programs(0)
    n = x_ref.shape[0]
    inv_n = 1.0 / n

    # ---- fc1, this TK-wide column chunk (bf16 MXU inputs, f32 accumulate).
    # fc1 bias omitted: cancelled exactly by the bn1 mean subtraction.
    h = jnp.dot(x_ref[...], w1_ref[...], preferred_element_type=jnp.float32)

    # ---- bn1 (training-mode batch stats): single-pass stats + fused affine + relu
    mu = jnp.sum(h, axis=0, keepdims=True) * inv_n
    ex2 = jnp.sum(h * h, axis=0, keepdims=True) * inv_n
    var = jnp.maximum(ex2 - mu * mu, 0.0)             # biased variance
    a1 = g1_ref[...] * lax.rsqrt(var + BN_EPS)
    c1 = be1_ref[...] - mu * a1
    h1 = jnp.maximum(h * a1 + c1, 0.0).astype(jnp.bfloat16)

    # ---- fc2 partial contraction: (N, TK) @ (TK, HIDDEN), f32 accumulator.
    part = jnp.dot(h1, w2_ref[...], preferred_element_type=jnp.float32)

    @pl.when(k == 0)
    def _():
        acc_ref[...] = part            # write first partial directly (no zero-init)

    @pl.when(k > 0)
    def _():
        acc_ref[...] += part

    # ---- finalize: bn2 (fc2 bias cancelled by its mean), relu, padded out layer
    @pl.when(k == nk - 1)
    def _():
        h2 = acc_ref[...]
        mu2 = jnp.sum(h2, axis=0, keepdims=True) * inv_n
        ex22 = jnp.sum(h2 * h2, axis=0, keepdims=True) * inv_n
        var2 = jnp.maximum(ex22 - mu2 * mu2, 0.0)
        a2 = g2_ref[...] * lax.rsqrt(var2 + BN_EPS)
        c2 = be2_ref[...] - mu2 * a2
        h2 = jnp.maximum(h2 * a2 + c2, 0.0).astype(jnp.bfloat16)
        o_ref[...] = (jnp.dot(h2, w3_ref[...], preferred_element_type=jnp.float32)
                      + b3_ref[...])


def vmrn_rel_classifier_forward(x, params, tk=None):
    """x: (N, obj_pair_feat_dim) float32.  Returns (N, 3) float32 logits."""
    n, d = x.shape
    if n < 2:
        raise ValueError("BatchNorm1d training-mode statistics need N >= 2")
    tk = _default_tk() if tk is None else tk
    assert HIDDEN % tk == 0, "TK must divide the 2048 hidden width"
    nk = HIDDEN // tk

    # VMEM-residency guard: x, the (N,2048) f32 accumulator, the padded output
    # block and the double-buffered weight chunks must fit under the limit.
    resident = (n * d * 2                              # x (bf16, resident)
                + n * HIDDEN * 4                       # f32 fc2 accumulator
                + n * OUT_PAD * 4                      # output block
                + 2 * (d * tk * 2 + tk * HIDDEN * 2)   # double-buffered w1/w2 chunks
                + HIDDEN * OUT_PAD * 2                 # padded w3
                + 8 * HIDDEN * 4 + OUT_PAD * 4)        # bn vectors / b3 (generous)
    if resident > VMEM_LIMIT - (2 << 20):
        raise ValueError(
            f"batch {n} too large for the single-block BN layout "
            f"(~{resident >> 20} MiB VMEM needed); tile N with a two-pass BN.")

    # Pre-cast x to bf16 (native MXU input): half the HBM traffic / residency.
    x_bf16 = x.astype(jnp.bfloat16)

    args = (x_bf16,
            params["w1"], params["g1"], params["be1"],
            params["w2"], params["g2"], params["be2"],
            params["w3p"], params["b3p"])

    def const(shape):
        return pl.BlockSpec(shape, lambda k: (0, 0))

    in_specs = [
        const((n, d)),                                 # x (bf16, resident)
        pl.BlockSpec((d, tk), lambda k: (0, k)),       # w1 column chunk (bf16)
        pl.BlockSpec((1, tk), lambda k: (0, k)),       # bn1 gamma chunk
        pl.BlockSpec((1, tk), lambda k: (0, k)),       # bn1 beta chunk
        pl.BlockSpec((tk, HIDDEN), lambda k: (k, 0)),  # w2 K-chunk (bf16)
        const((1, HIDDEN)),                            # bn2 gamma
        const((1, HIDDEN)),                            # bn2 beta
        const((HIDDEN, OUT_PAD)),                      # w3, pre-padded (bf16)
        const((1, OUT_PAD)),                           # b3, pre-padded (f32)
    ]
    out_spec = pl.BlockSpec((n, OUT_PAD), lambda k: (0, 0))

    flops = 2 * n * (d * HIDDEN + HIDDEN * HIDDEN + HIDDEN * OUT_PAD) + 10 * n * HIDDEN
    bytes_accessed = (x_bf16.size * 2
                      + params["w1"].size * 2 + params["w2"].size * 2
                      + params["w3p"].size * 2
                      + 4 * HIDDEN * 4 + OUT_PAD * 4
                      + n * OUT_PAD * 4)

    out = pl.pallas_call(
        _vmrn_kernel,
        out_shape=jax.ShapeDtypeStruct((n, OUT_PAD), jnp.float32),
        grid_spec=pltpu.PrefetchScalarGridSpec(
            num_scalar_prefetch=0,
            grid=(nk,),
            in_specs=in_specs,
            out_specs=out_spec,
            scratch_shapes=[pltpu.VMEM((n, HIDDEN), jnp.float32)],  # fc2 accumulator
        ),
        compiler_params=pltpu.CompilerParams(
            dimension_semantics=("arbitrary",),          # hidden/K contraction axis
            vmem_limit_bytes=VMEM_LIMIT,
        ),
        cost_estimate=pl.CostEstimate(
            flops=int(flops),
            transcendentals=2 * HIDDEN,                  # rsqrt per BN feature
            bytes_accessed=int(bytes_accessed),
        ),
    )(*args)
    return out[:, :OUT]


def init_params(key, input_dim):
    ks = jax.random.split(key, 6)
    s1 = 1.0 / jnp.sqrt(input_dim)
    s2 = 1.0 / jnp.sqrt(HIDDEN)
    w3 = (jax.random.normal(ks[4], (HIDDEN, OUT), jnp.float32) * s2
          ).astype(jnp.bfloat16)
    b3 = jax.random.normal(ks[5], (1, OUT), jnp.float32) * s2
    return {
        # weights stored (in, out) = PyTorch weight transposed; bf16 for DMA/MXU
        "w1": (jax.random.normal(ks[0], (input_dim, HIDDEN), jnp.float32) * s1
               ).astype(jnp.bfloat16),
        # b1/b2 are kept ONLY for the reference; a bias followed by
        # training-mode BatchNorm is a forward no-op, so the kernel skips them.
        "b1": jax.random.normal(ks[1], (1, HIDDEN), jnp.float32) * s1,
        "g1": jnp.ones((1, HIDDEN), jnp.float32),
        "be1": jnp.zeros((1, HIDDEN), jnp.float32),
        "w2": (jax.random.normal(ks[2], (HIDDEN, HIDDEN), jnp.float32) * s2
               ).astype(jnp.bfloat16),
        "b2": jax.random.normal(ks[3], (1, HIDDEN), jnp.float32) * s2,
        "g2": jnp.ones((1, HIDDEN), jnp.float32),
        "be2": jnp.zeros((1, HIDDEN), jnp.float32),
        "w3": w3,
        "b3": b3,
        # padded ONCE here (lane-dense 128-wide out layer; extra cols are zero)
        "w3p": jnp.pad(w3, ((0, 0), (0, OUT_PAD - OUT))),
        "b3p": jnp.pad(b3, ((0, 0), (0, OUT_PAD - OUT))),
    }


def _reference(x, p):
    """Pure-JAX reference of the full module (WITH fc biases, two-pass BN var)."""
    def bn_relu(h, g, be):
        mu = jnp.mean(h, axis=0, keepdims=True)
        var = jnp.mean((h - mu) ** 2, axis=0, keepdims=True)   # biased variance
        return jnp.maximum((h - mu) / jnp.sqrt(var + BN_EPS) * g + be, 0.0)

    h = jnp.dot(x.astype(jnp.bfloat16), p["w1"],
                preferred_element_type=jnp.float32) + p["b1"]
    h = bn_relu(h, p["g1"], p["be1"]).astype(jnp.bfloat16)
    h = jnp.dot(h, p["w2"], preferred_element_type=jnp.float32) + p["b2"]
    h = bn_relu(h, p["g2"], p["be2"]).astype(jnp.bfloat16)
    return jnp.dot(h, p["w3"], preferred_element_type=jnp.float32) + p["b3"]


if __name__ == "__main__":
    key = jax.random.PRNGKey(0)
    k_x, k_p = jax.random.split(key)

    batch = 8                       # object pairs (N >= 2 required by BN training mode)
    obj_pair_feat_dim = 32          # module ctor arg (kept small for the test)

    x = jax.random.normal(k_x, (batch, obj_pair_feat_dim), jnp.float32)
    params = init_params(k_p, obj_pair_feat_dim)

    out = vmrn_rel_classifier_forward(x, params)
    out = jax.block_until_ready(out)

    ref = _reference(x, params)
    assert out.shape == (batch, OUT)
    assert jnp.allclose(out, ref, atol=1e-2, rtol=1e-2), "mismatch vs JAX reference"
    print("KERNEL_OK")
</pallas_src>

<mosaic_0001>
module attributes {stable_mosaic.version = 11 : i64} {
  func.func @_vmrn_kernel(%arg0: i32, %arg1: memref<8x32xbf16, #tpu.memory_space<vmem>>, %arg2: memref<32x1024xbf16, #tpu.memory_space<vmem>>, %arg3: memref<1x1024xf32, #tpu.memory_space<vmem>>, %arg4: memref<1x1024xf32, #tpu.memory_space<vmem>>, %arg5: memref<1024x2048xbf16, #tpu.memory_space<vmem>>, %arg6: memref<1x2048xf32, #tpu.memory_space<vmem>>, %arg7: memref<1x2048xf32, #tpu.memory_space<vmem>>, %arg8: memref<2048x128xbf16, #tpu.memory_space<vmem>>, %arg9: memref<1x128xf32, #tpu.memory_space<vmem>>, %arg10: memref<8x128xf32, #tpu.memory_space<vmem>>, %arg11: memref<8x2048xf32, #tpu.memory_space<vmem>>) attributes {dimension_semantics = [#tpu.dimension_semantics<arbitrary>], iteration_bounds = array<i64: 2>, scalar_prefetch = 0 : i64, scratch_operands = 1 : i64, tpu.core_type = #tpu.core_type<tc>, window_params = [{pipeline_mode = #tpu.pipeline_mode<synchronous>, transform_indices = @transform_0, window_bounds = array<i64: 8, 32>}, {transform_indices = @transform_1, window_bounds = array<i64: 32, 1024>}, {transform_indices = @transform_2, window_bounds = array<i64: 1, 1024>}, {transform_indices = @transform_3, window_bounds = array<i64: 1, 1024>}, {transform_indices = @transform_4, window_bounds = array<i64: 1024, 2048>}, {pipeline_mode = #tpu.pipeline_mode<synchronous>, transform_indices = @transform_5, window_bounds = array<i64: 1, 2048>}, {pipeline_mode = #tpu.pipeline_mode<synchronous>, transform_indices = @transform_6, window_bounds = array<i64: 1, 2048>}, {pipeline_mode = #tpu.pipeline_mode<synchronous>, transform_indices = @transform_7, window_bounds = array<i64: 2048, 128>}, {pipeline_mode = #tpu.pipeline_mode<synchronous>, transform_indices = @transform_8, window_bounds = array<i64: 1, 128>}, {pipeline_mode = #tpu.pipeline_mode<synchronous>, transform_indices = @transform_9, window_bounds = array<i64: 8, 128>}]} {
    %c0 = arith.constant 0 : index
    %c0_0 = arith.constant 0 : index
    %0 = vector.load %arg1[%c0, %c0_0] : memref<8x32xbf16, #tpu.memory_space<vmem>>, vector<8x32xbf16>
    %c0_1 = arith.constant 0 : index
    %c0_2 = arith.constant 0 : index
    %1 = vector.load %arg2[%c0_1, %c0_2] : memref<32x1024xbf16, #tpu.memory_space<vmem>>, vector<32x1024xbf16>
    %cst = arith.constant dense<0.000000e+00> : vector<8x1024xf32>
    %2 = tpu.matmul %0, %1, %cst {dimension_numbers = #tpu.dot_dimension_numbers<[1], [0], [0], [1], [0, 0, 1, 1], [], []>} : vector<8x32xbf16>, vector<32x1024xbf16>, vector<8x1024xf32> -> vector<8x1024xf32>
    %cst_3 = arith.constant dense<0.000000e+00> : vector<1024xf32>
    %3 = vector.multi_reduction <add>, %2, %cst_3 [0] : vector<8x1024xf32> to vector<1024xf32>
    %4 = vector.shape_cast %3 : vector<1024xf32> to vector<1x1024xf32>
    %cst_4 = arith.constant 1.250000e-01 : f32
    %5 = vector.broadcast %cst_4 : f32 to vector<1x1024xf32>
    %6 = arith.mulf %4, %5 : vector<1x1024xf32>
    %7 = arith.mulf %2, %2 : vector<8x1024xf32>
    %cst_5 = arith.constant dense<0.000000e+00> : vector<1024xf32>
    %8 = vector.multi_reduction <add>, %7, %cst_5 [0] : vector<8x1024xf32> to vector<1024xf32>
    %9 = vector.shape_cast %8 : vector<1024xf32> to vector<1x1024xf32>
    %cst_6 = arith.constant 1.250000e-01 : f32
    %10 = vector.broadcast %cst_6 : f32 to vector<1x1024xf32>
    %11 = arith.mulf %9, %10 : vector<1x1024xf32>
    %12 = arith.mulf %6, %6 : vector<1x1024xf32>
    %13 = arith.subf %11, %12 : vector<1x1024xf32>
    %cst_7 = arith.constant 0.000000e+00 : f32
    %14 = vector.broadcast %cst_7 : f32 to vector<1x1024xf32>
    %15 = arith.maximumf %13, %14 : vector<1x1024xf32>
    %c0_8 = arith.constant 0 : index
    %c0_9 = arith.constant 0 : index
    %16 = vector.load %arg3[%c0_8, %c0_9] : memref<1x1024xf32, #tpu.memory_space<vmem>>, vector<1x1024xf32>
    %cst_10 = arith.constant 9.99999974E-6 : f32
    %17 = vector.broadcast %cst_10 : f32 to vector<1x1024xf32>
    %18 = arith.addf %15, %17 : vector<1x1024xf32>
    %19 = math.rsqrt %18 : vector<1x1024xf32>
    %20 = arith.mulf %16, %19 : vector<1x1024xf32>
    %c0_11 = arith.constant 0 : index
    %c0_12 = arith.constant 0 : index
    %21 = vector.load %arg4[%c0_11, %c0_12] : memref<1x1024xf32, #tpu.memory_space<vmem>>, vector<1x1024xf32>
    %22 = arith.mulf %6, %20 : vector<1x1024xf32>
    %23 = arith.subf %21, %22 : vector<1x1024xf32>
    %24 = vector.broadcast %20 : vector<1x1024xf32> to vector<8x1024xf32>
    %25 = arith.mulf %2, %24 : vector<8x1024xf32>
    %26 = vector.broadcast %23 : vector<1x1024xf32> to vector<8x1024xf32>
    %27 = arith.addf %25, %26 : vector<8x1024xf32>
    %cst_13 = arith.constant 0.000000e+00 : f32
    %28 = vector.broadcast %cst_13 : f32 to vector<8x1024xf32>
    %29 = arith.maximumf %27, %28 : vector<8x1024xf32>
    %30 = arith.truncf %29 : vector<8x1024xf32> to vector<8x1024xbf16>
    %c0_14 = arith.constant 0 : index
    %c0_15 = arith.constant 0 : index
    %31 = vector.load %arg5[%c0_14, %c0_15] : memref<1024x2048xbf16, #tpu.memory_space<vmem>>, vector<1024x2048xbf16>
    %cst_16 = arith.constant dense<0.000000e+00> : vector<8x2048xf32>
    %32 = tpu.matmul %30, %31, %cst_16 {dimension_numbers = #tpu.dot_dimension_numbers<[1], [0], [0], [1], [0, 0, 1, 1], [], []>} : vector<8x1024xbf16>, vector<1024x2048xbf16>, vector<8x2048xf32> -> vector<8x2048xf32>
    %c0_i32 = arith.constant 0 : i32
    %33 = arith.cmpi eq, %arg0, %c0_i32 : i32
    %34 = arith.extui %33 : i1 to i32
    %c0_i32_17 = arith.constant 0 : i32
    %35 = arith.cmpi ne, %34, %c0_i32_17 : i32
    scf.if %35 {
      %c0_21 = arith.constant 0 : index
      %c0_22 = arith.constant 0 : index
      %42 = vector.load %arg11[%c0_21, %c0_22] : memref<8x2048xf32, #tpu.memory_space<vmem>>, vector<8x2048xf32>
      tpu.vector_store %arg11[%c0_21, %c0_22], %32 {strides = array<i32>} : memref<8x2048xf32, #tpu.memory_space<vmem>>, vector<8x2048xf32>,
    } else {
    }
    %c0_i32_18 = arith.constant 0 : i32
    %36 = arith.cmpi sgt, %arg0, %c0_i32_18 : i32
    %37 = arith.extui %36 : i1 to i32
    %c0_i32_19 = arith.constant 0 : i32
    %38 = arith.cmpi ne, %37, %c0_i32_19 : i32
    scf.if %38 {
      %c0_21 = arith.constant 0 : index
      %c0_22 = arith.constant 0 : index
      %42 = vector.load %arg11[%c0_21, %c0_22] : memref<8x2048xf32, #tpu.memory_space<vmem>>, vector<8x2048xf32>
      %43 = arith.addf %42, %32 : vector<8x2048xf32>
      %c0_23 = arith.constant 0 : index
      %c0_24 = arith.constant 0 : index
      %44 = vector.load %arg11[%c0_23, %c0_24] : memref<8x2048xf32, #tpu.memory_space<vmem>>, vector<8x2048xf32>
      tpu.vector_store %arg11[%c0_23, %c0_24], %43 {strides = array<i32>} : memref<8x2048xf32, #tpu.memory_space<vmem>>, vector<8x2048xf32>,
    } else {
    }
    %c1_i32 = arith.constant 1 : i32
    %39 = arith.cmpi eq, %arg0, %c1_i32 : i32
    %40 = arith.extui %39 : i1 to i32
    %c0_i32_20 = arith.constant 0 : i32
    %41 = arith.cmpi ne, %40, %c0_i32_20 : i32
    scf.if %41 {
      %c0_21 = arith.constant 0 : index
      %c0_22 = arith.constant 0 : index
      %42 = vector.load %arg11[%c0_21, %c0_22] : memref<8x2048xf32, #tpu.memory_space<vmem>>, vector<8x2048xf32>
      %cst_23 = arith.constant dense<0.000000e+00> : vector<2048xf32>
      %43 = vector.multi_reduction <add>, %42, %cst_23 [0] : vector<8x2048xf32> to vector<2048xf32>
      %44 = vector.shape_cast %43 : vector<2048xf32> to vector<1x2048xf32>
      %cst_24 = arith.constant 1.250000e-01 : f32
      %45 = vector.broadcast %cst_24 : f32 to vector<1x2048xf32>
      %46 = arith.mulf %44, %45 : vector<1x2048xf32>
      %47 = arith.mulf %42, %42 : vector<8x2048xf32>
      %cst_25 = arith.constant dense<0.000000e+00> : vector<2048xf32>
      %48 = vector.multi_reduction <add>, %47, %cst_25 [0] : vector<8x2048xf32> to vector<2048xf32>
      %49 = vector.shape_cast %48 : vector<2048xf32> to vector<1x2048xf32>
      %cst_26 = arith.constant 1.250000e-01 : f32
      %50 = vector.broadcast %cst_26 : f32 to vector<1x2048xf32>
      %51 = arith.mulf %49, %50 : vector<1x2048xf32>
      %52 = arith.mulf %46, %46 : vector<1x2048xf32>
      %53 = arith.subf %51, %52 : vector<1x2048xf32>
      %cst_27 = arith.constant 0.000000e+00 : f32
      %54 = vector.broadcast %cst_27 : f32 to vector<1x2048xf32>
      %55 = arith.maximumf %53, %54 : vector<1x2048xf32>
      %c0_28 = arith.constant 0 : index
      %c0_29 = arith.constant 0 : index
      %56 = vector.load %arg6[%c0_28, %c0_29] : memref<1x2048xf32, #tpu.memory_space<vmem>>, vector<1x2048xf32>
      %cst_30 = arith.constant 9.99999974E-6 : f32
      %57 = vector.broadcast %cst_30 : f32 to vector<1x2048xf32>
      %58 = arith.addf %55, %57 : vector<1x2048xf32>
      %59 = math.rsqrt %58 : vector<1x2048xf32>
      %60 = arith.mulf %56, %59 : vector<1x2048xf32>
      %c0_31 = arith.constant 0 : index
      %c0_32 = arith.constant 0 : index
      %61 = vector.load %arg7[%c0_31, %c0_32] : memref<1x2048xf32, #tpu.memory_space<vmem>>, vector<1x2048xf32>
      %62 = arith.mulf %46, %60 : vector<1x2048xf32>
      %63 = arith.subf %61, %62 : vector<1x2048xf32>
      %64 = vector.broadcast %60 : vector<1x2048xf32> to vector<8x2048xf32>
      %65 = arith.mulf %42, %64 : vector<8x2048xf32>
      %66 = vector.broadcast %63 : vector<1x2048xf32> to vector<8x2048xf32>
      %67 = arith.addf %65, %66 : vector<8x2048xf32>
      %cst_33 = arith.constant 0.000000e+00 : f32
      %68 = vector.broadcast %cst_33 : f32 to vector<8x2048xf32>
      %69 = arith.maximumf %67, %68 : vector<8x2048xf32>
      %70 = arith.truncf %69 : vector<8x2048xf32> to vector<8x2048xbf16>
      %c0_34 = arith.constant 0 : index
      %c0_35 = arith.constant 0 : index
      %71 = vector.load %arg8[%c0_34, %c0_35] : memref<2048x128xbf16, #tpu.memory_space<vmem>>, vector<2048x128xbf16>
      %cst_36 = arith.constant dense<0.000000e+00> : vector<8x128xf32>
      %72 = tpu.matmul %70, %71, %cst_36 {dimension_numbers = #tpu.dot_dimension_numbers<[1], [0], [0], [1], [0, 0, 1, 1], [], []>} : vector<8x2048xbf16>, vector<2048x128xbf16>, vector<8x128xf32> -> vector<8x128xf32>
      %c0_37 = arith.constant 0 : index
      %c0_38 = arith.constant 0 : index
      %73 = vector.load %arg9[%c0_37, %c0_38] : memref<1x128xf32, #tpu.memory_space<vmem>>, vector<1x128xf32>
      %74 = vector.broadcast %73 : vector<1x128xf32> to vector<8x128xf32>
      %75 = arith.addf %72, %74 : vector<8x128xf32>
      %c0_39 = arith.constant 0 : index
      %c0_40 = arith.constant 0 : index
      %76 = vector.load %arg10[%c0_39, %c0_40] : memref<8x128xf32, #tpu.memory_space<vmem>>, vector<8x128xf32>
      tpu.vector_store %arg10[%c0_39, %c0_40], %75 {strides = array<i32>} : memref<8x128xf32, #tpu.memory_space<vmem>>, vector<8x128xf32>,
    } else {
    }
    return
  }
  func.func @transform_0(%arg0: i32) -> (i32, i32) {
    %c0_i32 = arith.constant 0 : i32
    %c0_i32_0 = arith.constant 0 : i32
    %c0_i32_1 = arith.constant 0 : i32
    return %c0_i32, %c0_i32_0 : i32, i32
  }
  func.func @transform_1(%arg0: i32) -> (i32, i32) {
    %c0_i32 = arith.constant 0 : i32
    %c0_i32_0 = arith.constant 0 : i32
    return %c0_i32, %arg0 : i32, i32
  }
  func.func @transform_2(%arg0: i32) -> (i32, i32) {
    %c0_i32 = arith.constant 0 : i32
    %c0_i32_0 = arith.constant 0 : i32
    return %c0_i32, %arg0 : i32, i32
  }
  func.func @transform_3(%arg0: i32) -> (i32, i32) {
    %c0_i32 = arith.constant 0 : i32
    %c0_i32_0 = arith.constant 0 : i32
    return %c0_i32, %arg0 : i32, i32
  }
  func.func @transform_4(%arg0: i32) -> (i32, i32) {
    %c0_i32 = arith.constant 0 : i32
    %c0_i32_0 = arith.constant 0 : i32
    return %arg0, %c0_i32 : i32, i32
  }
  func.func @transform_5(%arg0: i32) -> (i32, i32) {
    %c0_i32 = arith.constant 0 : i32
    %c0_i32_0 = arith.constant 0 : i32
    %c0_i32_1 = arith.constant 0 : i32
    return %c0_i32, %c0_i32_0 : i32, i32
  }
  func.func @transform_6(%arg0: i32) -> (i32, i32) {
    %c0_i32 = arith.constant 0 : i32
    %c0_i32_0 = arith.constant 0 : i32
    %c0_i32_1 = arith.constant 0 : i32
    return %c0_i32, %c0_i32_0 : i32, i32
  }
  func.func @transform_7(%arg0: i32) -> (i32, i32) {
    %c0_i32 = arith.constant 0 : i32
    %c0_i32_0 = arith.constant 0 : i32
    %c0_i32_1 = arith.constant 0 : i32
    return %c0_i32, %c0_i32_0 : i32, i32
  }
  func.func @transform_8(%arg0: i32) -> (i32, i32) {
    %c0_i32 = arith.constant 0 : i32
    %c0_i32_0 = arith.constant 0 : i32
    %c0_i32_1 = arith.constant 0 : i32
    return %c0_i32, %c0_i32_0 : i32, i32
  }
  func.func @transform_9(%arg0: i32) -> (i32, i32) {
    %c0_i32 = arith.constant 0 : i32
    %c0_i32_0 = arith.constant 0 : i32
    %c0_i32_1 = arith.constant 0 : i32
    return %c0_i32, %c0_i32_0 : i32, i32
  }
}

</mosaic_0001>

<bundles_post_ra>
// kernel: tpu_custom_call.1
= control target key start
LH: loop header
LB: loop body
LE: loop exit
PB: predicated region body
PF: predicated region fallthrough
CT: control target
= control target key end

     0   :  { %s15308_s0 = inlined_call_operand.hbm [shape: bf16[8,32], index: 0, kind: input, shape index: {}]   ;;  %s15309_s1 = inlined_call_operand.hbm [shape: bf16[32,2048], index: 1, kind: input, shape index: {}]   ;;  %s15310_s2 = inlined_call_operand.hbm [shape: f32[1,2048], index: 2, kind: input, shape index: {}]   ;;  %s15311_s3 = inlined_call_operand.hbm [shape: f32[1,2048], index: 3, kind: input, shape index: {}]   ;;  %s15312_s4 = inlined_call_operand.hbm [shape: bf16[2048,2048], index: 4, kind: input, shape index: {}]   ;;  %s15313_s5 = inlined_call_operand.hbm [shape: f32[1,2048], index: 5, kind: input, shape index: {}]   ;;  %s15314_s6 = inlined_call_operand.hbm [shape: f32[1,2048], index: 6, kind: input, shape index: {}]   ;;  %s15315_s7 = inlined_call_operand.hbm [shape: bf16[2048,128], index: 7, kind: input, shape index: {}]   ;;  %s15316_s8 = inlined_call_operand.hbm [shape: f32[1,128], index: 8, kind: input, shape index: {}]   ;;  %s15317_s9 = inlined_call_operand.hbm [shape: f32[8,128], index: 9, kind: output, shape index: {}]  }
   0x1   :  { %15339 = sst [smem:[#allocation29_spill]] %s15309_s1 }
   0x2   :  { %15340 = sst [smem:[#allocation30_spill]] %s15313_s5 }
   0x3   :  { %15341 = sst [smem:[#allocation31_spill]] %s15315_s7 }
   0x4   :  { %15342 = sst [smem:[#allocation32_spill]] %s15317_s9 }
   0x5   :  { %14 = vsyncpa [#allocation4], 0 }
   0x6   :  { %15 = vsyncpa [#allocation7], 0 }
   0x7   :  { %17 = vsyncpa [#allocation7 + $0x1], 0 }
   0x8   :  { %18 = vsyncpa [#allocation10], 0 }
   0x9   :  { %20 = vsyncpa [#allocation10 + $0x1], 0 }
   0xa   :  { %21 = vsyncpa [#allocation13], 0 }
   0xb   :  { %22 = vsyncpa [#allocation16], 0 }
   0xc   :  { %23 = vsyncpa [#allocation5], 0  ;;  %s13255_s30 = smov 0   ;;  %s13257_s10 = smov 0  }
   0xd   :  { %s13259_s11 = smov 0   ;;  %s13261_s12 = smov 0  }
   0xe LB: > { %15343 = sst [smem:[#allocation25_spill]] %s13182_s11  ;;  %s13274_s13 = sadd.s32 4294967295, %s13186_s12   ;;  %s13186_s12 = sphi %s13261_s12, %s15376_s12   ;;  %s13182_s11 = sphi %s13259_s11, %s15378_s11   ;;  %s13178_s10 = sphi %s13257_s10, %s15380_s10   ;;  %s13174_s30 = sphi %s13255_s30, %s15379_s30  }
   0xf   : > { %p70_p0 = scmp.ne.s32.totalorder %s13178_s10, %s13174_s30  ;;  %p15318_p1 = scmp.eq.s32.totalorder %s13274_s13, 0 }
  0x10   : > { %p11062_p2 = scmp.ge.s32.totalorder %s13186_s12, 1  ;;  %p264_p3 = scmp.lt.s32.totalorder %s13186_s12, 3 }
  0x11   : > { %p13283_p5 = por %p15318_p1, %p70_p0  ;;  %s13188_s16 = smov [#allocation12]  }
  0x12   : > { %p13287_p6 = pnand %p11062_p2, %p264_p3  ;;  %s288_s17 = sshll.u32 %s13188_s16, 4  ;;  %s289_s17 = int_to_ptr.vmem [resolvable:$true] %s288_s17 }
  0x13   : > { %s15344_s14 = scalar_select %p13283_p5, 1, 0 }
  0x14   : > { %s15346_s15 = scalar_select %p13287_p6, 1, 0 }
  0x15   : > { %15345 = sst [smem:[#allocation26_spill]] %s15344_s14  ;;  %p12581_p7 = pneg %p13287_p6 }
  0x16   : > { %s13189_s18 = smov [#allocation15]   ;;  %s15348_s5 = sld [smem:[#allocation30_spill]] }
  0x17   : > { %s309_s19 = sshll.u32 %s13189_s18, 4  ;;  %p13295_p8 = pnand %p12581_p7, %p15318_p1  ;;  %s13299_s19 = int_to_ptr.vmem [resolvable:$true] %s309_s19 }
  0x19   : > { %s15347_s20 = scalar_select %p13295_p8, 1, 0 }
  0x1a   : > { %p13309_p10 = pneg %p13295_p8 }
  0x1c   : > { %s12846_s23 = scalar_lea.hbm %s15348_s5, 256 }
  0x1d   : > { %p12847_p9 = scmp.ne.s32.totalorder %s15348_s5, %s12846_s23  ;;  %p12853_p13 = scmp.lt.u32.totalorder %s12846_s23, %s15348_s5 }
  0x1e   : > { %s15349_s26 = scalar_select %p13309_p10, 1, 0 }
  0x1f   : > { %p12849_p11 = pnand %p13309_p10, %p12847_p9 }
  0x21   : > { %p12850_p12 = pneg %p12849_p11 }
  0x23   : > { %p12855_p0 = pnand %p12853_p13, %p12850_p12 }
  0x25   : > { %12858 = shalt.err (!%p12855_p0)
}
  0x26   : > { %s12859_s29 = scalar_lea.vmem %s289_s17, 256  ;;  %p12867_p4 = scmp.lt.s32.totalorder %s289_s17, %s289_s17 }
  0x27   : > { %p12860_p2 = scmp.ne.s32.totalorder %s289_s17, %s12859_s29  ;;  %p12868_p1 = scmp.lt.s32.totalorder %s12859_s29, %s12859_s29 }
  0x29   : > { %p12862_p3 = pnand %p12860_p2, %p13309_p10  ;;  %p12869_p5 = por %p12868_p1, %p12867_p4 }
  0x2b   : > { %p12863_p7 = pneg %p12862_p3 }
  0x2d   : > { %p12870_p6 = pnand %p12869_p5, %p12863_p7 }
  0x2f   : > { %12873 = shalt.err (!%p12870_p6)
}
  0x30   : > { %12587 = dma.hbm_to_vmem [thread:$0]  (!%p13295_p8), %s15348_s5, 256, %s289_s17, [#allocation13]  }
  0x31   : > { %s15350_s7 = sld [smem:[#allocation31_spill]] }
  0x37   : > { %s12874_s22 = scalar_lea.hbm %s15350_s7, 16384 }
  0x38   : > { %p12875_p9 = scmp.ne.s32.totalorder %s15350_s7, %s12874_s22  ;;  %p12881_p4 = scmp.lt.u32.totalorder %s12874_s22, %s15350_s7 }
  0x3a   : > { %p12877_p11 = pnand %p12875_p9, %p13309_p10 }
  0x3c   : > { %p12878_p1 = pneg %p12877_p11 }
  0x3e   : > { %p12883_p5 = pnand %p12881_p4, %p12878_p1 }
  0x40   : > { %12886 = shalt.err (!%p12883_p5)
}
  0x41   : > { %s12887_s17 = scalar_lea.vmem %s13299_s19, 16384  ;;  %p12895_p0 = scmp.lt.s32.totalorder %s13299_s19, %s13299_s19 }
  0x42   : > { %p12888_p6 = scmp.ne.s32.totalorder %s13299_s19, %s12887_s17  ;;  %p12896_p2 = scmp.lt.s32.totalorder %s12887_s17, %s12887_s17 }
  0x44   : > { %p12890_p12 = pnand %p12888_p6, %p13309_p10  ;;  %p12897_p3 = por %p12896_p2, %p12895_p0 }
  0x46   : > { %p12891_p13 = pneg %p12890_p12 }
  0x48   : > { %p12898_p7 = pnand %p12897_p3, %p12891_p13 }
  0x4a   : > { %12901 = shalt.err (!%p12898_p7)
}
  0x4b   : > { %s15321_s28 = smov 64   ;;  %s13191_s29 = smov 4  }
  0x4c   : > { %12593 = dma.hbm_to_vmem [thread:$0]  (!%p13295_p8), %s15350_s7, 16384, %s13299_s19, [#allocation16], %s15321_s28, %s15321_s28, %s13191_s29  }
  0x4d   : > { %s13351_s18 = sadd.s32 1, %s13186_s12   ;;  %s57_s21 = sadd.s32 1, %s13182_s11 }
  0x4e   : > { %15351 = sst [smem:[#allocation27_spill]] %s13351_s18  ;;  %s54_s22 = ssub.s32 %s13186_s12, %s13351_s18 }
  0x4f   : > { %p64_p9 = scmp.ne.s32.totalorder %s13182_s11, %s13178_s10  ;;  %p55_p11 = scmp.eq.s32.totalorder %s54_s22, 0 }
  0x50   : > { %p65_p1 = scmp.eq.s32.totalorder %s13186_s12, 0  ;;  %p12615_p4 = scmp.lt.s32.totalorder %s13186_s12, 2 }
  0x51   : > { %s15322_s23 = sand.u32 1, %s13186_s12   ;;  %s13365_s25 = sand.u32 1, %s13182_s11  }
  0x52   : > { %s13362_s24 = scalar_select %p55_p11, %s13182_s11, %s57_s21  }
  0x53   : > { %p66_p5 = por %p65_p1, %p64_p9  ;;  %s12272_s27 = sshll.u32 %s13186_s12, 9 }
  0x54   : > { %15352 = sst [smem:[#allocation28_spill]] %s13362_s24  ;;  %s11069_s17 = sshll.u32 %s13365_s25, 7 }
  0x55   : > { %s15353_s1 = sld [smem:[#allocation29_spill]]  ;;  %p13374_p6 = pnand %p12615_p4, %p66_p5 }
  0x56   : > { %s338_s21 = scalar_lea.vmem [#allocation6], %s11069_s17  ;;  %s13382_s28 = scalar_lea.sflag [#allocation7], %s15322_s23 }
  0x57   : > { %s15354_s16 = scalar_select %p13374_p6, 1, 0 }
  0x58   : > { %s345_s22 = sshll.u32 %s338_s21, 4  ;;  %p13388_p13 = pneg %p13374_p6  ;;  %s13378_s22 = int_to_ptr.vmem [resolvable:$true] %s345_s22 }
  0x5b   : > { %s13372_s30 = scalar_lea.hbm %s15353_s1, %s12272_s27  ;;  %s12907_s17 = scalar_lea.hbm %s15353_s1, 4096 }
  0x5c   : > { %s12902_s5 = scalar_lea.hbm %s13372_s30, 2048  ;;  %p12908_p3 = scmp.lt.u32.totalorder %s13372_s30, %s15353_s1 }
  0x5d   : > { %p12903_p12 = scmp.ne.s32.totalorder %s13372_s30, %s12902_s5  ;;  %p12909_p7 = scmp.lt.u32.totalorder %s12907_s17, %s12902_s5 }
  0x5e   : > { %s15355_s27 = scalar_select %p13388_p13, 1, 0 }
  0x5f   : > { %p12905_p0 = pnand %p13388_p13, %p12903_p12  ;;  %p12910_p9 = por %p12909_p7, %p12908_p3 }
  0x60   : > { %p12911_p11 = scmp.lt.u32.totalorder %s12902_s5, %s13372_s30 }
  0x61   : > { %p12906_p2 = pneg %p12905_p0 }
  0x62   : > { %p12912_p1 = por %p12911_p11, %p12910_p9 }
  0x64   : > { %p12913_p4 = pnand %p12912_p1, %p12906_p2 }
  0x66   : > { %12916 = shalt.err (!%p12913_p4)
}
  0x67   : > { %s12917_s23 = scalar_lea.vmem %s13378_s22, 2048  ;;  %s13192_s19 = smov [#allocation6]  }
  0x68   : > { %p12918_p5 = scmp.ne.s32.totalorder %s13378_s22, %s12917_s23  ;;  %s12922_s29 = sshll.u32 %s13192_s19, 4  ;;  %s12923_s29 = int_to_ptr.vmem [resolvable:$false] %s12922_s29 }
  0x69   : > { %s12924_s7 = scalar_lea.vmem %s12923_s29, 4096  ;;  %p12925_p8 = scmp.lt.s32.totalorder %s13378_s22, %s12923_s29 }
  0x6a   : > { %p12920_p12 = pnand %p12918_p5, %p13388_p13  ;;  %p12926_p10 = scmp.lt.s32.totalorder %s12924_s7, %s12917_s23 }
  0x6c   : > { %p12921_p0 = pneg %p12920_p12  ;;  %p12927_p3 = por %p12926_p10, %p12925_p8 }
  0x6e   : > { %p12928_p7 = pnand %p12927_p3, %p12921_p0 }
  0x70   : > { %12931 = shalt.err (!%p12928_p7)
}
  0x71   : > { %s15335_s5 = smov 1024   ;;  %s13194_s17 = smov 512  }
  0x72   : > { %s13195_s21 = smov 32   ;;  %s15336_s19 = sshll.u32 %s13365_s25, 3 }
  0x73   : > { %12600 = dma.hbm_to_vmem [thread:$0]  (!%p13374_p6), %s13372_s30, 2048, %s13378_s22, %s13382_s28, %s15335_s5, %s13194_s17, %s13195_s21  }
  0x74   : > { %s12273_s23 = sshll.u32 %s13186_s12, 7  ;;  %s378_s9 = scalar_lea.vmem [#allocation9], %s15336_s19 }
  0x75   : > { %s13418_s1 = scalar_lea.hbm %s15310_s2, %s12273_s23  ;;  %s13423_s18 = scalar_lea.hbm %s15311_s3, %s12273_s23 }
  0x76   : > { %s386_s14 = sshll.u32 %s378_s9, 4  ;;  %s15356_s30 = sand.u32 1, %s13186_s12   ;;  %s387_s14 = int_to_ptr.vmem [resolvable:$true] %s386_s14 }
  0x77   : > { %s13429_s22 = scalar_lea.sflag [#allocation10], %s15356_s30  ;;  %s12932_s17 = scalar_lea.hbm %s13423_s18, 128 }
  0x78   : > { %p12933_p8 = scmp.ne.s32.totalorder %s13423_s18, %s12932_s17  ;;  %s12937_s24 = scalar_lea.hbm %s15311_s3, 256 }
  0x79   : > { %p12938_p9 = scmp.lt.u32.totalorder %s13423_s18, %s15311_s3  ;;  %p12939_p11 = scmp.lt.u32.totalorder %s12937_s24, %s12932_s17 }
  0x7a   : > { %p12935_p10 = pnand %p12933_p8, %p13388_p13  ;;  %p12941_p4 = scmp.lt.u32.totalorder %s12932_s17, %s13423_s18 }
  0x7b   : > { %p12940_p1 = por %p12939_p11, %p12938_p9 }
  0x7c   : > { %p12936_p2 = pneg %p12935_p10 }
  0x7d   : > { %p12942_p5 = por %p12941_p4, %p12940_p1 }
  0x7f   : > { %p12943_p12 = pnand %p12942_p5, %p12936_p2 }
  0x81   : > { %12946 = shalt.err (!%p12943_p12)
}
  0x82   : > { %s12947_s9 = scalar_lea.vmem %s387_s14, 128  ;;  %s13196_s7 = smov [#allocation9]  }
  0x83   : > { %p12948_p0 = scmp.ne.s32.totalorder %s387_s14, %s12947_s9  ;;  %s12952_s30 = sshll.u32 %s13196_s7, 4  ;;  %s12953_s30 = int_to_ptr.vmem [resolvable:$false] %s12952_s30 }
  0x84   : > { %s12954_s21 = scalar_lea.vmem %s12953_s30, 256  ;;  %p12955_p8 = scmp.lt.s32.totalorder %s387_s14, %s12953_s30 }
  0x85   : > { %p12950_p3 = pnand %p12948_p0, %p13388_p13  ;;  %p12956_p10 = scmp.lt.s32.totalorder %s12954_s21, %s12947_s9 }
  0x87   : > { %p12951_p7 = pneg %p12950_p3  ;;  %p12957_p6 = por %p12956_p10, %p12955_p8 }
  0x89   : > { %p12958_p9 = pnand %p12957_p6, %p12951_p7 }
  0x8b   : > { %12961 = shalt.err (!%p12958_p9)
}
  0x8c   : > { %p15357_p11 = scmp.ne.s32.totalorder %s15354_s16, 0  ;;  %s13197_s17 = smov [#allocation3]  }
  0x8d   : > { %s277_s11 = sshll.u32 %s13197_s17, 4  ;;  %s13198_s24 = smov [#allocation14]   ;;  %s278_s11 = int_to_ptr.vmem [resolvable:$true] %s277_s11 }
  0x8e   : > { %12606 = dma.hbm_to_vmem [thread:$0]  (!%p15357_p11), %s13423_s18, 128, %s387_s14, %s13429_s22  }
  0x8f   : > { %s299_s23 = sshll.u32 %s13198_s24, 4  ;;  %s12962_s5 = scalar_lea.hbm %s15308_s0, 64  ;;  %s300_s23 = int_to_ptr.vmem [resolvable:$true] %s299_s23 }
  0x90   : > { %p12963_p6 = scmp.ne.s32.totalorder %s15308_s0, %s12962_s5  ;;  %p15358_p2 = scmp.ne.s32.totalorder %s15349_s26, 0 }
  0x91   : > { %p12969_p5 = scmp.lt.u32.totalorder %s12962_s5, %s15308_s0 }
  0x92   : > { %p12965_p1 = pnand %p12963_p6, %p15358_p2 }
  0x94   : > { %p12966_p4 = pneg %p12965_p1 }
  0x96   : > { %p12971_p12 = pnand %p12969_p5, %p12966_p4 }
  0x98   : > { %12974 = shalt.err (!%p12971_p12)
}
  0x99   : > { %s12975_s14 = scalar_lea.vmem %s278_s11, 64  ;;  %p12983_p8 = scmp.lt.s32.totalorder %s278_s11, %s278_s11 }
  0x9a   : > { %p12976_p0 = scmp.ne.s32.totalorder %s278_s11, %s12975_s14  ;;  %p12984_p10 = scmp.lt.s32.totalorder %s12975_s14, %s12975_s14 }
  0x9c   : > { %p12978_p3 = pnand %p12976_p0, %p15358_p2  ;;  %p12985_p9 = por %p12984_p10, %p12983_p8 }
  0x9e   : > { %p12979_p7 = pneg %p12978_p3 }
  0xa0   : > { %p12986_p11 = pnand %p12985_p9, %p12979_p7 }
  0xa2   : > { %12989 = shalt.err (!%p12986_p11)
}
  0xa3   : > { %p15359_p6 = scmp.ne.s32.totalorder %s15347_s20, 0  ;;  %s12990_s24 = scalar_lea.hbm %s15314_s6, 256 }
  0xa4   : > { %p12991_p1 = scmp.ne.s32.totalorder %s15314_s6, %s12990_s24  ;;  %p12997_p11 = scmp.lt.u32.totalorder %s12990_s24, %s15314_s6 }
  0xa5   : > { %12584 = dma.hbm_to_vmem [thread:$0]  (!%p15359_p6), %s15308_s0, 64, %s278_s11, [#allocation4]  }
  0xa6   : > { %p12993_p4 = pnand %p12991_p1, %p15358_p2 }
  0xa8   : > { %p12994_p5 = pneg %p12993_p4 }
  0xaa   : > { %p12999_p12 = pnand %p12997_p11, %p12994_p5 }
  0xac   : > { %13002 = shalt.err (!%p12999_p12)
}
  0xad   : > { %s13003_s21 = scalar_lea.vmem %s300_s23, 256  ;;  %p13011_p8 = scmp.lt.s32.totalorder %s300_s23, %s300_s23 }
  0xae   : > { %p13004_p0 = scmp.ne.s32.totalorder %s300_s23, %s13003_s21  ;;  %p13012_p10 = scmp.lt.s32.totalorder %s13003_s21, %s13003_s21 }
  0xb0   : > { %p13006_p3 = pnand %p13004_p0, %p15358_p2  ;;  %p13013_p9 = por %p13012_p10, %p13011_p8 }
  0xb2   : > { %p13007_p7 = pneg %p13006_p3 }
  0xb4   : > { %p13014_p13 = pnand %p13013_p9, %p13007_p7 }
  0xb6   : > { %13017 = shalt.err (!%p13014_p13)
}
  0xb7   : > { %12590 = dma.hbm_to_vmem [thread:$0]  (!%p15359_p6), %s15314_s6, 256, %s300_s23, [#allocation13]  }
  0xb8   : > { %s13199_s18 = smov [#allocation17]   ;;  %s15360_s5 = sshll.u32 %s13365_s25, 3 }
  0xb9   : > { %s323_s17 = sshll.u32 %s13199_s18, 4  ;;  %s359_s19 = scalar_lea.vmem [#allocation8], %s15360_s5  ;;  %s324_s17 = int_to_ptr.vmem [resolvable:$true] %s323_s17 }
  0xba   : > { %s367_s24 = sshll.u32 %s359_s19, 4  ;;  %s13018_s30 = scalar_lea.hbm %s15316_s8, 16  ;;  %s13487_s24 = int_to_ptr.vmem [resolvable:$true] %s367_s24 }
  0xbb   : > { %p13019_p13 = scmp.ne.s32.totalorder %s15316_s8, %s13018_s30  ;;  %p13025_p5 = scmp.lt.u32.totalorder %s13018_s30, %s15316_s8 }
  0xbd   : > { %p13021_p1 = pnand %p13019_p13, %p15358_p2 }
  0xbf   : > { %p13022_p4 = pneg %p13021_p1 }
  0xc1   : > { %p13027_p11 = pnand %p13025_p5, %p13022_p4 }
  0xc3   : > { %13030 = shalt.err (!%p13027_p11)
}
  0xc4   : > { %s13031_s14 = scalar_lea.vmem %s324_s17, 16  ;;  %s13038_s18 = scalar_lea.vmem %s324_s17, 32 }
  0xc5   : > { %p13032_p12 = scmp.ne.s32.totalorder %s324_s17, %s13031_s14  ;;  %p13039_p7 = scmp.lt.s32.totalorder %s324_s17, %s324_s17 }
  0xc6   : > { %p13040_p8 = scmp.lt.s32.totalorder %s13038_s18, %s13031_s14 }
  0xc7   : > { %p13034_p0 = pnand %p13032_p12, %p15358_p2 }
  0xc8   : > { %p13041_p10 = por %p13040_p8, %p13039_p7 }
  0xc9   : > { %p13035_p3 = pneg %p13034_p0 }
  0xcb   : > { %p13042_p9 = pnand %p13041_p10, %p13035_p3 }
  0xcd   : > { %13045 = shalt.err (!%p13042_p9)
}
  0xce   : > { %12596 = dma.hbm_to_vmem [thread:$0]  (!%p15359_p6), %s15316_s8, 16, %s324_s17, [#allocation16]  }
  0xcf   : > { %s13046_s26 = scalar_lea.hbm %s13418_s1, 128  ;;  %p15361_p13 = scmp.ne.s32.totalorder %s15355_s27, 0 }
  0xd0   : > { %p13047_p2 = scmp.ne.s32.totalorder %s13418_s1, %s13046_s26  ;;  %s13051_s30 = scalar_lea.hbm %s15310_s2, 256 }
  0xd1   : > { %p13052_p5 = scmp.lt.u32.totalorder %s13418_s1, %s15310_s2  ;;  %p13053_p11 = scmp.lt.u32.totalorder %s13051_s30, %s13046_s26 }
  0xd2   : > { %p13049_p1 = pnand %p13047_p2, %p15361_p13  ;;  %p13055_p0 = scmp.lt.u32.totalorder %s13046_s26, %s13418_s1 }
  0xd3   : > { %p13054_p12 = por %p13053_p11, %p13052_p5 }
  0xd4   : > { %p13050_p4 = pneg %p13049_p1 }
  0xd5   : > { %p13056_p3 = por %p13055_p0, %p13054_p12 }
  0xd7   : > { %p13057_p7 = pnand %p13056_p3, %p13050_p4 }
  0xd9   : > { %13060 = shalt.err (!%p13057_p7)
}
  0xda   : > { %s13061_s17 = scalar_lea.vmem %s13487_s24, 128  ;;  %s13200_s21 = smov [#allocation8]  }
  0xdb   : > { %p13062_p6 = scmp.ne.s32.totalorder %s13487_s24, %s13061_s17  ;;  %s13066_s23 = sshll.u32 %s13200_s21, 4  ;;  %s13067_s23 = int_to_ptr.vmem [resolvable:$false] %s13066_s23 }
  0xdc   : > { %s13068_s11 = scalar_lea.vmem %s13067_s23, 256  ;;  %p13069_p9 = scmp.lt.s32.totalorder %s13487_s24, %s13067_s23 }
  0xdd   : > { %p13064_p8 = pnand %p13062_p6, %p15361_p13  ;;  %p13070_p2 = scmp.lt.s32.totalorder %s13068_s11, %s13061_s17 }
  0xdf   : > { %p13065_p10 = pneg %p13064_p8  ;;  %p13071_p1 = por %p13070_p2, %p13069_p9 }
  0xe1   : > { %p13072_p5 = pnand %p13071_p1, %p13065_p10 }
  0xe3   : > { %13075 = shalt.err (!%p13072_p5)
}
  0xe4   : > { %p15362_p4 = scmp.ne.s32.totalorder %s15354_s16, 0  ;;  %s11078_s14 = sshll.u32 %s13365_s25, 13 }
  0xe5   : > { %s12276_s18 = sshll.u32 %s13186_s12, 17  ;;  %s397_s29 = scalar_lea.vmem [#allocation11], %s11078_s14 }
  0xe6   : > { %12603 = dma.hbm_to_vmem [thread:$0]  (!%p15362_p4), %s13418_s1, 128, %s13487_s24, %s13382_s28  }
  0xe7   : > { %s13534_s26 = scalar_lea.hbm %s15312_s4, %s12276_s18  ;;  %s405_s7 = sshll.u32 %s397_s29, 4  ;;  %s13536_s7 = int_to_ptr.vmem [resolvable:$true] %s405_s7 }
  0xe8   : > { %s13076_s30 = scalar_lea.hbm %s13534_s26, 131072  ;;  %s13081_s28 = scalar_lea.hbm %s15312_s4, 262144 }
  0xe9   : > { %p13077_p11 = scmp.ne.s32.totalorder %s13534_s26, %s13076_s30  ;;  %p13082_p3 = scmp.lt.u32.totalorder %s13534_s26, %s15312_s4 }
  0xea   : > { %p13083_p7 = scmp.lt.u32.totalorder %s13081_s28, %s13076_s30  ;;  %p13085_p8 = scmp.lt.u32.totalorder %s13076_s30, %s13534_s26 }
  0xeb   : > { %p13079_p12 = pnand %p13077_p11, %p15361_p13 }
  0xec   : > { %p13084_p6 = por %p13083_p7, %p13082_p3 }
  0xed   : > { %p13080_p0 = pneg %p13079_p12 }
  0xee   : > { %p13086_p10 = por %p13085_p8, %p13084_p6 }
  0xf0   : > { %p13087_p9 = pnand %p13086_p10, %p13080_p0 }
  0xf2   : > { %13090 = shalt.err (!%p13087_p9)
}
  0xf3   : > { %s13091_s9 = scalar_lea.vmem %s13536_s7, 131072  ;;  %s13201_s20 = smov [#allocation11]  }
  0xf4   : > { %p13092_p2 = scmp.ne.s32.totalorder %s13536_s7, %s13091_s9  ;;  %s13096_s17 = sshll.u32 %s13201_s20, 4  ;;  %s13097_s17 = int_to_ptr.vmem [resolvable:$false] %s13096_s17 }
  0xf5   : > { %s13098_s21 = scalar_lea.vmem %s13097_s17, 262144  ;;  %p13099_p11 = scmp.lt.s32.totalorder %s13536_s7, %s13097_s17 }
  0xf6   : > { %p13094_p1 = pnand %p13092_p2, %p15361_p13  ;;  %p13100_p12 = scmp.lt.s32.totalorder %s13098_s21, %s13091_s9 }
  0xf8   : > { %p13095_p5 = pneg %p13094_p1  ;;  %p13101_p3 = por %p13100_p12, %p13099_p11 }
  0xfa   : > { %p13102_p7 = pnand %p13101_p3, %p13095_p5 }
  0xfc   : > { %13105 = shalt.err (!%p13102_p7)
}
  0xfd   : > { %s15363_s23 = smov 64   ;;  %s15364_s11 = smov 1024  }
  0xfe   : > { %12609 = dma.hbm_to_vmem [thread:$0]  (!%p15362_p4), %s13534_s26, 131072, %s13536_s7, %s13429_s22, %s15364_s11, %s15364_s11, %s15363_s23  }
  0xff   : > { %p15365_p13 = scmp.ne.s32.totalorder %s15346_s15, 0 }
 0x100   : > { %p15366_p0 = scmp.eq.s32.totalorder (!%p15365_p13), %s13274_s13, 0 }
 0x101   : > { %417 = sbr.rel (%p15365_p13) target bundleno = 2274 (0x8e2), region = 56 }
 0x108   : > { %13149 = dma.done.wait (%p15366_p0), [#allocation4], 64   ;;  %p15367_p6 = pmov %p15366_p0 }
 0x109   : > { %s15368_s27 = sld [smem:[#allocation26_spill]]  ;;  %s423_s16 = sand.u32 1, %s13274_s13  }
 0x10a   : > { %13151 = vsyncadd (%p15367_p6), [#allocation4], 4294967232  ;;  %s425_s14 = sand.u32 1, %s13178_s10   ;;  %s424_s5 = scalar_lea.sflag [#allocation7], %s423_s16 }
 0x10b   : > { %s11084_s18 = sshll.u32 %s425_s14, 7 }
 0x10c   : > { %s13571_s19 = scalar_lea.vmem [#allocation6], %s11084_s18 }
 0x10f   : > { %p15369_p8 = scmp.ne.s32.totalorder %s15368_s27, 0 }
 0x111   : > { %13153 = dma.done.wait (%p15369_p8), %s424_s5, 2176  }
 0x112   : > { %13155 = vsyncadd (%p15369_p8), %s424_s5, 4294965120  ;;  %s11085_s15 = sshll.u32 %s425_s14, 3  ;;  %s442_s26 = scalar_lea.sflag [#allocation10], %s423_s16 }
 0x113   : > { %s13577_s22 = scalar_lea.vmem [#allocation8], %s11085_s15  ;;  %s13579_s29 = scalar_lea.vmem [#allocation9], %s11085_s15 }
 0x114   : > { %13157 = dma.done.wait (%p15369_p8), %s442_s26, 131200  }
 0x115   : > { %13159 = vsyncadd (%p15369_p8), %s442_s26, 4294836096  ;;  %s11087_s7 = sshll.u32 %s425_s14, 13  ;;  %p15370_p4 = pmov %p15366_p0 }
 0x116   : > { %s13585_s30 = scalar_lea.vmem [#allocation11], %s11087_s7 }
 0x117   : > { %13161 = dma.done.wait (%p15370_p4), [#allocation13], 512   ;;  %p15371_p10 = pmov %p15366_p0 }
 0x118   : > { %p15372_p9 = pmov %p15366_p0 }
 0x119   : > { %13163 = vsyncadd (%p15371_p10), [#allocation13], 4294966784 }
 0x11a   : > { %13165 = dma.done.wait (%p15372_p9), [#allocation16], 16400   ;;  %p15373_p2 = pmov %p15366_p0 }
 0x11b   : > { %v13202_v0 = vmov 0   ;;  %v521_v1 = vld [vmem:[%s13571_s19] sm:$0xff]  ;;  %v522_v3 = vld [vmem:[%s13571_s19 + $0x8] sm:$0xff]  ;;  %v523_v15 = vld [vmem:[%s13571_s19 + $0x10] sm:$0xff]  ;;  %vm617_vm0 = vcmask 261120   ;;  %p15374_p1 = scmp.ne.s32.totalorder %s13274_s13, 0 }
 0x11c   : > { %13167 = vsyncadd (%p15373_p2), [#allocation16], 4294950896  ;;  %653 = vmatprep.mubr.bf16.mxu0 %v13202_v0  ;;  %694 = vmatprep.mubr.bf16.mxu1 %v13202_v0  ;;  %v525_v2 = vld [vmem:[%s13571_s19 + $0x20] sm:$0xff]  ;;  %v526_v5 = vld [vmem:[%s13571_s19 + $0x28] sm:$0xff] }
 0x11d   : > { %v11093_v4 = vcombine.high %v521_v1, %v525_v2  ;;  %v11092_v6 = vcombine.low %v521_v1, %v525_v2  ;;  %v529_v7 = vld [vmem:[%s13571_s19 + $0x40] sm:$0xff]  ;;  %v11095_v9 = vcombine.high %v522_v3, %v526_v5  ;;  %v11094_v10 = vcombine.low %v522_v3, %v526_v5  ;;  %v530_v12 = vld [vmem:[%s13571_s19 + $0x48] sm:$0xff]  ;;  %v527_v16 = vld [vmem:[%s13571_s19 + $0x30] sm:$0xff] }
 0x11e   : > { %v533_v8 = vld [vmem:[%s13571_s19 + $0x60] sm:$0xff]  ;;  %v534_v13 = vld [vmem:[%s13571_s19 + $0x68] sm:$0xff]  ;;  %v524_v17 = vld [vmem:[%s13571_s19 + $0x18] sm:$0xff]  ;;  %v11097_v21 = vcombine.high %v523_v15, %v527_v16  ;;  %v11096_v28 = vcombine.low %v523_v15, %v527_v16 }
 0x11f   : > { %v11101_v11 = vcombine.high %v529_v7, %v533_v8  ;;  %621 = vmatprep.subr.bf16.mxu0 %v11093_v4  ;;  %v11103_v14 = vcombine.high %v530_v12, %v534_v13  ;;  %662 = vmatprep.subr.bf16.mxu1 %v11095_v9  ;;  %v11100_v18 = vcombine.low %v529_v7, %v533_v8  ;;  %v528_v19 = vld [vmem:[%s13571_s19 + $0x38] sm:$0xff]  ;;  %v531_v23 = vld [vmem:[%s13571_s19 + $0x50] sm:$0xff]  ;;  %v1187_v34 = vld [vmem:[%s13585_s30] sm:$0xff] }
 0x120   : > { %622 = vmatpush1.bf16.msra.mxu0 %v11092_v6  ;;  %663 = vmatpush1.bf16.msra.mxu1 %v11094_v10  ;;  %v11102_v20 = vcombine.low %v530_v12, %v534_v13  ;;  %v11099_v22 = vcombine.high %v524_v17, %v528_v19  ;;  %v535_v24 = vld [vmem:[%s13571_s19 + $0x70] sm:$0xff]  ;;  %v532_v25 = vld [vmem:[%s13571_s19 + $0x58] sm:$0xff]  ;;  %v11098_v29 = vcombine.low %v524_v17, %v528_v19  ;;  %v1195_v35 = vld [vmem:[%s13585_s30 + $0x40] sm:$0xff] }
 0x121   : > { %623 = vmatprep.subr.bf16.mxu0 %v11101_v11  ;;  %664 = vmatprep.subr.bf16.mxu1 %v11103_v14  ;;  %v536_v26 = vld [vmem:[%s13571_s19 + $0x78] sm:$0xff]  ;;  %v11105_v30 = vcombine.high %v531_v23, %v535_v24  ;;  %v11104_v32 = vcombine.low %v531_v23, %v535_v24  ;;  %v1188_v36 = vld [vmem:[%s13585_s30 + $0x8] sm:$0xff]  ;;  %v11113_v37 = vcombine.high %v1187_v34, %v1195_v35  ;;  %v1203_v42 = vld [vmem:[%s13585_s30 + $0x80] sm:$0xff] }
 0x122   : > { %v520_v27 = vld [vmem:[#allocation3] sm:$0xf]  ;;  %v11107_v31 = vcombine.high %v532_v25, %v536_v26  ;;  %v11106_v33 = vcombine.low %v532_v25, %v536_v26  ;;  %v1196_v38 = vld [vmem:[%s13585_s30 + $0x48] sm:$0xff]  ;;  %v11112_v39 = vcombine.low %v1187_v34, %v1195_v35  ;;  %v1211_v43 = vld [vmem:[%s13585_s30 + $0xc0] sm:$0xff] }
 0x123   : > { %v11114_v40 = vcombine.low %v1188_v36, %v1196_v38  ;;  %v11115_v41 = vcombine.high %v1188_v36, %v1196_v38  ;;  %v1204_v44 = vld [vmem:[%s13585_s30 + $0x88] sm:$0xff]  ;;  %v11129_v45 = vcombine.high %v1203_v42, %v1211_v43  ;;  %v11128_v47 = vcombine.low %v1203_v42, %v1211_v43  ;;  %v1219_v50 = vld [vmem:[%s13585_s30 + $0x100] sm:$0xff] }
 0x124   : > { %624 = vmatpush1.bf16.msra.mxu0 %v11100_v18  ;;  %665 = vmatpush1.bf16.msra.mxu1 %v11102_v20  ;;  %v1212_v46 = vld [vmem:[%s13585_s30 + $0xc8] sm:$0xff]  ;;  %v1227_v51 = vld [vmem:[%s13585_s30 + $0x140] sm:$0xff] }
 0x125   : > { %703 = vmatprep.subr.bf16.mxu0 %v11097_v21  ;;  %744 = vmatprep.subr.bf16.mxu1 %v11099_v22  ;;  %v11130_v48 = vcombine.low %v1204_v44, %v1212_v46  ;;  %v11131_v49 = vcombine.high %v1204_v44, %v1212_v46  ;;  %v1220_v52 = vld [vmem:[%s13585_s30 + $0x108] sm:$0xff]  ;;  %v11145_v53 = vcombine.high %v1219_v50, %v1227_v51  ;;  %v1235_v58 = vld [vmem:[%s13585_s30 + $0x180] sm:$0xff] }
 0x126   : > { %v1228_v54 = vld [vmem:[%s13585_s30 + $0x148] sm:$0xff]  ;;  %v11144_v55 = vcombine.low %v1219_v50, %v1227_v51  ;;  %v1243_v59 = vld [vmem:[%s13585_s30 + $0x1c0] sm:$0xff] }
 0x127   : > { %11108 = vmatmul.mubr.msk.bf16.vlgmr.msra.gmra.mrb[0].mxu0 %vm617_vm0, %v520_v27  ;;  %11109 = vmatmul.mubr.msk.bf16.vlgmr.msra.gmra.mrb[0].mxu1 %vm617_vm0, %v520_v27  ;;  %v11146_v56 = vcombine.low %v1220_v52, %v1228_v54  ;;  %v11147_v57 = vcombine.high %v1220_v52, %v1228_v54  ;;  %v1236_v60 = vld [vmem:[%s13585_s30 + $0x188] sm:$0xff]  ;;  %v11161_v61 = vcombine.high %v1235_v58, %v1243_v59  ;;  %v1251_v2 = vld [vmem:[%s13585_s30 + $0x200] sm:$0xff] }
 0x128   : > { %704 = vmatpush1.bf16.msra.mxu0 %v11096_v28  ;;  %745 = vmatpush1.bf16.msra.mxu1 %v11098_v29  ;;  %v1244_v62 = vld [vmem:[%s13585_s30 + $0x1c8] sm:$0xff]  ;;  %v11160_v63 = vcombine.low %v1235_v58, %v1243_v59  ;;  %v1259_v3 = vld [vmem:[%s13585_s30 + $0x240] sm:$0xff] }
 0x129   : > { %705 = vmatprep.subr.bf16.mxu0 %v11105_v30  ;;  %746 = vmatprep.subr.bf16.mxu1 %v11107_v31  ;;  %v11163_v1 = vcombine.high %v1236_v60, %v1244_v62  ;;  %v1252_v4 = vld [vmem:[%s13585_s30 + $0x208] sm:$0xff]  ;;  %v11177_v5 = vcombine.high %v1251_v2, %v1259_v3  ;;  %v11176_v7 = vcombine.low %v1251_v2, %v1259_v3  ;;  %v1267_v10 = vld [vmem:[%s13585_s30 + $0x280] sm:$0xff] }
 0x12a   : > { %735 = vmatprep.mubr.bf16.mxu0 %v13202_v0  ;;  %776 = vmatprep.mubr.bf16.mxu1 %v13202_v0  ;;  %v11162_v0 = vcombine.low %v1236_v60, %v1244_v62  ;;  %v1260_v6 = vld [vmem:[%s13585_s30 + $0x248] sm:$0xff]  ;;  %v1275_v11 = vld [vmem:[%s13585_s30 + $0x2c0] sm:$0xff] }
 0x12b   : > { %v11178_v8 = vcombine.low %v1252_v4, %v1260_v6  ;;  %v11179_v9 = vcombine.high %v1252_v4, %v1260_v6  ;;  %v1268_v12 = vld [vmem:[%s13585_s30 + $0x288] sm:$0xff]  ;;  %v11193_v13 = vcombine.high %v1267_v10, %v1275_v11  ;;  %v11192_v15 = vcombine.low %v1267_v10, %v1275_v11  ;;  %v1283_v18 = vld [vmem:[%s13585_s30 + $0x300] sm:$0xff] }
 0x12c   : > { %706 = vmatpush1.bf16.msra.mxu0 %v11104_v32  ;;  %747 = vmatpush1.bf16.msra.mxu1 %v11106_v33  ;;  %v1276_v14 = vld [vmem:[%s13585_s30 + $0x2c8] sm:$0xff]  ;;  %v1291_v19 = vld [vmem:[%s13585_s30 + $0x340] sm:$0xff] }
 0x12d   : > { %7331 = vmatprep.subr.bf16.mxu0 %v11113_v37  ;;  %7495 = vmatprep.subr.bf16.mxu1 %v11115_v41  ;;  %v11194_v16 = vcombine.low %v1268_v12, %v1276_v14  ;;  %v11195_v17 = vcombine.high %v1268_v12, %v1276_v14  ;;  %v1284_v20 = vld [vmem:[%s13585_s30 + $0x308] sm:$0xff]  ;;  %v11209_v21 = vcombine.high %v1283_v18, %v1291_v19  ;;  %v1299_v26 = vld [vmem:[%s13585_s30 + $0x380] sm:$0xff] }
 0x12e   : > { %v1292_v22 = vld [vmem:[%s13585_s30 + $0x348] sm:$0xff]  ;;  %v11208_v23 = vcombine.low %v1283_v18, %v1291_v19  ;;  %v1315_v34 = vld [vmem:[%s13585_s30 + $0x400] sm:$0xff] }
 0x12f   : > { %11110 = vmatmul.mubr.msk.bf16.vlgmr.msra.gmra.mrb[4].mxu0 %vm617_vm0, %v520_v27  ;;  %11111 = vmatmul.mubr.msk.bf16.vlgmr.msra.gmra.mrb[4].mxu1 %vm617_vm0, %v520_v27  ;;  %v11210_v24 = vcombine.low %v1284_v20, %v1292_v22  ;;  %v11211_v25 = vcombine.high %v1284_v20, %v1292_v22  ;;  %v1307_v27 = vld [vmem:[%s13585_s30 + $0x3c0] sm:$0xff]  ;;  %v1300_v28 = vld [vmem:[%s13585_s30 + $0x388] sm:$0xff] }
 0x130   : > { %7332 = vmatpush1.bf16.msra.mxu0 %v11112_v39  ;;  %7496 = vmatpush1.bf16.msra.mxu1 %v11114_v40  ;;  %v11225_v29 = vcombine.high %v1299_v26, %v1307_v27  ;;  %v1308_v30 = vld [vmem:[%s13585_s30 + $0x3c8] sm:$0xff]  ;;  %v11224_v31 = vcombine.low %v1299_v26, %v1307_v27  ;;  %v1323_v35 = vld [vmem:[%s13585_s30 + $0x440] sm:$0xff] }
 0x131   : > { %7333 = vmatprep.subr.bf16.mxu0 %v11129_v45  ;;  %7497 = vmatprep.subr.bf16.mxu1 %v11131_v49  ;;  %v11226_v32 = vcombine.low %v1300_v28, %v1308_v30  ;;  %v11227_v33 = vcombine.high %v1300_v28, %v1308_v30  ;;  %v1316_v36 = vld [vmem:[%s13585_s30 + $0x408] sm:$0xff]  ;;  %v11241_v37 = vcombine.high %v1315_v34, %v1323_v35  ;;  %v1331_v42 = vld [vmem:[%s13585_s30 + $0x480] sm:$0xff] }
 0x132   : > { %v1324_v38 = vld [vmem:[%s13585_s30 + $0x448] sm:$0xff]  ;;  %v11240_v39 = vcombine.low %v1315_v34, %v1323_v35  ;;  %v1339_v43 = vld [vmem:[%s13585_s30 + $0x4c0] sm:$0xff] }
 0x133   : > { %v11242_v40 = vcombine.low %v1316_v36, %v1324_v38  ;;  %v11243_v41 = vcombine.high %v1316_v36, %v1324_v38  ;;  %v1332_v44 = vld [vmem:[%s13585_s30 + $0x488] sm:$0xff]  ;;  %v11256_v45 = vcombine.low %v1331_v42, %v1339_v43  ;;  %v11257_v46 = vcombine.high %v1331_v42, %v1339_v43  ;;  %v1347_v50 = vld [vmem:[%s13585_s30 + $0x500] sm:$0xff] }
 0x134   : > { %7334 = vmatpush1.bf16.msra.mxu0 %v11128_v47  ;;  %7498 = vmatpush1.bf16.msra.mxu1 %v11130_v48  ;;  %v1340_v47 = vld [vmem:[%s13585_s30 + $0x4c8] sm:$0xff]  ;;  %v1355_v51 = vld [vmem:[%s13585_s30 + $0x540] sm:$0xff]  ;;  %v13203_v42 = vmov 1966171168  }
 0x135   : > { %7335 = vmatprep.subr.bf16.mxu0 %v11145_v53  ;;  %7499 = vmatprep.subr.bf16.mxu1 %v11147_v57  ;;  %v11258_v48 = vcombine.low %v1332_v44, %v1340_v47  ;;  %v11259_v49 = vcombine.high %v1332_v44, %v1340_v47  ;;  %v1348_v52 = vld [vmem:[%s13585_s30 + $0x508] sm:$0xff]  ;;  %v11273_v53 = vcombine.high %v1347_v50, %v1355_v51  ;;  %v1363_v58 = vld [vmem:[%s13585_s30 + $0x580] sm:$0xff]  ;;  %v13699_v43 = vunpack.c.l.s4 %v13203_v42 }
 0x136   : > { %v1356_v54 = vld [vmem:[%s13585_s30 + $0x548] sm:$0xff]  ;;  %v1371_v59 = vld [vmem:[%s13585_s30 + $0x5c0] sm:$0xff]  ;;  %v961_v44 = vlaneseq }
 0x137   : > { %v11275_v57 = vcombine.high %v1348_v52, %v1356_v54  ;;  %v1364_v60 = vld [vmem:[%s13585_s30 + $0x588] sm:$0xff]  ;;  %v1379_v2 = vld [vmem:[%s13585_s30 + $0x600] sm:$0xff] }
 0x138   : > { %7336 = vmatpush1.bf16.msra.mxu0 %v11144_v55  ;;  %7500 = vmatpush1.bf16.msra.mxu1 %v11146_v56  ;;  %v11272_v55 = vcombine.low %v1347_v50, %v1355_v51  ;;  %v11274_v56 = vcombine.low %v1348_v52, %v1356_v54  ;;  %v1372_v62 = vld [vmem:[%s13585_s30 + $0x5c8] sm:$0xff]  ;;  %v1387_v3 = vld [vmem:[%s13585_s30 + $0x640] sm:$0xff]  ;;  %v960_v50 = vunpack.c.0.s8 %v13699_v43  ;;  %v13711_v51 = vshrl.u32 %v961_v44, 7 }
 0x139   : > { %7337 = vmatprep.subr.bf16.mxu0 %v11161_v61  ;;  %7501 = vmatprep.subr.bf16.mxu1 %v11163_v1  ;;  %v11289_v61 = vcombine.high %v1363_v58, %v1371_v59  ;;  %v11291_v1 = vcombine.high %v1364_v60, %v1372_v62  ;;  %v1380_v4 = vld [vmem:[%s13585_s30 + $0x608] sm:$0xff]  ;;  %v1395_v10 = vld [vmem:[%s13585_s30 + $0x680] sm:$0xff] }
 0x13a   : > { %v1388_v6 = vld [vmem:[%s13585_s30 + $0x648] sm:$0xff]  ;;  %v1403_v11 = vld [vmem:[%s13585_s30 + $0x6c0] sm:$0xff] }
 0x13b   : > { %v1396_v12 = vld [vmem:[%s13585_s30 + $0x688] sm:$0xff]  ;;  %v1411_v18 = vld [vmem:[%s13585_s30 + $0x700] sm:$0xff] }
 0x13c   : > { %7338 = vmatpush1.bf16.msra.mxu0 %v11160_v63  ;;  %7502 = vmatpush1.bf16.msra.mxu1 %v11162_v0  ;;  %v11288_v63 = vcombine.low %v1363_v58, %v1371_v59  ;;  %v11290_v0 = vcombine.low %v1364_v60, %v1372_v62  ;;  %v1404_v14 = vld [vmem:[%s13585_s30 + $0x6c8] sm:$0xff]  ;;  %v1419_v19 = vld [vmem:[%s13585_s30 + $0x740] sm:$0xff] }
 0x13d   : > { %7339 = vmatprep.subr.bf16.mxu0 %v11177_v5  ;;  %7503 = vmatprep.subr.bf16.mxu1 %v11179_v9  ;;  %v11305_v5 = vcombine.high %v1379_v2, %v1387_v3  ;;  %v11307_v9 = vcombine.high %v1380_v4, %v1388_v6  ;;  %v1412_v20 = vld [vmem:[%s13585_s30 + $0x708] sm:$0xff]  ;;  %v1427_v26 = vld [vmem:[%s13585_s30 + $0x780] sm:$0xff] }
 0x13e   : > { %v1420_v22 = vld [vmem:[%s13585_s30 + $0x748] sm:$0xff]  ;;  %v1435_v27 = vld [vmem:[%s13585_s30 + $0x7c0] sm:$0xff] }
 0x13f   : > { %v1428_v28 = vld [vmem:[%s13585_s30 + $0x788] sm:$0xff]  ;;  %v11353_v30 = vcombine.high %v1427_v26, %v1435_v27  ;;  %v13680_v34 = vld [vmem:[%s13585_s30 + $0x800] sm:$0xff] }
 0x140   : > { %7340 = vmatpush1.bf16.msra.mxu0 %v11176_v7  ;;  %7504 = vmatpush1.bf16.msra.mxu1 %v11178_v8  ;;  %v11304_v7 = vcombine.low %v1379_v2, %v1387_v3  ;;  %v11306_v8 = vcombine.low %v1380_v4, %v1388_v6  ;;  %v13683_v35 = vld [vmem:[%s13585_s30 + $0x840] sm:$0xff]  ;;  %v13686_v36 = vld [vmem:[%s13585_s30 + $0x808] sm:$0xff] }
 0x141   : > { %7341 = vmatprep.subr.bf16.mxu0 %v11193_v13  ;;  %7505 = vmatprep.subr.bf16.mxu1 %v11195_v17  ;;  %v11321_v13 = vcombine.high %v1395_v10, %v1403_v11  ;;  %v11323_v17 = vcombine.high %v1396_v12, %v1404_v14  ;;  %v11369_v38 = vcombine.high %v13680_v34, %v13683_v35 }
 0x144   : > { %7342 = vmatpush1.bf16.msra.mxu0 %v11192_v15  ;;  %7506 = vmatpush1.bf16.msra.mxu1 %v11194_v16  ;;  %v11320_v15 = vcombine.low %v1395_v10, %v1403_v11  ;;  %v11322_v16 = vcombine.low %v1396_v12, %v1404_v14 }
 0x145   : > { %7343 = vmatprep.subr.bf16.mxu0 %v11209_v21  ;;  %7507 = vmatprep.subr.bf16.mxu1 %v11211_v25  ;;  %v11337_v21 = vcombine.high %v1411_v18, %v1419_v19  ;;  %v11339_v25 = vcombine.high %v1412_v20, %v1420_v22 }
 0x148   : > { %7344 = vmatpush1.bf16.msra.mxu0 %v11208_v23  ;;  %7508 = vmatpush1.bf16.msra.mxu1 %v11210_v24  ;;  %v11336_v23 = vcombine.low %v1411_v18, %v1419_v19  ;;  %v11338_v24 = vcombine.low %v1412_v20, %v1420_v22 }
 0x149   : > { %7345 = vmatprep.subr.bf16.mxu0 %v11225_v29  ;;  %7509 = vmatprep.subr.bf16.mxu1 %v11227_v33  ;;  %v11352_v29 = vcombine.low %v1427_v26, %v1435_v27 }
 0x14c   : > { %7346 = vmatpush1.bf16.msra.mxu0 %v11224_v31  ;;  %7510 = vmatpush1.bf16.msra.mxu1 %v11226_v32  ;;  %v1436_v31 = vld [vmem:[%s13585_s30 + $0x7c8] sm:$0xff] }
 0x14d   : > { %7347 = vmatprep.subr.bf16.mxu0 %v11241_v37  ;;  %7511 = vmatprep.subr.bf16.mxu1 %v11243_v41  ;;  %v11354_v32 = vcombine.low %v1428_v28, %v1436_v31  ;;  %v11355_v33 = vcombine.high %v1428_v28, %v1436_v31  ;;  %v11368_v37 = vcombine.low %v13680_v34, %v13683_v35  ;;  %v1499_v34 = vld [vmem:[%s13585_s30 + $0x9c0] sm:$0xff]  ;;  %v1492_v35 = vld [vmem:[%s13585_s30 + $0x988] sm:$0xff] }
 0x150   : > { %7348 = vmatpush1.bf16.msra.mxu0 %v11240_v39  ;;  %7512 = vmatpush1.bf16.msra.mxu1 %v11242_v40  ;;  %v13693_v39 = vld [vmem:[%s13585_s30 + $0x848] sm:$0xff] }
 0x151   : > { %7349 = vmatprep.subr.bf16.mxu0 %v11257_v46  ;;  %7513 = vmatprep.subr.bf16.mxu1 %v11259_v49  ;;  %v11370_v40 = vcombine.low %v13686_v36, %v13693_v39  ;;  %v11371_v41 = vcombine.high %v13686_v36, %v13693_v39 }
 0x154   : > { %7350 = vmatpush1.bf16.msra.mxu0 %v11256_v45  ;;  %7514 = vmatpush1.bf16.msra.mxu1 %v11258_v48 }
 0x155   : > { %7351 = vmatprep.subr.bf16.mxu0 %v11273_v53  ;;  %7515 = vmatprep.subr.bf16.mxu1 %v11275_v57 }
 0x158   : > { %7352 = vmatpush1.bf16.msra.mxu0 %v11272_v55  ;;  %7516 = vmatpush1.bf16.msra.mxu1 %v11274_v56 }
 0x159   : > { %7353 = vmatprep.subr.bf16.mxu0 %v11289_v61  ;;  %7517 = vmatprep.subr.bf16.mxu1 %v11291_v1 }
 0x15c   : > { %7354 = vmatpush1.bf16.msra.mxu0 %v11288_v63  ;;  %7518 = vmatpush1.bf16.msra.mxu1 %v11290_v0 }
 0x15d   : > { %7355 = vmatprep.subr.bf16.mxu0 %v11305_v5  ;;  %7519 = vmatprep.subr.bf16.mxu1 %v11307_v9 }
 0x160   : > { %7356 = vmatpush1.bf16.msra.mxu0 %v11304_v7  ;;  %7520 = vmatpush1.bf16.msra.mxu1 %v11306_v8 }
 0x161   : > { %7357 = vmatprep.subr.bf16.mxu0 %v11321_v13  ;;  %7521 = vmatprep.subr.bf16.mxu1 %v11323_v17 }
 0x164   : > { %7358 = vmatpush1.bf16.msra.mxu0 %v11320_v15  ;;  %7522 = vmatpush1.bf16.msra.mxu1 %v11322_v16 }
 0x165   : > { %7359 = vmatprep.subr.bf16.mxu0 %v11337_v21  ;;  %7523 = vmatprep.subr.bf16.mxu1 %v11339_v25 }
 0x168   : > { %7360 = vmatpush1.bf16.msra.mxu0 %v11336_v23  ;;  %7524 = vmatpush1.bf16.msra.mxu1 %v11338_v24 }
 0x169   : > { %7361 = vmatprep.subr.bf16.mxu0 %v11353_v30  ;;  %7525 = vmatprep.subr.bf16.mxu1 %v11355_v33 }
 0x16c   : > { %7362 = vmatpush1.bf16.msra.mxu0 %v11352_v29  ;;  %7526 = vmatpush1.bf16.msra.mxu1 %v11354_v32 }
 0x16d   : > { %7372 = vmatprep.subr.bf16.mxu0 %v11369_v38  ;;  %7536 = vmatprep.subr.bf16.mxu1 %v11371_v41 }
 0x1fa   : > { %v13701_v45 = vpop.f32.mrb[0].mxu0  ;;  %v13706_v48 = vpop.f32.mrb[0].mxu1 }
 0x1fb   : > { %v785_v46 = vrot.slane %v13701_v45, 4  ;;  %v841_v47 = vmul.f32 %v13701_v45, %v13701_v45  ;;  %v13708_v49 = vpop.f32.mrb[1].mxu0  ;;  %v797_v52 = vrot.slane %v13706_v48, 4  ;;  %v843_v53 = vmul.f32 %v13706_v48, %v13706_v48  ;;  %v13719_v56 = vpop.f32.mrb[1].mxu1 }
 0x1fc   : > { %v791_v54 = vrot.slane %v13708_v49, 4  ;;  %v842_v55 = vmul.f32 %v13708_v49, %v13708_v49  ;;  %v659_v57 = vpop.f32.mrb[2].mxu0  ;;  %v803_v60 = vrot.slane %v13719_v56, 4  ;;  %v844_v61 = vmul.f32 %v13719_v56, %v13719_v56  ;;  %v700_v62 = vpop.f32.mrb[2].mxu1 }
 0x1fd   : > { %v786_v58 = vadd.f32 %v785_v46, %v13701_v45  ;;  %v849_v59 = vrot.slane %v841_v47, 4  ;;  %v660_v63 = vpop.f32.mrb[3].mxu0  ;;  %v798_v0 = vadd.f32 %v797_v52, %v13706_v48  ;;  %v861_v1 = vrot.slane %v843_v53, 4  ;;  %v701_v4 = vpop.f32.mrb[3].mxu1 }
 0x1fe   : > { %v792_v2 = vadd.f32 %v791_v54, %v13708_v49  ;;  %v855_v3 = vrot.slane %v842_v55, 4  ;;  %v804_v7 = vadd.f32 %v803_v60, %v13719_v56  ;;  %v867_v8 = vrot.slane %v844_v61, 4 }
 0x1ff   : > { %v787_v5 = vrot.slane %v786_v58, 2  ;;  %v850_v6 = vadd.f32 %v849_v59, %v841_v47  ;;  %v799_v9 = vrot.slane %v798_v0, 2  ;;  %v862_v10 = vadd.f32 %v861_v1, %v843_v53 }
 0x200   : > { %v793_v11 = vrot.slane %v792_v2, 2  ;;  %v856_v12 = vadd.f32 %v855_v3, %v842_v55  ;;  %v805_v15 = vrot.slane %v804_v7, 2  ;;  %v868_v16 = vadd.f32 %v867_v8, %v844_v61 }
 0x201   : > { %v788_v13 = vadd.f32 %v787_v5, %v786_v58  ;;  %v851_v14 = vrot.slane %v850_v6, 2  ;;  %v800_v17 = vadd.f32 %v799_v9, %v798_v0  ;;  %v863_v18 = vrot.slane %v862_v10, 2 }
 0x202   : > { %v794_v19 = vadd.f32 %v793_v11, %v792_v2  ;;  %v857_v20 = vrot.slane %v856_v12, 2  ;;  %v13728_v21 = vpop.f32.mrb[4].mxu0  ;;  %v806_v24 = vadd.f32 %v805_v15, %v804_v7  ;;  %v869_v25 = vrot.slane %v868_v16, 2  ;;  %v13730_v26 = vpop.f32.mrb[4].mxu1 }
 0x203   : > { %v789_v22 = vrot.slane %v788_v13, 1  ;;  %v852_v23 = vadd.f32 %v851_v14, %v850_v6  ;;  %v13732_v27 = vpop.f32.mrb[5].mxu0  ;;  %v801_v28 = vrot.slane %v800_v17, 1  ;;  %v864_v29 = vadd.f32 %v863_v18, %v862_v10  ;;  %v13734_v32 = vpop.f32.mrb[5].mxu1 }
 0x204   : > { %v795_v30 = vrot.slane %v794_v19, 1  ;;  %v858_v31 = vadd.f32 %v857_v20, %v856_v12  ;;  %v741_v33 = vpop.f32.mrb[6].mxu0  ;;  %v807_v42 = vrot.slane %v806_v24, 1  ;;  %v870_v44 = vadd.f32 %v869_v25, %v868_v16  ;;  %v782_v46 = vpop.f32.mrb[6].mxu1 }
 0x205   : > { %v790_v38 = vadd.f32 %v789_v22, %v788_v13  ;;  %v853_v41 = vrot.slane %v852_v23, 1  ;;  %v742_v47 = vpop.f32.mrb[7].mxu0  ;;  %v802_v52 = vadd.f32 %v801_v28, %v800_v17  ;;  %v865_v53 = vrot.slane %v864_v29, 1  ;;  %v783_v57 = vpop.f32.mrb[7].mxu1 }
 0x206   : > { %v796_v54 = vadd.f32 %v795_v30, %v794_v19  ;;  %v859_v55 = vrot.slane %v858_v31, 1  ;;  %v808_v60 = vadd.f32 %v807_v42, %v806_v24  ;;  %v871_v61 = vrot.slane %v870_v44, 1 }
 0x207   : > { %v13736_v58 = vmul.f32 0.125, %v790_v38  ;;  %v854_v59 = vadd.f32 %v853_v41, %v852_v23  ;;  %v13738_v62 = vmul.f32 0.125, %v802_v52  ;;  %v866_v63 = vadd.f32 %v865_v53, %v864_v29 }
 0x208   : > { %v13740_v0 = vmul.f32 0.125, %v796_v54  ;;  %v860_v1 = vadd.f32 %v859_v55, %v858_v31  ;;  %v13744_v4 = vmul.f32 0.125, %v808_v60  ;;  %v872_v5 = vadd.f32 %v871_v61, %v870_v44 }
 0x209   : > { %v897_v2 = vmul.f32 0.125, %v854_v59  ;;  %v905_v3 = vmul.f32 %v13736_v58, %v13736_v58  ;;  %v899_v6 = vmul.f32 0.125, %v866_v63  ;;  %v907_v7 = vmul.f32 %v13738_v62, %v13738_v62 }
 0x20a   : > { %v898_v8 = vmul.f32 0.125, %v860_v1  ;;  %v906_v9 = vmul.f32 %v13740_v0, %v13740_v0  ;;  %v900_v11 = vmul.f32 0.125, %v872_v5  ;;  %v908_v12 = vmul.f32 %v13744_v4, %v13744_v4 }
 0x20b   : > { %v913_v10 = vsub.f32 %v897_v2, %v905_v3  ;;  %v809_v13 = vrot.slane %v13728_v21, 4  ;;  %v915_v14 = vsub.f32 %v899_v6, %v907_v7  ;;  %v845_v16 = vmul.f32 %v13728_v21, %v13728_v21 }
 0x20c   : > { %v914_v15 = vsub.f32 %v898_v8, %v906_v9  ;;  %v821_v17 = vrot.slane %v13730_v26, 4  ;;  %v916_v19 = vsub.f32 %v900_v11, %v908_v12  ;;  %v847_v22 = vmul.f32 %v13730_v26, %v13730_v26 }
 0x20d   : > { %v921_v18 = vmax.f32 %v913_v10, 0.0  ;;  %v810_v20 = vadd.f32 %v809_v13, %v13728_v21  ;;  %v923_v23 = vmax.f32 %v915_v14, 0.0  ;;  %v873_v25 = vrot.slane %v845_v16, 4 }
 0x20e   : > { %v922_v24 = vmax.f32 %v914_v15, 0.0  ;;  %v822_v28 = vadd.f32 %v821_v17, %v13730_v26  ;;  %v924_v30 = vmax.f32 %v916_v19, 0.0  ;;  %v885_v33 = vrot.slane %v847_v22, 4 }
 0x20f   : > { %v930_v29 = vadd.f32 1e-05, %v921_v18  ;;  %v811_v31 = vrot.slane %v810_v20, 2  ;;  %v932_v38 = vadd.f32 1e-05, %v923_v23  ;;  %v874_v42 = vadd.f32 %v873_v25, %v845_v16 }
 0x210   : > { %v931_v41 = vadd.f32 1e-05, %v922_v24  ;;  %v823_v44 = vrot.slane %v822_v28, 2  ;;  %v933_v46 = vadd.f32 1e-05, %v924_v30  ;;  %v886_v52 = vadd.f32 %v885_v33, %v847_v22 }
 0x211   : > { %12668 = vrsqrt.f32 %v930_v29  ;;  %v812_v47 = vadd.f32 %v811_v31, %v810_v20  ;;  %v875_v53 = vrot.slane %v874_v42, 2  ;;  %v815_v55 = vrot.slane %v13732_v27, 4 }
 0x212   : > { %12670 = vrsqrt.f32 %v932_v38  ;;  %v824_v54 = vadd.f32 %v823_v44, %v822_v28  ;;  %v887_v59 = vrot.slane %v886_v52, 2  ;;  %v846_v60 = vmul.f32 %v13732_v27, %v13732_v27 }
 0x213   : > { %12672 = vrsqrt.f32 %v931_v41  ;;  %v813_v57 = vrot.slane %v812_v47, 1  ;;  %v876_v61 = vadd.f32 %v875_v53, %v874_v42  ;;  %v816_v1 = vadd.f32 %v815_v55, %v13732_v27 }
 0x214   : > { %12674 = vrsqrt.f32 %v933_v46  ;;  %v825_v63 = vrot.slane %v824_v54, 1  ;;  %v888_v3 = vadd.f32 %v887_v59, %v886_v52  ;;  %v879_v5 = vrot.slane %v846_v60, 4 }
 0x215   : > { %v814_v2 = vadd.f32 %v813_v57, %v812_v47  ;;  %v827_v6 = vrot.slane %v13734_v32, 4  ;;  %v877_v7 = vrot.slane %v876_v61, 1  ;;  %v817_v9 = vrot.slane %v816_v1, 2 }
 0x216   : > { %v826_v8 = vadd.f32 %v825_v63, %v824_v54  ;;  %v848_v10 = vmul.f32 %v13734_v32, %v13734_v32  ;;  %v889_v12 = vrot.slane %v888_v3, 1  ;;  %v880_v13 = vadd.f32 %v879_v5, %v846_v60 }
 0x217   : > { %v13767_v11 = vmul.f32 0.125, %v814_v2  ;;  %v828_v14 = vadd.f32 %v827_v6, %v13734_v32  ;;  %v878_v15 = vadd.f32 %v877_v7, %v876_v61  ;;  %v818_v17 = vadd.f32 %v817_v9, %v816_v1 }
 0x218   : > { %v13770_v16 = vmul.f32 0.125, %v826_v8  ;;  %v891_v18 = vrot.slane %v848_v10, 4  ;;  %v890_v20 = vadd.f32 %v889_v12, %v888_v3  ;;  %v881_v22 = vrot.slane %v880_v13, 2 }
 0x219   : > { %v909_v19 = vmul.f32 %v13767_v11, %v13767_v11  ;;  %v829_v23 = vrot.slane %v828_v14, 2  ;;  %v901_v24 = vmul.f32 0.125, %v878_v15  ;;  %v819_v28 = vrot.slane %v818_v17, 1 }
 0x21a   : > { %v911_v25 = vmul.f32 %v13770_v16, %v13770_v16  ;;  %v892_v29 = vadd.f32 %v891_v18, %v848_v10  ;;  %v903_v31 = vmul.f32 0.125, %v890_v20  ;;  %v882_v33 = vadd.f32 %v881_v22, %v880_v13 }
 0x21b   : > { %v12669_v30 = vpop.eup %12668  ;;  %v830_v38 = vadd.f32 %v829_v23, %v828_v14  ;;  %v13779_v42 = vsub.s32 %v960_v50, %v13711_v51  ;;  %v917_v44 = vsub.f32 %v901_v24, %v909_v19  ;;  %v820_v46 = vadd.f32 %v819_v28, %v818_v17 }
 0x21c   : > { %v12671_v41 = vpop.eup %12670  ;;  %v893_v47 = vrot.slane %v892_v29, 2  ;;  %v883_v53 = vrot.slane %v882_v33, 1  ;;  %v919_v59 = vsub.f32 %v903_v31, %v911_v25 }
 0x21d   : > { %v12673_v52 = vpop.eup %12672  ;;  %v831_v54 = vrot.slane %v830_v38, 1  ;;  %v13781_v60 = vmul.f32 0.125, %v820_v46  ;;  %v925_v1 = vmax.f32 %v917_v44, 0.0 }
 0x21e   : > { %v12675_v55 = vpop.eup %12674  ;;  %v954_v57 = vcombine.low %v12669_v30, %v12673_v52  ;;  %v894_v61 = vadd.f32 %v893_v47, %v892_v29  ;;  %v884_v2 = vadd.f32 %v883_v53, %v882_v33  ;;  %v927_v9 = vmax.f32 %v919_v59, 0.0  ;;  %v929_v52 = vld [vmem:[%s13577_s22] sm:$0xff] }
 0x21f   : > { %v955_v63 = vcombine.low %v12671_v41, %v12675_v55  ;;  %v832_v3 = vadd.f32 %v831_v54, %v830_v38  ;;  %v910_v50 = vmul.f32 %v13781_v60, %v13781_v60  ;;  %v934_v13 = vadd.f32 1e-05, %v925_v1 }
 0x220   : > { %v964_v43 = vrot.slane %v954_v57, %v13779_v42  ;;  %v895_v5 = vrot.slane %v894_v61, 1  ;;  %v902_v7 = vmul.f32 0.125, %v884_v2  ;;  %v936_v19 = vadd.f32 1e-05, %v927_v9 }
 0x221   : > { %v971_v6 = vrot.slane %v955_v63, %v13779_v42  ;;  %v840_v8 = vmul.f32 0.125, %v832_v3  ;;  %12676 = vrsqrt.f32 %v934_v13  ;;  %v13793_v53 = vsub.s32 0, %v13711_v51 }
 0x222   : > { %v896_v10 = vadd.f32 %v895_v5, %v894_v61  ;;  %v918_v14 = vsub.f32 %v902_v7, %v910_v50  ;;  %v13796_v55 = vsub.s32 1, %v13711_v51  ;;  %v13799_v57 = vsub.s32 2, %v13711_v51 }
 0x223   : > { %v986_v12 = vcombine.low %v964_v43, %v971_v6  ;;  %v912_v15 = vmul.f32 %v840_v8, %v840_v8  ;;  %v13802_v59 = vsub.s32 3, %v13711_v51  ;;  %v13805_v61 = vsub.s32 4, %v13711_v51 }
 0x224   : > { %v904_v17 = vmul.f32 0.125, %v896_v10  ;;  %v926_v18 = vmax.f32 %v918_v14, 0.0  ;;  %v13808_v63 = vsub.s32 5, %v13711_v51  ;;  %v13811_v1 = vsub.s32 6, %v13711_v51 }
 0x225   : > { %v994_v46 = vrot.slane %v986_v12, %v13779_v42  ;;  %v13814_v2 = vsub.s32 7, %v13711_v51 }
 0x226   : > { %v920_v20 = vsub.f32 %v904_v17, %v912_v15  ;;  %v935_v22 = vadd.f32 1e-05, %v926_v18 }
 0x228   : > { %v928_v23 = vmax.f32 %v920_v20, 0.0  ;;  %12678 = vrsqrt.f32 %v935_v22 }
 0x229   : > { %12680 = vrsqrt.f32 %v936_v19 }
 0x22a   : > { %v937_v24 = vadd.f32 1e-05, %v928_v23 }
 0x22b   : > { %v12677_v25 = vpop.eup %12676 }
 0x22c   : > { %12682 = vrsqrt.f32 %v937_v24 }
 0x232   : > { %v12679_v28 = vpop.eup %12678 }
 0x233   : > { %v12681_v29 = vpop.eup %12680  ;;  %v956_v30 = vcombine.low %v12677_v25, %v12679_v28 }
 0x235   : > { %v978_v33 = vrot.slane %v956_v30, %v13779_v42 }
 0x236   : > { %v12683_v31 = vpop.eup %12682 }
 0x237   : > { %v957_v38 = vcombine.low %v12681_v29, %v12683_v31 }
 0x239   : > { %v985_v41 = vrot.slane %v957_v38, %v13779_v42 }
 0x23b   : > { %v987_v44 = vcombine.low %v978_v33, %v985_v41  ;;  %v1005_v33 = vld [vmem:[%s13579_s29] sm:$0xff] }
 0x23d   : > { %v1001_v47 = vrot.slane %v987_v44, %v13779_v42 }
 0x23f   : > { %v1002_v54 = vcombine.low %v994_v46, %v1001_v47 }
 0x241   : > { %v1004_v3 = vmul.f32 %v1002_v54, %v929_v52 }
 0x243   : > { %v1010_v43 = vrot.slane %v1004_v3, %v13793_v53  ;;  %v1014_v50 = vrot.slane %v1004_v3, %v13796_v55  ;;  %v1018_v5 = vrot.slane %v1004_v3, %v13799_v57  ;;  %v1022_v6 = vrot.slane %v1004_v3, %v13802_v59 }
 0x244   : > { %v1026_v7 = vrot.slane %v1004_v3, %v13805_v61  ;;  %v1030_v9 = vrot.slane %v1004_v3, %v13808_v63  ;;  %v1034_v10 = vrot.slane %v1004_v3, %v13811_v1  ;;  %v1038_v12 = vrot.slane %v1004_v3, %v13814_v2 }
 0x245   : > { %v1047_v51 = vmul.f32 %v1010_v43, %v13736_v58  ;;  %v1048_v13 = vmul.f32 %v1014_v50, %v13740_v0  ;;  %v1049_v14 = vmul.f32 %v1018_v5, %v13738_v62  ;;  %v1050_v15 = vmul.f32 %v1022_v6, %v13744_v4 }
 0x246   : > { %v1051_v17 = vmul.f32 %v1026_v7, %v13767_v11  ;;  %v1052_v18 = vmul.f32 %v1030_v9, %v13781_v60  ;;  %v1053_v19 = vmul.f32 %v1034_v10, %v13770_v16  ;;  %v1054_v20 = vmul.f32 %v1038_v12, %v840_v8 }
 0x247   : > { %v1063_v22 = vcombine.low %v1047_v51, %v1048_v13  ;;  %v1064_v23 = vcombine.low %v1049_v14, %v1050_v15  ;;  %v1114_v24 = vmul.f32 %v1010_v43, %v13701_v45  ;;  %v1115_v25 = vmul.f32 %v1014_v50, %v13708_v49  ;;  %v1459_v51 = vld [vmem:[%s13585_s30 + $0x880] sm:$0xff]  ;;  %v1460_v15 = vld [vmem:[%s13585_s30 + $0x888] sm:$0xff] }
 0x248   : > { %v1065_v58 = vcombine.low %v1051_v17, %v1052_v18  ;;  %v1066_v0 = vcombine.low %v1053_v19, %v1054_v20  ;;  %v1116_v62 = vmul.f32 %v1018_v5, %v13706_v48  ;;  %v1117_v4 = vmul.f32 %v1022_v6, %v13719_v56  ;;  %v1467_v14 = vld [vmem:[%s13585_s30 + $0x8c0] sm:$0xff]  ;;  %v1468_v17 = vld [vmem:[%s13585_s30 + $0x8c8] sm:$0xff] }
 0x249   : > { %v1073_v11 = vrot.slane %v1063_v22, %v13779_v42  ;;  %v1080_v60 = vrot.slane %v1064_v23, %v13779_v42  ;;  %v1118_v16 = vmul.f32 %v1026_v7, %v13728_v21  ;;  %v1119_v8 = vmul.f32 %v1030_v9, %v13732_v27  ;;  %v1475_v20 = vld [vmem:[%s13585_s30 + $0x900] sm:$0xff] }
 0x24a   : > { %v1087_v28 = vrot.slane %v1065_v58, %v13779_v42  ;;  %v1094_v45 = vrot.slane %v1066_v0, %v13779_v42  ;;  %v1120_v49 = vmul.f32 %v1034_v10, %v13730_v26  ;;  %v1121_v29 = vmul.f32 %v1038_v12, %v13734_v32  ;;  %v1484_v58 = vld [vmem:[%s13585_s30 + $0x948] sm:$0xff] }
 0x24b   : > { %v1095_v30 = vcombine.low %v1073_v11, %v1080_v60  ;;  %v11385_v22 = vcombine.high %v1459_v51, %v1467_v14  ;;  %v11387_v23 = vcombine.high %v1460_v15, %v1468_v17 }
 0x24c   : > { %v1096_v48 = vcombine.low %v1087_v28, %v1094_v45  ;;  %v1507_v28 = vld [vmem:[%s13585_s30 + $0xa00] sm:$0xff] }
 0x24d   : > { %v1103_v56 = vrot.slane %v1095_v30, %v13779_v42  ;;  %v1515_v45 = vld [vmem:[%s13585_s30 + $0xa40] sm:$0xff] }
 0x24e   : > { %v1110_v31 = vrot.slane %v1096_v48, %v13779_v42 }
 0x250   : > { %v1111_v38 = vcombine.low %v1103_v56, %v1110_v31  ;;  %v11433_v56 = vcombine.high %v1507_v28, %v1515_v45 }
 0x252   : > { %v1113_v41 = vsub.f32 %v1005_v33, %v1111_v38  ;;  %v1523_v33 = vld [vmem:[%s13585_s30 + $0xa80] sm:$0xff] }
 0x253   : > { %v1531_v38 = vld [vmem:[%s13585_s30 + $0xac0] sm:$0xff] }
 0x254   : > { %v1142_v21 = vrot.slane %v1113_v41, %v13805_v61  ;;  %v1146_v27 = vrot.slane %v1113_v41, %v13808_v63  ;;  %v1150_v44 = vrot.slane %v1113_v41, %v13811_v1  ;;  %v1154_v26 = vrot.slane %v1113_v41, %v13814_v2 }
 0x255   : > { %v1130_v32 = vrot.slane %v1113_v41, %v13796_v55  ;;  %v1126_v46 = vrot.slane %v1113_v41, %v13793_v53  ;;  %v1138_v47 = vrot.slane %v1113_v41, %v13802_v59  ;;  %v1134_v52 = vrot.slane %v1113_v41, %v13799_v57  ;;  %v1524_v41 = vld [vmem:[%s13585_s30 + $0xa88] sm:$0xff] }
 0x256   : > { %v13854_v54 = vadd.f32 %v1142_v21, %v1118_v16  ;;  %v13856_v3 = vadd.f32 %v1146_v27, %v1119_v8  ;;  %v13858_v43 = vadd.f32 %v1150_v44, %v1120_v49  ;;  %v13860_v50 = vadd.f32 %v1154_v26, %v1121_v29  ;;  %v1491_v16 = vld [vmem:[%s13585_s30 + $0x980] sm:$0xff]  ;;  %v1508_v49 = vld [vmem:[%s13585_s30 + $0xa08] sm:$0xff] }
 0x257   : > { %v1164_v5 = vadd.f32 %v1130_v32, %v1115_v25  ;;  %v1163_v6 = vadd.f32 %v1126_v46, %v1114_v24  ;;  %v1166_v7 = vadd.f32 %v1138_v47, %v1117_v4  ;;  %v13862_v9 = vadd.f32 %v1134_v52, %v1116_v62  ;;  %v1483_v24 = vld [vmem:[%s13585_s30 + $0x940] sm:$0xff]  ;;  %v1476_v25 = vld [vmem:[%s13585_s30 + $0x908] sm:$0xff] }
 0x258   : > { %v11384_v62 = vcombine.low %v1459_v51, %v1467_v14  ;;  %v11386_v4 = vcombine.low %v1460_v15, %v1468_v17  ;;  %v11401_v11 = vcombine.high %v1475_v20, %v1483_v24  ;;  %v11403_v60 = vcombine.high %v1476_v25, %v1484_v58  ;;  %v1516_v29 = vld [vmem:[%s13585_s30 + $0xa48] sm:$0xff]  ;;  %v1539_v46 = vld [vmem:[%s13585_s30 + $0xb00] sm:$0xff] }
 0x259   : > { %v1172_v10 = vmax.f32 %v1164_v5, 0.0  ;;  %v1171_v12 = vmax.f32 %v1163_v6, 0.0  ;;  %v1174_v13 = vmax.f32 %v1166_v7, 0.0  ;;  %v11400_v36 = vcombine.low %v1475_v20, %v1483_v24  ;;  %v1532_v21 = vld [vmem:[%s13585_s30 + $0xac8] sm:$0xff]  ;;  %v1547_v47 = vld [vmem:[%s13585_s30 + $0xb40] sm:$0xff] }
 0x25a   : > { %v11402_v39 = vcombine.low %v1476_v25, %v1484_v58  ;;  %v11416_v30 = vcombine.low %v1491_v16, %v1499_v34  ;;  %v11435_v31 = vcombine.high %v1508_v49, %v1516_v29  ;;  %v11432_v27 = vcombine.low %v1507_v28, %v1515_v45  ;;  %v1540_v52 = vld [vmem:[%s13585_s30 + $0xb08] sm:$0xff]  ;;  %v1555_v51 = vld [vmem:[%s13585_s30 + $0xb80] sm:$0xff] }
 0x25b   : > { %v13868_v18 = vpack.c.bf16 %v1172_v10, %v1172_v10  ;;  %v13870_v19 = vpack.c.bf16 %v1171_v12, %v1171_v12  ;;  %v13880_v0 = vpack.c.bf16 %v1174_v13, %v1174_v13  ;;  %v11434_v44 = vcombine.low %v1508_v49, %v1516_v29  ;;  %v1548_v5 = vld [vmem:[%s13585_s30 + $0xb48] sm:$0xff]  ;;  %v1563_v13 = vld [vmem:[%s13585_s30 + $0xbc0] sm:$0xff] }
 0x25c   : > { %v11449_v26 = vcombine.high %v1523_v33, %v1531_v38  ;;  %v11451_v32 = vcombine.high %v1524_v41, %v1532_v21  ;;  %v11448_v6 = vcombine.low %v1523_v33, %v1531_v38  ;;  %v11450_v7 = vcombine.low %v1524_v41, %v1532_v21  ;;  %v1556_v14 = vld [vmem:[%s13585_s30 + $0xb88] sm:$0xff]  ;;  %v1571_v24 = vld [vmem:[%s13585_s30 + $0xc00] sm:$0xff] }
 0x25d   : > { %7363 = vmatprep.mubr.bf16.mxu0 %v13868_v18  ;;  %7527 = vmatprep.mubr.bf16.mxu1 %v13868_v18  ;;  %v11465_v10 = vcombine.high %v1539_v46, %v1547_v47  ;;  %v11467_v12 = vcombine.high %v1540_v52, %v1548_v5  ;;  %v1564_v15 = vld [vmem:[%s13585_s30 + $0xbc8] sm:$0xff]  ;;  %v11464_v17 = vcombine.low %v1539_v46, %v1547_v47  ;;  %v1579_v25 = vld [vmem:[%s13585_s30 + $0xc40] sm:$0xff] }
 0x25e   : > { %7364 = vmatmul.mubr.bf16.vlgmr.msra.gmra.mrb[8].mxu0 %v13870_v19  ;;  %7528 = vmatmul.mubr.bf16.vlgmr.msra.gmra.mrb[8].mxu1 %v13870_v19  ;;  %v11466_v20 = vcombine.low %v1540_v52, %v1548_v5  ;;  %v1572_v58 = vld [vmem:[%s13585_s30 + $0xc08] sm:$0xff]  ;;  %v1603_v45 = vld [vmem:[%s13585_s30 + $0xd00] sm:$0xff] }
 0x25f   : > { %7373 = vmatpush1.bf16.msra.mxu0 %v11368_v37  ;;  %7537 = vmatpush1.bf16.msra.mxu1 %v11370_v40  ;;  %v1500_v37 = vld [vmem:[%s13585_s30 + $0x9c8] sm:$0xff]  ;;  %v11417_v40 = vcombine.high %v1491_v16, %v1499_v34  ;;  %v1587_v34 = vld [vmem:[%s13585_s30 + $0xc80] sm:$0xff] }
 0x260   : > { %7404 = vmatprep.mubr.bf16.mxu0 %v13880_v0  ;;  %7568 = vmatprep.mubr.bf16.mxu1 %v13880_v0  ;;  %v11419_v8 = vcombine.high %v1492_v35, %v1500_v37  ;;  %v11418_v48 = vcombine.low %v1492_v35, %v1500_v37  ;;  %v1595_v35 = vld [vmem:[%s13585_s30 + $0xcc0] sm:$0xff]  ;;  %v1588_v37 = vld [vmem:[%s13585_s30 + $0xc88] sm:$0xff] }
 0x261   : > { %7374 = vmatprep.subr.bf16.mxu0 %v11385_v22  ;;  %7538 = vmatprep.subr.bf16.mxu1 %v11387_v23  ;;  %v11481_v22 = vcombine.high %v1555_v51, %v1563_v13  ;;  %v11483_v23 = vcombine.high %v1556_v14, %v1564_v15  ;;  %v1611_v49 = vld [vmem:[%s13585_s30 + $0xd40] sm:$0xff]  ;;  %v1604_v29 = vld [vmem:[%s13585_s30 + $0xd08] sm:$0xff] }
 0x262   : > { %v1619_v38 = vld [vmem:[%s13585_s30 + $0xd80] sm:$0xff]  ;;  %v1620_v21 = vld [vmem:[%s13585_s30 + $0xd88] sm:$0xff] }
 0x263   : > { %7375 = vmatpush1.bf16.msra.mxu0 %v11384_v62  ;;  %7539 = vmatpush1.bf16.msra.mxu1 %v11386_v4  ;;  %v1580_v62 = vld [vmem:[%s13585_s30 + $0xc48] sm:$0xff]  ;;  %v11480_v4 = vcombine.low %v1555_v51, %v1563_v13  ;;  %v1627_v41 = vld [vmem:[%s13585_s30 + $0xdc0] sm:$0xff] }
 0x264   : > { %7376 = vmatprep.subr.bf16.mxu0 %v11401_v11  ;;  %7540 = vmatprep.subr.bf16.mxu1 %v11403_v60  ;;  %v11482_v11 = vcombine.low %v1556_v14, %v1564_v15  ;;  %v11497_v60 = vcombine.high %v1571_v24, %v1579_v25  ;;  %v11499_v16 = vcombine.high %v1572_v58, %v1580_v62  ;;  %v1635_v47 = vld [vmem:[%s13585_s30 + $0xe00] sm:$0xff]  ;;  %v1636_v5 = vld [vmem:[%s13585_s30 + $0xe08] sm:$0xff] }
 0x265   : > { %v1643_v52 = vld [vmem:[%s13585_s30 + $0xe40] sm:$0xff]  ;;  %v1652_v15 = vld [vmem:[%s13585_s30 + $0xe88] sm:$0xff] }
 0x266   : > { %v1651_v13 = vld [vmem:[%s13585_s30 + $0xe80] sm:$0xff] }
 0x267   : > { %7377 = vmatpush1.bf16.msra.mxu0 %v11400_v36  ;;  %7541 = vmatpush1.bf16.msra.mxu1 %v11402_v39  ;;  %v1596_v36 = vld [vmem:[%s13585_s30 + $0xcc8] sm:$0xff]  ;;  %v11496_v39 = vcombine.low %v1571_v24, %v1579_v25  ;;  %v1659_v14 = vld [vmem:[%s13585_s30 + $0xec0] sm:$0xff] }
 0x268   : > { %7378 = vmatprep.subr.bf16.mxu0 %v11417_v40  ;;  %7542 = vmatprep.subr.bf16.mxu1 %v11419_v8  ;;  %v11498_v40 = vcombine.low %v1572_v58, %v1580_v62  ;;  %v11513_v8 = vcombine.high %v1587_v34, %v1595_v35  ;;  %v11515_v28 = vcombine.high %v1588_v37, %v1596_v36  ;;  %v1667_v25 = vld [vmem:[%s13585_s30 + $0xf00] sm:$0xff]  ;;  %v1668_v62 = vld [vmem:[%s13585_s30 + $0xf08] sm:$0xff] }
 0x269   : > { %v1675_v58 = vld [vmem:[%s13585_s30 + $0xf40] sm:$0xff] }
 0x26b   : > { %7379 = vmatpush1.bf16.msra.mxu0 %v11416_v30  ;;  %7543 = vmatpush1.bf16.msra.mxu1 %v11418_v48  ;;  %v1612_v30 = vld [vmem:[%s13585_s30 + $0xd48] sm:$0xff]  ;;  %v11512_v48 = vcombine.low %v1587_v34, %v1595_v35  ;;  %v1683_v35 = vld [vmem:[%s13585_s30 + $0xf80] sm:$0xff] }
 0x26c   : > { %7380 = vmatprep.subr.bf16.mxu0 %v11433_v56  ;;  %7544 = vmatprep.subr.bf16.mxu1 %v11435_v31  ;;  %v11514_v56 = vcombine.low %v1588_v37, %v1596_v36  ;;  %v11529_v31 = vcombine.high %v1603_v45, %v1611_v49  ;;  %v11531_v33 = vcombine.high %v1604_v29, %v1612_v30  ;;  %v1691_v37 = vld [vmem:[%s13585_s30 + $0xfc0] sm:$0xff]  ;;  %v1684_v36 = vld [vmem:[%s13585_s30 + $0xf88] sm:$0xff] }
 0x26f   : > { %7381 = vmatpush1.bf16.msra.mxu0 %v11432_v27  ;;  %7545 = vmatpush1.bf16.msra.mxu1 %v11434_v44  ;;  %v1628_v27 = vld [vmem:[%s13585_s30 + $0xdc8] sm:$0xff]  ;;  %v11528_v44 = vcombine.low %v1603_v45, %v1611_v49  ;;  %v1699_v49 = vld [vmem:[%s13585_s30 + $0x1000] sm:$0xff] }
 0x270   : > { %7382 = vmatprep.subr.bf16.mxu0 %v11449_v26  ;;  %7546 = vmatprep.subr.bf16.mxu1 %v11451_v32  ;;  %v11530_v26 = vcombine.low %v1604_v29, %v1612_v30  ;;  %v11545_v32 = vcombine.high %v1619_v38, %v1627_v41  ;;  %v11547_v46 = vcombine.high %v1620_v21, %v1628_v27  ;;  %v1707_v29 = vld [vmem:[%s13585_s30 + $0x1040] sm:$0xff]  ;;  %v1700_v30 = vld [vmem:[%s13585_s30 + $0x1008] sm:$0xff] }
 0x273   : > { %7383 = vmatpush1.bf16.msra.mxu0 %v11448_v6  ;;  %7547 = vmatpush1.bf16.msra.mxu1 %v11450_v7  ;;  %v1644_v6 = vld [vmem:[%s13585_s30 + $0xe48] sm:$0xff]  ;;  %v11544_v7 = vcombine.low %v1619_v38, %v1627_v41  ;;  %v11625_v38 = vcombine.high %v1699_v49, %v1707_v29 }
 0x274   : > { %7384 = vmatprep.subr.bf16.mxu0 %v11465_v10  ;;  %7548 = vmatprep.subr.bf16.mxu1 %v11467_v12  ;;  %v11546_v10 = vcombine.low %v1620_v21, %v1628_v27  ;;  %v11561_v12 = vcombine.high %v1635_v47, %v1643_v52  ;;  %v11563_v51 = vcombine.high %v1636_v5, %v1644_v6  ;;  %v1176_v21 = vmax.f32 %v13856_v3, 0.0  ;;  %v1715_v27 = vld [vmem:[%s13585_s30 + $0x1080] sm:$0xff] }
 0x275   : > { %v1731_v3 = vld [vmem:[%s13585_s30 + $0x1100] sm:$0xff] }
 0x277   : > { %7385 = vmatpush1.bf16.msra.mxu0 %v11464_v17  ;;  %7549 = vmatpush1.bf16.msra.mxu1 %v11466_v20  ;;  %v1660_v17 = vld [vmem:[%s13585_s30 + $0xec8] sm:$0xff]  ;;  %v11560_v20 = vcombine.low %v1635_v47, %v1643_v52 }
 0x278   : > { %7386 = vmatprep.subr.bf16.mxu0 %v11481_v22  ;;  %7550 = vmatprep.subr.bf16.mxu1 %v11483_v23  ;;  %v11562_v22 = vcombine.low %v1636_v5, %v1644_v6  ;;  %v11577_v23 = vcombine.high %v1651_v13, %v1659_v14  ;;  %v11579_v24 = vcombine.high %v1652_v15, %v1660_v17 }
 0x27b   : > { %7387 = vmatpush1.bf16.msra.mxu0 %v11480_v4  ;;  %7551 = vmatpush1.bf16.msra.mxu1 %v11482_v11  ;;  %v1676_v4 = vld [vmem:[%s13585_s30 + $0xf48] sm:$0xff]  ;;  %v11576_v11 = vcombine.low %v1651_v13, %v1659_v14 }
 0x27c   : > { %7388 = vmatprep.subr.bf16.mxu0 %v11497_v60  ;;  %7552 = vmatprep.subr.bf16.mxu1 %v11499_v16  ;;  %v11578_v60 = vcombine.low %v1652_v15, %v1660_v17  ;;  %v11593_v16 = vcombine.high %v1667_v25, %v1675_v58  ;;  %v11595_v34 = vcombine.high %v1668_v62, %v1676_v4  ;;  %v1747_v17 = vld [vmem:[%s13585_s30 + $0x1180] sm:$0xff] }
 0x27f   : > { %7389 = vmatpush1.bf16.msra.mxu0 %v11496_v39  ;;  %7553 = vmatpush1.bf16.msra.mxu1 %v11498_v40  ;;  %v1692_v39 = vld [vmem:[%s13585_s30 + $0xfc8] sm:$0xff]  ;;  %v11592_v40 = vcombine.low %v1667_v25, %v1675_v58 }
 0x280   : > { %7390 = vmatprep.subr.bf16.mxu0 %v11513_v8  ;;  %7554 = vmatprep.subr.bf16.mxu1 %v11515_v28  ;;  %v11594_v8 = vcombine.low %v1668_v62, %v1676_v4  ;;  %v11609_v28 = vcombine.high %v1683_v35, %v1691_v37  ;;  %v11611_v45 = vcombine.high %v1684_v36, %v1692_v39  ;;  %v1763_v4 = vld [vmem:[%s13585_s30 + $0x1200] sm:$0xff] }
 0x283   : > { %7391 = vmatpush1.bf16.msra.mxu0 %v11512_v48  ;;  %7555 = vmatpush1.bf16.msra.mxu1 %v11514_v56  ;;  %v1708_v48 = vld [vmem:[%s13585_s30 + $0x1048] sm:$0xff]  ;;  %v11608_v56 = vcombine.low %v1683_v35, %v1691_v37 }
 0x284   : > { %7392 = vmatprep.subr.bf16.mxu0 %v11529_v31  ;;  %7556 = vmatprep.subr.bf16.mxu1 %v11531_v33  ;;  %v11610_v31 = vcombine.low %v1684_v36, %v1692_v39  ;;  %v1173_v33 = vmax.f32 %v13862_v9, 0.0  ;;  %v11627_v41 = vcombine.high %v1700_v30, %v1708_v48  ;;  %v11626_v52 = vcombine.low %v1700_v30, %v1708_v48  ;;  %v1779_v39 = vld [vmem:[%s13585_s30 + $0x1280] sm:$0xff] }
 0x285   : > { %v13954_v9 = vpack.c.bf16 %v1176_v21, %v1176_v21  ;;  %v1795_v48 = vld [vmem:[%s13585_s30 + $0x1300] sm:$0xff] }
 0x286   : > { %v13952_v47 = vpack.c.bf16 %v1173_v33, %v1173_v33  ;;  %v1804_v33 = vld [vmem:[%s13585_s30 + $0x1348] sm:$0xff] }
 0x287   : > { %7393 = vmatpush1.bf16.msra.mxu0 %v11528_v44  ;;  %7557 = vmatpush1.bf16.msra.mxu1 %v11530_v26  ;;  %v1723_v44 = vld [vmem:[%s13585_s30 + $0x10c0] sm:$0xff]  ;;  %v1716_v26 = vld [vmem:[%s13585_s30 + $0x1088] sm:$0xff] }
 0x288   : > { %7394 = vmatprep.subr.bf16.mxu0 %v11545_v32  ;;  %7558 = vmatprep.subr.bf16.mxu1 %v11547_v46  ;;  %v1724_v32 = vld [vmem:[%s13585_s30 + $0x10c8] sm:$0xff]  ;;  %v11624_v46 = vcombine.low %v1699_v49, %v1707_v29  ;;  %v11641_v5 = vcombine.high %v1715_v27, %v1723_v44 }
 0x289   : > { %v11643_v6 = vcombine.high %v1716_v26, %v1724_v32  ;;  %v11642_v13 = vcombine.low %v1716_v26, %v1724_v32  ;;  %v1819_v26 = vld [vmem:[%s13585_s30 + $0x13c0] sm:$0xff]  ;;  %v1812_v32 = vld [vmem:[%s13585_s30 + $0x1388] sm:$0xff] }
 0x28b   : > { %7395 = vmatpush1.bf16.msra.mxu0 %v11544_v7  ;;  %7559 = vmatpush1.bf16.msra.mxu1 %v11546_v10  ;;  %v1739_v7 = vld [vmem:[%s13585_s30 + $0x1140] sm:$0xff]  ;;  %v1732_v10 = vld [vmem:[%s13585_s30 + $0x1108] sm:$0xff] }
 0x28c   : > { %7396 = vmatprep.subr.bf16.mxu0 %v11561_v12  ;;  %7560 = vmatprep.subr.bf16.mxu1 %v11563_v51  ;;  %v1740_v12 = vld [vmem:[%s13585_s30 + $0x1148] sm:$0xff]  ;;  %v11640_v51 = vcombine.low %v1715_v27, %v1723_v44  ;;  %v11657_v14 = vcombine.high %v1731_v3, %v1739_v7  ;;  %v1811_v44 = vld [vmem:[%s13585_s30 + $0x1380] sm:$0xff] }
 0x28d   : > { %v11659_v15 = vcombine.high %v1732_v10, %v1740_v12  ;;  %v11658_v25 = vcombine.low %v1732_v10, %v1740_v12  ;;  %v1835_v10 = vld [vmem:[%s13585_s30 + $0x1440] sm:$0xff]  ;;  %v1828_v12 = vld [vmem:[%s13585_s30 + $0x1408] sm:$0xff] }
 0x28f   : > { %7397 = vmatpush1.bf16.msra.mxu0 %v11560_v20  ;;  %7561 = vmatpush1.bf16.msra.mxu1 %v11562_v22  ;;  %v1755_v20 = vld [vmem:[%s13585_s30 + $0x11c0] sm:$0xff]  ;;  %v1748_v22 = vld [vmem:[%s13585_s30 + $0x1188] sm:$0xff] }
 0x290   : > { %7398 = vmatprep.subr.bf16.mxu0 %v11577_v23  ;;  %7562 = vmatprep.subr.bf16.mxu1 %v11579_v24  ;;  %v1756_v23 = vld [vmem:[%s13585_s30 + $0x11c8] sm:$0xff]  ;;  %v11656_v24 = vcombine.low %v1731_v3, %v1739_v7  ;;  %v11673_v58 = vcombine.high %v1747_v17, %v1755_v20  ;;  %v1827_v7 = vld [vmem:[%s13585_s30 + $0x1400] sm:$0xff] }
 0x291   : > { %v11675_v62 = vcombine.high %v1748_v22, %v1756_v23  ;;  %v11674_v35 = vcombine.low %v1748_v22, %v1756_v23  ;;  %v1851_v22 = vld [vmem:[%s13585_s30 + $0x14c0] sm:$0xff]  ;;  %v1844_v23 = vld [vmem:[%s13585_s30 + $0x1488] sm:$0xff] }
 0x293   : > { %7399 = vmatpush1.bf16.msra.mxu0 %v11576_v11  ;;  %7563 = vmatpush1.bf16.msra.mxu1 %v11578_v60  ;;  %v1771_v11 = vld [vmem:[%s13585_s30 + $0x1240] sm:$0xff]  ;;  %v1764_v60 = vld [vmem:[%s13585_s30 + $0x1208] sm:$0xff] }
 0x294   : > { %7400 = vmatprep.subr.bf16.mxu0 %v11593_v16  ;;  %7564 = vmatprep.subr.bf16.mxu1 %v11595_v34  ;;  %v1772_v16 = vld [vmem:[%s13585_s30 + $0x1248] sm:$0xff]  ;;  %v11672_v34 = vcombine.low %v1747_v17, %v1755_v20  ;;  %v11689_v37 = vcombine.high %v1763_v4, %v1771_v11  ;;  %v1843_v20 = vld [vmem:[%s13585_s30 + $0x1480] sm:$0xff] }
 0x295   : > { %v11691_v36 = vcombine.high %v1764_v60, %v1772_v16  ;;  %v11690_v49 = vcombine.low %v1764_v60, %v1772_v16  ;;  %v1867_v60 = vld [vmem:[%s13585_s30 + $0x1540] sm:$0xff]  ;;  %v1860_v16 = vld [vmem:[%s13585_s30 + $0x1508] sm:$0xff] }
 0x297   : > { %7401 = vmatpush1.bf16.msra.mxu0 %v11592_v40  ;;  %7565 = vmatpush1.bf16.msra.mxu1 %v11594_v8  ;;  %v1787_v40 = vld [vmem:[%s13585_s30 + $0x12c0] sm:$0xff]  ;;  %v1780_v8 = vld [vmem:[%s13585_s30 + $0x1288] sm:$0xff] }
 0x298   : > { %7402 = vmatprep.subr.bf16.mxu0 %v11609_v28  ;;  %7566 = vmatprep.subr.bf16.mxu1 %v11611_v45  ;;  %v1788_v28 = vld [vmem:[%s13585_s30 + $0x12c8] sm:$0xff]  ;;  %v11688_v45 = vcombine.low %v1763_v4, %v1771_v11  ;;  %v11705_v29 = vcombine.high %v1779_v39, %v1787_v40  ;;  %v1859_v11 = vld [vmem:[%s13585_s30 + $0x1500] sm:$0xff] }
 0x299   : > { %v11707_v30 = vcombine.high %v1780_v8, %v1788_v28 }
 0x29b   : > { %7403 = vmatpush1.bf16.msra.mxu0 %v11608_v56  ;;  %7567 = vmatpush1.bf16.msra.mxu1 %v11610_v31  ;;  %v1803_v56 = vld [vmem:[%s13585_s30 + $0x1340] sm:$0xff]  ;;  %v1796_v31 = vld [vmem:[%s13585_s30 + $0x1308] sm:$0xff] }
 0x29c   : > { %7413 = vmatprep.subr.bf16.mxu0 %v11625_v38  ;;  %7577 = vmatprep.subr.bf16.mxu1 %v11627_v41  ;;  %v11704_v38 = vcombine.low %v1779_v39, %v1787_v40  ;;  %v11706_v41 = vcombine.low %v1780_v8, %v1788_v28  ;;  %v11721_v21 = vcombine.high %v1795_v48, %v1803_v56  ;;  %v1875_v40 = vld [vmem:[%s13585_s30 + $0x1580] sm:$0xff]  ;;  %v1876_v28 = vld [vmem:[%s13585_s30 + $0x1588] sm:$0xff] }
 0x29d   : > { %v11723_v27 = vcombine.high %v1796_v31, %v1804_v33  ;;  %v1883_v8 = vld [vmem:[%s13585_s30 + $0x15c0] sm:$0xff] }
 0x29e   : > { %7405 = vmatmul.mubr.bf16.vlgmr.msra.gmra.mrb[8].mxu0 %v13952_v47  ;;  %7569 = vmatmul.mubr.bf16.vlgmr.msra.gmra.mrb[8].mxu1 %v13952_v47 }
 0x29f   : > { %7414 = vmatpush1.bf16.msra.mxu0 %v11624_v46  ;;  %7445 = vmatprep.mubr.bf16.mxu0 %v13954_v9  ;;  %v1820_v46 = vld [vmem:[%s13585_s30 + $0x13c8] sm:$0xff] }
 0x2a0   : > { %7578 = vmatpush1.bf16.msra.mxu1 %v11626_v52  ;;  %7609 = vmatprep.mubr.bf16.mxu1 %v13954_v9  ;;  %v11720_v52 = vcombine.low %v1795_v48, %v1803_v56  ;;  %v11739_v3 = vcombine.high %v1812_v32, %v1820_v46  ;;  %v1891_v56 = vld [vmem:[%s13585_s30 + $0x1600] sm:$0xff] }
 0x2a1   : > { %7415 = vmatprep.subr.bf16.mxu0 %v11641_v5  ;;  %7579 = vmatprep.subr.bf16.mxu1 %v11643_v6  ;;  %v11722_v5 = vcombine.low %v1796_v31, %v1804_v33  ;;  %v11737_v6 = vcombine.high %v1811_v44, %v1819_v26  ;;  %v1899_v31 = vld [vmem:[%s13585_s30 + $0x1640] sm:$0xff]  ;;  %v1892_v33 = vld [vmem:[%s13585_s30 + $0x1608] sm:$0xff] }
 0x2a3   : > { %7416 = vmatpush1.bf16.msra.mxu0 %v11640_v51  ;;  %v1836_v51 = vld [vmem:[%s13585_s30 + $0x1448] sm:$0xff] }
 0x2a4   : > { %7580 = vmatpush1.bf16.msra.mxu1 %v11642_v13  ;;  %7417 = vmatprep.subr.bf16.mxu0 %v11657_v14  ;;  %v11736_v13 = vcombine.low %v1811_v44, %v1819_v26  ;;  %v11738_v14 = vcombine.low %v1812_v32, %v1820_v46  ;;  %v11755_v17 = vcombine.high %v1828_v12, %v1836_v51  ;;  %v1907_v26 = vld [vmem:[%s13585_s30 + $0x1680] sm:$0xff]  ;;  %v1908_v46 = vld [vmem:[%s13585_s30 + $0x1688] sm:$0xff] }
 0x2a5   : > { %7581 = vmatprep.subr.bf16.mxu1 %v11659_v15  ;;  %v11753_v15 = vcombine.high %v1827_v7, %v1835_v10  ;;  %v1915_v32 = vld [vmem:[%s13585_s30 + $0x16c0] sm:$0xff] }
 0x2a7   : > { %7418 = vmatpush1.bf16.msra.mxu0 %v11656_v24  ;;  %v1852_v24 = vld [vmem:[%s13585_s30 + $0x14c8] sm:$0xff] }
 0x2a8   : > { %7582 = vmatpush1.bf16.msra.mxu1 %v11658_v25  ;;  %7419 = vmatprep.subr.bf16.mxu0 %v11673_v58  ;;  %v11752_v25 = vcombine.low %v1827_v7, %v1835_v10  ;;  %v11754_v58 = vcombine.low %v1828_v12, %v1836_v51  ;;  %v11771_v4 = vcombine.high %v1844_v23, %v1852_v24  ;;  %v1923_v10 = vld [vmem:[%s13585_s30 + $0x1700] sm:$0xff]  ;;  %v1924_v51 = vld [vmem:[%s13585_s30 + $0x1708] sm:$0xff] }
 0x2a9   : > { %7583 = vmatprep.subr.bf16.mxu1 %v11675_v62  ;;  %v11769_v62 = vcombine.high %v1843_v20, %v1851_v22  ;;  %v1931_v12 = vld [vmem:[%s13585_s30 + $0x1740] sm:$0xff] }
 0x2ab   : > { %7420 = vmatpush1.bf16.msra.mxu0 %v11672_v34  ;;  %v1868_v34 = vld [vmem:[%s13585_s30 + $0x1548] sm:$0xff] }
 0x2ac   : > { %7584 = vmatpush1.bf16.msra.mxu1 %v11674_v35  ;;  %7421 = vmatprep.subr.bf16.mxu0 %v11689_v37  ;;  %v11768_v35 = vcombine.low %v1843_v20, %v1851_v22  ;;  %v11770_v37 = vcombine.low %v1844_v23, %v1852_v24  ;;  %v11787_v39 = vcombine.high %v1860_v16, %v1868_v34  ;;  %v1939_v22 = vld [vmem:[%s13585_s30 + $0x1780] sm:$0xff]  ;;  %v1940_v24 = vld [vmem:[%s13585_s30 + $0x1788] sm:$0xff] }
 0x2ad   : > { %7585 = vmatprep.subr.bf16.mxu1 %v11691_v36  ;;  %v11785_v36 = vcombine.high %v1859_v11, %v1867_v60  ;;  %v1947_v23 = vld [vmem:[%s13585_s30 + $0x17c0] sm:$0xff] }
 0x2af   : > { %7422 = vmatpush1.bf16.msra.mxu0 %v11688_v45  ;;  %v1884_v45 = vld [vmem:[%s13585_s30 + $0x15c8] sm:$0xff] }
 0x2b0   : > { %7586 = vmatpush1.bf16.msra.mxu1 %v11690_v49  ;;  %7423 = vmatprep.subr.bf16.mxu0 %v11705_v29  ;;  %v11784_v49 = vcombine.low %v1859_v11, %v1867_v60  ;;  %v11786_v29 = vcombine.low %v1860_v16, %v1868_v34  ;;  %v11803_v48 = vcombine.high %v1876_v28, %v1884_v45  ;;  %v1955_v60 = vld [vmem:[%s13585_s30 + $0x1800] sm:$0xff]  ;;  %v1956_v34 = vld [vmem:[%s13585_s30 + $0x1808] sm:$0xff] }
 0x2b1   : > { %7587 = vmatprep.subr.bf16.mxu1 %v11707_v30  ;;  %v11801_v30 = vcombine.high %v1875_v40, %v1883_v8  ;;  %v1963_v16 = vld [vmem:[%s13585_s30 + $0x1840] sm:$0xff] }
 0x2b3   : > { %7424 = vmatpush1.bf16.msra.mxu0 %v11704_v38  ;;  %v1900_v38 = vld [vmem:[%s13585_s30 + $0x1648] sm:$0xff] }
 0x2b4   : > { %7588 = vmatpush1.bf16.msra.mxu1 %v11706_v41  ;;  %7425 = vmatprep.subr.bf16.mxu0 %v11721_v21  ;;  %v11800_v41 = vcombine.low %v1875_v40, %v1883_v8  ;;  %v11802_v21 = vcombine.low %v1876_v28, %v1884_v45  ;;  %v11819_v44 = vcombine.high %v1892_v33, %v1900_v38  ;;  %v1178_v28 = vmax.f32 %v13860_v50, 0.0  ;;  %v1971_v45 = vld [vmem:[%s13585_s30 + $0x1880] sm:$0xff] }
 0x2b5   : > { %7589 = vmatprep.subr.bf16.mxu1 %v11723_v27  ;;  %v11817_v27 = vcombine.high %v1891_v56, %v1899_v31  ;;  %v11881_v40 = vcombine.high %v1955_v60, %v1963_v16 }
 0x2b7   : > { %7426 = vmatpush1.bf16.msra.mxu0 %v11720_v52  ;;  %v1916_v52 = vld [vmem:[%s13585_s30 + $0x16c8] sm:$0xff] }
 0x2b8   : > { %7590 = vmatpush1.bf16.msra.mxu1 %v11722_v5  ;;  %7427 = vmatprep.subr.bf16.mxu0 %v11737_v6  ;;  %v11816_v5 = vcombine.low %v1891_v56, %v1899_v31  ;;  %v11818_v6 = vcombine.low %v1892_v33, %v1900_v38  ;;  %v11835_v7 = vcombine.high %v1908_v46, %v1916_v52  ;;  %v1987_v33 = vld [vmem:[%s13585_s30 + $0x1900] sm:$0xff] }
 0x2b9   : > { %7591 = vmatprep.subr.bf16.mxu1 %v11739_v3  ;;  %v11833_v3 = vcombine.high %v1907_v26, %v1915_v32  ;;  %v1995_v38 = vld [vmem:[%s13585_s30 + $0x1940] sm:$0xff] }
 0x2bb   : > { %7428 = vmatpush1.bf16.msra.mxu0 %v11736_v13  ;;  %v1932_v13 = vld [vmem:[%s13585_s30 + $0x1748] sm:$0xff] }
 0x2bc   : > { %7592 = vmatpush1.bf16.msra.mxu1 %v11738_v14  ;;  %7429 = vmatprep.subr.bf16.mxu0 %v11753_v15  ;;  %v11832_v14 = vcombine.low %v1907_v26, %v1915_v32  ;;  %v11834_v15 = vcombine.low %v1908_v46, %v1916_v52  ;;  %v11851_v20 = vcombine.high %v1924_v51, %v1932_v13  ;;  %v2003_v52 = vld [vmem:[%s13585_s30 + $0x1980] sm:$0xff] }
 0x2bd   : > { %7593 = vmatprep.subr.bf16.mxu1 %v11755_v17  ;;  %v11849_v17 = vcombine.high %v1923_v10, %v1931_v12  ;;  %v11913_v32 = vcombine.high %v1987_v33, %v1995_v38 }
 0x2bf   : > { %7430 = vmatpush1.bf16.msra.mxu0 %v11752_v25  ;;  %v1948_v25 = vld [vmem:[%s13585_s30 + $0x17c8] sm:$0xff] }
 0x2c0   : > { %7594 = vmatpush1.bf16.msra.mxu1 %v11754_v58  ;;  %7431 = vmatprep.subr.bf16.mxu0 %v11769_v62  ;;  %v11848_v58 = vcombine.low %v1923_v10, %v1931_v12  ;;  %v11850_v62 = vcombine.low %v1924_v51, %v1932_v13  ;;  %v11867_v11 = vcombine.high %v1940_v24, %v1948_v25  ;;  %v2019_v13 = vld [vmem:[%s13585_s30 + $0x1a00] sm:$0xff] }
 0x2c1   : > { %7595 = vmatprep.subr.bf16.mxu1 %v11771_v4  ;;  %v11865_v4 = vcombine.high %v1939_v22, %v1947_v23 }
 0x2c3   : > { %7432 = vmatpush1.bf16.msra.mxu0 %v11768_v35  ;;  %v1964_v35 = vld [vmem:[%s13585_s30 + $0x1848] sm:$0xff] }
 0x2c4   : > { %7596 = vmatpush1.bf16.msra.mxu1 %v11770_v37  ;;  %7433 = vmatprep.subr.bf16.mxu0 %v11785_v36  ;;  %v11864_v37 = vcombine.low %v1939_v22, %v1947_v23  ;;  %v1175_v36 = vmax.f32 %v13854_v54, 0.0  ;;  %v11883_v8 = vcombine.high %v1956_v34, %v1964_v35  ;;  %v11882_v54 = vcombine.low %v1956_v34, %v1964_v35  ;;  %v2051_v35 = vld [vmem:[%s13585_s30 + $0x1b00] sm:$0xff] }
 0x2c5   : > { %7597 = vmatprep.subr.bf16.mxu1 %v11787_v39  ;;  %v11866_v39 = vcombine.low %v1940_v24, %v1948_v25  ;;  %v2035_v25 = vld [vmem:[%s13585_s30 + $0x1a80] sm:$0xff] }
 0x2c6   : > { %v14026_v56 = vpack.c.bf16 %v1175_v36, %v1175_v36  ;;  %v2052_v36 = vld [vmem:[%s13585_s30 + $0x1b08] sm:$0xff] }
 0x2c7   : > { %7434 = vmatpush1.bf16.msra.mxu0 %v11784_v49  ;;  %v1979_v49 = vld [vmem:[%s13585_s30 + $0x18c0] sm:$0xff] }
 0x2c8   : > { %7598 = vmatpush1.bf16.msra.mxu1 %v11786_v29  ;;  %7435 = vmatprep.subr.bf16.mxu0 %v11801_v30  ;;  %v11880_v29 = vcombine.low %v1955_v60, %v1963_v16  ;;  %v1972_v30 = vld [vmem:[%s13585_s30 + $0x1888] sm:$0xff]  ;;  %v11897_v31 = vcombine.high %v1971_v45, %v1979_v49 }
 0x2c9   : > { %7599 = vmatprep.subr.bf16.mxu1 %v11803_v48  ;;  %v1980_v48 = vld [vmem:[%s13585_s30 + $0x18c8] sm:$0xff] }
 0x2ca   : > { %v11899_v50 = vcombine.high %v1972_v30, %v1980_v48  ;;  %v11898_v26 = vcombine.low %v1972_v30, %v1980_v48  ;;  %v2068_v30 = vld [vmem:[%s13585_s30 + $0x1b88] sm:$0xff] }
 0x2cb   : > { %7436 = vmatpush1.bf16.msra.mxu0 %v11800_v41  ;;  %v14030_v41 = vpack.c.bf16 %v1178_v28, %v1178_v28  ;;  %v2076_v48 = vld [vmem:[%s13585_s30 + $0x1bc8] sm:$0xff] }
 0x2cc   : > { %7600 = vmatpush1.bf16.msra.mxu1 %v11802_v21  ;;  %7437 = vmatprep.subr.bf16.mxu0 %v11817_v27  ;;  %v1988_v21 = vld [vmem:[%s13585_s30 + $0x1908] sm:$0xff] }
 0x2cd   : > { %7601 = vmatprep.subr.bf16.mxu1 %v11819_v44  ;;  %v1996_v27 = vld [vmem:[%s13585_s30 + $0x1948] sm:$0xff]  ;;  %v11896_v44 = vcombine.low %v1971_v45, %v1979_v49  ;;  %v2067_v49 = vld [vmem:[%s13585_s30 + $0x1b80] sm:$0xff] }
 0x2ce   : > { %v11915_v46 = vcombine.high %v1988_v21, %v1996_v27  ;;  %v11914_v10 = vcombine.low %v1988_v21, %v1996_v27  ;;  %v2091_v21 = vld [vmem:[%s13585_s30 + $0x1c40] sm:$0xff]  ;;  %v2084_v27 = vld [vmem:[%s13585_s30 + $0x1c08] sm:$0xff] }
 0x2cf   : > { %7438 = vmatpush1.bf16.msra.mxu0 %v11816_v5  ;;  %v2011_v5 = vld [vmem:[%s13585_s30 + $0x19c0] sm:$0xff] }
 0x2d0   : > { %7602 = vmatpush1.bf16.msra.mxu1 %v11818_v6  ;;  %7439 = vmatprep.subr.bf16.mxu0 %v11833_v3  ;;  %v2004_v6 = vld [vmem:[%s13585_s30 + $0x1988] sm:$0xff]  ;;  %v11929_v12 = vcombine.high %v2003_v52, %v2011_v5 }
 0x2d1   : > { %7603 = vmatprep.subr.bf16.mxu1 %v11835_v7  ;;  %v2012_v3 = vld [vmem:[%s13585_s30 + $0x19c8] sm:$0xff]  ;;  %v11912_v7 = vcombine.low %v1987_v33, %v1995_v38  ;;  %v11995_v38 = vcombine.high %v2068_v30, %v2076_v48 }
 0x2d2   : > { %v11931_v51 = vcombine.high %v2004_v6, %v2012_v3  ;;  %v11930_v22 = vcombine.low %v2004_v6, %v2012_v3  ;;  %v2107_v6 = vld [vmem:[%s13585_s30 + $0x1cc0] sm:$0xff]  ;;  %v2100_v3 = vld [vmem:[%s13585_s30 + $0x1c88] sm:$0xff] }
 0x2d3   : > { %7440 = vmatpush1.bf16.msra.mxu0 %v11832_v14  ;;  %v2027_v14 = vld [vmem:[%s13585_s30 + $0x1a40] sm:$0xff] }
 0x2d4   : > { %7604 = vmatpush1.bf16.msra.mxu1 %v11834_v15  ;;  %7441 = vmatprep.subr.bf16.mxu0 %v11849_v17  ;;  %v2020_v15 = vld [vmem:[%s13585_s30 + $0x1a08] sm:$0xff]  ;;  %v11945_v23 = vcombine.high %v2019_v13, %v2027_v14 }
 0x2d5   : > { %7605 = vmatprep.subr.bf16.mxu1 %v11851_v20  ;;  %v2028_v17 = vld [vmem:[%s13585_s30 + $0x1a48] sm:$0xff]  ;;  %v11928_v20 = vcombine.low %v2003_v52, %v2011_v5  ;;  %v2099_v5 = vld [vmem:[%s13585_s30 + $0x1c80] sm:$0xff] }
 0x2d6   : > { %v11947_v24 = vcombine.high %v2020_v15, %v2028_v17  ;;  %v11946_v60 = vcombine.low %v2020_v15, %v2028_v17  ;;  %v2123_v15 = vld [vmem:[%s13585_s30 + $0x1d40] sm:$0xff]  ;;  %v2116_v17 = vld [vmem:[%s13585_s30 + $0x1d08] sm:$0xff] }
 0x2d7   : > { %7442 = vmatpush1.bf16.msra.mxu0 %v11848_v58  ;;  %v2043_v58 = vld [vmem:[%s13585_s30 + $0x1ac0] sm:$0xff] }
 0x2d8   : > { %7606 = vmatpush1.bf16.msra.mxu1 %v11850_v62  ;;  %7443 = vmatprep.subr.bf16.mxu0 %v11865_v4  ;;  %v2036_v62 = vld [vmem:[%s13585_s30 + $0x1a88] sm:$0xff]  ;;  %v11961_v16 = vcombine.high %v2035_v25, %v2043_v58 }
 0x2d9   : > { %7607 = vmatprep.subr.bf16.mxu1 %v11867_v11  ;;  %v2044_v4 = vld [vmem:[%s13585_s30 + $0x1ac8] sm:$0xff]  ;;  %v11944_v11 = vcombine.low %v2019_v13, %v2027_v14  ;;  %v2115_v14 = vld [vmem:[%s13585_s30 + $0x1d00] sm:$0xff] }
 0x2da   : > { %v11963_v34 = vcombine.high %v2036_v62, %v2044_v4 }
 0x2db   : > { %7444 = vmatpush1.bf16.msra.mxu0 %v11864_v37  ;;  %v2059_v37 = vld [vmem:[%s13585_s30 + $0x1b40] sm:$0xff] }
 0x2dc   : > { %7608 = vmatpush1.bf16.msra.mxu1 %v11866_v39  ;;  %7454 = vmatprep.subr.bf16.mxu0 %v11881_v40  ;;  %v2060_v39 = vld [vmem:[%s13585_s30 + $0x1b48] sm:$0xff]  ;;  %v11960_v40 = vcombine.low %v2035_v25, %v2043_v58  ;;  %v11977_v28 = vcombine.high %v2051_v35, %v2059_v37  ;;  %v2131_v58 = vld [vmem:[%s13585_s30 + $0x1d80] sm:$0xff] }
 0x2dd   : > { %7618 = vmatprep.subr.bf16.mxu1 %v11883_v8  ;;  %v11962_v8 = vcombine.low %v2036_v62, %v2044_v4  ;;  %v11979_v45 = vcombine.high %v2052_v36, %v2060_v39  ;;  %v2139_v62 = vld [vmem:[%s13585_s30 + $0x1dc0] sm:$0xff]  ;;  %v2132_v4 = vld [vmem:[%s13585_s30 + $0x1d88] sm:$0xff] }
 0x2de   : > { %7446 = vmatmul.mubr.bf16.vlgmr.msra.gmra.mrb[8].mxu0 %v14026_v56 }
 0x2df   : > { %7610 = vmatmul.mubr.bf16.vlgmr.msra.gmra.mrb[8].mxu1 %v14026_v56  ;;  %7455 = vmatpush1.bf16.msra.mxu0 %v11880_v29  ;;  %v2075_v29 = vld [vmem:[%s13585_s30 + $0x1bc0] sm:$0xff] }
 0x2e0   : > { %7486 = vmatprep.mubr.bf16.mxu0 %v14030_v41  ;;  %7619 = vmatpush1.bf16.msra.mxu1 %v11882_v54  ;;  %v11976_v54 = vcombine.low %v2051_v35, %v2059_v37  ;;  %v11993_v33 = vcombine.high %v2067_v49, %v2075_v29  ;;  %v2147_v37 = vld [vmem:[%s13585_s30 + $0x1e00] sm:$0xff] }
 0x2e1   : > { %7650 = vmatprep.mubr.bf16.mxu1 %v14030_v41  ;;  %7456 = vmatprep.subr.bf16.mxu0 %v11897_v31  ;;  %v11978_v31 = vcombine.low %v2052_v36, %v2060_v39  ;;  %v2155_v36 = vld [vmem:[%s13585_s30 + $0x1e40] sm:$0xff]  ;;  %v2148_v39 = vld [vmem:[%s13585_s30 + $0x1e08] sm:$0xff] }
 0x2e2   : > { %7620 = vmatprep.subr.bf16.mxu1 %v11899_v50  ;;  %v2083_v50 = vld [vmem:[%s13585_s30 + $0x1c00] sm:$0xff] }
 0x2e3   : > { %7457 = vmatpush1.bf16.msra.mxu0 %v11896_v44  ;;  %v2092_v44 = vld [vmem:[%s13585_s30 + $0x1c48] sm:$0xff] }
 0x2e4   : > { %7621 = vmatpush1.bf16.msra.mxu1 %v11898_v26  ;;  %7458 = vmatprep.subr.bf16.mxu0 %v11913_v32  ;;  %v11992_v26 = vcombine.low %v2067_v49, %v2075_v29  ;;  %v11994_v32 = vcombine.low %v2068_v30, %v2076_v48  ;;  %v12011_v52 = vcombine.high %v2084_v27, %v2092_v44  ;;  %v2163_v29 = vld [vmem:[%s13585_s30 + $0x1e80] sm:$0xff]  ;;  %v2164_v48 = vld [vmem:[%s13585_s30 + $0x1e88] sm:$0xff] }
 0x2e5   : > { %7622 = vmatprep.subr.bf16.mxu1 %v11915_v46  ;;  %v12009_v46 = vcombine.high %v2083_v50, %v2091_v21  ;;  %v2171_v30 = vld [vmem:[%s13585_s30 + $0x1ec0] sm:$0xff] }
 0x2e7   : > { %7459 = vmatpush1.bf16.msra.mxu0 %v11912_v7  ;;  %v2108_v7 = vld [vmem:[%s13585_s30 + $0x1cc8] sm:$0xff] }
 0x2e8   : > { %7623 = vmatpush1.bf16.msra.mxu1 %v11914_v10  ;;  %7460 = vmatprep.subr.bf16.mxu0 %v11929_v12  ;;  %v12008_v10 = vcombine.low %v2083_v50, %v2091_v21  ;;  %v12010_v12 = vcombine.low %v2084_v27, %v2092_v44  ;;  %v12027_v13 = vcombine.high %v2100_v3, %v2108_v7  ;;  %v2179_v21 = vld [vmem:[%s13585_s30 + $0x1f00] sm:$0xff]  ;;  %v2180_v44 = vld [vmem:[%s13585_s30 + $0x1f08] sm:$0xff] }
 0x2e9   : > { %7624 = vmatprep.subr.bf16.mxu1 %v11931_v51  ;;  %v12025_v51 = vcombine.high %v2099_v5, %v2107_v6  ;;  %v2187_v27 = vld [vmem:[%s13585_s30 + $0x1f40] sm:$0xff] }
 0x2eb   : > { %7461 = vmatpush1.bf16.msra.mxu0 %v11928_v20  ;;  %v2124_v20 = vld [vmem:[%s13585_s30 + $0x1d48] sm:$0xff] }
 0x2ec   : > { %7625 = vmatpush1.bf16.msra.mxu1 %v11930_v22  ;;  %7462 = vmatprep.subr.bf16.mxu0 %v11945_v23  ;;  %v12024_v22 = vcombine.low %v2099_v5, %v2107_v6  ;;  %v12026_v23 = vcombine.low %v2100_v3, %v2108_v7  ;;  %v12043_v25 = vcombine.high %v2116_v17, %v2124_v20  ;;  %v2195_v6 = vld [vmem:[%s13585_s30 + $0x1f80] sm:$0xff]  ;;  %v2196_v7 = vld [vmem:[%s13585_s30 + $0x1f88] sm:$0xff] }
 0x2ed   : > { %7626 = vmatprep.subr.bf16.mxu1 %v11947_v24  ;;  %v12041_v24 = vcombine.high %v2115_v14, %v2123_v15  ;;  %v2203_v3 = vld [vmem:[%s13585_s30 + $0x1fc0] sm:$0xff] }
 0x2ef   : > { %7463 = vmatpush1.bf16.msra.mxu0 %v11944_v11  ;;  %v2140_v11 = vld [vmem:[%s13585_s30 + $0x1dc8] sm:$0xff] }
 0x2f0   : > { %7627 = vmatpush1.bf16.msra.mxu1 %v11946_v60  ;;  %7464 = vmatprep.subr.bf16.mxu0 %v11961_v16  ;;  %v12040_v60 = vcombine.low %v2115_v14, %v2123_v15  ;;  %v12042_v16 = vcombine.low %v2116_v17, %v2124_v20  ;;  %v12059_v35 = vcombine.high %v2132_v4, %v2140_v11  ;;  %v1189_v15 = vld [vmem:[%s13585_s30 + $0x10] sm:$0xff]  ;;  %v1190_v20 = vld [vmem:[%s13585_s30 + $0x18] sm:$0xff] }
 0x2f1   : > { %7628 = vmatprep.subr.bf16.mxu1 %v11963_v34  ;;  %v12057_v34 = vcombine.high %v2131_v58, %v2139_v62  ;;  %v1197_v17 = vld [vmem:[%s13585_s30 + $0x50] sm:$0xff] }
 0x2f3   : > { %7465 = vmatpush1.bf16.msra.mxu0 %v11960_v40  ;;  %v2156_v40 = vld [vmem:[%s13585_s30 + $0x1e48] sm:$0xff] }
 0x2f4   : > { %7629 = vmatpush1.bf16.msra.mxu1 %v11962_v8  ;;  %7466 = vmatprep.subr.bf16.mxu0 %v11977_v28  ;;  %v12056_v8 = vcombine.low %v2131_v58, %v2139_v62  ;;  %v12058_v28 = vcombine.low %v2132_v4, %v2140_v11  ;;  %v12075_v49 = vcombine.high %v2148_v39, %v2156_v40  ;;  %v1205_v4 = vld [vmem:[%s13585_s30 + $0x90] sm:$0xff] }
 0x2f5   : > { %7630 = vmatprep.subr.bf16.mxu1 %v11979_v45  ;;  %v12073_v45 = vcombine.high %v2147_v37, %v2155_v36  ;;  %v11117_v58 = vcombine.high %v1189_v15, %v1197_v17  ;;  %v1213_v11 = vld [vmem:[%s13585_s30 + $0xd0] sm:$0xff] }
 0x2f7   : > { %7467 = vmatpush1.bf16.msra.mxu0 %v11976_v54  ;;  %v2172_v54 = vld [vmem:[%s13585_s30 + $0x1ec8] sm:$0xff] }
 0x2f8   : > { %7631 = vmatpush1.bf16.msra.mxu1 %v11978_v31  ;;  %7468 = vmatprep.subr.bf16.mxu0 %v11993_v33  ;;  %v12072_v31 = vcombine.low %v2147_v37, %v2155_v36  ;;  %v12074_v33 = vcombine.low %v2148_v39, %v2156_v40  ;;  %v12091_v50 = vcombine.high %v2164_v48, %v2172_v54  ;;  %v1221_v36 = vld [vmem:[%s13585_s30 + $0x110] sm:$0xff] }
 0x2f9   : > { %7632 = vmatprep.subr.bf16.mxu1 %v11995_v38  ;;  %v12089_v38 = vcombine.high %v2163_v29, %v2171_v30  ;;  %v11133_v37 = vcombine.high %v1205_v4, %v1213_v11  ;;  %v1229_v39 = vld [vmem:[%s13585_s30 + $0x150] sm:$0xff] }
 0x2fb   : > { %7469 = vmatpush1.bf16.msra.mxu0 %v11992_v26  ;;  %v2188_v26 = vld [vmem:[%s13585_s30 + $0x1f48] sm:$0xff] }
 0x2fc   : > { %7633 = vmatpush1.bf16.msra.mxu1 %v11994_v32  ;;  %7470 = vmatprep.subr.bf16.mxu0 %v12009_v46  ;;  %v12088_v32 = vcombine.low %v2163_v29, %v2171_v30  ;;  %v12090_v46 = vcombine.low %v2164_v48, %v2172_v54  ;;  %v12107_v5 = vcombine.high %v2180_v44, %v2188_v26  ;;  %v1237_v48 = vld [vmem:[%s13585_s30 + $0x190] sm:$0xff] }
 0x2fd   : > { %7634 = vmatprep.subr.bf16.mxu1 %v12011_v52  ;;  %v12105_v52 = vcombine.high %v2179_v21, %v2187_v27  ;;  %v11149_v29 = vcombine.high %v1221_v36, %v1229_v39  ;;  %v1245_v54 = vld [vmem:[%s13585_s30 + $0x1d0] sm:$0xff] }
 0x2ff   : > { %7471 = vmatpush1.bf16.msra.mxu0 %v12008_v10  ;;  %v2204_v10 = vld [vmem:[%s13585_s30 + $0x1fc8] sm:$0xff] }
 0x300   : > { %7635 = vmatpush1.bf16.msra.mxu1 %v12010_v12  ;;  %7472 = vmatprep.subr.bf16.mxu0 %v12025_v51  ;;  %v12104_v12 = vcombine.low %v2179_v21, %v2187_v27  ;;  %v12106_v51 = vcombine.low %v2180_v44, %v2188_v26  ;;  %v12123_v14 = vcombine.high %v2196_v7, %v2204_v10  ;;  %v1253_v44 = vld [vmem:[%s13585_s30 + $0x210] sm:$0xff] }
 0x301   : > { %7636 = vmatprep.subr.bf16.mxu1 %v12027_v13  ;;  %v12121_v13 = vcombine.high %v2195_v6, %v2203_v3  ;;  %v11165_v21 = vcombine.high %v1237_v48, %v1245_v54  ;;  %v1261_v26 = vld [vmem:[%s13585_s30 + $0x250] sm:$0xff] }
 0x303   : > { %7473 = vmatpush1.bf16.msra.mxu0 %v12024_v22  ;;  %v1198_v22 = vld [vmem:[%s13585_s30 + $0x58] sm:$0xff] }
 0x304   : > { %7637 = vmatpush1.bf16.msra.mxu1 %v12026_v23  ;;  %7474 = vmatprep.subr.bf16.mxu0 %v12041_v24  ;;  %v12120_v23 = vcombine.low %v2195_v6, %v2203_v3  ;;  %v1177_v24 = vmax.f32 %v13858_v43, 0.0  ;;  %v11119_v62 = vcombine.high %v1190_v20, %v1198_v22  ;;  %v11118_v43 = vcombine.low %v1190_v20, %v1198_v22  ;;  %v1285_v20 = vld [vmem:[%s13585_s30 + $0x310] sm:$0xff] }
 0x305   : > { %7638 = vmatprep.subr.bf16.mxu1 %v12043_v25  ;;  %v12122_v25 = vcombine.low %v2196_v7, %v2204_v10  ;;  %v11181_v6 = vcombine.high %v1253_v44, %v1261_v26  ;;  %v1269_v7 = vld [vmem:[%s13585_s30 + $0x290] sm:$0xff] }
 0x306   : > { %v1277_v10 = vld [vmem:[%s13585_s30 + $0x2d0] sm:$0xff] }
 0x307   : > { %7475 = vmatpush1.bf16.msra.mxu0 %v12040_v60  ;;  %v11116_v60 = vcombine.low %v1189_v15, %v1197_v17  ;;  %v11197_v15 = vcombine.high %v1269_v7, %v1277_v10  ;;  %v1293_v22 = vld [vmem:[%s13585_s30 + $0x350] sm:$0xff] }
 0x308   : > { %7639 = vmatpush1.bf16.msra.mxu1 %v12042_v16  ;;  %7476 = vmatprep.subr.bf16.mxu0 %v12057_v34  ;;  %v1206_v16 = vld [vmem:[%s13585_s30 + $0x98] sm:$0xff] }
 0x309   : > { %7640 = vmatprep.subr.bf16.mxu1 %v12059_v35  ;;  %v1214_v34 = vld [vmem:[%s13585_s30 + $0xd8] sm:$0xff]  ;;  %v14099_v35 = vpack.c.bf16 %v1177_v24, %v1177_v24 }
 0x30a   : > { %v11135_v40 = vcombine.high %v1206_v16, %v1214_v34  ;;  %v1294_v24 = vld [vmem:[%s13585_s30 + $0x358] sm:$0xff] }
 0x30b   : > { %7477 = vmatpush1.bf16.msra.mxu0 %v12056_v8  ;;  %v1222_v8 = vld [vmem:[%s13585_s30 + $0x118] sm:$0xff] }
 0x30c   : > { %7641 = vmatpush1.bf16.msra.mxu1 %v12058_v28  ;;  %7478 = vmatprep.subr.bf16.mxu0 %v12073_v45  ;;  %v1230_v28 = vld [vmem:[%s13585_s30 + $0x158] sm:$0xff]  ;;  %v11132_v45 = vcombine.low %v1205_v4, %v1213_v11  ;;  %v1301_v11 = vld [vmem:[%s13585_s30 + $0x390] sm:$0xff] }
 0x30d   : > { %7642 = vmatprep.subr.bf16.mxu1 %v12075_v49  ;;  %v11134_v49 = vcombine.low %v1206_v16, %v1214_v34  ;;  %v11151_v30 = vcombine.high %v1222_v8, %v1230_v28  ;;  %v1302_v16 = vld [vmem:[%s13585_s30 + $0x398] sm:$0xff] }
 0x30e   : > { %v1310_v34 = vld [vmem:[%s13585_s30 + $0x3d8] sm:$0xff] }
 0x30f   : > { %7479 = vmatpush1.bf16.msra.mxu0 %v12072_v31  ;;  %v1238_v31 = vld [vmem:[%s13585_s30 + $0x198] sm:$0xff] }
 0x310   : > { %7643 = vmatpush1.bf16.msra.mxu1 %v12074_v33  ;;  %7480 = vmatprep.subr.bf16.mxu0 %v12089_v38  ;;  %v1246_v33 = vld [vmem:[%s13585_s30 + $0x1d8] sm:$0xff]  ;;  %v11148_v38 = vcombine.low %v1221_v36, %v1229_v39  ;;  %v11231_v39 = vcombine.high %v1302_v16, %v1310_v34 }
 0x311   : > { %7644 = vmatprep.subr.bf16.mxu1 %v12091_v50  ;;  %v11150_v50 = vcombine.low %v1222_v8, %v1230_v28  ;;  %v11167_v27 = vcombine.high %v1238_v31, %v1246_v33  ;;  %v1325_v8 = vld [vmem:[%s13585_s30 + $0x450] sm:$0xff]  ;;  %v1318_v28 = vld [vmem:[%s13585_s30 + $0x418] sm:$0xff] }
 0x313   : > { %7481 = vmatpush1.bf16.msra.mxu0 %v12088_v32  ;;  %v1254_v32 = vld [vmem:[%s13585_s30 + $0x218] sm:$0xff] }
 0x314   : > { %7645 = vmatpush1.bf16.msra.mxu1 %v12090_v46  ;;  %7482 = vmatprep.subr.bf16.mxu0 %v12105_v52  ;;  %v1262_v46 = vld [vmem:[%s13585_s30 + $0x258] sm:$0xff]  ;;  %v11164_v52 = vcombine.low %v1237_v48, %v1245_v54  ;;  %v1333_v54 = vld [vmem:[%s13585_s30 + $0x490] sm:$0xff] }
 0x315   : > { %7646 = vmatprep.subr.bf16.mxu1 %v12107_v5  ;;  %v11166_v5 = vcombine.low %v1238_v31, %v1246_v33  ;;  %v11183_v3 = vcombine.high %v1254_v32, %v1262_v46  ;;  %v1341_v31 = vld [vmem:[%s13585_s30 + $0x4d0] sm:$0xff]  ;;  %v1334_v33 = vld [vmem:[%s13585_s30 + $0x498] sm:$0xff] }
 0x317   : > { %7483 = vmatpush1.bf16.msra.mxu0 %v12104_v12  ;;  %v1270_v12 = vld [vmem:[%s13585_s30 + $0x298] sm:$0xff] }
 0x318   : > { %7647 = vmatpush1.bf16.msra.mxu1 %v12106_v51  ;;  %7484 = vmatprep.subr.bf16.mxu0 %v12121_v13  ;;  %v1278_v51 = vld [vmem:[%s13585_s30 + $0x2d8] sm:$0xff]  ;;  %v11180_v13 = vcombine.low %v1253_v44, %v1261_v26  ;;  %v1349_v26 = vld [vmem:[%s13585_s30 + $0x510] sm:$0xff] }
 0x319   : > { %7648 = vmatprep.subr.bf16.mxu1 %v12123_v14  ;;  %v11182_v14 = vcombine.low %v1254_v32, %v1262_v46  ;;  %v11199_v17 = vcombine.high %v1270_v12, %v1278_v51  ;;  %v1357_v32 = vld [vmem:[%s13585_s30 + $0x550] sm:$0xff]  ;;  %v1350_v46 = vld [vmem:[%s13585_s30 + $0x518] sm:$0xff] }
 0x31b   : > { %7485 = vmatpush1.bf16.msra.mxu0 %v12120_v23  ;;  %v1286_v23 = vld [vmem:[%s13585_s30 + $0x318] sm:$0xff] }
 0x31c   : > { %7649 = vmatpush1.bf16.msra.mxu1 %v12122_v25  ;;  %7659 = vmatprep.subr.bf16.mxu0 %v11117_v58  ;;  %v11196_v25 = vcombine.low %v1269_v7, %v1277_v10  ;;  %v11198_v58 = vcombine.low %v1270_v12, %v1278_v51  ;;  %v11215_v4 = vcombine.high %v1286_v23, %v1294_v24  ;;  %v1365_v10 = vld [vmem:[%s13585_s30 + $0x590] sm:$0xff]  ;;  %v1366_v51 = vld [vmem:[%s13585_s30 + $0x598] sm:$0xff] }
 0x31d   : > { %7823 = vmatprep.subr.bf16.mxu1 %v11119_v62  ;;  %v11213_v62 = vcombine.high %v1285_v20, %v1293_v22  ;;  %v1373_v12 = vld [vmem:[%s13585_s30 + $0x5d0] sm:$0xff] }
 0x31e   : > { %7487 = vmatmul.mubr.bf16.vlgmr.msra.gmra.mrb[8].mxu0 %v14099_v35 }
 0x31f   : > { %7651 = vmatmul.mubr.bf16.vlgmr.msra.gmra.mrb[8].mxu1 %v14099_v35  ;;  %7660 = vmatpush1.bf16.msra.mxu0 %v11116_v60  ;;  %v1309_v60 = vld [vmem:[%s13585_s30 + $0x3d0] sm:$0xff] }
 0x320   : > { %7691 = vmatprep.mubr.bf16.mxu0 %v13868_v18  ;;  %7824 = vmatpush1.bf16.msra.mxu1 %v11118_v43  ;;  %v11212_v43 = vcombine.low %v1285_v20, %v1293_v22  ;;  %v11229_v36 = vcombine.high %v1301_v11, %v1309_v60  ;;  %v1381_v22 = vld [vmem:[%s13585_s30 + $0x610] sm:$0xff] }
 0x321   : > { %7855 = vmatprep.mubr.bf16.mxu1 %v13868_v18  ;;  %7661 = vmatprep.subr.bf16.mxu0 %v11133_v37  ;;  %v11214_v37 = vcombine.low %v1286_v23, %v1294_v24  ;;  %v1389_v23 = vld [vmem:[%s13585_s30 + $0x650] sm:$0xff]  ;;  %v1382_v24 = vld [vmem:[%s13585_s30 + $0x618] sm:$0xff] }
 0x322   : > { %7825 = vmatprep.subr.bf16.mxu1 %v11135_v40  ;;  %v1317_v40 = vld [vmem:[%s13585_s30 + $0x410] sm:$0xff] }
 0x323   : > { %7662 = vmatpush1.bf16.msra.mxu0 %v11132_v45  ;;  %v1326_v45 = vld [vmem:[%s13585_s30 + $0x458] sm:$0xff] }
 0x324   : > { %7826 = vmatpush1.bf16.msra.mxu1 %v11134_v49  ;;  %7663 = vmatprep.subr.bf16.mxu0 %v11149_v29  ;;  %v11228_v49 = vcombine.low %v1301_v11, %v1309_v60  ;;  %v11230_v29 = vcombine.low %v1302_v16, %v1310_v34  ;;  %v11247_v48 = vcombine.high %v1318_v28, %v1326_v45  ;;  %v1397_v60 = vld [vmem:[%s13585_s30 + $0x690] sm:$0xff]  ;;  %v1398_v34 = vld [vmem:[%s13585_s30 + $0x698] sm:$0xff] }
 0x325   : > { %7827 = vmatprep.subr.bf16.mxu1 %v11151_v30  ;;  %v11245_v30 = vcombine.high %v1317_v40, %v1325_v8  ;;  %v1405_v16 = vld [vmem:[%s13585_s30 + $0x6d0] sm:$0xff] }
 0x327   : > { %7664 = vmatpush1.bf16.msra.mxu0 %v11148_v38  ;;  %v1342_v38 = vld [vmem:[%s13585_s30 + $0x4d8] sm:$0xff] }
 0x328   : > { %7828 = vmatpush1.bf16.msra.mxu1 %v11150_v50  ;;  %7665 = vmatprep.subr.bf16.mxu0 %v11165_v21  ;;  %v11244_v50 = vcombine.low %v1317_v40, %v1325_v8  ;;  %v11246_v21 = vcombine.low %v1318_v28, %v1326_v45  ;;  %v11263_v44 = vcombine.high %v1334_v33, %v1342_v38  ;;  %v1413_v8 = vld [vmem:[%s13585_s30 + $0x710] sm:$0xff]  ;;  %v1414_v45 = vld [vmem:[%s13585_s30 + $0x718] sm:$0xff] }
 0x329   : > { %7829 = vmatprep.subr.bf16.mxu1 %v11167_v27  ;;  %v11261_v27 = vcombine.high %v1333_v54, %v1341_v31  ;;  %v1421_v28 = vld [vmem:[%s13585_s30 + $0x750] sm:$0xff] }
 0x32b   : > { %7666 = vmatpush1.bf16.msra.mxu0 %v11164_v52  ;;  %v1358_v52 = vld [vmem:[%s13585_s30 + $0x558] sm:$0xff] }
 0x32c   : > { %7830 = vmatpush1.bf16.msra.mxu1 %v11166_v5  ;;  %7667 = vmatprep.subr.bf16.mxu0 %v11181_v6  ;;  %v11260_v5 = vcombine.low %v1333_v54, %v1341_v31  ;;  %v11262_v6 = vcombine.low %v1334_v33, %v1342_v38  ;;  %v11279_v7 = vcombine.high %v1350_v46, %v1358_v52  ;;  %v1429_v31 = vld [vmem:[%s13585_s30 + $0x790] sm:$0xff]  ;;  %v1430_v38 = vld [vmem:[%s13585_s30 + $0x798] sm:$0xff] }
 0x32d   : > { %7831 = vmatprep.subr.bf16.mxu1 %v11183_v3  ;;  %v11277_v3 = vcombine.high %v1349_v26, %v1357_v32  ;;  %v1437_v33 = vld [vmem:[%s13585_s30 + $0x7d0] sm:$0xff] }
 0x32f   : > { %7668 = vmatpush1.bf16.msra.mxu0 %v11180_v13  ;;  %v1374_v13 = vld [vmem:[%s13585_s30 + $0x5d8] sm:$0xff] }
 0x330   : > { %7832 = vmatpush1.bf16.msra.mxu1 %v11182_v14  ;;  %7669 = vmatprep.subr.bf16.mxu0 %v11197_v15  ;;  %v11276_v14 = vcombine.low %v1349_v26, %v1357_v32  ;;  %v11278_v15 = vcombine.low %v1350_v46, %v1358_v52  ;;  %v11295_v20 = vcombine.high %v1366_v51, %v1374_v13  ;;  %v1445_v32 = vld [vmem:[%s13585_s30 + $0x810] sm:$0xff]  ;;  %v1446_v52 = vld [vmem:[%s13585_s30 + $0x818] sm:$0xff] }
 0x331   : > { %7833 = vmatprep.subr.bf16.mxu1 %v11199_v17  ;;  %v11293_v17 = vcombine.high %v1365_v10, %v1373_v12  ;;  %v1453_v46 = vld [vmem:[%s13585_s30 + $0x850] sm:$0xff] }
 0x333   : > { %7670 = vmatpush1.bf16.msra.mxu0 %v11196_v25  ;;  %v1390_v25 = vld [vmem:[%s13585_s30 + $0x658] sm:$0xff] }
 0x334   : > { %7834 = vmatpush1.bf16.msra.mxu1 %v11198_v58  ;;  %7671 = vmatprep.subr.bf16.mxu0 %v11213_v62  ;;  %v11292_v58 = vcombine.low %v1365_v10, %v1373_v12  ;;  %v11294_v62 = vcombine.low %v1366_v51, %v1374_v13  ;;  %v11311_v11 = vcombine.high %v1382_v24, %v1390_v25  ;;  %v1461_v12 = vld [vmem:[%s13585_s30 + $0x890] sm:$0xff] }
 0x335   : > { %7835 = vmatprep.subr.bf16.mxu1 %v11215_v4  ;;  %v11309_v4 = vcombine.high %v1381_v22, %v1389_v23  ;;  %v1469_v51 = vld [vmem:[%s13585_s30 + $0x8d0] sm:$0xff]  ;;  %v11372_v13 = vcombine.low %v1445_v32, %v1453_v46 }
 0x337   : > { %7672 = vmatpush1.bf16.msra.mxu0 %v11212_v43  ;;  %v1406_v43 = vld [vmem:[%s13585_s30 + $0x6d8] sm:$0xff] }
 0x338   : > { %7836 = vmatpush1.bf16.msra.mxu1 %v11214_v37  ;;  %7673 = vmatprep.subr.bf16.mxu0 %v11229_v36  ;;  %v11308_v37 = vcombine.low %v1381_v22, %v1389_v23  ;;  %v11310_v36 = vcombine.low %v1382_v24, %v1390_v25  ;;  %v11327_v40 = vcombine.high %v1398_v34, %v1406_v43  ;;  %v1477_v22 = vld [vmem:[%s13585_s30 + $0x910] sm:$0xff]  ;;  %v1478_v25 = vld [vmem:[%s13585_s30 + $0x918] sm:$0xff] }
 0x339   : > { %7837 = vmatprep.subr.bf16.mxu1 %v11231_v39  ;;  %v11325_v39 = vcombine.high %v1397_v60, %v1405_v16  ;;  %v1485_v23 = vld [vmem:[%s13585_s30 + $0x950] sm:$0xff] }
 0x33b   : > { %7674 = vmatpush1.bf16.msra.mxu0 %v11228_v49  ;;  %v1422_v49 = vld [vmem:[%s13585_s30 + $0x758] sm:$0xff] }
 0x33c   : > { %7838 = vmatpush1.bf16.msra.mxu1 %v11230_v29  ;;  %7675 = vmatprep.subr.bf16.mxu0 %v11245_v30  ;;  %v11324_v29 = vcombine.low %v1397_v60, %v1405_v16  ;;  %v11326_v30 = vcombine.low %v1398_v34, %v1406_v43  ;;  %v11343_v54 = vcombine.high %v1414_v45, %v1422_v49  ;;  %v1493_v16 = vld [vmem:[%s13585_s30 + $0x990] sm:$0xff]  ;;  %v1494_v43 = vld [vmem:[%s13585_s30 + $0x998] sm:$0xff] }
 0x33d   : > { %7839 = vmatprep.subr.bf16.mxu1 %v11247_v48  ;;  %v11341_v48 = vcombine.high %v1413_v8, %v1421_v28  ;;  %v1501_v34 = vld [vmem:[%s13585_s30 + $0x9d0] sm:$0xff] }
 0x33f   : > { %7676 = vmatpush1.bf16.msra.mxu0 %v11244_v50  ;;  %v1438_v50 = vld [vmem:[%s13585_s30 + $0x7d8] sm:$0xff] }
 0x340   : > { %7840 = vmatpush1.bf16.msra.mxu1 %v11246_v21  ;;  %7677 = vmatprep.subr.bf16.mxu0 %v11261_v27  ;;  %v11340_v21 = vcombine.low %v1413_v8, %v1421_v28  ;;  %v11342_v27 = vcombine.low %v1414_v45, %v1422_v49  ;;  %v11359_v26 = vcombine.high %v1430_v38, %v1438_v50  ;;  %v1509_v28 = vld [vmem:[%s13585_s30 + $0xa10] sm:$0xff]  ;;  %v1510_v49 = vld [vmem:[%s13585_s30 + $0xa18] sm:$0xff] }
 0x341   : > { %7841 = vmatprep.subr.bf16.mxu1 %v11263_v44  ;;  %v11357_v44 = vcombine.high %v1429_v31, %v1437_v33  ;;  %v1517_v45 = vld [vmem:[%s13585_s30 + $0xa50] sm:$0xff] }
 0x343   : > { %7678 = vmatpush1.bf16.msra.mxu0 %v11260_v5  ;;  %v1454_v5 = vld [vmem:[%s13585_s30 + $0x858] sm:$0xff] }
 0x344   : > { %7842 = vmatpush1.bf16.msra.mxu1 %v11262_v6  ;;  %7679 = vmatprep.subr.bf16.mxu0 %v11277_v3  ;;  %v11356_v6 = vcombine.low %v1429_v31, %v1437_v33  ;;  %v11358_v3 = vcombine.low %v1430_v38, %v1438_v50  ;;  %v11375_v10 = vcombine.high %v1446_v52, %v1454_v5  ;;  %v1525_v33 = vld [vmem:[%s13585_s30 + $0xa90] sm:$0xff]  ;;  %v1526_v50 = vld [vmem:[%s13585_s30 + $0xa98] sm:$0xff] }
 0x345   : > { %7843 = vmatprep.subr.bf16.mxu1 %v11279_v7  ;;  %v11373_v7 = vcombine.high %v1445_v32, %v1453_v46  ;;  %v1533_v38 = vld [vmem:[%s13585_s30 + $0xad0] sm:$0xff] }
 0x346   : > { %v1541_v46 = vld [vmem:[%s13585_s30 + $0xb10] sm:$0xff] }
 0x347   : > { %7680 = vmatpush1.bf16.msra.mxu0 %v11276_v14  ;;  %v1462_v14 = vld [vmem:[%s13585_s30 + $0x898] sm:$0xff] }
 0x348   : > { %7844 = vmatpush1.bf16.msra.mxu1 %v11278_v15  ;;  %7681 = vmatprep.subr.bf16.mxu0 %v11293_v17  ;;  %v1470_v15 = vld [vmem:[%s13585_s30 + $0x8d8] sm:$0xff]  ;;  %v11374_v17 = vcombine.low %v1446_v52, %v1454_v5  ;;  %v1549_v52 = vld [vmem:[%s13585_s30 + $0xb50] sm:$0xff] }
 0x349   : > { %7845 = vmatprep.subr.bf16.mxu1 %v11295_v20  ;;  %v11389_v20 = vcombine.high %v1461_v12, %v1469_v51  ;;  %v11391_v24 = vcombine.high %v1462_v14, %v1470_v15  ;;  %v1542_v5 = vld [vmem:[%s13585_s30 + $0xb18] sm:$0xff] }
 0x34b   : > { %7682 = vmatpush1.bf16.msra.mxu0 %v11292_v58  ;;  %v1486_v58 = vld [vmem:[%s13585_s30 + $0x958] sm:$0xff] }
 0x34c   : > { %7846 = vmatpush1.bf16.msra.mxu1 %v11294_v62  ;;  %7683 = vmatprep.subr.bf16.mxu0 %v11309_v4  ;;  %v11388_v62 = vcombine.low %v1461_v12, %v1469_v51  ;;  %v11390_v4 = vcombine.low %v1462_v14, %v1470_v15  ;;  %v11407_v60 = vcombine.high %v1478_v25, %v1486_v58  ;;  %v1557_v51 = vld [vmem:[%s13585_s30 + $0xb90] sm:$0xff]  ;;  %v1558_v14 = vld [vmem:[%s13585_s30 + $0xb98] sm:$0xff] }
 0x34d   : > { %7847 = vmatprep.subr.bf16.mxu1 %v11311_v11  ;;  %v11405_v11 = vcombine.high %v1477_v22, %v1485_v23  ;;  %v1566_v15 = vld [vmem:[%s13585_s30 + $0xbd8] sm:$0xff] }
 0x34f   : > { %7684 = vmatpush1.bf16.msra.mxu0 %v11308_v37  ;;  %v1502_v37 = vld [vmem:[%s13585_s30 + $0x9d8] sm:$0xff] }
 0x350   : > { %7848 = vmatpush1.bf16.msra.mxu1 %v11310_v36  ;;  %7685 = vmatprep.subr.bf16.mxu0 %v11325_v39  ;;  %v11404_v36 = vcombine.low %v1477_v22, %v1485_v23  ;;  %v11406_v39 = vcombine.low %v1478_v25, %v1486_v58  ;;  %v11423_v8 = vcombine.high %v1494_v43, %v1502_v37  ;;  %v1581_v25 = vld [vmem:[%s13585_s30 + $0xc50] sm:$0xff]  ;;  %v1574_v58 = vld [vmem:[%s13585_s30 + $0xc18] sm:$0xff] }
 0x351   : > { %7849 = vmatprep.subr.bf16.mxu1 %v11327_v40  ;;  %v11421_v40 = vcombine.high %v1493_v16, %v1501_v34  ;;  %v11487_v23 = vcombine.high %v1558_v14, %v1566_v15 }
 0x353   : > { %7686 = vmatpush1.bf16.msra.mxu0 %v11324_v29  ;;  %v1518_v29 = vld [vmem:[%s13585_s30 + $0xa58] sm:$0xff] }
 0x354   : > { %7850 = vmatpush1.bf16.msra.mxu1 %v11326_v30  ;;  %7687 = vmatprep.subr.bf16.mxu0 %v11341_v48  ;;  %v11420_v30 = vcombine.low %v1493_v16, %v1501_v34  ;;  %v11422_v48 = vcombine.low %v1494_v43, %v1502_v37  ;;  %v11439_v31 = vcombine.high %v1510_v49, %v1518_v29  ;;  %v1589_v34 = vld [vmem:[%s13585_s30 + $0xc90] sm:$0xff]  ;;  %v1590_v37 = vld [vmem:[%s13585_s30 + $0xc98] sm:$0xff] }
 0x355   : > { %7851 = vmatprep.subr.bf16.mxu1 %v11343_v54  ;;  %v11437_v54 = vcombine.high %v1509_v28, %v1517_v45  ;;  %v1597_v43 = vld [vmem:[%s13585_s30 + $0xcd0] sm:$0xff] }
 0x357   : > { %7688 = vmatpush1.bf16.msra.mxu0 %v11340_v21  ;;  %v1534_v21 = vld [vmem:[%s13585_s30 + $0xad8] sm:$0xff] }
 0x358   : > { %7852 = vmatpush1.bf16.msra.mxu1 %v11342_v27  ;;  %7689 = vmatprep.subr.bf16.mxu0 %v11357_v44  ;;  %v11436_v27 = vcombine.low %v1509_v28, %v1517_v45  ;;  %v11438_v44 = vcombine.low %v1510_v49, %v1518_v29  ;;  %v11455_v32 = vcombine.high %v1526_v50, %v1534_v21  ;;  %v1605_v45 = vld [vmem:[%s13585_s30 + $0xd10] sm:$0xff]  ;;  %v1606_v29 = vld [vmem:[%s13585_s30 + $0xd18] sm:$0xff] }
 0x359   : > { %7853 = vmatprep.subr.bf16.mxu1 %v11359_v26  ;;  %v11453_v26 = vcombine.high %v1525_v33, %v1533_v38  ;;  %v1613_v49 = vld [vmem:[%s13585_s30 + $0xd50] sm:$0xff] }
 0x35b   : > { %7690 = vmatpush1.bf16.msra.mxu0 %v11356_v6  ;;  %v1550_v6 = vld [vmem:[%s13585_s30 + $0xb58] sm:$0xff] }
 0x35c   : > { %7854 = vmatpush1.bf16.msra.mxu1 %v11358_v3  ;;  %7700 = vmatprep.subr.bf16.mxu0 %v11373_v7  ;;  %v11452_v3 = vcombine.low %v1525_v33, %v1533_v38  ;;  %v11454_v7 = vcombine.low %v1526_v50, %v1534_v21  ;;  %v11471_v12 = vcombine.high %v1542_v5, %v1550_v6  ;;  %v1621_v38 = vld [vmem:[%s13585_s30 + $0xd90] sm:$0xff]  ;;  %v1622_v21 = vld [vmem:[%s13585_s30 + $0xd98] sm:$0xff] }
 0x35d   : > { %7864 = vmatprep.subr.bf16.mxu1 %v11375_v10  ;;  %v11469_v10 = vcombine.high %v1541_v46, %v1549_v52  ;;  %v1629_v50 = vld [vmem:[%s13585_s30 + $0xdd0] sm:$0xff] }
 0x35e   : > { %7692 = vmatmul.mubr.bf16.vlgmr.msra.gmra.mrb[12].mxu0 %v13870_v19 }
 0x35f   : > { %7856 = vmatmul.mubr.bf16.vlgmr.msra.gmra.mrb[12].mxu1 %v13870_v19  ;;  %7701 = vmatpush1.bf16.msra.mxu0 %v11372_v13  ;;  %v1565_v13 = vld [vmem:[%s13585_s30 + $0xbd0] sm:$0xff] }
 0x360   : > { %7732 = vmatprep.mubr.bf16.mxu0 %v13880_v0  ;;  %7865 = vmatpush1.bf16.msra.mxu1 %v11374_v17  ;;  %v11468_v17 = vcombine.low %v1541_v46, %v1549_v52  ;;  %v11485_v22 = vcombine.high %v1557_v51, %v1565_v13  ;;  %v1637_v52 = vld [vmem:[%s13585_s30 + $0xe10] sm:$0xff] }
 0x361   : > { %7896 = vmatprep.mubr.bf16.mxu1 %v13880_v0  ;;  %7702 = vmatprep.subr.bf16.mxu0 %v11389_v20  ;;  %v11470_v20 = vcombine.low %v1542_v5, %v1550_v6  ;;  %v1645_v5 = vld [vmem:[%s13585_s30 + $0xe50] sm:$0xff]  ;;  %v1638_v6 = vld [vmem:[%s13585_s30 + $0xe18] sm:$0xff] }
 0x362   : > { %7866 = vmatprep.subr.bf16.mxu1 %v11391_v24  ;;  %v1573_v24 = vld [vmem:[%s13585_s30 + $0xc10] sm:$0xff] }
 0x363   : > { %7703 = vmatpush1.bf16.msra.mxu0 %v11388_v62  ;;  %v1582_v62 = vld [vmem:[%s13585_s30 + $0xc58] sm:$0xff] }
 0x364   : > { %7867 = vmatpush1.bf16.msra.mxu1 %v11390_v4  ;;  %7704 = vmatprep.subr.bf16.mxu0 %v11405_v11  ;;  %v11484_v4 = vcombine.low %v1557_v51, %v1565_v13  ;;  %v11486_v11 = vcombine.low %v1558_v14, %v1566_v15  ;;  %v11503_v16 = vcombine.high %v1574_v58, %v1582_v62  ;;  %v1653_v13 = vld [vmem:[%s13585_s30 + $0xe90] sm:$0xff]  ;;  %v1654_v15 = vld [vmem:[%s13585_s30 + $0xe98] sm:$0xff] }
 0x365   : > { %7868 = vmatprep.subr.bf16.mxu1 %v11407_v60  ;;  %v11501_v60 = vcombine.high %v1573_v24, %v1581_v25  ;;  %v1661_v14 = vld [vmem:[%s13585_s30 + $0xed0] sm:$0xff] }
 0x367   : > { %7705 = vmatpush1.bf16.msra.mxu0 %v11404_v36  ;;  %v1598_v36 = vld [vmem:[%s13585_s30 + $0xcd8] sm:$0xff] }
 0x368   : > { %7869 = vmatpush1.bf16.msra.mxu1 %v11406_v39  ;;  %7706 = vmatprep.subr.bf16.mxu0 %v11421_v40  ;;  %v11500_v39 = vcombine.low %v1573_v24, %v1581_v25  ;;  %v11502_v40 = vcombine.low %v1574_v58, %v1582_v62  ;;  %v11519_v28 = vcombine.high %v1590_v37, %v1598_v36  ;;  %v1669_v25 = vld [vmem:[%s13585_s30 + $0xf10] sm:$0xff]  ;;  %v1670_v62 = vld [vmem:[%s13585_s30 + $0xf18] sm:$0xff] }
 0x369   : > { %7870 = vmatprep.subr.bf16.mxu1 %v11423_v8  ;;  %v11517_v8 = vcombine.high %v1589_v34, %v1597_v43  ;;  %v1677_v58 = vld [vmem:[%s13585_s30 + $0xf50] sm:$0xff] }
 0x36b   : > { %7707 = vmatpush1.bf16.msra.mxu0 %v11420_v30  ;;  %v1614_v30 = vld [vmem:[%s13585_s30 + $0xd58] sm:$0xff] }
 0x36c   : > { %7871 = vmatpush1.bf16.msra.mxu1 %v11422_v48  ;;  %7708 = vmatprep.subr.bf16.mxu0 %v11437_v54  ;;  %v11516_v48 = vcombine.low %v1589_v34, %v1597_v43  ;;  %v11518_v54 = vcombine.low %v1590_v37, %v1598_v36  ;;  %v11535_v33 = vcombine.high %v1606_v29, %v1614_v30  ;;  %v1685_v43 = vld [vmem:[%s13585_s30 + $0xf90] sm:$0xff]  ;;  %v1686_v36 = vld [vmem:[%s13585_s30 + $0xf98] sm:$0xff] }
 0x36d   : > { %7872 = vmatprep.subr.bf16.mxu1 %v11439_v31  ;;  %v11533_v31 = vcombine.high %v1605_v45, %v1613_v49  ;;  %v1693_v37 = vld [vmem:[%s13585_s30 + $0xfd0] sm:$0xff] }
 0x36f   : > { %7709 = vmatpush1.bf16.msra.mxu0 %v11436_v27  ;;  %v1630_v27 = vld [vmem:[%s13585_s30 + $0xdd8] sm:$0xff] }
 0x370   : > { %7873 = vmatpush1.bf16.msra.mxu1 %v11438_v44  ;;  %7710 = vmatprep.subr.bf16.mxu0 %v11453_v26  ;;  %v11532_v44 = vcombine.low %v1605_v45, %v1613_v49  ;;  %v11534_v26 = vcombine.low %v1606_v29, %v1614_v30  ;;  %v11551_v46 = vcombine.high %v1622_v21, %v1630_v27  ;;  %v1701_v49 = vld [vmem:[%s13585_s30 + $0x1010] sm:$0xff]  ;;  %v1702_v30 = vld [vmem:[%s13585_s30 + $0x1018] sm:$0xff] }
 0x371   : > { %7874 = vmatprep.subr.bf16.mxu1 %v11455_v32  ;;  %v11549_v32 = vcombine.high %v1621_v38, %v1629_v50  ;;  %v1709_v29 = vld [vmem:[%s13585_s30 + $0x1050] sm:$0xff] }
 0x373   : > { %7711 = vmatpush1.bf16.msra.mxu0 %v11452_v3  ;;  %v1646_v3 = vld [vmem:[%s13585_s30 + $0xe58] sm:$0xff] }
 0x374   : > { %7875 = vmatpush1.bf16.msra.mxu1 %v11454_v7  ;;  %7712 = vmatprep.subr.bf16.mxu0 %v11469_v10  ;;  %v11548_v7 = vcombine.low %v1621_v38, %v1629_v50  ;;  %v11550_v10 = vcombine.low %v1622_v21, %v1630_v27  ;;  %v11567_v51 = vcombine.high %v1638_v6, %v1646_v3  ;;  %v1717_v50 = vld [vmem:[%s13585_s30 + $0x1090] sm:$0xff] }
 0x375   : > { %7876 = vmatprep.subr.bf16.mxu1 %v11471_v12  ;;  %v11565_v12 = vcombine.high %v1637_v52, %v1645_v5  ;;  %v1725_v21 = vld [vmem:[%s13585_s30 + $0x10d0] sm:$0xff]  ;;  %v11628_v27 = vcombine.low %v1701_v49, %v1709_v29 }
 0x377   : > { %7713 = vmatpush1.bf16.msra.mxu0 %v11468_v17  ;;  %v1662_v17 = vld [vmem:[%s13585_s30 + $0xed8] sm:$0xff] }
 0x378   : > { %7877 = vmatpush1.bf16.msra.mxu1 %v11470_v20  ;;  %7714 = vmatprep.subr.bf16.mxu0 %v11485_v22  ;;  %v11564_v20 = vcombine.low %v1637_v52, %v1645_v5  ;;  %v11566_v22 = vcombine.low %v1638_v6, %v1646_v3  ;;  %v11583_v24 = vcombine.high %v1654_v15, %v1662_v17  ;;  %v1733_v52 = vld [vmem:[%s13585_s30 + $0x1110] sm:$0xff]  ;;  %v1734_v3 = vld [vmem:[%s13585_s30 + $0x1118] sm:$0xff] }
 0x379   : > { %7878 = vmatprep.subr.bf16.mxu1 %v11487_v23  ;;  %v11581_v23 = vcombine.high %v1653_v13, %v1661_v14  ;;  %v1741_v5 = vld [vmem:[%s13585_s30 + $0x1150] sm:$0xff] }
 0x37b   : > { %7715 = vmatpush1.bf16.msra.mxu0 %v11484_v4  ;;  %v1678_v4 = vld [vmem:[%s13585_s30 + $0xf58] sm:$0xff] }
 0x37c   : > { %7879 = vmatpush1.bf16.msra.mxu1 %v11486_v11  ;;  %7716 = vmatprep.subr.bf16.mxu0 %v11501_v60  ;;  %v11580_v11 = vcombine.low %v1653_v13, %v1661_v14  ;;  %v11582_v60 = vcombine.low %v1654_v15, %v1662_v17  ;;  %v11599_v34 = vcombine.high %v1670_v62, %v1678_v4  ;;  %v1749_v14 = vld [vmem:[%s13585_s30 + $0x1190] sm:$0xff]  ;;  %v1750_v17 = vld [vmem:[%s13585_s30 + $0x1198] sm:$0xff] }
 0x37d   : > { %7880 = vmatprep.subr.bf16.mxu1 %v11503_v16  ;;  %v11597_v16 = vcombine.high %v1669_v25, %v1677_v58  ;;  %v1757_v15 = vld [vmem:[%s13585_s30 + $0x11d0] sm:$0xff] }
 0x37f   : > { %7717 = vmatpush1.bf16.msra.mxu0 %v11500_v39  ;;  %v1694_v39 = vld [vmem:[%s13585_s30 + $0xfd8] sm:$0xff] }
 0x380   : > { %7881 = vmatpush1.bf16.msra.mxu1 %v11502_v40  ;;  %7718 = vmatprep.subr.bf16.mxu0 %v11517_v8  ;;  %v11596_v40 = vcombine.low %v1669_v25, %v1677_v58  ;;  %v11598_v8 = vcombine.low %v1670_v62, %v1678_v4  ;;  %v11615_v45 = vcombine.high %v1686_v36, %v1694_v39  ;;  %v1765_v58 = vld [vmem:[%s13585_s30 + $0x1210] sm:$0xff]  ;;  %v1766_v4 = vld [vmem:[%s13585_s30 + $0x1218] sm:$0xff] }
 0x381   : > { %7882 = vmatprep.subr.bf16.mxu1 %v11519_v28  ;;  %v11613_v28 = vcombine.high %v1685_v43, %v1693_v37  ;;  %v1773_v62 = vld [vmem:[%s13585_s30 + $0x1250] sm:$0xff] }
 0x383   : > { %7719 = vmatpush1.bf16.msra.mxu0 %v11516_v48  ;;  %v1710_v48 = vld [vmem:[%s13585_s30 + $0x1058] sm:$0xff] }
 0x384   : > { %7883 = vmatpush1.bf16.msra.mxu1 %v11518_v54  ;;  %7720 = vmatprep.subr.bf16.mxu0 %v11533_v31  ;;  %v11612_v54 = vcombine.low %v1685_v43, %v1693_v37  ;;  %v11614_v31 = vcombine.low %v1686_v36, %v1694_v39  ;;  %v11631_v38 = vcombine.high %v1702_v30, %v1710_v48  ;;  %v1781_v37 = vld [vmem:[%s13585_s30 + $0x1290] sm:$0xff]  ;;  %v1782_v39 = vld [vmem:[%s13585_s30 + $0x1298] sm:$0xff] }
 0x385   : > { %7884 = vmatprep.subr.bf16.mxu1 %v11535_v33  ;;  %v11629_v33 = vcombine.high %v1701_v49, %v1709_v29  ;;  %v1789_v36 = vld [vmem:[%s13585_s30 + $0x12d0] sm:$0xff] }
 0x386   : > { %v1797_v29 = vld [vmem:[%s13585_s30 + $0x1310] sm:$0xff] }
 0x387   : > { %7721 = vmatpush1.bf16.msra.mxu0 %v11532_v44  ;;  %v1718_v44 = vld [vmem:[%s13585_s30 + $0x1098] sm:$0xff] }
 0x388   : > { %7885 = vmatpush1.bf16.msra.mxu1 %v11534_v26  ;;  %7722 = vmatprep.subr.bf16.mxu0 %v11549_v32  ;;  %v1726_v26 = vld [vmem:[%s13585_s30 + $0x10d8] sm:$0xff]  ;;  %v11630_v32 = vcombine.low %v1702_v30, %v1710_v48  ;;  %v1805_v30 = vld [vmem:[%s13585_s30 + $0x1350] sm:$0xff] }
 0x389   : > { %7886 = vmatprep.subr.bf16.mxu1 %v11551_v46  ;;  %v11645_v46 = vcombine.high %v1717_v50, %v1725_v21  ;;  %v11647_v6 = vcombine.high %v1718_v44, %v1726_v26  ;;  %v1798_v48 = vld [vmem:[%s13585_s30 + $0x1318] sm:$0xff] }
 0x38b   : > { %7723 = vmatpush1.bf16.msra.mxu0 %v11548_v7  ;;  %v1742_v7 = vld [vmem:[%s13585_s30 + $0x1158] sm:$0xff] }
 0x38c   : > { %7887 = vmatpush1.bf16.msra.mxu1 %v11550_v10  ;;  %7724 = vmatprep.subr.bf16.mxu0 %v11565_v12  ;;  %v11644_v10 = vcombine.low %v1717_v50, %v1725_v21  ;;  %v11646_v12 = vcombine.low %v1718_v44, %v1726_v26  ;;  %v11663_v13 = vcombine.high %v1734_v3, %v1742_v7  ;;  %v1813_v21 = vld [vmem:[%s13585_s30 + $0x1390] sm:$0xff]  ;;  %v1814_v44 = vld [vmem:[%s13585_s30 + $0x1398] sm:$0xff] }
 0x38d   : > { %7888 = vmatprep.subr.bf16.mxu1 %v11567_v51  ;;  %v11661_v51 = vcombine.high %v1733_v52, %v1741_v5  ;;  %v1822_v26 = vld [vmem:[%s13585_s30 + $0x13d8] sm:$0xff] }
 0x38f   : > { %7725 = vmatpush1.bf16.msra.mxu0 %v11564_v20  ;;  %v1758_v20 = vld [vmem:[%s13585_s30 + $0x11d8] sm:$0xff] }
 0x390   : > { %7889 = vmatpush1.bf16.msra.mxu1 %v11566_v22  ;;  %7726 = vmatprep.subr.bf16.mxu0 %v11581_v23  ;;  %v11660_v22 = vcombine.low %v1733_v52, %v1741_v5  ;;  %v11662_v23 = vcombine.low %v1734_v3, %v1742_v7  ;;  %v11679_v25 = vcombine.high %v1750_v17, %v1758_v20  ;;  %v1837_v3 = vld [vmem:[%s13585_s30 + $0x1450] sm:$0xff]  ;;  %v1830_v7 = vld [vmem:[%s13585_s30 + $0x1418] sm:$0xff] }
 0x391   : > { %7890 = vmatprep.subr.bf16.mxu1 %v11583_v24  ;;  %v11677_v24 = vcombine.high %v1749_v14, %v1757_v15  ;;  %v11743_v5 = vcombine.high %v1814_v44, %v1822_v26 }
 0x393   : > { %7727 = vmatpush1.bf16.msra.mxu0 %v11580_v11  ;;  %v1774_v11 = vld [vmem:[%s13585_s30 + $0x1258] sm:$0xff] }
 0x394   : > { %7891 = vmatpush1.bf16.msra.mxu1 %v11582_v60  ;;  %7728 = vmatprep.subr.bf16.mxu0 %v11597_v16  ;;  %v11676_v60 = vcombine.low %v1749_v14, %v1757_v15  ;;  %v11678_v16 = vcombine.low %v1750_v17, %v1758_v20  ;;  %v11695_v43 = vcombine.high %v1766_v4, %v1774_v11  ;;  %v1845_v15 = vld [vmem:[%s13585_s30 + $0x1490] sm:$0xff]  ;;  %v1846_v20 = vld [vmem:[%s13585_s30 + $0x1498] sm:$0xff] }
 0x395   : > { %7892 = vmatprep.subr.bf16.mxu1 %v11599_v34  ;;  %v11693_v34 = vcombine.high %v1765_v58, %v1773_v62  ;;  %v1853_v17 = vld [vmem:[%s13585_s30 + $0x14d0] sm:$0xff] }
 0x397   : > { %7729 = vmatpush1.bf16.msra.mxu0 %v11596_v40  ;;  %v1790_v40 = vld [vmem:[%s13585_s30 + $0x12d8] sm:$0xff] }
 0x398   : > { %7893 = vmatpush1.bf16.msra.mxu1 %v11598_v8  ;;  %7730 = vmatprep.subr.bf16.mxu0 %v11613_v28  ;;  %v11692_v8 = vcombine.low %v1765_v58, %v1773_v62  ;;  %v11694_v28 = vcombine.low %v1766_v4, %v1774_v11  ;;  %v11711_v49 = vcombine.high %v1782_v39, %v1790_v40  ;;  %v1861_v62 = vld [vmem:[%s13585_s30 + $0x1510] sm:$0xff]  ;;  %v1862_v11 = vld [vmem:[%s13585_s30 + $0x1518] sm:$0xff] }
 0x399   : > { %7894 = vmatprep.subr.bf16.mxu1 %v11615_v45  ;;  %v11709_v45 = vcombine.high %v1781_v37, %v1789_v36  ;;  %v1869_v4 = vld [vmem:[%s13585_s30 + $0x1550] sm:$0xff] }
 0x39b   : > { %7731 = vmatpush1.bf16.msra.mxu0 %v11612_v54  ;;  %v1806_v54 = vld [vmem:[%s13585_s30 + $0x1358] sm:$0xff] }
 0x39c   : > { %7895 = vmatpush1.bf16.msra.mxu1 %v11614_v31  ;;  %7741 = vmatprep.subr.bf16.mxu0 %v11629_v33  ;;  %v11708_v31 = vcombine.low %v1781_v37, %v1789_v36  ;;  %v11710_v33 = vcombine.low %v1782_v39, %v1790_v40  ;;  %v11727_v50 = vcombine.high %v1798_v48, %v1806_v54  ;;  %v1877_v36 = vld [vmem:[%s13585_s30 + $0x1590] sm:$0xff]  ;;  %v1878_v40 = vld [vmem:[%s13585_s30 + $0x1598] sm:$0xff] }
 0x39d   : > { %7905 = vmatprep.subr.bf16.mxu1 %v11631_v38  ;;  %v11725_v38 = vcombine.high %v1797_v29, %v1805_v30  ;;  %v1885_v39 = vld [vmem:[%s13585_s30 + $0x15d0] sm:$0xff] }
 0x39e   : > { %7733 = vmatmul.mubr.bf16.vlgmr.msra.gmra.mrb[12].mxu0 %v13952_v47 }
 0x39f   : > { %7897 = vmatmul.mubr.bf16.vlgmr.msra.gmra.mrb[12].mxu1 %v13952_v47  ;;  %7742 = vmatpush1.bf16.msra.mxu0 %v11628_v27  ;;  %v1821_v27 = vld [vmem:[%s13585_s30 + $0x13d0] sm:$0xff] }
 0x3a0   : > { %7773 = vmatprep.mubr.bf16.mxu0 %v13954_v9  ;;  %7906 = vmatpush1.bf16.msra.mxu1 %v11630_v32  ;;  %v11724_v32 = vcombine.low %v1797_v29, %v1805_v30  ;;  %v11741_v52 = vcombine.high %v1813_v21, %v1821_v27  ;;  %v1893_v30 = vld [vmem:[%s13585_s30 + $0x1610] sm:$0xff] }
 0x3a1   : > { %7937 = vmatprep.mubr.bf16.mxu1 %v13954_v9  ;;  %7743 = vmatprep.subr.bf16.mxu0 %v11645_v46  ;;  %v11726_v46 = vcombine.low %v1798_v48, %v1806_v54  ;;  %v1901_v48 = vld [vmem:[%s13585_s30 + $0x1650] sm:$0xff]  ;;  %v1894_v54 = vld [vmem:[%s13585_s30 + $0x1618] sm:$0xff] }
 0x3a2   : > { %7907 = vmatprep.subr.bf16.mxu1 %v11647_v6  ;;  %v1829_v6 = vld [vmem:[%s13585_s30 + $0x1410] sm:$0xff] }
 0x3a3   : > { %7744 = vmatpush1.bf16.msra.mxu0 %v11644_v10  ;;  %v1838_v10 = vld [vmem:[%s13585_s30 + $0x1458] sm:$0xff] }
 0x3a4   : > { %7908 = vmatpush1.bf16.msra.mxu1 %v11646_v12  ;;  %7745 = vmatprep.subr.bf16.mxu0 %v11661_v51  ;;  %v11740_v12 = vcombine.low %v1813_v21, %v1821_v27  ;;  %v11742_v51 = vcombine.low %v1814_v44, %v1822_v26  ;;  %v11759_v14 = vcombine.high %v1830_v7, %v1838_v10  ;;  %v1909_v27 = vld [vmem:[%s13585_s30 + $0x1690] sm:$0xff]  ;;  %v1910_v26 = vld [vmem:[%s13585_s30 + $0x1698] sm:$0xff] }
 0x3a5   : > { %7909 = vmatprep.subr.bf16.mxu1 %v11663_v13  ;;  %v11757_v13 = vcombine.high %v1829_v6, %v1837_v3  ;;  %v1917_v44 = vld [vmem:[%s13585_s30 + $0x16d0] sm:$0xff] }
 0x3a7   : > { %7746 = vmatpush1.bf16.msra.mxu0 %v11660_v22  ;;  %v1854_v22 = vld [vmem:[%s13585_s30 + $0x14d8] sm:$0xff] }
 0x3a8   : > { %7910 = vmatpush1.bf16.msra.mxu1 %v11662_v23  ;;  %7747 = vmatprep.subr.bf16.mxu0 %v11677_v24  ;;  %v11756_v23 = vcombine.low %v1829_v6, %v1837_v3  ;;  %v11758_v24 = vcombine.low %v1830_v7, %v1838_v10  ;;  %v11775_v58 = vcombine.high %v1846_v20, %v1854_v22  ;;  %v1925_v3 = vld [vmem:[%s13585_s30 + $0x1710] sm:$0xff]  ;;  %v1926_v10 = vld [vmem:[%s13585_s30 + $0x1718] sm:$0xff] }
 0x3a9   : > { %7911 = vmatprep.subr.bf16.mxu1 %v11679_v25  ;;  %v11773_v25 = vcombine.high %v1845_v15, %v1853_v17  ;;  %v1933_v7 = vld [vmem:[%s13585_s30 + $0x1750] sm:$0xff] }
 0x3ab   : > { %7748 = vmatpush1.bf16.msra.mxu0 %v11676_v60  ;;  %v1870_v60 = vld [vmem:[%s13585_s30 + $0x1558] sm:$0xff] }
 0x3ac   : > { %7912 = vmatpush1.bf16.msra.mxu1 %v11678_v16  ;;  %7749 = vmatprep.subr.bf16.mxu0 %v11693_v34  ;;  %v11772_v16 = vcombine.low %v1845_v15, %v1853_v17  ;;  %v11774_v34 = vcombine.low %v1846_v20, %v1854_v22  ;;  %v11791_v37 = vcombine.high %v1862_v11, %v1870_v60  ;;  %v1941_v17 = vld [vmem:[%s13585_s30 + $0x1790] sm:$0xff]  ;;  %v1942_v22 = vld [vmem:[%s13585_s30 + $0x1798] sm:$0xff] }
 0x3ad   : > { %7913 = vmatprep.subr.bf16.mxu1 %v11695_v43  ;;  %v11789_v43 = vcombine.high %v1861_v62, %v1869_v4  ;;  %v1949_v20 = vld [vmem:[%s13585_s30 + $0x17d0] sm:$0xff] }
 0x3af   : > { %7750 = vmatpush1.bf16.msra.mxu0 %v11692_v8  ;;  %v1886_v8 = vld [vmem:[%s13585_s30 + $0x15d8] sm:$0xff] }
 0x3b0   : > { %7914 = vmatpush1.bf16.msra.mxu1 %v11694_v28  ;;  %7751 = vmatprep.subr.bf16.mxu0 %v11709_v45  ;;  %v11788_v28 = vcombine.low %v1861_v62, %v1869_v4  ;;  %v11790_v45 = vcombine.low %v1862_v11, %v1870_v60  ;;  %v11807_v29 = vcombine.high %v1878_v40, %v1886_v8  ;;  %v1957_v4 = vld [vmem:[%s13585_s30 + $0x1810] sm:$0xff]  ;;  %v1958_v60 = vld [vmem:[%s13585_s30 + $0x1818] sm:$0xff] }
 0x3b1   : > { %7915 = vmatprep.subr.bf16.mxu1 %v11711_v49  ;;  %v11805_v49 = vcombine.high %v1877_v36, %v1885_v39  ;;  %v1965_v11 = vld [vmem:[%s13585_s30 + $0x1850] sm:$0xff] }
 0x3b3   : > { %7752 = vmatpush1.bf16.msra.mxu0 %v11708_v31  ;;  %v1902_v31 = vld [vmem:[%s13585_s30 + $0x1658] sm:$0xff] }
 0x3b4   : > { %7916 = vmatpush1.bf16.msra.mxu1 %v11710_v33  ;;  %7753 = vmatprep.subr.bf16.mxu0 %v11725_v38  ;;  %v11804_v33 = vcombine.low %v1877_v36, %v1885_v39  ;;  %v11806_v38 = vcombine.low %v1878_v40, %v1886_v8  ;;  %v11823_v21 = vcombine.high %v1894_v54, %v1902_v31  ;;  %v1973_v39 = vld [vmem:[%s13585_s30 + $0x1890] sm:$0xff] }
 0x3b5   : > { %7917 = vmatprep.subr.bf16.mxu1 %v11727_v50  ;;  %v11821_v50 = vcombine.high %v1893_v30, %v1901_v48  ;;  %v1981_v40 = vld [vmem:[%s13585_s30 + $0x18d0] sm:$0xff]  ;;  %v11884_v8 = vcombine.low %v1957_v4, %v1965_v11 }
 0x3b7   : > { %7754 = vmatpush1.bf16.msra.mxu0 %v11724_v32  ;;  %v1918_v32 = vld [vmem:[%s13585_s30 + $0x16d8] sm:$0xff] }
 0x3b8   : > { %7918 = vmatpush1.bf16.msra.mxu1 %v11726_v46  ;;  %7755 = vmatprep.subr.bf16.mxu0 %v11741_v52  ;;  %v11820_v46 = vcombine.low %v1893_v30, %v1901_v48  ;;  %v11822_v52 = vcombine.low %v1894_v54, %v1902_v31  ;;  %v11839_v6 = vcombine.high %v1910_v26, %v1918_v32  ;;  %v1989_v30 = vld [vmem:[%s13585_s30 + $0x1910] sm:$0xff]  ;;  %v1990_v31 = vld [vmem:[%s13585_s30 + $0x1918] sm:$0xff] }
 0x3b9   : > { %7919 = vmatprep.subr.bf16.mxu1 %v11743_v5  ;;  %v11837_v5 = vcombine.high %v1909_v27, %v1917_v44  ;;  %v1997_v48 = vld [vmem:[%s13585_s30 + $0x1950] sm:$0xff] }
 0x3bb   : > { %7756 = vmatpush1.bf16.msra.mxu0 %v11740_v12  ;;  %v1934_v12 = vld [vmem:[%s13585_s30 + $0x1758] sm:$0xff] }
 0x3bc   : > { %7920 = vmatpush1.bf16.msra.mxu1 %v11742_v51  ;;  %7757 = vmatprep.subr.bf16.mxu0 %v11757_v13  ;;  %v11836_v51 = vcombine.low %v1909_v27, %v1917_v44  ;;  %v11838_v13 = vcombine.low %v1910_v26, %v1918_v32  ;;  %v11855_v15 = vcombine.high %v1926_v10, %v1934_v12  ;;  %v2005_v44 = vld [vmem:[%s13585_s30 + $0x1990] sm:$0xff]  ;;  %v2006_v32 = vld [vmem:[%s13585_s30 + $0x1998] sm:$0xff] }
 0x3bd   : > { %7921 = vmatprep.subr.bf16.mxu1 %v11759_v14  ;;  %v11853_v14 = vcombine.high %v1925_v3, %v1933_v7  ;;  %v2013_v26 = vld [vmem:[%s13585_s30 + $0x19d0] sm:$0xff] }
 0x3bf   : > { %7758 = vmatpush1.bf16.msra.mxu0 %v11756_v23  ;;  %v1950_v23 = vld [vmem:[%s13585_s30 + $0x17d8] sm:$0xff] }
 0x3c0   : > { %7922 = vmatpush1.bf16.msra.mxu1 %v11758_v24  ;;  %7759 = vmatprep.subr.bf16.mxu0 %v11773_v25  ;;  %v11852_v24 = vcombine.low %v1925_v3, %v1933_v7  ;;  %v11854_v25 = vcombine.low %v1926_v10, %v1934_v12  ;;  %v11871_v62 = vcombine.high %v1942_v22, %v1950_v23  ;;  %v2021_v7 = vld [vmem:[%s13585_s30 + $0x1a10] sm:$0xff]  ;;  %v2022_v12 = vld [vmem:[%s13585_s30 + $0x1a18] sm:$0xff] }
 0x3c1   : > { %7923 = vmatprep.subr.bf16.mxu1 %v11775_v58  ;;  %v11869_v58 = vcombine.high %v1941_v17, %v1949_v20  ;;  %v2029_v10 = vld [vmem:[%s13585_s30 + $0x1a50] sm:$0xff] }
 0x3c3   : > { %7760 = vmatpush1.bf16.msra.mxu0 %v11772_v16  ;;  %v1966_v16 = vld [vmem:[%s13585_s30 + $0x1858] sm:$0xff] }
 0x3c4   : > { %7924 = vmatpush1.bf16.msra.mxu1 %v11774_v34  ;;  %7761 = vmatprep.subr.bf16.mxu0 %v11789_v43  ;;  %v11868_v34 = vcombine.low %v1941_v17, %v1949_v20  ;;  %v11870_v43 = vcombine.low %v1942_v22, %v1950_v23  ;;  %v11887_v36 = vcombine.high %v1958_v60, %v1966_v16  ;;  %v2037_v20 = vld [vmem:[%s13585_s30 + $0x1a90] sm:$0xff]  ;;  %v2038_v23 = vld [vmem:[%s13585_s30 + $0x1a98] sm:$0xff] }
 0x3c5   : > { %7925 = vmatprep.subr.bf16.mxu1 %v11791_v37  ;;  %v11885_v37 = vcombine.high %v1957_v4, %v1965_v11  ;;  %v2045_v22 = vld [vmem:[%s13585_s30 + $0x1ad0] sm:$0xff] }
 0x3c6   : > { %v2053_v11 = vld [vmem:[%s13585_s30 + $0x1b10] sm:$0xff] }
 0x3c7   : > { %7762 = vmatpush1.bf16.msra.mxu0 %v11788_v28  ;;  %v1974_v28 = vld [vmem:[%s13585_s30 + $0x1898] sm:$0xff] }
 0x3c8   : > { %7926 = vmatpush1.bf16.msra.mxu1 %v11790_v45  ;;  %7763 = vmatprep.subr.bf16.mxu0 %v11805_v49  ;;  %v1982_v45 = vld [vmem:[%s13585_s30 + $0x18d8] sm:$0xff]  ;;  %v11886_v49 = vcombine.low %v1958_v60, %v1966_v16  ;;  %v2061_v60 = vld [vmem:[%s13585_s30 + $0x1b50] sm:$0xff] }
 0x3c9   : > { %7927 = vmatprep.subr.bf16.mxu1 %v11807_v29  ;;  %v11901_v29 = vcombine.high %v1973_v39, %v1981_v40  ;;  %v11903_v54 = vcombine.high %v1974_v28, %v1982_v45  ;;  %v2054_v16 = vld [vmem:[%s13585_s30 + $0x1b18] sm:$0xff] }
 0x3cb   : > { %7764 = vmatpush1.bf16.msra.mxu0 %v11804_v33  ;;  %v1998_v33 = vld [vmem:[%s13585_s30 + $0x1958] sm:$0xff] }
 0x3cc   : > { %7928 = vmatpush1.bf16.msra.mxu1 %v11806_v38  ;;  %7765 = vmatprep.subr.bf16.mxu0 %v11821_v50  ;;  %v11900_v38 = vcombine.low %v1973_v39, %v1981_v40  ;;  %v11902_v50 = vcombine.low %v1974_v28, %v1982_v45  ;;  %v11919_v27 = vcombine.high %v1990_v31, %v1998_v33  ;;  %v2077_v28 = vld [vmem:[%s13585_s30 + $0x1bd0] sm:$0xff] }
 0x3cd   : > { %7929 = vmatprep.subr.bf16.mxu1 %v11823_v21  ;;  %v11917_v21 = vcombine.high %v1989_v30, %v1997_v48 }
 0x3cf   : > { %7766 = vmatpush1.bf16.msra.mxu0 %v11820_v46  ;;  %v2014_v46 = vld [vmem:[%s13585_s30 + $0x19d8] sm:$0xff] }
 0x3d0   : > { %7930 = vmatpush1.bf16.msra.mxu1 %v11822_v52  ;;  %7767 = vmatprep.subr.bf16.mxu0 %v11837_v5  ;;  %v11916_v52 = vcombine.low %v1989_v30, %v1997_v48  ;;  %v11918_v5 = vcombine.low %v1990_v31, %v1998_v33  ;;  %v11935_v3 = vcombine.high %v2006_v32, %v2014_v46  ;;  %v2078_v30 = vld [vmem:[%s13585_s30 + $0x1bd8] sm:$0xff] }
 0x3d1   : > { %7931 = vmatprep.subr.bf16.mxu1 %v11839_v6  ;;  %v11933_v6 = vcombine.high %v2005_v44, %v2013_v26  ;;  %v11980_v31 = vcombine.low %v2053_v11, %v2061_v60 }
 0x3d3   : > { %7768 = vmatpush1.bf16.msra.mxu0 %v11836_v51  ;;  %v2030_v51 = vld [vmem:[%s13585_s30 + $0x1a58] sm:$0xff] }
 0x3d4   : > { %7932 = vmatpush1.bf16.msra.mxu1 %v11838_v13  ;;  %7769 = vmatprep.subr.bf16.mxu0 %v11853_v14  ;;  %v11932_v13 = vcombine.low %v2005_v44, %v2013_v26  ;;  %v11934_v14 = vcombine.low %v2006_v32, %v2014_v46  ;;  %v11951_v17 = vcombine.high %v2022_v12, %v2030_v51  ;;  %v2085_v26 = vld [vmem:[%s13585_s30 + $0x1c10] sm:$0xff]  ;;  %v2086_v46 = vld [vmem:[%s13585_s30 + $0x1c18] sm:$0xff] }
 0x3d5   : > { %7933 = vmatprep.subr.bf16.mxu1 %v11855_v15  ;;  %v11949_v15 = vcombine.high %v2021_v7, %v2029_v10  ;;  %v2093_v32 = vld [vmem:[%s13585_s30 + $0x1c50] sm:$0xff] }
 0x3d7   : > { %7770 = vmatpush1.bf16.msra.mxu0 %v11852_v24  ;;  %v2046_v24 = vld [vmem:[%s13585_s30 + $0x1ad8] sm:$0xff] }
 0x3d8   : > { %7934 = vmatpush1.bf16.msra.mxu1 %v11854_v25  ;;  %7771 = vmatprep.subr.bf16.mxu0 %v11869_v58  ;;  %v11948_v25 = vcombine.low %v2021_v7, %v2029_v10  ;;  %v11950_v58 = vcombine.low %v2022_v12, %v2030_v51  ;;  %v11967_v4 = vcombine.high %v2038_v23, %v2046_v24  ;;  %v2101_v10 = vld [vmem:[%s13585_s30 + $0x1c90] sm:$0xff]  ;;  %v2102_v51 = vld [vmem:[%s13585_s30 + $0x1c98] sm:$0xff] }
 0x3d9   : > { %7935 = vmatprep.subr.bf16.mxu1 %v11871_v62  ;;  %v11965_v62 = vcombine.high %v2037_v20, %v2045_v22  ;;  %v2109_v12 = vld [vmem:[%s13585_s30 + $0x1cd0] sm:$0xff] }
 0x3db   : > { %7772 = vmatpush1.bf16.msra.mxu0 %v11868_v34  ;;  %v2062_v34 = vld [vmem:[%s13585_s30 + $0x1b58] sm:$0xff] }
 0x3dc   : > { %7936 = vmatpush1.bf16.msra.mxu1 %v11870_v43  ;;  %7782 = vmatprep.subr.bf16.mxu0 %v11885_v37  ;;  %v11964_v43 = vcombine.low %v2037_v20, %v2045_v22  ;;  %v11966_v37 = vcombine.low %v2038_v23, %v2046_v24  ;;  %v11983_v40 = vcombine.high %v2054_v16, %v2062_v34  ;;  %v2117_v22 = vld [vmem:[%s13585_s30 + $0x1d10] sm:$0xff]  ;;  %v2118_v24 = vld [vmem:[%s13585_s30 + $0x1d18] sm:$0xff] }
 0x3dd   : > { %7946 = vmatprep.subr.bf16.mxu1 %v11887_v36  ;;  %v11981_v36 = vcombine.high %v2053_v11, %v2061_v60  ;;  %v2125_v23 = vld [vmem:[%s13585_s30 + $0x1d50] sm:$0xff] }
 0x3de   : > { %7774 = vmatmul.mubr.bf16.vlgmr.msra.gmra.mrb[12].mxu0 %v14026_v56  ;;  %v2133_v60 = vld [vmem:[%s13585_s30 + $0x1d90] sm:$0xff] }
 0x3df   : > { %7938 = vmatmul.mubr.bf16.vlgmr.msra.gmra.mrb[12].mxu1 %v14026_v56  ;;  %7783 = vmatpush1.bf16.msra.mxu0 %v11884_v8  ;;  %v2069_v8 = vld [vmem:[%s13585_s30 + $0x1b90] sm:$0xff] }
 0x3e0   : > { %7814 = vmatprep.mubr.bf16.mxu0 %v14030_v41  ;;  %7947 = vmatpush1.bf16.msra.mxu1 %v11886_v49 }
 0x3e1   : > { %7978 = vmatprep.mubr.bf16.mxu1 %v14030_v41  ;;  %7784 = vmatprep.subr.bf16.mxu0 %v11901_v29  ;;  %v2070_v29 = vld [vmem:[%s13585_s30 + $0x1b98] sm:$0xff] }
 0x3e2   : > { %7948 = vmatprep.subr.bf16.mxu1 %v11903_v54  ;;  %v11999_v44 = vcombine.high %v2070_v29, %v2078_v30 }
 0x3e3   : > { %7785 = vmatpush1.bf16.msra.mxu0 %v11900_v38 }
 0x3e4   : > { %7949 = vmatpush1.bf16.msra.mxu1 %v11902_v50  ;;  %7786 = vmatprep.subr.bf16.mxu0 %v11917_v21  ;;  %v11982_v50 = vcombine.low %v2054_v16, %v2062_v34  ;;  %v11997_v21 = vcombine.high %v2069_v8, %v2077_v28  ;;  %v2141_v16 = vld [vmem:[%s13585_s30 + $0x1dd0] sm:$0xff]  ;;  %v2134_v34 = vld [vmem:[%s13585_s30 + $0x1d98] sm:$0xff] }
 0x3e5   : > { %7950 = vmatprep.subr.bf16.mxu1 %v11919_v27 }
 0x3e7   : > { %7787 = vmatpush1.bf16.msra.mxu0 %v11916_v52  ;;  %v2094_v52 = vld [vmem:[%s13585_s30 + $0x1c58] sm:$0xff] }
 0x3e8   : > { %7951 = vmatpush1.bf16.msra.mxu1 %v11918_v5  ;;  %7788 = vmatprep.subr.bf16.mxu0 %v11933_v6  ;;  %v11996_v5 = vcombine.low %v2069_v8, %v2077_v28  ;;  %v11998_v6 = vcombine.low %v2070_v29, %v2078_v30  ;;  %v12015_v7 = vcombine.high %v2086_v46, %v2094_v52  ;;  %v2149_v28 = vld [vmem:[%s13585_s30 + $0x1e10] sm:$0xff]  ;;  %v2150_v30 = vld [vmem:[%s13585_s30 + $0x1e18] sm:$0xff] }
 0x3e9   : > { %7952 = vmatprep.subr.bf16.mxu1 %v11935_v3  ;;  %v12013_v3 = vcombine.high %v2085_v26, %v2093_v32  ;;  %v2157_v29 = vld [vmem:[%s13585_s30 + $0x1e50] sm:$0xff] }
 0x3eb   : > { %7789 = vmatpush1.bf16.msra.mxu0 %v11932_v13  ;;  %v2110_v13 = vld [vmem:[%s13585_s30 + $0x1cd8] sm:$0xff] }
 0x3ec   : > { %7953 = vmatpush1.bf16.msra.mxu1 %v11934_v14  ;;  %7790 = vmatprep.subr.bf16.mxu0 %v11949_v15  ;;  %v12012_v14 = vcombine.low %v2085_v26, %v2093_v32  ;;  %v12014_v15 = vcombine.low %v2086_v46, %v2094_v52  ;;  %v12031_v20 = vcombine.high %v2102_v51, %v2110_v13  ;;  %v2174_v26 = vld [vmem:[%s13585_s30 + $0x1ed8] sm:$0xff] }
 0x3ed   : > { %7954 = vmatprep.subr.bf16.mxu1 %v11951_v17  ;;  %v12029_v17 = vcombine.high %v2101_v10, %v2109_v12  ;;  %v12076_v32 = vcombine.low %v2149_v28, %v2157_v29 }
 0x3ef   : > { %7791 = vmatpush1.bf16.msra.mxu0 %v11948_v25  ;;  %v2126_v25 = vld [vmem:[%s13585_s30 + $0x1d58] sm:$0xff] }
 0x3f0   : > { %7955 = vmatpush1.bf16.msra.mxu1 %v11950_v58  ;;  %7792 = vmatprep.subr.bf16.mxu0 %v11965_v62  ;;  %v12028_v58 = vcombine.low %v2101_v10, %v2109_v12  ;;  %v12030_v62 = vcombine.low %v2102_v51, %v2110_v13  ;;  %v12047_v11 = vcombine.high %v2118_v24, %v2126_v25  ;;  %v2190_v10 = vld [vmem:[%s13585_s30 + $0x1f58] sm:$0xff] }
 0x3f1   : > { %v14329_v39 = vpop.f32.mrb[8].mxu0  ;;  %7956 = vmatprep.subr.bf16.mxu1 %v11967_v4  ;;  %v12045_v4 = vcombine.high %v2117_v22, %v2125_v23 }
 0x3f2   : > { %v14333_v45 = vpop.f32.mrb[8].mxu1  ;;  %v14335_v49 = vpop.f32.mrb[9].mxu0  ;;  %8647 = vst [vmem:[#allocation2] sm:$0xff] (!%p15374_p1), %v14329_v39 }
 0x3f3   : > { %v14339_v48 = vpop.f32.mrb[9].mxu1  ;;  %v7492_v54 = vpop.f32.mrb[10].mxu0  ;;  %7793 = vmatpush1.bf16.msra.mxu0 %v11964_v43  ;;  %v2142_v43 = vld [vmem:[%s13585_s30 + $0x1dd8] sm:$0xff]  ;;  %8648 = vst [vmem:[#allocation2 + $0x8] sm:$0xff] (!%p15374_p1), %v14335_v49  ;;  %8649 = vst [vmem:[#allocation2 + $0x10] sm:$0xff] (!%p15374_p1), %v14333_v45 }
 0x3f4   : > { %v7656_v33 = vpop.f32.mrb[10].mxu1  ;;  %7957 = vmatpush1.bf16.msra.mxu1 %v11966_v37  ;;  %v7493_v38 = vpop.f32.mrb[11].mxu0  ;;  %7794 = vmatprep.subr.bf16.mxu0 %v11981_v36  ;;  %v12044_v37 = vcombine.low %v2117_v22, %v2125_v23  ;;  %v12046_v36 = vcombine.low %v2118_v24, %v2126_v25  ;;  %v12063_v8 = vcombine.high %v2134_v34, %v2142_v43  ;;  %v2158_v54 = vld [vmem:[%s13585_s30 + $0x1e58] sm:$0xff] }
 0x3f5   : > { %v7657_v27 = vpop.f32.mrb[11].mxu1  ;;  %7958 = vmatprep.subr.bf16.mxu1 %v11983_v40  ;;  %v12061_v40 = vcombine.high %v2133_v60, %v2141_v16  ;;  %v12062_v33 = vcombine.low %v2134_v34, %v2142_v43  ;;  %v12077_v38 = vcombine.high %v2149_v28, %v2157_v29  ;;  %v12078_v46 = vcombine.low %v2150_v30, %v2158_v54  ;;  %v2206_v22 = vld [vmem:[%s13585_s30 + $0x1fd8] sm:$0xff]  ;;  %v1208_v28 = vld [vmem:[%s13585_s30 + $0xa8] sm:$0xff] }
 0x3f6   : > { %v2173_v27 = vld [vmem:[%s13585_s30 + $0x1ed0] sm:$0xff]  ;;  %v1216_v29 = vld [vmem:[%s13585_s30 + $0xe8] sm:$0xff]  ;;  %8650 = vst [vmem:[#allocation2 + $0x18] sm:$0xff] (!%p15374_p1), %v14339_v48 }
 0x3f7   : > { %7795 = vmatpush1.bf16.msra.mxu0 %v11980_v31  ;;  %v12060_v31 = vcombine.low %v2133_v60, %v2141_v16  ;;  %v1200_v60 = vld [vmem:[%s13585_s30 + $0x68] sm:$0xff] }
 0x3f8   : > { %7959 = vmatpush1.bf16.msra.mxu1 %v11982_v50  ;;  %7796 = vmatprep.subr.bf16.mxu0 %v11997_v21  ;;  %v12079_v50 = vcombine.high %v2150_v30, %v2158_v54  ;;  %v2165_v21 = vld [vmem:[%s13585_s30 + $0x1e90] sm:$0xff] }
 0x3f9   : > { %7960 = vmatprep.subr.bf16.mxu1 %v11999_v44  ;;  %v2166_v44 = vld [vmem:[%s13585_s30 + $0x1e98] sm:$0xff]  ;;  %v12093_v52 = vcombine.high %v2165_v21, %v2173_v27  ;;  %v12092_v12 = vcombine.low %v2165_v21, %v2173_v27  ;;  %v1232_v21 = vld [vmem:[%s13585_s30 + $0x168] sm:$0xff] }
 0x3fa   : > { %v12094_v51 = vcombine.low %v2166_v44, %v2174_v26 }
 0x3fb   : > { %7797 = vmatpush1.bf16.msra.mxu0 %v11996_v5  ;;  %v12095_v5 = vcombine.high %v2166_v44, %v2174_v26  ;;  %v11138_v44 = vcombine.low %v1208_v28, %v1216_v29 }
 0x3fc   : > { %7961 = vmatpush1.bf16.msra.mxu1 %v11998_v6  ;;  %7798 = vmatprep.subr.bf16.mxu0 %v12013_v3  ;;  %v2181_v6 = vld [vmem:[%s13585_s30 + $0x1f10] sm:$0xff] }
 0x3fd   : > { %7962 = vmatprep.subr.bf16.mxu1 %v12015_v7  ;;  %v2189_v3 = vld [vmem:[%s13585_s30 + $0x1f50] sm:$0xff]  ;;  %v2182_v7 = vld [vmem:[%s13585_s30 + $0x1f18] sm:$0xff] }
 0x3fe   : > { %v12109_v13 = vcombine.high %v2181_v6, %v2189_v3  ;;  %v12108_v23 = vcombine.low %v2181_v6, %v2189_v3  ;;  %v12110_v24 = vcombine.low %v2182_v7, %v2190_v10  ;;  %v1248_v6 = vld [vmem:[%s13585_s30 + $0x1e8] sm:$0xff] }
 0x3ff   : > { %7799 = vmatpush1.bf16.msra.mxu0 %v12012_v14  ;;  %v12111_v14 = vcombine.high %v2182_v7, %v2190_v10 }
 0x400   : > { %7963 = vmatpush1.bf16.msra.mxu1 %v12014_v15  ;;  %7800 = vmatprep.subr.bf16.mxu0 %v12029_v17  ;;  %v2197_v15 = vld [vmem:[%s13585_s30 + $0x1f90] sm:$0xff] }
 0x401   : > { %7964 = vmatprep.subr.bf16.mxu1 %v12031_v20  ;;  %v2205_v17 = vld [vmem:[%s13585_s30 + $0x1fd0] sm:$0xff]  ;;  %v2198_v20 = vld [vmem:[%s13585_s30 + $0x1f98] sm:$0xff] }
 0x402   : > { %v12125_v25 = vcombine.high %v2197_v15, %v2205_v17  ;;  %v12124_v16 = vcombine.low %v2197_v15, %v2205_v17  ;;  %v12126_v34 = vcombine.low %v2198_v20, %v2206_v22  ;;  %v1264_v15 = vld [vmem:[%s13585_s30 + $0x268] sm:$0xff] }
 0x403   : > { %7801 = vmatpush1.bf16.msra.mxu0 %v12028_v58  ;;  %v12127_v58 = vcombine.high %v2198_v20, %v2206_v22 }
 0x404   : > { %7965 = vmatpush1.bf16.msra.mxu1 %v12030_v62  ;;  %7802 = vmatprep.subr.bf16.mxu0 %v12045_v4  ;;  %v1191_v62 = vld [vmem:[%s13585_s30 + $0x20] sm:$0xff] }
 0x405   : > { %7966 = vmatprep.subr.bf16.mxu1 %v12047_v11  ;;  %v1199_v4 = vld [vmem:[%s13585_s30 + $0x60] sm:$0xff]  ;;  %v1192_v11 = vld [vmem:[%s13585_s30 + $0x28] sm:$0xff] }
 0x406   : > { %v11121_v43 = vcombine.high %v1191_v62, %v1199_v4  ;;  %v11122_v30 = vcombine.low %v1192_v11, %v1200_v60 }
 0x407   : > { %7803 = vmatpush1.bf16.msra.mxu0 %v12044_v37  ;;  %v11123_v37 = vcombine.high %v1192_v11, %v1200_v60 }
 0x408   : > { %7967 = vmatpush1.bf16.msra.mxu1 %v12046_v36  ;;  %7804 = vmatprep.subr.bf16.mxu0 %v12061_v40  ;;  %v1207_v36 = vld [vmem:[%s13585_s30 + $0xa0] sm:$0xff] }
 0x409   : > { %7968 = vmatprep.subr.bf16.mxu1 %v12063_v8  ;;  %v1215_v40 = vld [vmem:[%s13585_s30 + $0xe0] sm:$0xff]  ;;  %v11120_v8 = vcombine.low %v1191_v62, %v1199_v4  ;;  %v1280_v62 = vld [vmem:[%s13585_s30 + $0x2e8] sm:$0xff] }
 0x40a   : > { %v11137_v54 = vcombine.high %v1207_v36, %v1215_v40  ;;  %v11136_v27 = vcombine.low %v1207_v36, %v1215_v40  ;;  %v1296_v36 = vld [vmem:[%s13585_s30 + $0x368] sm:$0xff] }
 0x40b   : > { %7805 = vmatpush1.bf16.msra.mxu0 %v12060_v31  ;;  %v1223_v31 = vld [vmem:[%s13585_s30 + $0x120] sm:$0xff] }
 0x40c   : > { %7969 = vmatpush1.bf16.msra.mxu1 %v12062_v33  ;;  %7806 = vmatprep.subr.bf16.mxu0 %v12077_v38  ;;  %v1231_v33 = vld [vmem:[%s13585_s30 + $0x160] sm:$0xff]  ;;  %v11139_v38 = vcombine.high %v1208_v28, %v1216_v29 }
 0x40d   : > { %7970 = vmatprep.subr.bf16.mxu1 %v12079_v50  ;;  %v1224_v50 = vld [vmem:[%s13585_s30 + $0x128] sm:$0xff]  ;;  %v11153_v26 = vcombine.high %v1223_v31, %v1231_v33  ;;  %v11152_v3 = vcombine.low %v1223_v31, %v1231_v33 }
 0x40e   : > { %v11154_v7 = vcombine.low %v1224_v50, %v1232_v21  ;;  %v1304_v31 = vld [vmem:[%s13585_s30 + $0x3a8] sm:$0xff] }
 0x40f   : > { %7807 = vmatpush1.bf16.msra.mxu0 %v12076_v32  ;;  %v11155_v32 = vcombine.high %v1224_v50, %v1232_v21  ;;  %v1312_v33 = vld [vmem:[%s13585_s30 + $0x3e8] sm:$0xff] }
 0x410   : > { %7971 = vmatpush1.bf16.msra.mxu1 %v12078_v46  ;;  %7808 = vmatprep.subr.bf16.mxu0 %v12093_v52  ;;  %v1239_v46 = vld [vmem:[%s13585_s30 + $0x1a0] sm:$0xff] }
 0x411   : > { %7972 = vmatprep.subr.bf16.mxu1 %v12095_v5  ;;  %v1247_v52 = vld [vmem:[%s13585_s30 + $0x1e0] sm:$0xff]  ;;  %v1240_v5 = vld [vmem:[%s13585_s30 + $0x1a8] sm:$0xff] }
 0x412   : > { %v11169_v10 = vcombine.high %v1239_v46, %v1247_v52  ;;  %v11168_v17 = vcombine.low %v1239_v46, %v1247_v52  ;;  %v11170_v20 = vcombine.low %v1240_v5, %v1248_v6  ;;  %v1328_v46 = vld [vmem:[%s13585_s30 + $0x468] sm:$0xff] }
 0x413   : > { %7809 = vmatpush1.bf16.msra.mxu0 %v12092_v12  ;;  %v11171_v12 = vcombine.high %v1240_v5, %v1248_v6  ;;  %v11234_v5 = vcombine.low %v1304_v31, %v1312_v33 }
 0x414   : > { %7973 = vmatpush1.bf16.msra.mxu1 %v12094_v51  ;;  %7810 = vmatprep.subr.bf16.mxu0 %v12109_v13  ;;  %v1255_v51 = vld [vmem:[%s13585_s30 + $0x220] sm:$0xff] }
 0x415   : > { %7974 = vmatprep.subr.bf16.mxu1 %v12111_v14  ;;  %v1263_v13 = vld [vmem:[%s13585_s30 + $0x260] sm:$0xff]  ;;  %v1256_v14 = vld [vmem:[%s13585_s30 + $0x228] sm:$0xff] }
 0x416   : > { %v11185_v22 = vcombine.high %v1255_v51, %v1263_v13  ;;  %v11184_v4 = vcombine.low %v1255_v51, %v1263_v13  ;;  %v11186_v11 = vcombine.low %v1256_v14, %v1264_v15  ;;  %v1344_v51 = vld [vmem:[%s13585_s30 + $0x4e8] sm:$0xff] }
 0x417   : > { %7811 = vmatpush1.bf16.msra.mxu0 %v12108_v23  ;;  %v11187_v23 = vcombine.high %v1256_v14, %v1264_v15 }
 0x418   : > { %7975 = vmatpush1.bf16.msra.mxu1 %v12110_v24  ;;  %7812 = vmatprep.subr.bf16.mxu0 %v12125_v25  ;;  %v1271_v24 = vld [vmem:[%s13585_s30 + $0x2a0] sm:$0xff] }
 0x419   : > { %7976 = vmatprep.subr.bf16.mxu1 %v12127_v58  ;;  %v1279_v25 = vld [vmem:[%s13585_s30 + $0x2e0] sm:$0xff]  ;;  %v1272_v58 = vld [vmem:[%s13585_s30 + $0x2a8] sm:$0xff] }
 0x41a   : > { %v11201_v60 = vcombine.high %v1271_v24, %v1279_v25  ;;  %v11200_v40 = vcombine.low %v1271_v24, %v1279_v25  ;;  %v1360_v24 = vld [vmem:[%s13585_s30 + $0x568] sm:$0xff] }
 0x41b   : > { %7813 = vmatpush1.bf16.msra.mxu0 %v12124_v16  ;;  %v11203_v16 = vcombine.high %v1272_v58, %v1280_v62 }
 0x41c   : > { %7977 = vmatpush1.bf16.msra.mxu1 %v12126_v34  ;;  %7987 = vmatprep.subr.bf16.mxu0 %v11121_v43  ;;  %v1287_v34 = vld [vmem:[%s13585_s30 + $0x320] sm:$0xff] }
 0x41d   : > { %8151 = vmatprep.subr.bf16.mxu1 %v11123_v37  ;;  %v1295_v43 = vld [vmem:[%s13585_s30 + $0x360] sm:$0xff]  ;;  %v1288_v37 = vld [vmem:[%s13585_s30 + $0x328] sm:$0xff] }
 0x41e   : > { %7815 = vmatmul.mubr.bf16.vlgmr.msra.gmra.mrb[12].mxu0 %v14099_v35  ;;  %v11217_v28 = vcombine.high %v1287_v34, %v1295_v43  ;;  %v11219_v29 = vcombine.high %v1288_v37, %v1296_v36  ;;  %v11218_v50 = vcombine.low %v1288_v37, %v1296_v36 }
 0x41f   : > { %7979 = vmatmul.mubr.bf16.vlgmr.msra.gmra.mrb[12].mxu1 %v14099_v35  ;;  %7988 = vmatpush1.bf16.msra.mxu0 %v11120_v8  ;;  %v11202_v8 = vcombine.low %v1272_v58, %v1280_v62 }
 0x420   : > { %8019 = vmatprep.mubr.bf16.mxu0 %v13868_v18  ;;  %8152 = vmatpush1.bf16.msra.mxu1 %v11122_v30  ;;  %v1303_v30 = vld [vmem:[%s13585_s30 + $0x3a0] sm:$0xff] }
 0x421   : > { %8183 = vmatprep.mubr.bf16.mxu1 %v13868_v18  ;;  %7989 = vmatprep.subr.bf16.mxu0 %v11137_v54  ;;  %v1311_v54 = vld [vmem:[%s13585_s30 + $0x3e0] sm:$0xff] }
 0x422   : > { %8153 = vmatprep.subr.bf16.mxu1 %v11139_v38  ;;  %v11216_v38 = vcombine.low %v1287_v34, %v1295_v43  ;;  %v11233_v21 = vcombine.high %v1303_v30, %v1311_v54  ;;  %v11232_v52 = vcombine.low %v1303_v30, %v1311_v54  ;;  %v1376_v34 = vld [vmem:[%s13585_s30 + $0x5e8] sm:$0xff] }
 0x423   : > { %7990 = vmatpush1.bf16.msra.mxu0 %v11136_v27  ;;  %v11235_v27 = vcombine.high %v1304_v31, %v1312_v33  ;;  %v1392_v30 = vld [vmem:[%s13585_s30 + $0x668] sm:$0xff] }
 0x424   : > { %8154 = vmatpush1.bf16.msra.mxu1 %v11138_v44  ;;  %7991 = vmatprep.subr.bf16.mxu0 %v11153_v26  ;;  %v1319_v44 = vld [vmem:[%s13585_s30 + $0x420] sm:$0xff] }
 0x425   : > { %8155 = vmatprep.subr.bf16.mxu1 %v11155_v32  ;;  %v1327_v26 = vld [vmem:[%s13585_s30 + $0x460] sm:$0xff]  ;;  %v1320_v32 = vld [vmem:[%s13585_s30 + $0x428] sm:$0xff] }
 0x426   : > { %v11249_v6 = vcombine.high %v1319_v44, %v1327_v26  ;;  %v11248_v13 = vcombine.low %v1319_v44, %v1327_v26  ;;  %v11250_v14 = vcombine.low %v1320_v32, %v1328_v46  ;;  %v1408_v44 = vld [vmem:[%s13585_s30 + $0x6e8] sm:$0xff] }
 0x427   : > { %7992 = vmatpush1.bf16.msra.mxu0 %v11152_v3  ;;  %v11251_v3 = vcombine.high %v1320_v32, %v1328_v46 }
 0x428   : > { %8156 = vmatpush1.bf16.msra.mxu1 %v11154_v7  ;;  %7993 = vmatprep.subr.bf16.mxu0 %v11169_v10  ;;  %v1335_v7 = vld [vmem:[%s13585_s30 + $0x4a0] sm:$0xff] }
 0x429   : > { %8157 = vmatprep.subr.bf16.mxu1 %v11171_v12  ;;  %v1343_v10 = vld [vmem:[%s13585_s30 + $0x4e0] sm:$0xff]  ;;  %v1336_v12 = vld [vmem:[%s13585_s30 + $0x4a8] sm:$0xff] }
 0x42a   : > { %v11265_v15 = vcombine.high %v1335_v7, %v1343_v10  ;;  %v11264_v25 = vcombine.low %v1335_v7, %v1343_v10  ;;  %v11266_v58 = vcombine.low %v1336_v12, %v1344_v51  ;;  %v1424_v7 = vld [vmem:[%s13585_s30 + $0x768] sm:$0xff] }
 0x42b   : > { %7994 = vmatpush1.bf16.msra.mxu0 %v11168_v17  ;;  %v11267_v17 = vcombine.high %v1336_v12, %v1344_v51 }
 0x42c   : > { %8158 = vmatpush1.bf16.msra.mxu1 %v11170_v20  ;;  %7995 = vmatprep.subr.bf16.mxu0 %v11185_v22  ;;  %v1351_v20 = vld [vmem:[%s13585_s30 + $0x520] sm:$0xff] }
 0x42d   : > { %8159 = vmatprep.subr.bf16.mxu1 %v11187_v23  ;;  %v1359_v22 = vld [vmem:[%s13585_s30 + $0x560] sm:$0xff]  ;;  %v1352_v23 = vld [vmem:[%s13585_s30 + $0x528] sm:$0xff] }
 0x42e   : > { %v11281_v62 = vcombine.high %v1351_v20, %v1359_v22  ;;  %v11280_v43 = vcombine.low %v1351_v20, %v1359_v22  ;;  %v11282_v37 = vcombine.low %v1352_v23, %v1360_v24  ;;  %v1440_v20 = vld [vmem:[%s13585_s30 + $0x7e8] sm:$0xff] }
 0x42f   : > { %7996 = vmatpush1.bf16.msra.mxu0 %v11184_v4  ;;  %v11283_v4 = vcombine.high %v1352_v23, %v1360_v24 }
 0x430   : > { %8160 = vmatpush1.bf16.msra.mxu1 %v11186_v11  ;;  %7997 = vmatprep.subr.bf16.mxu0 %v11201_v60  ;;  %v1367_v11 = vld [vmem:[%s13585_s30 + $0x5a0] sm:$0xff] }
 0x431   : > { %8161 = vmatprep.subr.bf16.mxu1 %v11203_v16  ;;  %v1375_v60 = vld [vmem:[%s13585_s30 + $0x5e0] sm:$0xff]  ;;  %v1368_v16 = vld [vmem:[%s13585_s30 + $0x5a8] sm:$0xff] }
 0x432   : > { %v11297_v36 = vcombine.high %v1367_v11, %v1375_v60  ;;  %v11296_v54 = vcombine.low %v1367_v11, %v1375_v60  ;;  %v11298_v31 = vcombine.low %v1368_v16, %v1376_v34  ;;  %v1456_v11 = vld [vmem:[%s13585_s30 + $0x868] sm:$0xff] }
 0x433   : > { %7998 = vmatpush1.bf16.msra.mxu0 %v11200_v40  ;;  %v11299_v40 = vcombine.high %v1368_v16, %v1376_v34 }
 0x434   : > { %8162 = vmatpush1.bf16.msra.mxu1 %v11202_v8  ;;  %7999 = vmatprep.subr.bf16.mxu0 %v11217_v28  ;;  %v1383_v8 = vld [vmem:[%s13585_s30 + $0x620] sm:$0xff] }
 0x435   : > { %8163 = vmatprep.subr.bf16.mxu1 %v11219_v29  ;;  %v1391_v28 = vld [vmem:[%s13585_s30 + $0x660] sm:$0xff]  ;;  %v1384_v29 = vld [vmem:[%s13585_s30 + $0x628] sm:$0xff] }
 0x436   : > { %v11313_v33 = vcombine.high %v1383_v8, %v1391_v28  ;;  %v11312_v26 = vcombine.low %v1383_v8, %v1391_v28  ;;  %v11314_v32 = vcombine.low %v1384_v29, %v1392_v30  ;;  %v1464_v8 = vld [vmem:[%s13585_s30 + $0x8a8] sm:$0xff] }
 0x437   : > { %8000 = vmatpush1.bf16.msra.mxu0 %v11216_v38  ;;  %v11315_v38 = vcombine.high %v1384_v29, %v1392_v30  ;;  %v1472_v28 = vld [vmem:[%s13585_s30 + $0x8e8] sm:$0xff] }
 0x438   : > { %8164 = vmatpush1.bf16.msra.mxu1 %v11218_v50  ;;  %8001 = vmatprep.subr.bf16.mxu0 %v11233_v21  ;;  %v1399_v50 = vld [vmem:[%s13585_s30 + $0x6a0] sm:$0xff] }
 0x439   : > { %8165 = vmatprep.subr.bf16.mxu1 %v11235_v27  ;;  %v1407_v21 = vld [vmem:[%s13585_s30 + $0x6e0] sm:$0xff]  ;;  %v1400_v27 = vld [vmem:[%s13585_s30 + $0x6a8] sm:$0xff] }
 0x43a   : > { %v11329_v46 = vcombine.high %v1399_v50, %v1407_v21  ;;  %v11328_v10 = vcombine.low %v1399_v50, %v1407_v21  ;;  %v11330_v12 = vcombine.low %v1400_v27, %v1408_v44  ;;  %v1488_v50 = vld [vmem:[%s13585_s30 + $0x968] sm:$0xff] }
 0x43b   : > { %8002 = vmatpush1.bf16.msra.mxu0 %v11232_v52  ;;  %v11331_v52 = vcombine.high %v1400_v27, %v1408_v44  ;;  %v11394_v27 = vcombine.low %v1464_v8, %v1472_v28 }
 0x43c   : > { %8166 = vmatpush1.bf16.msra.mxu1 %v11234_v5  ;;  %8003 = vmatprep.subr.bf16.mxu0 %v11249_v6  ;;  %v1415_v5 = vld [vmem:[%s13585_s30 + $0x720] sm:$0xff] }
 0x43d   : > { %8167 = vmatprep.subr.bf16.mxu1 %v11251_v3  ;;  %v1423_v6 = vld [vmem:[%s13585_s30 + $0x760] sm:$0xff]  ;;  %v1416_v3 = vld [vmem:[%s13585_s30 + $0x728] sm:$0xff] }
 0x43e   : > { %v11345_v51 = vcombine.high %v1415_v5, %v1423_v6  ;;  %v11344_v22 = vcombine.low %v1415_v5, %v1423_v6  ;;  %v11346_v23 = vcombine.low %v1416_v3, %v1424_v7  ;;  %v1504_v5 = vld [vmem:[%s13585_s30 + $0x9e8] sm:$0xff] }
 0x43f   : > { %8004 = vmatpush1.bf16.msra.mxu0 %v11248_v13  ;;  %v11347_v13 = vcombine.high %v1416_v3, %v1424_v7 }
 0x440   : > { %8168 = vmatpush1.bf16.msra.mxu1 %v11250_v14  ;;  %8005 = vmatprep.subr.bf16.mxu0 %v11265_v15  ;;  %v1431_v14 = vld [vmem:[%s13585_s30 + $0x7a0] sm:$0xff] }
 0x441   : > { %8169 = vmatprep.subr.bf16.mxu1 %v11267_v17  ;;  %v1439_v15 = vld [vmem:[%s13585_s30 + $0x7e0] sm:$0xff]  ;;  %v1432_v17 = vld [vmem:[%s13585_s30 + $0x7a8] sm:$0xff] }
 0x442   : > { %v11361_v24 = vcombine.high %v1431_v14, %v1439_v15  ;;  %v11360_v60 = vcombine.low %v1431_v14, %v1439_v15  ;;  %v11362_v16 = vcombine.low %v1432_v17, %v1440_v20  ;;  %v1520_v14 = vld [vmem:[%s13585_s30 + $0xa68] sm:$0xff] }
 0x443   : > { %8006 = vmatpush1.bf16.msra.mxu0 %v11264_v25  ;;  %v11363_v25 = vcombine.high %v1432_v17, %v1440_v20 }
 0x444   : > { %8170 = vmatpush1.bf16.msra.mxu1 %v11266_v58  ;;  %8007 = vmatprep.subr.bf16.mxu0 %v11281_v62  ;;  %v1447_v58 = vld [vmem:[%s13585_s30 + $0x820] sm:$0xff] }
 0x445   : > { %8171 = vmatprep.subr.bf16.mxu1 %v11283_v4  ;;  %v1455_v62 = vld [vmem:[%s13585_s30 + $0x860] sm:$0xff]  ;;  %v1448_v4 = vld [vmem:[%s13585_s30 + $0x828] sm:$0xff] }
 0x446   : > { %v11377_v34 = vcombine.high %v1447_v58, %v1455_v62  ;;  %v11378_v29 = vcombine.low %v1448_v4, %v1456_v11 }
 0x447   : > { %8008 = vmatpush1.bf16.msra.mxu0 %v11280_v43  ;;  %v11379_v43 = vcombine.high %v1448_v4, %v1456_v11 }
 0x448   : > { %8172 = vmatpush1.bf16.msra.mxu1 %v11282_v37  ;;  %8009 = vmatprep.subr.bf16.mxu0 %v11297_v36  ;;  %v1463_v37 = vld [vmem:[%s13585_s30 + $0x8a0] sm:$0xff] }
 0x449   : > { %8173 = vmatprep.subr.bf16.mxu1 %v11299_v40  ;;  %v1471_v36 = vld [vmem:[%s13585_s30 + $0x8e0] sm:$0xff]  ;;  %v11376_v40 = vcombine.low %v1447_v58, %v1455_v62  ;;  %v1536_v58 = vld [vmem:[%s13585_s30 + $0xae8] sm:$0xff] }
 0x44a   : > { %v11393_v30 = vcombine.high %v1463_v37, %v1471_v36  ;;  %v11392_v21 = vcombine.low %v1463_v37, %v1471_v36  ;;  %v1552_v37 = vld [vmem:[%s13585_s30 + $0xb68] sm:$0xff] }
 0x44b   : > { %8010 = vmatpush1.bf16.msra.mxu0 %v11296_v54  ;;  %v1479_v54 = vld [vmem:[%s13585_s30 + $0x920] sm:$0xff] }
 0x44c   : > { %8174 = vmatpush1.bf16.msra.mxu1 %v11298_v31  ;;  %8011 = vmatprep.subr.bf16.mxu0 %v11313_v33  ;;  %v1487_v31 = vld [vmem:[%s13585_s30 + $0x960] sm:$0xff]  ;;  %v11395_v33 = vcombine.high %v1464_v8, %v1472_v28 }
 0x44d   : > { %8175 = vmatprep.subr.bf16.mxu1 %v11315_v38  ;;  %v1480_v38 = vld [vmem:[%s13585_s30 + $0x928] sm:$0xff]  ;;  %v11409_v44 = vcombine.high %v1479_v54, %v1487_v31  ;;  %v11408_v6 = vcombine.low %v1479_v54, %v1487_v31 }
 0x44e   : > { %v11410_v3 = vcombine.low %v1480_v38, %v1488_v50  ;;  %v1560_v54 = vld [vmem:[%s13585_s30 + $0xba8] sm:$0xff] }
 0x44f   : > { %8012 = vmatpush1.bf16.msra.mxu0 %v11312_v26  ;;  %v11411_v26 = vcombine.high %v1480_v38, %v1488_v50  ;;  %v1568_v31 = vld [vmem:[%s13585_s30 + $0xbe8] sm:$0xff] }
 0x450   : > { %8176 = vmatpush1.bf16.msra.mxu1 %v11314_v32  ;;  %8013 = vmatprep.subr.bf16.mxu0 %v11329_v46  ;;  %v1495_v32 = vld [vmem:[%s13585_s30 + $0x9a0] sm:$0xff] }
 0x451   : > { %8177 = vmatprep.subr.bf16.mxu1 %v11331_v52  ;;  %v1503_v46 = vld [vmem:[%s13585_s30 + $0x9e0] sm:$0xff]  ;;  %v1496_v52 = vld [vmem:[%s13585_s30 + $0x9a8] sm:$0xff] }
 0x452   : > { %v11425_v7 = vcombine.high %v1495_v32, %v1503_v46  ;;  %v11424_v15 = vcombine.low %v1495_v32, %v1503_v46  ;;  %v11426_v17 = vcombine.low %v1496_v52, %v1504_v5  ;;  %v1584_v32 = vld [vmem:[%s13585_s30 + $0xc68] sm:$0xff] }
 0x453   : > { %8014 = vmatpush1.bf16.msra.mxu0 %v11328_v10  ;;  %v11427_v10 = vcombine.high %v1496_v52, %v1504_v5  ;;  %v11490_v52 = vcombine.low %v1560_v54, %v1568_v31 }
 0x454   : > { %8178 = vmatpush1.bf16.msra.mxu1 %v11330_v12  ;;  %8015 = vmatprep.subr.bf16.mxu0 %v11345_v51  ;;  %v1511_v12 = vld [vmem:[%s13585_s30 + $0xa20] sm:$0xff] }
 0x455   : > { %8179 = vmatprep.subr.bf16.mxu1 %v11347_v13  ;;  %v1519_v51 = vld [vmem:[%s13585_s30 + $0xa60] sm:$0xff]  ;;  %v1512_v13 = vld [vmem:[%s13585_s30 + $0xa28] sm:$0xff] }
 0x456   : > { %v11441_v20 = vcombine.high %v1511_v12, %v1519_v51  ;;  %v11440_v62 = vcombine.low %v1511_v12, %v1519_v51  ;;  %v11442_v4 = vcombine.low %v1512_v13, %v1520_v14  ;;  %v1600_v12 = vld [vmem:[%s13585_s30 + $0xce8] sm:$0xff] }
 0x457   : > { %8016 = vmatpush1.bf16.msra.mxu0 %v11344_v22  ;;  %v11443_v22 = vcombine.high %v1512_v13, %v1520_v14 }
 0x458   : > { %8180 = vmatpush1.bf16.msra.mxu1 %v11346_v23  ;;  %8017 = vmatprep.subr.bf16.mxu0 %v11361_v24  ;;  %v1527_v23 = vld [vmem:[%s13585_s30 + $0xaa0] sm:$0xff] }
 0x459   : > { %8181 = vmatprep.subr.bf16.mxu1 %v11363_v25  ;;  %v1535_v24 = vld [vmem:[%s13585_s30 + $0xae0] sm:$0xff]  ;;  %v1528_v25 = vld [vmem:[%s13585_s30 + $0xaa8] sm:$0xff] }
 0x45a   : > { %v11457_v11 = vcombine.high %v1527_v23, %v1535_v24  ;;  %v11456_v36 = vcombine.low %v1527_v23, %v1535_v24  ;;  %v1616_v23 = vld [vmem:[%s13585_s30 + $0xd68] sm:$0xff] }
 0x45b   : > { %8018 = vmatpush1.bf16.msra.mxu0 %v11360_v60  ;;  %v11459_v60 = vcombine.high %v1528_v25, %v1536_v58 }
 0x45c   : > { %8182 = vmatpush1.bf16.msra.mxu1 %v11362_v16  ;;  %8028 = vmatprep.subr.bf16.mxu0 %v11377_v34  ;;  %v1543_v16 = vld [vmem:[%s13585_s30 + $0xb20] sm:$0xff] }
 0x45d   : > { %8192 = vmatprep.subr.bf16.mxu1 %v11379_v43  ;;  %v1551_v34 = vld [vmem:[%s13585_s30 + $0xb60] sm:$0xff]  ;;  %v1544_v43 = vld [vmem:[%s13585_s30 + $0xb28] sm:$0xff] }
 0x45e   : > { %8020 = vmatmul.mubr.bf16.vlgmr.msra.gmra.mrb[16].mxu0 %v13870_v19  ;;  %v11473_v8 = vcombine.high %v1543_v16, %v1551_v34  ;;  %v11475_v28 = vcombine.high %v1544_v43, %v1552_v37  ;;  %v11474_v38 = vcombine.low %v1544_v43, %v1552_v37 }
 0x45f   : > { %8184 = vmatmul.mubr.bf16.vlgmr.msra.gmra.mrb[16].mxu1 %v13870_v19  ;;  %8029 = vmatpush1.bf16.msra.mxu0 %v11376_v40  ;;  %v11458_v40 = vcombine.low %v1528_v25, %v1536_v58 }
 0x460   : > { %8060 = vmatprep.mubr.bf16.mxu0 %v13880_v0  ;;  %8193 = vmatpush1.bf16.msra.mxu1 %v11378_v29  ;;  %v1559_v29 = vld [vmem:[%s13585_s30 + $0xba0] sm:$0xff] }
 0x461   : > { %8224 = vmatprep.mubr.bf16.mxu1 %v13880_v0  ;;  %8030 = vmatprep.subr.bf16.mxu0 %v11393_v30  ;;  %v1567_v30 = vld [vmem:[%s13585_s30 + $0xbe0] sm:$0xff] }
 0x462   : > { %8194 = vmatprep.subr.bf16.mxu1 %v11395_v33  ;;  %v11472_v33 = vcombine.low %v1543_v16, %v1551_v34  ;;  %v11489_v50 = vcombine.high %v1559_v29, %v1567_v30  ;;  %v11488_v46 = vcombine.low %v1559_v29, %v1567_v30  ;;  %v1632_v16 = vld [vmem:[%s13585_s30 + $0xde8] sm:$0xff] }
 0x463   : > { %8031 = vmatpush1.bf16.msra.mxu0 %v11392_v21  ;;  %v11491_v21 = vcombine.high %v1560_v54, %v1568_v31  ;;  %v1648_v29 = vld [vmem:[%s13585_s30 + $0xe68] sm:$0xff] }
 0x464   : > { %8195 = vmatpush1.bf16.msra.mxu1 %v11394_v27  ;;  %8032 = vmatprep.subr.bf16.mxu0 %v11409_v44  ;;  %v1575_v27 = vld [vmem:[%s13585_s30 + $0xc20] sm:$0xff] }
 0x465   : > { %8196 = vmatprep.subr.bf16.mxu1 %v11411_v26  ;;  %v1583_v44 = vld [vmem:[%s13585_s30 + $0xc60] sm:$0xff]  ;;  %v1576_v26 = vld [vmem:[%s13585_s30 + $0xc28] sm:$0xff] }
 0x466   : > { %v11505_v5 = vcombine.high %v1575_v27, %v1583_v44  ;;  %v11504_v51 = vcombine.low %v1575_v27, %v1583_v44  ;;  %v11506_v13 = vcombine.low %v1576_v26, %v1584_v32  ;;  %v1664_v27 = vld [vmem:[%s13585_s30 + $0xee8] sm:$0xff] }
 0x467   : > { %8033 = vmatpush1.bf16.msra.mxu0 %v11408_v6  ;;  %v11507_v6 = vcombine.high %v1576_v26, %v1584_v32 }
 0x468   : > { %8197 = vmatpush1.bf16.msra.mxu1 %v11410_v3  ;;  %8034 = vmatprep.subr.bf16.mxu0 %v11425_v7  ;;  %v1591_v3 = vld [vmem:[%s13585_s30 + $0xca0] sm:$0xff] }
 0x469   : > { %8198 = vmatprep.subr.bf16.mxu1 %v11427_v10  ;;  %v1599_v7 = vld [vmem:[%s13585_s30 + $0xce0] sm:$0xff]  ;;  %v1592_v10 = vld [vmem:[%s13585_s30 + $0xca8] sm:$0xff] }
 0x46a   : > { %v11521_v14 = vcombine.high %v1591_v3, %v1599_v7  ;;  %v11520_v24 = vcombine.low %v1591_v3, %v1599_v7  ;;  %v11522_v25 = vcombine.low %v1592_v10, %v1600_v12  ;;  %v1680_v3 = vld [vmem:[%s13585_s30 + $0xf68] sm:$0xff] }
 0x46b   : > { %8035 = vmatpush1.bf16.msra.mxu0 %v11424_v15  ;;  %v11523_v15 = vcombine.high %v1592_v10, %v1600_v12 }
 0x46c   : > { %8199 = vmatpush1.bf16.msra.mxu1 %v11426_v17  ;;  %8036 = vmatprep.subr.bf16.mxu0 %v11441_v20  ;;  %v1607_v17 = vld [vmem:[%s13585_s30 + $0xd20] sm:$0xff] }
 0x46d   : > { %8200 = vmatprep.subr.bf16.mxu1 %v11443_v22  ;;  %v1615_v20 = vld [vmem:[%s13585_s30 + $0xd60] sm:$0xff]  ;;  %v1608_v22 = vld [vmem:[%s13585_s30 + $0xd28] sm:$0xff] }
 0x46e   : > { %v11537_v58 = vcombine.high %v1607_v17, %v1615_v20  ;;  %v11536_v34 = vcombine.low %v1607_v17, %v1615_v20  ;;  %v11538_v43 = vcombine.low %v1608_v22, %v1616_v23  ;;  %v1696_v17 = vld [vmem:[%s13585_s30 + $0xfe8] sm:$0xff] }
 0x46f   : > { %8037 = vmatpush1.bf16.msra.mxu0 %v11440_v62  ;;  %v11539_v62 = vcombine.high %v1608_v22, %v1616_v23 }
 0x470   : > { %8201 = vmatpush1.bf16.msra.mxu1 %v11442_v4  ;;  %8038 = vmatprep.subr.bf16.mxu0 %v11457_v11  ;;  %v1623_v4 = vld [vmem:[%s13585_s30 + $0xda0] sm:$0xff] }
 0x471   : > { %8202 = vmatprep.subr.bf16.mxu1 %v11459_v60  ;;  %v1631_v11 = vld [vmem:[%s13585_s30 + $0xde0] sm:$0xff]  ;;  %v1624_v60 = vld [vmem:[%s13585_s30 + $0xda8] sm:$0xff] }
 0x472   : > { %v11553_v37 = vcombine.high %v1623_v4, %v1631_v11  ;;  %v11552_v30 = vcombine.low %v1623_v4, %v1631_v11  ;;  %v11554_v54 = vcombine.low %v1624_v60, %v1632_v16  ;;  %v1712_v4 = vld [vmem:[%s13585_s30 + $0x1068] sm:$0xff] }
 0x473   : > { %8039 = vmatpush1.bf16.msra.mxu0 %v11456_v36  ;;  %v11555_v36 = vcombine.high %v1624_v60, %v1632_v16 }
 0x474   : > { %8203 = vmatpush1.bf16.msra.mxu1 %v11458_v40  ;;  %8040 = vmatprep.subr.bf16.mxu0 %v11473_v8  ;;  %v1639_v40 = vld [vmem:[%s13585_s30 + $0xe20] sm:$0xff] }
 0x475   : > { %8204 = vmatprep.subr.bf16.mxu1 %v11475_v28  ;;  %v1647_v8 = vld [vmem:[%s13585_s30 + $0xe60] sm:$0xff]  ;;  %v1640_v28 = vld [vmem:[%s13585_s30 + $0xe28] sm:$0xff] }
 0x476   : > { %v11569_v31 = vcombine.high %v1639_v40, %v1647_v8  ;;  %v11568_v44 = vcombine.low %v1639_v40, %v1647_v8  ;;  %v11570_v26 = vcombine.low %v1640_v28, %v1648_v29  ;;  %v1720_v40 = vld [vmem:[%s13585_s30 + $0x10a8] sm:$0xff] }
 0x477   : > { %8041 = vmatpush1.bf16.msra.mxu0 %v11472_v33  ;;  %v11571_v33 = vcombine.high %v1640_v28, %v1648_v29  ;;  %v1728_v8 = vld [vmem:[%s13585_s30 + $0x10e8] sm:$0xff] }
 0x478   : > { %8205 = vmatpush1.bf16.msra.mxu1 %v11474_v38  ;;  %8042 = vmatprep.subr.bf16.mxu0 %v11489_v50  ;;  %v1655_v38 = vld [vmem:[%s13585_s30 + $0xea0] sm:$0xff] }
 0x479   : > { %8206 = vmatprep.subr.bf16.mxu1 %v11491_v21  ;;  %v1663_v50 = vld [vmem:[%s13585_s30 + $0xee0] sm:$0xff]  ;;  %v1656_v21 = vld [vmem:[%s13585_s30 + $0xea8] sm:$0xff] }
 0x47a   : > { %v11585_v32 = vcombine.high %v1655_v38, %v1663_v50  ;;  %v11584_v7 = vcombine.low %v1655_v38, %v1663_v50  ;;  %v11586_v10 = vcombine.low %v1656_v21, %v1664_v27  ;;  %v1744_v38 = vld [vmem:[%s13585_s30 + $0x1168] sm:$0xff] }
 0x47b   : > { %8043 = vmatpush1.bf16.msra.mxu0 %v11488_v46  ;;  %v11587_v46 = vcombine.high %v1656_v21, %v1664_v27  ;;  %v11650_v21 = vcombine.low %v1720_v40, %v1728_v8 }
 0x47c   : > { %8207 = vmatpush1.bf16.msra.mxu1 %v11490_v52  ;;  %8044 = vmatprep.subr.bf16.mxu0 %v11505_v5  ;;  %v1671_v52 = vld [vmem:[%s13585_s30 + $0xf20] sm:$0xff] }
 0x47d   : > { %8208 = vmatprep.subr.bf16.mxu1 %v11507_v6  ;;  %v1679_v5 = vld [vmem:[%s13585_s30 + $0xf60] sm:$0xff]  ;;  %v1672_v6 = vld [vmem:[%s13585_s30 + $0xf28] sm:$0xff] }
 0x47e   : > { %v11601_v12 = vcombine.high %v1671_v52, %v1679_v5  ;;  %v11600_v20 = vcombine.low %v1671_v52, %v1679_v5  ;;  %v11602_v22 = vcombine.low %v1672_v6, %v1680_v3  ;;  %v1760_v52 = vld [vmem:[%s13585_s30 + $0x11e8] sm:$0xff] }
 0x47f   : > { %8045 = vmatpush1.bf16.msra.mxu0 %v11504_v51  ;;  %v11603_v51 = vcombine.high %v1672_v6, %v1680_v3 }
 0x480   : > { %8209 = vmatpush1.bf16.msra.mxu1 %v11506_v13  ;;  %8046 = vmatprep.subr.bf16.mxu0 %v11521_v14  ;;  %v1687_v13 = vld [vmem:[%s13585_s30 + $0xfa0] sm:$0xff] }
 0x481   : > { %8210 = vmatprep.subr.bf16.mxu1 %v11523_v15  ;;  %v1695_v14 = vld [vmem:[%s13585_s30 + $0xfe0] sm:$0xff]  ;;  %v1688_v15 = vld [vmem:[%s13585_s30 + $0xfa8] sm:$0xff] }
 0x482   : > { %v11617_v23 = vcombine.high %v1687_v13, %v1695_v14  ;;  %v11616_v11 = vcombine.low %v1687_v13, %v1695_v14  ;;  %v11618_v60 = vcombine.low %v1688_v15, %v1696_v17  ;;  %v1776_v13 = vld [vmem:[%s13585_s30 + $0x1268] sm:$0xff] }
 0x483   : > { %8047 = vmatpush1.bf16.msra.mxu0 %v11520_v24  ;;  %v11619_v24 = vcombine.high %v1688_v15, %v1696_v17 }
 0x484   : > { %8211 = vmatpush1.bf16.msra.mxu1 %v11522_v25  ;;  %8048 = vmatprep.subr.bf16.mxu0 %v11537_v58  ;;  %v1703_v25 = vld [vmem:[%s13585_s30 + $0x1020] sm:$0xff] }
 0x485   : > { %8212 = vmatprep.subr.bf16.mxu1 %v11539_v62  ;;  %v1711_v58 = vld [vmem:[%s13585_s30 + $0x1060] sm:$0xff]  ;;  %v1704_v62 = vld [vmem:[%s13585_s30 + $0x1028] sm:$0xff] }
 0x486   : > { %v11633_v16 = vcombine.high %v1703_v25, %v1711_v58  ;;  %v11634_v28 = vcombine.low %v1704_v62, %v1712_v4 }
 0x487   : > { %8049 = vmatpush1.bf16.msra.mxu0 %v11536_v34  ;;  %v11635_v34 = vcombine.high %v1704_v62, %v1712_v4 }
 0x488   : > { %8213 = vmatpush1.bf16.msra.mxu1 %v11538_v43  ;;  %8050 = vmatprep.subr.bf16.mxu0 %v11553_v37  ;;  %v1719_v43 = vld [vmem:[%s13585_s30 + $0x10a0] sm:$0xff] }
 0x489   : > { %8214 = vmatprep.subr.bf16.mxu1 %v11555_v36  ;;  %v1727_v37 = vld [vmem:[%s13585_s30 + $0x10e0] sm:$0xff]  ;;  %v11632_v36 = vcombine.low %v1703_v25, %v1711_v58  ;;  %v1792_v25 = vld [vmem:[%s13585_s30 + $0x12e8] sm:$0xff] }
 0x48a   : > { %v11649_v29 = vcombine.high %v1719_v43, %v1727_v37  ;;  %v11648_v50 = vcombine.low %v1719_v43, %v1727_v37  ;;  %v1808_v43 = vld [vmem:[%s13585_s30 + $0x1368] sm:$0xff] }
 0x48b   : > { %8051 = vmatpush1.bf16.msra.mxu0 %v11552_v30  ;;  %v1735_v30 = vld [vmem:[%s13585_s30 + $0x1120] sm:$0xff] }
 0x48c   : > { %8215 = vmatpush1.bf16.msra.mxu1 %v11554_v54  ;;  %8052 = vmatprep.subr.bf16.mxu0 %v11569_v31  ;;  %v1743_v54 = vld [vmem:[%s13585_s30 + $0x1160] sm:$0xff]  ;;  %v11651_v31 = vcombine.high %v1720_v40, %v1728_v8 }
 0x48d   : > { %8216 = vmatprep.subr.bf16.mxu1 %v11571_v33  ;;  %v1736_v33 = vld [vmem:[%s13585_s30 + $0x1128] sm:$0xff]  ;;  %v11665_v27 = vcombine.high %v1735_v30, %v1743_v54  ;;  %v11664_v5 = vcombine.low %v1735_v30, %v1743_v54 }
 0x48e   : > { %v11666_v6 = vcombine.low %v1736_v33, %v1744_v38  ;;  %v1816_v30 = vld [vmem:[%s13585_s30 + $0x13a8] sm:$0xff] }
 0x48f   : > { %8053 = vmatpush1.bf16.msra.mxu0 %v11568_v44  ;;  %v11667_v44 = vcombine.high %v1736_v33, %v1744_v38  ;;  %v1824_v54 = vld [vmem:[%s13585_s30 + $0x13e8] sm:$0xff] }
 0x490   : > { %8217 = vmatpush1.bf16.msra.mxu1 %v11570_v26  ;;  %8054 = vmatprep.subr.bf16.mxu0 %v11585_v32  ;;  %v1751_v26 = vld [vmem:[%s13585_s30 + $0x11a0] sm:$0xff] }
 0x491   : > { %8218 = vmatprep.subr.bf16.mxu1 %v11587_v46  ;;  %v1759_v32 = vld [vmem:[%s13585_s30 + $0x11e0] sm:$0xff]  ;;  %v1752_v46 = vld [vmem:[%s13585_s30 + $0x11a8] sm:$0xff] }
 0x492   : > { %v11681_v3 = vcombine.high %v1751_v26, %v1759_v32  ;;  %v11680_v14 = vcombine.low %v1751_v26, %v1759_v32  ;;  %v11682_v15 = vcombine.low %v1752_v46, %v1760_v52  ;;  %v1840_v26 = vld [vmem:[%s13585_s30 + $0x1468] sm:$0xff] }
 0x493   : > { %8055 = vmatpush1.bf16.msra.mxu0 %v11584_v7  ;;  %v11683_v7 = vcombine.high %v1752_v46, %v1760_v52  ;;  %v11746_v46 = vcombine.low %v1816_v30, %v1824_v54 }
 0x494   : > { %8219 = vmatpush1.bf16.msra.mxu1 %v11586_v10  ;;  %8056 = vmatprep.subr.bf16.mxu0 %v11601_v12  ;;  %v1767_v10 = vld [vmem:[%s13585_s30 + $0x1220] sm:$0xff] }
 0x495   : > { %8220 = vmatprep.subr.bf16.mxu1 %v11603_v51  ;;  %v1775_v12 = vld [vmem:[%s13585_s30 + $0x1260] sm:$0xff]  ;;  %v1768_v51 = vld [vmem:[%s13585_s30 + $0x1228] sm:$0xff] }
 0x496   : > { %v11697_v17 = vcombine.high %v1767_v10, %v1775_v12  ;;  %v11696_v58 = vcombine.low %v1767_v10, %v1775_v12  ;;  %v11698_v62 = vcombine.low %v1768_v51, %v1776_v13  ;;  %v1856_v10 = vld [vmem:[%s13585_s30 + $0x14e8] sm:$0xff] }
 0x497   : > { %8057 = vmatpush1.bf16.msra.mxu0 %v11600_v20  ;;  %v11699_v20 = vcombine.high %v1768_v51, %v1776_v13 }
 0x498   : > { %8221 = vmatpush1.bf16.msra.mxu1 %v11602_v22  ;;  %8058 = vmatprep.subr.bf16.mxu0 %v11617_v23  ;;  %v1783_v22 = vld [vmem:[%s13585_s30 + $0x12a0] sm:$0xff] }
 0x499   : > { %8222 = vmatprep.subr.bf16.mxu1 %v11619_v24  ;;  %v1791_v23 = vld [vmem:[%s13585_s30 + $0x12e0] sm:$0xff]  ;;  %v1784_v24 = vld [vmem:[%s13585_s30 + $0x12a8] sm:$0xff] }
 0x49a   : > { %v11713_v4 = vcombine.high %v1783_v22, %v1791_v23  ;;  %v11712_v37 = vcombine.low %v1783_v22, %v1791_v23  ;;  %v1872_v22 = vld [vmem:[%s13585_s30 + $0x1568] sm:$0xff] }
 0x49b   : > { %8059 = vmatpush1.bf16.msra.mxu0 %v11616_v11  ;;  %v11715_v11 = vcombine.high %v1784_v24, %v1792_v25 }
 0x49c   : > { %8223 = vmatpush1.bf16.msra.mxu1 %v11618_v60  ;;  %8069 = vmatprep.subr.bf16.mxu0 %v11633_v16  ;;  %v1799_v60 = vld [vmem:[%s13585_s30 + $0x1320] sm:$0xff] }
 0x49d   : > { %8233 = vmatprep.subr.bf16.mxu1 %v11635_v34  ;;  %v1807_v16 = vld [vmem:[%s13585_s30 + $0x1360] sm:$0xff]  ;;  %v1800_v34 = vld [vmem:[%s13585_s30 + $0x1328] sm:$0xff] }
 0x49e   : > { %8061 = vmatmul.mubr.bf16.vlgmr.msra.gmra.mrb[16].mxu0 %v13952_v47  ;;  %v11729_v40 = vcombine.high %v1799_v60, %v1807_v16  ;;  %v11731_v8 = vcombine.high %v1800_v34, %v1808_v43  ;;  %v11730_v33 = vcombine.low %v1800_v34, %v1808_v43 }
 0x49f   : > { %8225 = vmatmul.mubr.bf16.vlgmr.msra.gmra.mrb[16].mxu1 %v13952_v47  ;;  %8070 = vmatpush1.bf16.msra.mxu0 %v11632_v36  ;;  %v11714_v36 = vcombine.low %v1784_v24, %v1792_v25 }
 0x4a0   : > { %8101 = vmatprep.mubr.bf16.mxu0 %v13954_v9  ;;  %8234 = vmatpush1.bf16.msra.mxu1 %v11634_v28  ;;  %v1815_v28 = vld [vmem:[%s13585_s30 + $0x13a0] sm:$0xff] }
 0x4a1   : > { %8265 = vmatprep.mubr.bf16.mxu1 %v13954_v9  ;;  %8071 = vmatprep.subr.bf16.mxu0 %v11649_v29  ;;  %v1823_v29 = vld [vmem:[%s13585_s30 + $0x13e0] sm:$0xff] }
 0x4a2   : > { %8235 = vmatprep.subr.bf16.mxu1 %v11651_v31  ;;  %v11728_v31 = vcombine.low %v1799_v60, %v1807_v16  ;;  %v11745_v38 = vcombine.high %v1815_v28, %v1823_v29  ;;  %v11744_v32 = vcombine.low %v1815_v28, %v1823_v29  ;;  %v1888_v60 = vld [vmem:[%s13585_s30 + $0x15e8] sm:$0xff] }
 0x4a3   : > { %8072 = vmatpush1.bf16.msra.mxu0 %v11648_v50  ;;  %v11747_v50 = vcombine.high %v1816_v30, %v1824_v54  ;;  %v1904_v28 = vld [vmem:[%s13585_s30 + $0x1668] sm:$0xff] }
 0x4a4   : > { %8236 = vmatpush1.bf16.msra.mxu1 %v11650_v21  ;;  %8073 = vmatprep.subr.bf16.mxu0 %v11665_v27  ;;  %v1831_v21 = vld [vmem:[%s13585_s30 + $0x1420] sm:$0xff] }
 0x4a5   : > { %8237 = vmatprep.subr.bf16.mxu1 %v11667_v44  ;;  %v1839_v27 = vld [vmem:[%s13585_s30 + $0x1460] sm:$0xff]  ;;  %v1832_v44 = vld [vmem:[%s13585_s30 + $0x1428] sm:$0xff] }
 0x4a6   : > { %v11761_v52 = vcombine.high %v1831_v21, %v1839_v27  ;;  %v11760_v12 = vcombine.low %v1831_v21, %v1839_v27  ;;  %v11762_v51 = vcombine.low %v1832_v44, %v1840_v26  ;;  %v1920_v21 = vld [vmem:[%s13585_s30 + $0x16e8] sm:$0xff] }
 0x4a7   : > { %8074 = vmatpush1.bf16.msra.mxu0 %v11664_v5  ;;  %v11763_v5 = vcombine.high %v1832_v44, %v1840_v26 }
 0x4a8   : > { %8238 = vmatpush1.bf16.msra.mxu1 %v11666_v6  ;;  %8075 = vmatprep.subr.bf16.mxu0 %v11681_v3  ;;  %v1847_v6 = vld [vmem:[%s13585_s30 + $0x14a0] sm:$0xff] }
 0x4a9   : > { %8239 = vmatprep.subr.bf16.mxu1 %v11683_v7  ;;  %v1855_v3 = vld [vmem:[%s13585_s30 + $0x14e0] sm:$0xff]  ;;  %v1848_v7 = vld [vmem:[%s13585_s30 + $0x14a8] sm:$0xff] }
 0x4aa   : > { %v11777_v13 = vcombine.high %v1847_v6, %v1855_v3  ;;  %v11776_v23 = vcombine.low %v1847_v6, %v1855_v3  ;;  %v11778_v24 = vcombine.low %v1848_v7, %v1856_v10  ;;  %v1936_v6 = vld [vmem:[%s13585_s30 + $0x1768] sm:$0xff] }
 0x4ab   : > { %8076 = vmatpush1.bf16.msra.mxu0 %v11680_v14  ;;  %v11779_v14 = vcombine.high %v1848_v7, %v1856_v10 }
 0x4ac   : > { %8240 = vmatpush1.bf16.msra.mxu1 %v11682_v15  ;;  %8077 = vmatprep.subr.bf16.mxu0 %v11697_v17  ;;  %v1863_v15 = vld [vmem:[%s13585_s30 + $0x1520] sm:$0xff] }
 0x4ad   : > { %8241 = vmatprep.subr.bf16.mxu1 %v11699_v20  ;;  %v1871_v17 = vld [vmem:[%s13585_s30 + $0x1560] sm:$0xff]  ;;  %v1864_v20 = vld [vmem:[%s13585_s30 + $0x1528] sm:$0xff] }
 0x4ae   : > { %v11793_v25 = vcombine.high %v1863_v15, %v1871_v17  ;;  %v11792_v16 = vcombine.low %v1863_v15, %v1871_v17  ;;  %v11794_v34 = vcombine.low %v1864_v20, %v1872_v22  ;;  %v1952_v15 = vld [vmem:[%s13585_s30 + $0x17e8] sm:$0xff] }
 0x4af   : > { %8078 = vmatpush1.bf16.msra.mxu0 %v11696_v58  ;;  %v11795_v58 = vcombine.high %v1864_v20, %v1872_v22 }
 0x4b0   : > { %8242 = vmatpush1.bf16.msra.mxu1 %v11698_v62  ;;  %8079 = vmatprep.subr.bf16.mxu0 %v11713_v4  ;;  %v1879_v62 = vld [vmem:[%s13585_s30 + $0x15a0] sm:$0xff] }
 0x4b1   : > { %8243 = vmatprep.subr.bf16.mxu1 %v11715_v11  ;;  %v1887_v4 = vld [vmem:[%s13585_s30 + $0x15e0] sm:$0xff]  ;;  %v1880_v11 = vld [vmem:[%s13585_s30 + $0x15a8] sm:$0xff] }
 0x4b2   : > { %v11809_v43 = vcombine.high %v1879_v62, %v1887_v4  ;;  %v11808_v29 = vcombine.low %v1879_v62, %v1887_v4  ;;  %v11810_v30 = vcombine.low %v1880_v11, %v1888_v60  ;;  %v1968_v62 = vld [vmem:[%s13585_s30 + $0x1868] sm:$0xff] }
 0x4b3   : > { %8080 = vmatpush1.bf16.msra.mxu0 %v11712_v37  ;;  %v11811_v37 = vcombine.high %v1880_v11, %v1888_v60 }
 0x4b4   : > { %8244 = vmatpush1.bf16.msra.mxu1 %v11714_v36  ;;  %8081 = vmatprep.subr.bf16.mxu0 %v11729_v40  ;;  %v1895_v36 = vld [vmem:[%s13585_s30 + $0x1620] sm:$0xff] }
 0x4b5   : > { %8245 = vmatprep.subr.bf16.mxu1 %v11731_v8  ;;  %v1903_v40 = vld [vmem:[%s13585_s30 + $0x1660] sm:$0xff]  ;;  %v1896_v8 = vld [vmem:[%s13585_s30 + $0x1628] sm:$0xff] }
 0x4b6   : > { %v11825_v54 = vcombine.high %v1895_v36, %v1903_v40  ;;  %v11824_v27 = vcombine.low %v1895_v36, %v1903_v40  ;;  %v11826_v44 = vcombine.low %v1896_v8, %v1904_v28  ;;  %v1976_v36 = vld [vmem:[%s13585_s30 + $0x18a8] sm:$0xff] }
 0x4b7   : > { %8082 = vmatpush1.bf16.msra.mxu0 %v11728_v31  ;;  %v11827_v31 = vcombine.high %v1896_v8, %v1904_v28  ;;  %v1984_v40 = vld [vmem:[%s13585_s30 + $0x18e8] sm:$0xff] }
 0x4b8   : > { %8246 = vmatpush1.bf16.msra.mxu1 %v11730_v33  ;;  %8083 = vmatprep.subr.bf16.mxu0 %v11745_v38  ;;  %v1911_v33 = vld [vmem:[%s13585_s30 + $0x16a0] sm:$0xff] }
 0x4b9   : > { %8247 = vmatprep.subr.bf16.mxu1 %v11747_v50  ;;  %v1919_v38 = vld [vmem:[%s13585_s30 + $0x16e0] sm:$0xff]  ;;  %v1912_v50 = vld [vmem:[%s13585_s30 + $0x16a8] sm:$0xff] }
 0x4ba   : > { %v11841_v26 = vcombine.high %v1911_v33, %v1919_v38  ;;  %v11840_v3 = vcombine.low %v1911_v33, %v1919_v38  ;;  %v11842_v7 = vcombine.low %v1912_v50, %v1920_v21  ;;  %v2000_v33 = vld [vmem:[%s13585_s30 + $0x1968] sm:$0xff] }
 0x4bb   : > { %8084 = vmatpush1.bf16.msra.mxu0 %v11744_v32  ;;  %v11843_v32 = vcombine.high %v1912_v50, %v1920_v21  ;;  %v11906_v50 = vcombine.low %v1976_v36, %v1984_v40 }
 0x4bc   : > { %8248 = vmatpush1.bf16.msra.mxu1 %v11746_v46  ;;  %8085 = vmatprep.subr.bf16.mxu0 %v11761_v52  ;;  %v1927_v46 = vld [vmem:[%s13585_s30 + $0x1720] sm:$0xff] }
 0x4bd   : > { %8249 = vmatprep.subr.bf16.mxu1 %v11763_v5  ;;  %v1935_v52 = vld [vmem:[%s13585_s30 + $0x1760] sm:$0xff]  ;;  %v1928_v5 = vld [vmem:[%s13585_s30 + $0x1728] sm:$0xff] }
 0x4be   : > { %v11857_v10 = vcombine.high %v1927_v46, %v1935_v52  ;;  %v11856_v17 = vcombine.low %v1927_v46, %v1935_v52  ;;  %v11858_v20 = vcombine.low %v1928_v5, %v1936_v6  ;;  %v2016_v46 = vld [vmem:[%s13585_s30 + $0x19e8] sm:$0xff] }
 0x4bf   : > { %8086 = vmatpush1.bf16.msra.mxu0 %v11760_v12  ;;  %v11859_v12 = vcombine.high %v1928_v5, %v1936_v6 }
 0x4c0   : > { %8250 = vmatpush1.bf16.msra.mxu1 %v11762_v51  ;;  %8087 = vmatprep.subr.bf16.mxu0 %v11777_v13  ;;  %v1943_v51 = vld [vmem:[%s13585_s30 + $0x17a0] sm:$0xff] }
 0x4c1   : > { %8251 = vmatprep.subr.bf16.mxu1 %v11779_v14  ;;  %v1951_v13 = vld [vmem:[%s13585_s30 + $0x17e0] sm:$0xff]  ;;  %v1944_v14 = vld [vmem:[%s13585_s30 + $0x17a8] sm:$0xff] }
 0x4c2   : > { %v11873_v22 = vcombine.high %v1943_v51, %v1951_v13  ;;  %v11872_v4 = vcombine.low %v1943_v51, %v1951_v13  ;;  %v11874_v11 = vcombine.low %v1944_v14, %v1952_v15  ;;  %v2032_v51 = vld [vmem:[%s13585_s30 + $0x1a68] sm:$0xff] }
 0x4c3   : > { %8088 = vmatpush1.bf16.msra.mxu0 %v11776_v23  ;;  %v11875_v23 = vcombine.high %v1944_v14, %v1952_v15 }
 0x4c4   : > { %8252 = vmatpush1.bf16.msra.mxu1 %v11778_v24  ;;  %8089 = vmatprep.subr.bf16.mxu0 %v11793_v25  ;;  %v1959_v24 = vld [vmem:[%s13585_s30 + $0x1820] sm:$0xff] }
 0x4c5   : > { %8253 = vmatprep.subr.bf16.mxu1 %v11795_v58  ;;  %v1967_v25 = vld [vmem:[%s13585_s30 + $0x1860] sm:$0xff]  ;;  %v1960_v58 = vld [vmem:[%s13585_s30 + $0x1828] sm:$0xff] }
 0x4c6   : > { %v11889_v60 = vcombine.high %v1959_v24, %v1967_v25  ;;  %v11890_v8 = vcombine.low %v1960_v58, %v1968_v62 }
 0x4c7   : > { %8090 = vmatpush1.bf16.msra.mxu0 %v11792_v16  ;;  %v11891_v16 = vcombine.high %v1960_v58, %v1968_v62 }
 0x4c8   : > { %8254 = vmatpush1.bf16.msra.mxu1 %v11794_v34  ;;  %8091 = vmatprep.subr.bf16.mxu0 %v11809_v43  ;;  %v1975_v34 = vld [vmem:[%s13585_s30 + $0x18a0] sm:$0xff] }
 0x4c9   : > { %8255 = vmatprep.subr.bf16.mxu1 %v11811_v37  ;;  %v1983_v43 = vld [vmem:[%s13585_s30 + $0x18e0] sm:$0xff]  ;;  %v11888_v37 = vcombine.low %v1959_v24, %v1967_v25  ;;  %v2048_v24 = vld [vmem:[%s13585_s30 + $0x1ae8] sm:$0xff] }
 0x4ca   : > { %v11905_v28 = vcombine.high %v1975_v34, %v1983_v43  ;;  %v11904_v38 = vcombine.low %v1975_v34, %v1983_v43  ;;  %v2064_v34 = vld [vmem:[%s13585_s30 + $0x1b68] sm:$0xff] }
 0x4cb   : > { %8092 = vmatpush1.bf16.msra.mxu0 %v11808_v29  ;;  %v1991_v29 = vld [vmem:[%s13585_s30 + $0x1920] sm:$0xff] }
 0x4cc   : > { %8256 = vmatpush1.bf16.msra.mxu1 %v11810_v30  ;;  %8093 = vmatprep.subr.bf16.mxu0 %v11825_v54  ;;  %v1999_v30 = vld [vmem:[%s13585_s30 + $0x1960] sm:$0xff]  ;;  %v11907_v54 = vcombine.high %v1976_v36, %v1984_v40 }
 0x4cd   : > { %8257 = vmatprep.subr.bf16.mxu1 %v11827_v31  ;;  %v1992_v31 = vld [vmem:[%s13585_s30 + $0x1928] sm:$0xff]  ;;  %v11921_v21 = vcombine.high %v1991_v29, %v1999_v30  ;;  %v11920_v52 = vcombine.low %v1991_v29, %v1999_v30  ;;  %v2079_v29 = vld [vmem:[%s13585_s30 + $0x1be0] sm:$0xff] }
 0x4ce   : > { %v11922_v5 = vcombine.low %v1992_v31, %v2000_v33 }
 0x4cf   : > { %8094 = vmatpush1.bf16.msra.mxu0 %v11824_v27  ;;  %v11923_v27 = vcombine.high %v1992_v31, %v2000_v33  ;;  %v2072_v31 = vld [vmem:[%s13585_s30 + $0x1ba8] sm:$0xff] }
 0x4d0   : > { %8258 = vmatpush1.bf16.msra.mxu1 %v11826_v44  ;;  %8095 = vmatprep.subr.bf16.mxu0 %v11841_v26  ;;  %v2007_v44 = vld [vmem:[%s13585_s30 + $0x19a0] sm:$0xff]  ;;  %v2080_v33 = vld [vmem:[%s13585_s30 + $0x1be8] sm:$0xff] }
 0x4d1   : > { %8259 = vmatprep.subr.bf16.mxu1 %v11843_v32  ;;  %v2015_v26 = vld [vmem:[%s13585_s30 + $0x19e0] sm:$0xff]  ;;  %v2008_v32 = vld [vmem:[%s13585_s30 + $0x19a8] sm:$0xff] }
 0x4d2   : > { %v11937_v6 = vcombine.high %v2007_v44, %v2015_v26  ;;  %v11936_v13 = vcombine.low %v2007_v44, %v2015_v26  ;;  %v11938_v14 = vcombine.low %v2008_v32, %v2016_v46 }
 0x4d3   : > { %8096 = vmatpush1.bf16.msra.mxu0 %v11840_v3  ;;  %v11939_v3 = vcombine.high %v2008_v32, %v2016_v46 }
 0x4d4   : > { %8260 = vmatpush1.bf16.msra.mxu1 %v11842_v7  ;;  %8097 = vmatprep.subr.bf16.mxu0 %v11857_v10  ;;  %v2023_v7 = vld [vmem:[%s13585_s30 + $0x1a20] sm:$0xff] }
 0x4d5   : > { %8261 = vmatprep.subr.bf16.mxu1 %v11859_v12  ;;  %v2031_v10 = vld [vmem:[%s13585_s30 + $0x1a60] sm:$0xff]  ;;  %v2024_v12 = vld [vmem:[%s13585_s30 + $0x1a28] sm:$0xff] }
 0x4d6   : > { %v11953_v15 = vcombine.high %v2023_v7, %v2031_v10  ;;  %v11952_v25 = vcombine.low %v2023_v7, %v2031_v10  ;;  %v11954_v58 = vcombine.low %v2024_v12, %v2032_v51  ;;  %v2096_v7 = vld [vmem:[%s13585_s30 + $0x1c68] sm:$0xff] }
 0x4d7   : > { %8098 = vmatpush1.bf16.msra.mxu0 %v11856_v17  ;;  %v11955_v17 = vcombine.high %v2024_v12, %v2032_v51  ;;  %v12002_v12 = vcombine.low %v2072_v31, %v2080_v33 }
 0x4d8   : > { %8262 = vmatpush1.bf16.msra.mxu1 %v11858_v20  ;;  %8099 = vmatprep.subr.bf16.mxu0 %v11873_v22  ;;  %v2039_v20 = vld [vmem:[%s13585_s30 + $0x1aa0] sm:$0xff] }
 0x4d9   : > { %8263 = vmatprep.subr.bf16.mxu1 %v11875_v23  ;;  %v2047_v22 = vld [vmem:[%s13585_s30 + $0x1ae0] sm:$0xff]  ;;  %v2040_v23 = vld [vmem:[%s13585_s30 + $0x1aa8] sm:$0xff] }
 0x4da   : > { %v11969_v62 = vcombine.high %v2039_v20, %v2047_v22  ;;  %v11968_v43 = vcombine.low %v2039_v20, %v2047_v22  ;;  %v2112_v20 = vld [vmem:[%s13585_s30 + $0x1ce8] sm:$0xff] }
 0x4db   : > { %8100 = vmatpush1.bf16.msra.mxu0 %v11872_v4  ;;  %v11971_v4 = vcombine.high %v2040_v23, %v2048_v24 }
 0x4dc   : > { %8264 = vmatpush1.bf16.msra.mxu1 %v11874_v11  ;;  %8110 = vmatprep.subr.bf16.mxu0 %v11889_v60  ;;  %v2055_v11 = vld [vmem:[%s13585_s30 + $0x1b20] sm:$0xff] }
 0x4dd   : > { %8274 = vmatprep.subr.bf16.mxu1 %v11891_v16  ;;  %v2063_v60 = vld [vmem:[%s13585_s30 + $0x1b60] sm:$0xff]  ;;  %v2056_v16 = vld [vmem:[%s13585_s30 + $0x1b28] sm:$0xff] }
 0x4de   : > { %8102 = vmatmul.mubr.bf16.vlgmr.msra.gmra.mrb[16].mxu0 %v14026_v56  ;;  %v11985_v36 = vcombine.high %v2055_v11, %v2063_v60  ;;  %v11986_v26 = vcombine.low %v2056_v16, %v2064_v34 }
 0x4df   : > { %8266 = vmatmul.mubr.bf16.vlgmr.msra.gmra.mrb[16].mxu1 %v14026_v56  ;;  %8111 = vmatpush1.bf16.msra.mxu0 %v11888_v37  ;;  %v11970_v37 = vcombine.low %v2040_v23, %v2048_v24 }
 0x4e0   : > { %8142 = vmatprep.mubr.bf16.mxu0 %v14030_v41  ;;  %8275 = vmatpush1.bf16.msra.mxu1 %v11890_v8  ;;  %v11987_v8 = vcombine.high %v2056_v16, %v2064_v34 }
 0x4e1   : > { %8306 = vmatprep.mubr.bf16.mxu1 %v14030_v41  ;;  %8112 = vmatprep.subr.bf16.mxu0 %v11905_v28  ;;  %v2071_v28 = vld [vmem:[%s13585_s30 + $0x1ba0] sm:$0xff] }
 0x4e2   : > { %8276 = vmatprep.subr.bf16.mxu1 %v11907_v54  ;;  %v12001_v32 = vcombine.high %v2071_v28, %v2079_v29  ;;  %v12000_v10 = vcombine.low %v2071_v28, %v2079_v29  ;;  %v2144_v28 = vld [vmem:[%s13585_s30 + $0x1de8] sm:$0xff] }
 0x4e3   : > { %8113 = vmatpush1.bf16.msra.mxu0 %v11904_v38 }
 0x4e4   : > { %8277 = vmatpush1.bf16.msra.mxu1 %v11906_v50  ;;  %8114 = vmatprep.subr.bf16.mxu0 %v11921_v21  ;;  %v11984_v21 = vcombine.low %v2055_v11, %v2063_v60  ;;  %v2128_v11 = vld [vmem:[%s13585_s30 + $0x1d68] sm:$0xff] }
 0x4e5   : > { %8278 = vmatprep.subr.bf16.mxu1 %v11923_v27 }
 0x4e7   : > { %8115 = vmatpush1.bf16.msra.mxu0 %v11920_v52  ;;  %v12003_v52 = vcombine.high %v2072_v31, %v2080_v33 }
 0x4e8   : > { %8279 = vmatpush1.bf16.msra.mxu1 %v11922_v5  ;;  %8116 = vmatprep.subr.bf16.mxu0 %v11937_v6  ;;  %v2087_v5 = vld [vmem:[%s13585_s30 + $0x1c20] sm:$0xff] }
 0x4e9   : > { %8280 = vmatprep.subr.bf16.mxu1 %v11939_v3  ;;  %v2095_v6 = vld [vmem:[%s13585_s30 + $0x1c60] sm:$0xff]  ;;  %v2088_v3 = vld [vmem:[%s13585_s30 + $0x1c28] sm:$0xff] }
 0x4ea   : > { %v12017_v51 = vcombine.high %v2087_v5, %v2095_v6  ;;  %v12016_v22 = vcombine.low %v2087_v5, %v2095_v6  ;;  %v12018_v23 = vcombine.low %v2088_v3, %v2096_v7  ;;  %v2167_v6 = vld [vmem:[%s13585_s30 + $0x1ea0] sm:$0xff] }
 0x4eb   : > { %8117 = vmatpush1.bf16.msra.mxu0 %v11936_v13  ;;  %v12019_v13 = vcombine.high %v2088_v3, %v2096_v7  ;;  %v2175_v3 = vld [vmem:[%s13585_s30 + $0x1ee0] sm:$0xff]  ;;  %v2168_v7 = vld [vmem:[%s13585_s30 + $0x1ea8] sm:$0xff] }
 0x4ec   : > { %8281 = vmatpush1.bf16.msra.mxu1 %v11938_v14  ;;  %8118 = vmatprep.subr.bf16.mxu0 %v11953_v15  ;;  %v2103_v14 = vld [vmem:[%s13585_s30 + $0x1ca0] sm:$0xff] }
 0x4ed   : > { %8282 = vmatprep.subr.bf16.mxu1 %v11955_v17  ;;  %v2111_v15 = vld [vmem:[%s13585_s30 + $0x1ce0] sm:$0xff]  ;;  %v2104_v17 = vld [vmem:[%s13585_s30 + $0x1ca8] sm:$0xff] }
 0x4ee   : > { %v12033_v24 = vcombine.high %v2103_v14, %v2111_v15  ;;  %v12032_v60 = vcombine.low %v2103_v14, %v2111_v15  ;;  %v12034_v16 = vcombine.low %v2104_v17, %v2112_v20  ;;  %v2183_v15 = vld [vmem:[%s13585_s30 + $0x1f20] sm:$0xff] }
 0x4ef   : > { %8119 = vmatpush1.bf16.msra.mxu0 %v11952_v25  ;;  %v12035_v25 = vcombine.high %v2104_v17, %v2112_v20  ;;  %v2191_v17 = vld [vmem:[%s13585_s30 + $0x1f60] sm:$0xff]  ;;  %v2184_v20 = vld [vmem:[%s13585_s30 + $0x1f28] sm:$0xff] }
 0x4f0   : > { %8283 = vmatpush1.bf16.msra.mxu1 %v11954_v58  ;;  %8120 = vmatprep.subr.bf16.mxu0 %v11969_v62  ;;  %v2119_v58 = vld [vmem:[%s13585_s30 + $0x1d20] sm:$0xff] }
 0x4f1   : > { %v14609_v40 = vpop.f32.mrb[12].mxu0  ;;  %8284 = vmatprep.subr.bf16.mxu1 %v11971_v4  ;;  %v2127_v62 = vld [vmem:[%s13585_s30 + $0x1d60] sm:$0xff]  ;;  %v2120_v4 = vld [vmem:[%s13585_s30 + $0x1d28] sm:$0xff] }
 0x4f2   : > { %v14613_v30 = vpop.f32.mrb[12].mxu1  ;;  %v14615_v54 = vpop.f32.mrb[13].mxu0  ;;  %v12049_v34 = vcombine.high %v2119_v58, %v2127_v62  ;;  %v12048_v29 = vcombine.low %v2119_v58, %v2127_v62  ;;  %v12050_v31 = vcombine.low %v2120_v4, %v2128_v11  ;;  %v2199_v62 = vld [vmem:[%s13585_s30 + $0x1fa0] sm:$0xff]  ;;  %8651 = vst [vmem:[#allocation2 + $0x20] sm:$0xff] (!%p15374_p1), %v14609_v40 }
 0x4f3   : > { %v14619_v38 = vpop.f32.mrb[13].mxu1  ;;  %v7820_v50 = vpop.f32.mrb[14].mxu0  ;;  %8121 = vmatpush1.bf16.msra.mxu0 %v11968_v43  ;;  %v12051_v43 = vcombine.high %v2120_v4, %v2128_v11  ;;  %v2207_v4 = vld [vmem:[%s13585_s30 + $0x1fe0] sm:$0xff]  ;;  %v2200_v11 = vld [vmem:[%s13585_s30 + $0x1fa8] sm:$0xff]  ;;  %8652 = vst [vmem:[#allocation2 + $0x28] sm:$0xff] (!%p15374_p1), %v14615_v54  ;;  %8653 = vst [vmem:[#allocation2 + $0x30] sm:$0xff] (!%p15374_p1), %v14613_v30 }
 0x4f4   : > { %v7984_v27 = vpop.f32.mrb[14].mxu1  ;;  %8285 = vmatpush1.bf16.msra.mxu1 %v11970_v37  ;;  %v7821_v44 = vpop.f32.mrb[15].mxu0  ;;  %8122 = vmatprep.subr.bf16.mxu0 %v11985_v36  ;;  %v2135_v37 = vld [vmem:[%s13585_s30 + $0x1da0] sm:$0xff]  ;;  %8654 = vst [vmem:[#allocation2 + $0x38] sm:$0xff] (!%p15374_p1), %v14619_v38 }
 0x4f5   : > { %v7985_v46 = vpop.f32.mrb[15].mxu1  ;;  %8286 = vmatprep.subr.bf16.mxu1 %v11987_v8  ;;  %v2143_v36 = vld [vmem:[%s13585_s30 + $0x1de0] sm:$0xff]  ;;  %v2136_v8 = vld [vmem:[%s13585_s30 + $0x1da8] sm:$0xff] }
 0x4f6   : > { %v12065_v33 = vcombine.high %v2135_v37, %v2143_v36  ;;  %v12067_v50 = vcombine.high %v2136_v8, %v2144_v28  ;;  %v2159_v27 = vld [vmem:[%s13585_s30 + $0x1e60] sm:$0xff]  ;;  %v2152_v44 = vld [vmem:[%s13585_s30 + $0x1e28] sm:$0xff]  ;;  %v12066_v46 = vcombine.low %v2136_v8, %v2144_v28  ;;  %v1201_v8 = vld [vmem:[%s13585_s30 + $0x70] sm:$0xff] }
 0x4f7   : > { %8123 = vmatpush1.bf16.msra.mxu0 %v11984_v21  ;;  %v2151_v21 = vld [vmem:[%s13585_s30 + $0x1e20] sm:$0xff]  ;;  %v1194_v28 = vld [vmem:[%s13585_s30 + $0x38] sm:$0xff] }
 0x4f8   : > { %8287 = vmatpush1.bf16.msra.mxu1 %v11986_v26  ;;  %8124 = vmatprep.subr.bf16.mxu0 %v12001_v32  ;;  %v2160_v26 = vld [vmem:[%s13585_s30 + $0x1e68] sm:$0xff]  ;;  %v12064_v32 = vcombine.low %v2135_v37, %v2143_v36  ;;  %v1193_v36 = vld [vmem:[%s13585_s30 + $0x30] sm:$0xff] }
 0x4f9   : > { %8288 = vmatprep.subr.bf16.mxu1 %v12003_v52  ;;  %v12081_v52 = vcombine.high %v2151_v21, %v2159_v27  ;;  %v12083_v5 = vcombine.high %v2152_v44, %v2160_v26 }
 0x4fb   : > { %8125 = vmatpush1.bf16.msra.mxu0 %v12000_v10  ;;  %v2176_v10 = vld [vmem:[%s13585_s30 + $0x1ee8] sm:$0xff] }
 0x4fc   : > { %8289 = vmatpush1.bf16.msra.mxu1 %v12002_v12  ;;  %8126 = vmatprep.subr.bf16.mxu0 %v12017_v51  ;;  %v12080_v12 = vcombine.low %v2151_v21, %v2159_v27  ;;  %v12082_v51 = vcombine.low %v2152_v44, %v2160_v26  ;;  %v12099_v14 = vcombine.high %v2168_v7, %v2176_v10  ;;  %v1209_v27 = vld [vmem:[%s13585_s30 + $0xb0] sm:$0xff] }
 0x4fd   : > { %8290 = vmatprep.subr.bf16.mxu1 %v12019_v13  ;;  %v12097_v13 = vcombine.high %v2167_v6, %v2175_v3  ;;  %v1217_v44 = vld [vmem:[%s13585_s30 + $0xf0] sm:$0xff]  ;;  %v11124_v26 = vcombine.low %v1193_v36, %v1201_v8 }
 0x4ff   : > { %8127 = vmatpush1.bf16.msra.mxu0 %v12016_v22  ;;  %v2192_v22 = vld [vmem:[%s13585_s30 + $0x1f68] sm:$0xff] }
 0x500   : > { %8291 = vmatpush1.bf16.msra.mxu1 %v12018_v23  ;;  %8128 = vmatprep.subr.bf16.mxu0 %v12033_v24  ;;  %v12096_v23 = vcombine.low %v2167_v6, %v2175_v3  ;;  %v12098_v24 = vcombine.low %v2168_v7, %v2176_v10  ;;  %v12115_v58 = vcombine.high %v2184_v20, %v2192_v22  ;;  %v1225_v6 = vld [vmem:[%s13585_s30 + $0x130] sm:$0xff]  ;;  %v1226_v10 = vld [vmem:[%s13585_s30 + $0x138] sm:$0xff] }
 0x501   : > { %8292 = vmatprep.subr.bf16.mxu1 %v12035_v25  ;;  %v12113_v25 = vcombine.high %v2183_v15, %v2191_v17  ;;  %v1233_v3 = vld [vmem:[%s13585_s30 + $0x170] sm:$0xff] }
 0x503   : > { %8129 = vmatpush1.bf16.msra.mxu0 %v12032_v60  ;;  %v2208_v60 = vld [vmem:[%s13585_s30 + $0x1fe8] sm:$0xff] }
 0x504   : > { %8293 = vmatpush1.bf16.msra.mxu1 %v12034_v16  ;;  %8130 = vmatprep.subr.bf16.mxu0 %v12049_v34  ;;  %v12112_v16 = vcombine.low %v2183_v15, %v2191_v17  ;;  %v12114_v34 = vcombine.low %v2184_v20, %v2192_v22  ;;  %v12131_v37 = vcombine.high %v2200_v11, %v2208_v60  ;;  %v1241_v17 = vld [vmem:[%s13585_s30 + $0x1b0] sm:$0xff]  ;;  %v1242_v22 = vld [vmem:[%s13585_s30 + $0x1b8] sm:$0xff] }
 0x505   : > { %8294 = vmatprep.subr.bf16.mxu1 %v12051_v43  ;;  %v12129_v43 = vcombine.high %v2199_v62, %v2207_v4  ;;  %v1249_v20 = vld [vmem:[%s13585_s30 + $0x1f0] sm:$0xff] }
 0x507   : > { %8131 = vmatpush1.bf16.msra.mxu0 %v12048_v29  ;;  %v1202_v29 = vld [vmem:[%s13585_s30 + $0x78] sm:$0xff] }
 0x508   : > { %8295 = vmatpush1.bf16.msra.mxu1 %v12050_v31  ;;  %8132 = vmatprep.subr.bf16.mxu0 %v12065_v33  ;;  %v12128_v31 = vcombine.low %v2199_v62, %v2207_v4  ;;  %v12130_v33 = vcombine.low %v2200_v11, %v2208_v60  ;;  %v11127_v21 = vcombine.high %v1194_v28, %v1202_v29  ;;  %v1257_v62 = vld [vmem:[%s13585_s30 + $0x230] sm:$0xff]  ;;  %v1258_v11 = vld [vmem:[%s13585_s30 + $0x238] sm:$0xff] }
 0x509   : > { %8296 = vmatprep.subr.bf16.mxu1 %v12067_v50  ;;  %v11125_v50 = vcombine.high %v1193_v36, %v1201_v8  ;;  %v1265_v4 = vld [vmem:[%s13585_s30 + $0x270] sm:$0xff]  ;;  %v1266_v60 = vld [vmem:[%s13585_s30 + $0x278] sm:$0xff] }
 0x50a   : > { %v1273_v36 = vld [vmem:[%s13585_s30 + $0x2b0] sm:$0xff] }
 0x50b   : > { %8133 = vmatpush1.bf16.msra.mxu0 %v12064_v32  ;;  %v1210_v32 = vld [vmem:[%s13585_s30 + $0xb8] sm:$0xff]  ;;  %v1281_v8 = vld [vmem:[%s13585_s30 + $0x2f0] sm:$0xff] }
 0x50c   : > { %8297 = vmatpush1.bf16.msra.mxu1 %v12066_v46  ;;  %8134 = vmatprep.subr.bf16.mxu0 %v12081_v52  ;;  %v1218_v46 = vld [vmem:[%s13585_s30 + $0xf8] sm:$0xff]  ;;  %v11126_v52 = vcombine.low %v1194_v28, %v1202_v29 }
 0x50d   : > { %8298 = vmatprep.subr.bf16.mxu1 %v12083_v5  ;;  %v11141_v5 = vcombine.high %v1209_v27, %v1217_v44  ;;  %v11143_v7 = vcombine.high %v1210_v32, %v1218_v46  ;;  %v1274_v28 = vld [vmem:[%s13585_s30 + $0x2b8] sm:$0xff] }
 0x50e   : > { %v1282_v29 = vld [vmem:[%s13585_s30 + $0x2f8] sm:$0xff] }
 0x50f   : > { %8135 = vmatpush1.bf16.msra.mxu0 %v12080_v12  ;;  %v1234_v12 = vld [vmem:[%s13585_s30 + $0x178] sm:$0xff] }
 0x510   : > { %8299 = vmatpush1.bf16.msra.mxu1 %v12082_v51  ;;  %8136 = vmatprep.subr.bf16.mxu0 %v12097_v13  ;;  %v11140_v51 = vcombine.low %v1209_v27, %v1217_v44  ;;  %v11142_v13 = vcombine.low %v1210_v32, %v1218_v46  ;;  %v11159_v15 = vcombine.high %v1226_v10, %v1234_v12  ;;  %v1289_v27 = vld [vmem:[%s13585_s30 + $0x330] sm:$0xff]  ;;  %v1298_v32 = vld [vmem:[%s13585_s30 + $0x378] sm:$0xff] }
 0x511   : > { %8300 = vmatprep.subr.bf16.mxu1 %v12099_v14  ;;  %v11157_v14 = vcombine.high %v1225_v6, %v1233_v3  ;;  %v1297_v44 = vld [vmem:[%s13585_s30 + $0x370] sm:$0xff]  ;;  %v11204_v46 = vcombine.low %v1273_v36, %v1281_v8 }
 0x513   : > { %8137 = vmatpush1.bf16.msra.mxu0 %v12096_v23  ;;  %v1250_v23 = vld [vmem:[%s13585_s30 + $0x1f8] sm:$0xff] }
 0x514   : > { %8301 = vmatpush1.bf16.msra.mxu1 %v12098_v24  ;;  %8138 = vmatprep.subr.bf16.mxu0 %v12113_v25  ;;  %v11156_v24 = vcombine.low %v1225_v6, %v1233_v3  ;;  %v11158_v25 = vcombine.low %v1226_v10, %v1234_v12  ;;  %v1305_v3 = vld [vmem:[%s13585_s30 + $0x3b0] sm:$0xff]  ;;  %v1306_v10 = vld [vmem:[%s13585_s30 + $0x3b8] sm:$0xff] }
 0x515   : > { %8302 = vmatprep.subr.bf16.mxu1 %v12115_v58  ;;  %v11173_v58 = vcombine.high %v1241_v17, %v1249_v20  ;;  %v1314_v12 = vld [vmem:[%s13585_s30 + $0x3f8] sm:$0xff] }
 0x517   : > { %8139 = vmatpush1.bf16.msra.mxu0 %v12112_v16  ;;  %v11172_v16 = vcombine.low %v1241_v17, %v1249_v20  ;;  %v1321_v17 = vld [vmem:[%s13585_s30 + $0x430] sm:$0xff] }
 0x518   : > { %8303 = vmatpush1.bf16.msra.mxu1 %v12114_v34  ;;  %8140 = vmatprep.subr.bf16.mxu0 %v12129_v43  ;;  %v11174_v34 = vcombine.low %v1242_v22, %v1250_v23  ;;  %v11189_v43 = vcombine.high %v1257_v62, %v1265_v4  ;;  %v1329_v20 = vld [vmem:[%s13585_s30 + $0x470] sm:$0xff] }
 0x519   : > { %8304 = vmatprep.subr.bf16.mxu1 %v12131_v37  ;;  %v11191_v37 = vcombine.high %v1258_v11, %v1266_v60 }
 0x51b   : > { %8141 = vmatpush1.bf16.msra.mxu0 %v12128_v31  ;;  %v11188_v31 = vcombine.low %v1257_v62, %v1265_v4  ;;  %v1337_v62 = vld [vmem:[%s13585_s30 + $0x4b0] sm:$0xff] }
 0x51c   : > { %8305 = vmatpush1.bf16.msra.mxu1 %v12130_v33  ;;  %8315 = vmatprep.subr.bf16.mxu0 %v11125_v50  ;;  %v11190_v33 = vcombine.low %v1258_v11, %v1266_v60  ;;  %v11205_v50 = vcombine.high %v1273_v36, %v1281_v8  ;;  %v1345_v4 = vld [vmem:[%s13585_s30 + $0x4f0] sm:$0xff]  ;;  %v1338_v11 = vld [vmem:[%s13585_s30 + $0x4b8] sm:$0xff] }
 0x51d   : > { %8479 = vmatprep.subr.bf16.mxu1 %v11127_v21  ;;  %v11207_v21 = vcombine.high %v1274_v28, %v1282_v29  ;;  %v1346_v60 = vld [vmem:[%s13585_s30 + $0x4f8] sm:$0xff]  ;;  %v1353_v36 = vld [vmem:[%s13585_s30 + $0x530] sm:$0xff] }
 0x51e   : > { %8143 = vmatmul.mubr.bf16.vlgmr.msra.gmra.mrb[16].mxu0 %v14099_v35  ;;  %v1361_v8 = vld [vmem:[%s13585_s30 + $0x570] sm:$0xff] }
 0x51f   : > { %8307 = vmatmul.mubr.bf16.vlgmr.msra.gmra.mrb[16].mxu1 %v14099_v35  ;;  %8316 = vmatpush1.bf16.msra.mxu0 %v11124_v26  ;;  %v1290_v26 = vld [vmem:[%s13585_s30 + $0x338] sm:$0xff] }
 0x520   : > { %8347 = vmatprep.mubr.bf16.mxu0 %v13868_v18  ;;  %8480 = vmatpush1.bf16.msra.mxu1 %v11126_v52  ;;  %v11206_v52 = vcombine.low %v1274_v28, %v1282_v29  ;;  %v11223_v6 = vcombine.high %v1290_v26, %v1298_v32  ;;  %v1354_v28 = vld [vmem:[%s13585_s30 + $0x538] sm:$0xff] }
 0x521   : > { %8511 = vmatprep.mubr.bf16.mxu1 %v13868_v18  ;;  %8317 = vmatprep.subr.bf16.mxu0 %v11141_v5  ;;  %v11175_v18 = vcombine.high %v1242_v22, %v1250_v23  ;;  %v11221_v5 = vcombine.high %v1289_v27, %v1297_v44  ;;  %v1322_v22 = vld [vmem:[%s13585_s30 + $0x438] sm:$0xff] }
 0x522   : > { %8481 = vmatprep.subr.bf16.mxu1 %v11143_v7  ;;  %v1313_v7 = vld [vmem:[%s13585_s30 + $0x3f0] sm:$0xff]  ;;  %v1330_v23 = vld [vmem:[%s13585_s30 + $0x478] sm:$0xff] }
 0x523   : > { %8318 = vmatpush1.bf16.msra.mxu0 %v11140_v51  ;;  %v11220_v51 = vcombine.low %v1289_v27, %v1297_v44  ;;  %v1362_v29 = vld [vmem:[%s13585_s30 + $0x578] sm:$0xff]  ;;  %v1369_v27 = vld [vmem:[%s13585_s30 + $0x5b0] sm:$0xff] }
 0x524   : > { %8482 = vmatpush1.bf16.msra.mxu1 %v11142_v13  ;;  %8319 = vmatprep.subr.bf16.mxu0 %v11157_v14  ;;  %v11222_v13 = vcombine.low %v1290_v26, %v1298_v32  ;;  %v11237_v14 = vcombine.high %v1305_v3, %v1313_v7  ;;  %v1377_v44 = vld [vmem:[%s13585_s30 + $0x5f0] sm:$0xff]  ;;  %v1370_v26 = vld [vmem:[%s13585_s30 + $0x5b8] sm:$0xff] }
 0x525   : > { %8483 = vmatprep.subr.bf16.mxu1 %v11159_v15  ;;  %v11239_v15 = vcombine.high %v1306_v10, %v1314_v12  ;;  %v1378_v32 = vld [vmem:[%s13585_s30 + $0x5f8] sm:$0xff] }
 0x527   : > { %8320 = vmatpush1.bf16.msra.mxu0 %v11156_v24  ;;  %v11236_v24 = vcombine.low %v1305_v3, %v1313_v7  ;;  %v1385_v3 = vld [vmem:[%s13585_s30 + $0x630] sm:$0xff] }
 0x528   : > { %8484 = vmatpush1.bf16.msra.mxu1 %v11158_v25  ;;  %8321 = vmatprep.subr.bf16.mxu0 %v11173_v58  ;;  %v11238_v25 = vcombine.low %v1306_v10, %v1314_v12  ;;  %v11253_v58 = vcombine.high %v1321_v17, %v1329_v20  ;;  %v1393_v7 = vld [vmem:[%s13585_s30 + $0x670] sm:$0xff]  ;;  %v1386_v10 = vld [vmem:[%s13585_s30 + $0x638] sm:$0xff] }
 0x529   : > { %8485 = vmatprep.subr.bf16.mxu1 %v11175_v18  ;;  %v11255_v18 = vcombine.high %v1322_v22, %v1330_v23  ;;  %v1394_v12 = vld [vmem:[%s13585_s30 + $0x678] sm:$0xff] }
 0x52b   : > { %8322 = vmatpush1.bf16.msra.mxu0 %v11172_v16  ;;  %v11252_v16 = vcombine.low %v1321_v17, %v1329_v20  ;;  %v1401_v17 = vld [vmem:[%s13585_s30 + $0x6b0] sm:$0xff] }
 0x52c   : > { %8486 = vmatpush1.bf16.msra.mxu1 %v11174_v34  ;;  %8323 = vmatprep.subr.bf16.mxu0 %v11189_v43  ;;  %v11254_v34 = vcombine.low %v1322_v22, %v1330_v23  ;;  %v11269_v43 = vcombine.high %v1337_v62, %v1345_v4  ;;  %v1409_v20 = vld [vmem:[%s13585_s30 + $0x6f0] sm:$0xff]  ;;  %v1402_v22 = vld [vmem:[%s13585_s30 + $0x6b8] sm:$0xff] }
 0x52d   : > { %8487 = vmatprep.subr.bf16.mxu1 %v11191_v37  ;;  %v11271_v37 = vcombine.high %v1338_v11, %v1346_v60  ;;  %v1410_v23 = vld [vmem:[%s13585_s30 + $0x6f8] sm:$0xff] }
 0x52f   : > { %8324 = vmatpush1.bf16.msra.mxu0 %v11188_v31  ;;  %v11268_v31 = vcombine.low %v1337_v62, %v1345_v4  ;;  %v1417_v62 = vld [vmem:[%s13585_s30 + $0x730] sm:$0xff] }
 0x530   : > { %8488 = vmatpush1.bf16.msra.mxu1 %v11190_v33  ;;  %8325 = vmatprep.subr.bf16.mxu0 %v11205_v50  ;;  %v11270_v33 = vcombine.low %v1338_v11, %v1346_v60  ;;  %v11285_v50 = vcombine.high %v1353_v36, %v1361_v8  ;;  %v1425_v4 = vld [vmem:[%s13585_s30 + $0x770] sm:$0xff]  ;;  %v1418_v11 = vld [vmem:[%s13585_s30 + $0x738] sm:$0xff] }
 0x531   : > { %8489 = vmatprep.subr.bf16.mxu1 %v11207_v21  ;;  %v11287_v21 = vcombine.high %v1354_v28, %v1362_v29  ;;  %v1426_v60 = vld [vmem:[%s13585_s30 + $0x778] sm:$0xff] }
 0x533   : > { %8326 = vmatpush1.bf16.msra.mxu0 %v11204_v46  ;;  %v11284_v46 = vcombine.low %v1353_v36, %v1361_v8  ;;  %v1433_v36 = vld [vmem:[%s13585_s30 + $0x7b0] sm:$0xff] }
 0x534   : > { %8490 = vmatpush1.bf16.msra.mxu1 %v11206_v52  ;;  %8327 = vmatprep.subr.bf16.mxu0 %v11221_v5  ;;  %v11286_v52 = vcombine.low %v1354_v28, %v1362_v29  ;;  %v11301_v5 = vcombine.high %v1369_v27, %v1377_v44  ;;  %v1441_v8 = vld [vmem:[%s13585_s30 + $0x7f0] sm:$0xff]  ;;  %v1434_v28 = vld [vmem:[%s13585_s30 + $0x7b8] sm:$0xff] }
 0x535   : > { %8491 = vmatprep.subr.bf16.mxu1 %v11223_v6  ;;  %v11303_v6 = vcombine.high %v1370_v26, %v1378_v32  ;;  %v1442_v29 = vld [vmem:[%s13585_s30 + $0x7f8] sm:$0xff] }
 0x537   : > { %8328 = vmatpush1.bf16.msra.mxu0 %v11220_v51  ;;  %v11300_v51 = vcombine.low %v1369_v27, %v1377_v44  ;;  %v1449_v27 = vld [vmem:[%s13585_s30 + $0x830] sm:$0xff] }
 0x538   : > { %8492 = vmatpush1.bf16.msra.mxu1 %v11222_v13  ;;  %8329 = vmatprep.subr.bf16.mxu0 %v11237_v14  ;;  %v11302_v13 = vcombine.low %v1370_v26, %v1378_v32  ;;  %v11317_v14 = vcombine.high %v1385_v3, %v1393_v7  ;;  %v1457_v44 = vld [vmem:[%s13585_s30 + $0x870] sm:$0xff]  ;;  %v1450_v26 = vld [vmem:[%s13585_s30 + $0x838] sm:$0xff] }
 0x539   : > { %8493 = vmatprep.subr.bf16.mxu1 %v11239_v15  ;;  %v11319_v15 = vcombine.high %v1386_v10, %v1394_v12  ;;  %v1458_v32 = vld [vmem:[%s13585_s30 + $0x878] sm:$0xff] }
 0x53b   : > { %8330 = vmatpush1.bf16.msra.mxu0 %v11236_v24  ;;  %v11316_v24 = vcombine.low %v1385_v3, %v1393_v7  ;;  %v1465_v3 = vld [vmem:[%s13585_s30 + $0x8b0] sm:$0xff] }
 0x53c   : > { %8494 = vmatpush1.bf16.msra.mxu1 %v11238_v25  ;;  %8331 = vmatprep.subr.bf16.mxu0 %v11253_v58  ;;  %v11318_v25 = vcombine.low %v1386_v10, %v1394_v12  ;;  %v11333_v58 = vcombine.high %v1401_v17, %v1409_v20  ;;  %v1473_v7 = vld [vmem:[%s13585_s30 + $0x8f0] sm:$0xff]  ;;  %v11380_v10 = vcombine.low %v1449_v27, %v1457_v44  ;;  %v1466_v12 = vld [vmem:[%s13585_s30 + $0x8b8] sm:$0xff] }
 0x53d   : > { %8495 = vmatprep.subr.bf16.mxu1 %v11255_v18  ;;  %v11335_v18 = vcombine.high %v1402_v22, %v1410_v23 }
 0x53f   : > { %8332 = vmatpush1.bf16.msra.mxu0 %v11252_v16  ;;  %v11332_v16 = vcombine.low %v1401_v17, %v1409_v20  ;;  %v1489_v17 = vld [vmem:[%s13585_s30 + $0x970] sm:$0xff] }
 0x540   : > { %8496 = vmatpush1.bf16.msra.mxu1 %v11254_v34  ;;  %8333 = vmatprep.subr.bf16.mxu0 %v11269_v43  ;;  %v11334_v34 = vcombine.low %v1402_v22, %v1410_v23  ;;  %v11349_v43 = vcombine.high %v1417_v62, %v1425_v4  ;;  %v1482_v22 = vld [vmem:[%s13585_s30 + $0x938] sm:$0xff] }
 0x541   : > { %8497 = vmatprep.subr.bf16.mxu1 %v11271_v37  ;;  %v11351_v37 = vcombine.high %v1418_v11, %v1426_v60  ;;  %v1490_v23 = vld [vmem:[%s13585_s30 + $0x978] sm:$0xff] }
 0x543   : > { %8334 = vmatpush1.bf16.msra.mxu0 %v11268_v31  ;;  %v11348_v31 = vcombine.low %v1417_v62, %v1425_v4  ;;  %v1497_v62 = vld [vmem:[%s13585_s30 + $0x9b0] sm:$0xff] }
 0x544   : > { %8498 = vmatpush1.bf16.msra.mxu1 %v11270_v33  ;;  %8335 = vmatprep.subr.bf16.mxu0 %v11285_v50  ;;  %v11350_v33 = vcombine.low %v1418_v11, %v1426_v60  ;;  %v11365_v50 = vcombine.high %v1433_v36, %v1441_v8  ;;  %v1505_v4 = vld [vmem:[%s13585_s30 + $0x9f0] sm:$0xff]  ;;  %v1498_v11 = vld [vmem:[%s13585_s30 + $0x9b8] sm:$0xff] }
 0x545   : > { %8499 = vmatprep.subr.bf16.mxu1 %v11287_v21  ;;  %v11367_v21 = vcombine.high %v1434_v28, %v1442_v29 }
 0x547   : > { %8336 = vmatpush1.bf16.msra.mxu0 %v11284_v46  ;;  %v11364_v46 = vcombine.low %v1433_v36, %v1441_v8  ;;  %v1514_v36 = vld [vmem:[%s13585_s30 + $0xa38] sm:$0xff] }
 0x548   : > { %8500 = vmatpush1.bf16.msra.mxu1 %v11286_v52  ;;  %8337 = vmatprep.subr.bf16.mxu0 %v11301_v5  ;;  %v11366_v52 = vcombine.low %v1434_v28, %v1442_v29  ;;  %v11381_v5 = vcombine.high %v1449_v27, %v1457_v44  ;;  %v1522_v8 = vld [vmem:[%s13585_s30 + $0xa78] sm:$0xff]  ;;  %v11428_v28 = vcombine.low %v1497_v62, %v1505_v4 }
 0x549   : > { %8501 = vmatprep.subr.bf16.mxu1 %v11303_v6  ;;  %v11383_v6 = vcombine.high %v1450_v26, %v1458_v32  ;;  %v1530_v27 = vld [vmem:[%s13585_s30 + $0xab8] sm:$0xff] }
 0x54a   : > { %v1538_v44 = vld [vmem:[%s13585_s30 + $0xaf8] sm:$0xff] }
 0x54b   : > { %8338 = vmatpush1.bf16.msra.mxu0 %v11300_v51  ;;  %v1474_v51 = vld [vmem:[%s13585_s30 + $0x8f8] sm:$0xff] }
 0x54c   : > { %8502 = vmatpush1.bf16.msra.mxu1 %v11302_v13  ;;  %8339 = vmatprep.subr.bf16.mxu0 %v11317_v14  ;;  %v11382_v13 = vcombine.low %v1450_v26, %v1458_v32  ;;  %v11397_v14 = vcombine.high %v1465_v3, %v1473_v7  ;;  %v11399_v20 = vcombine.high %v1466_v12, %v1474_v51 }
 0x54d   : > { %8503 = vmatprep.subr.bf16.mxu1 %v11319_v15  ;;  %v1481_v15 = vld [vmem:[%s13585_s30 + $0x930] sm:$0xff]  ;;  %v11446_v32 = vcombine.low %v1514_v36, %v1522_v8 }
 0x54e   : > { %v11412_v60 = vcombine.low %v1481_v15, %v1489_v17 }
 0x54f   : > { %8340 = vmatpush1.bf16.msra.mxu0 %v11316_v24  ;;  %v11396_v24 = vcombine.low %v1465_v3, %v1473_v7  ;;  %v1546_v3 = vld [vmem:[%s13585_s30 + $0xb38] sm:$0xff] }
 0x550   : > { %8504 = vmatpush1.bf16.msra.mxu1 %v11318_v25  ;;  %8341 = vmatprep.subr.bf16.mxu0 %v11333_v58  ;;  %v11398_v25 = vcombine.low %v1466_v12, %v1474_v51  ;;  %v11413_v58 = vcombine.high %v1481_v15, %v1489_v17  ;;  %v1554_v7 = vld [vmem:[%s13585_s30 + $0xb78] sm:$0xff]  ;;  %v11462_v12 = vcombine.low %v1530_v27, %v1538_v44  ;;  %v1569_v15 = vld [vmem:[%s13585_s30 + $0xbf0] sm:$0xff] }
 0x551   : > { %8505 = vmatprep.subr.bf16.mxu1 %v11335_v18  ;;  %v11415_v18 = vcombine.high %v1482_v22, %v1490_v23  ;;  %v1562_v17 = vld [vmem:[%s13585_s30 + $0xbb8] sm:$0xff] }
 0x553   : > { %8342 = vmatpush1.bf16.msra.mxu0 %v11332_v16  ;;  %v11414_v16 = vcombine.low %v1482_v22, %v1490_v23  ;;  %v11478_v23 = vcombine.low %v1546_v3, %v1554_v7 }
 0x554   : > { %8506 = vmatpush1.bf16.msra.mxu1 %v11334_v34  ;;  %8343 = vmatprep.subr.bf16.mxu0 %v11349_v43  ;;  %v11429_v34 = vcombine.high %v1497_v62, %v1505_v4  ;;  %v1513_v43 = vld [vmem:[%s13585_s30 + $0xa30] sm:$0xff]  ;;  %v1578_v62 = vld [vmem:[%s13585_s30 + $0xc38] sm:$0xff] }
 0x555   : > { %8507 = vmatprep.subr.bf16.mxu1 %v11351_v37  ;;  %v1521_v37 = vld [vmem:[%s13585_s30 + $0xa70] sm:$0xff]  ;;  %v1586_v4 = vld [vmem:[%s13585_s30 + $0xc78] sm:$0xff] }
 0x556   : > { %v11444_v26 = vcombine.low %v1513_v43, %v1521_v37 }
 0x557   : > { %8344 = vmatpush1.bf16.msra.mxu0 %v11348_v31  ;;  %v11445_v31 = vcombine.high %v1513_v43, %v1521_v37  ;;  %v1594_v43 = vld [vmem:[%s13585_s30 + $0xcb8] sm:$0xff] }
 0x558   : > { %8508 = vmatpush1.bf16.msra.mxu1 %v11350_v33  ;;  %8345 = vmatprep.subr.bf16.mxu0 %v11365_v50  ;;  %v11447_v33 = vcombine.high %v1514_v36, %v1522_v8  ;;  %v1529_v50 = vld [vmem:[%s13585_s30 + $0xab0] sm:$0xff]  ;;  %v1602_v37 = vld [vmem:[%s13585_s30 + $0xcf8] sm:$0xff]  ;;  %v11510_v8 = vcombine.low %v1578_v62, %v1586_v4 }
 0x559   : > { %8509 = vmatprep.subr.bf16.mxu1 %v11367_v21  ;;  %v1537_v21 = vld [vmem:[%s13585_s30 + $0xaf0] sm:$0xff] }
 0x55b   : > { %8346 = vmatpush1.bf16.msra.mxu0 %v11364_v46  ;;  %v11461_v46 = vcombine.high %v1529_v50, %v1537_v21 }
 0x55c   : > { %8510 = vmatpush1.bf16.msra.mxu1 %v11366_v52  ;;  %8356 = vmatprep.subr.bf16.mxu0 %v11381_v5  ;;  %v11463_v52 = vcombine.high %v1530_v27, %v1538_v44  ;;  %v1545_v5 = vld [vmem:[%s13585_s30 + $0xb30] sm:$0xff]  ;;  %v11526_v44 = vcombine.low %v1594_v43, %v1602_v37 }
 0x55d   : > { %8520 = vmatprep.subr.bf16.mxu1 %v11383_v6  ;;  %v1553_v6 = vld [vmem:[%s13585_s30 + $0xb70] sm:$0xff] }
 0x55e   : > { %8348 = vmatmul.mubr.bf16.vlgmr.msra.gmra.mrb[20].mxu0 %v13870_v19  ;;  %v11477_v51 = vcombine.high %v1545_v5, %v1553_v6  ;;  %v11476_v22 = vcombine.low %v1545_v5, %v1553_v6  ;;  %v1626_v5 = vld [vmem:[%s13585_s30 + $0xdb8] sm:$0xff] }
 0x55f   : > { %8512 = vmatmul.mubr.bf16.vlgmr.msra.gmra.mrb[20].mxu1 %v13870_v19  ;;  %8357 = vmatpush1.bf16.msra.mxu0 %v11380_v10  ;;  %v1506_v19 = vld [vmem:[%s13585_s30 + $0x9f8] sm:$0xff]  ;;  %v11460_v10 = vcombine.low %v1529_v50, %v1537_v21 }
 0x560   : > { %8388 = vmatprep.mubr.bf16.mxu0 %v13880_v0  ;;  %8521 = vmatpush1.bf16.msra.mxu1 %v11382_v13  ;;  %v11430_v29 = vcombine.low %v1498_v11, %v1506_v19  ;;  %v11479_v13 = vcombine.high %v1546_v3, %v1554_v7  ;;  %v1610_v50 = vld [vmem:[%s13585_s30 + $0xd38] sm:$0xff] }
 0x561   : > { %8552 = vmatprep.mubr.bf16.mxu1 %v13880_v0  ;;  %8358 = vmatprep.subr.bf16.mxu0 %v11397_v14  ;;  %v11431_v0 = vcombine.high %v1498_v11, %v1506_v19  ;;  %v1561_v14 = vld [vmem:[%s13585_s30 + $0xbb0] sm:$0xff]  ;;  %v1618_v21 = vld [vmem:[%s13585_s30 + $0xd78] sm:$0xff] }
 0x562   : > { %8522 = vmatprep.subr.bf16.mxu1 %v11399_v20  ;;  %v1570_v20 = vld [vmem:[%s13585_s30 + $0xbf8] sm:$0xff]  ;;  %v11492_v11 = vcombine.low %v1561_v14, %v1569_v15  ;;  %v11542_v7 = vcombine.low %v1610_v50, %v1618_v21 }
 0x563   : > { %8359 = vmatpush1.bf16.msra.mxu0 %v11396_v24  ;;  %v11493_v24 = vcombine.high %v1561_v14, %v1569_v15  ;;  %v11494_v19 = vcombine.low %v1562_v17, %v1570_v20  ;;  %v1634_v6 = vld [vmem:[%s13585_s30 + $0xdf8] sm:$0xff] }
 0x564   : > { %8523 = vmatpush1.bf16.msra.mxu1 %v11398_v25  ;;  %8360 = vmatprep.subr.bf16.mxu0 %v11413_v58  ;;  %v11495_v25 = vcombine.high %v1562_v17, %v1570_v20  ;;  %v1577_v58 = vld [vmem:[%s13585_s30 + $0xc30] sm:$0xff]  ;;  %v1642_v14 = vld [vmem:[%s13585_s30 + $0xe38] sm:$0xff]  ;;  %v11558_v20 = vcombine.low %v1626_v5, %v1634_v6 }
 0x565   : > { %8524 = vmatprep.subr.bf16.mxu1 %v11415_v18  ;;  %v1585_v18 = vld [vmem:[%s13585_s30 + $0xc70] sm:$0xff]  ;;  %v1650_v15 = vld [vmem:[%s13585_s30 + $0xe78] sm:$0xff] }
 0x566   : > { %v11508_v36 = vcombine.low %v1577_v58, %v1585_v18 }
 0x567   : > { %8361 = vmatpush1.bf16.msra.mxu0 %v11412_v60  ;;  %v11509_v60 = vcombine.high %v1577_v58, %v1585_v18  ;;  %v1658_v58 = vld [vmem:[%s13585_s30 + $0xeb8] sm:$0xff] }
 0x568   : > { %8525 = vmatpush1.bf16.msra.mxu1 %v11414_v16  ;;  %8362 = vmatprep.subr.bf16.mxu0 %v11429_v34  ;;  %v11511_v16 = vcombine.high %v1578_v62, %v1586_v4  ;;  %v1593_v34 = vld [vmem:[%s13585_s30 + $0xcb0] sm:$0xff]  ;;  %v1666_v18 = vld [vmem:[%s13585_s30 + $0xef8] sm:$0xff]  ;;  %v11574_v4 = vcombine.low %v1642_v14, %v1650_v15 }
 0x569   : > { %8526 = vmatprep.subr.bf16.mxu1 %v11431_v0  ;;  %v1601_v0 = vld [vmem:[%s13585_s30 + $0xcf0] sm:$0xff] }
 0x56a   : > { %v11524_v27 = vcombine.low %v1593_v34, %v1601_v0 }
 0x56b   : > { %8363 = vmatpush1.bf16.msra.mxu0 %v11428_v28  ;;  %v11525_v28 = vcombine.high %v1593_v34, %v1601_v0  ;;  %v1674_v34 = vld [vmem:[%s13585_s30 + $0xf38] sm:$0xff] }
 0x56c   : > { %8527 = vmatpush1.bf16.msra.mxu1 %v11430_v29  ;;  %8364 = vmatprep.subr.bf16.mxu0 %v11445_v31  ;;  %v11527_v29 = vcombine.high %v1594_v43, %v1602_v37  ;;  %v1609_v31 = vld [vmem:[%s13585_s30 + $0xd30] sm:$0xff]  ;;  %v1682_v0 = vld [vmem:[%s13585_s30 + $0xf78] sm:$0xff]  ;;  %v11590_v37 = vcombine.low %v1658_v58, %v1666_v18 }
 0x56d   : > { %8528 = vmatprep.subr.bf16.mxu1 %v11447_v33  ;;  %v1617_v33 = vld [vmem:[%s13585_s30 + $0xd70] sm:$0xff] }
 0x56e   : > { %v11540_v3 = vcombine.low %v1609_v31, %v1617_v33 }
 0x56f   : > { %8365 = vmatpush1.bf16.msra.mxu0 %v11444_v26  ;;  %v11541_v26 = vcombine.high %v1609_v31, %v1617_v33  ;;  %v1690_v31 = vld [vmem:[%s13585_s30 + $0xfb8] sm:$0xff] }
 0x570   : > { %8529 = vmatpush1.bf16.msra.mxu1 %v11446_v32  ;;  %8366 = vmatprep.subr.bf16.mxu0 %v11461_v46  ;;  %v11543_v32 = vcombine.high %v1610_v50, %v1618_v21  ;;  %v1625_v46 = vld [vmem:[%s13585_s30 + $0xdb0] sm:$0xff]  ;;  %v1698_v33 = vld [vmem:[%s13585_s30 + $0xff8] sm:$0xff]  ;;  %v11606_v21 = vcombine.low %v1674_v34, %v1682_v0 }
 0x571   : > { %8530 = vmatprep.subr.bf16.mxu1 %v11463_v52  ;;  %v1633_v52 = vld [vmem:[%s13585_s30 + $0xdf0] sm:$0xff] }
 0x572   : > { %v11556_v17 = vcombine.low %v1625_v46, %v1633_v52 }
 0x573   : > { %8367 = vmatpush1.bf16.msra.mxu0 %v11460_v10  ;;  %v11557_v10 = vcombine.high %v1625_v46, %v1633_v52  ;;  %v1706_v46 = vld [vmem:[%s13585_s30 + $0x1038] sm:$0xff] }
 0x574   : > { %8531 = vmatpush1.bf16.msra.mxu1 %v11462_v12  ;;  %8368 = vmatprep.subr.bf16.mxu0 %v11477_v51  ;;  %v11559_v12 = vcombine.high %v1626_v5, %v1634_v6  ;;  %v1641_v51 = vld [vmem:[%s13585_s30 + $0xe30] sm:$0xff]  ;;  %v1714_v52 = vld [vmem:[%s13585_s30 + $0x1078] sm:$0xff]  ;;  %v11622_v6 = vcombine.low %v1690_v31, %v1698_v33 }
 0x575   : > { %8532 = vmatprep.subr.bf16.mxu1 %v11479_v13  ;;  %v1649_v13 = vld [vmem:[%s13585_s30 + $0xe70] sm:$0xff] }
 0x576   : > { %v11572_v62 = vcombine.low %v1641_v51, %v1649_v13 }
 0x577   : > { %8369 = vmatpush1.bf16.msra.mxu0 %v11476_v22  ;;  %v11573_v22 = vcombine.high %v1641_v51, %v1649_v13  ;;  %v1722_v13 = vld [vmem:[%s13585_s30 + $0x10b8] sm:$0xff] }
 0x578   : > { %8533 = vmatpush1.bf16.msra.mxu1 %v11478_v23  ;;  %8370 = vmatprep.subr.bf16.mxu0 %v11493_v24  ;;  %v11575_v23 = vcombine.high %v1642_v14, %v1650_v15  ;;  %v1657_v24 = vld [vmem:[%s13585_s30 + $0xeb0] sm:$0xff]  ;;  %v1730_v14 = vld [vmem:[%s13585_s30 + $0x10f8] sm:$0xff]  ;;  %v11638_v15 = vcombine.low %v1706_v46, %v1714_v52 }
 0x579   : > { %8534 = vmatprep.subr.bf16.mxu1 %v11495_v25  ;;  %v1665_v25 = vld [vmem:[%s13585_s30 + $0xef0] sm:$0xff] }
 0x57a   : > { %v11588_v43 = vcombine.low %v1657_v24, %v1665_v25 }
 0x57b   : > { %8371 = vmatpush1.bf16.msra.mxu0 %v11492_v11  ;;  %v11589_v11 = vcombine.high %v1657_v24, %v1665_v25  ;;  %v1738_v24 = vld [vmem:[%s13585_s30 + $0x1138] sm:$0xff] }
 0x57c   : > { %8535 = vmatpush1.bf16.msra.mxu1 %v11494_v19  ;;  %8372 = vmatprep.subr.bf16.mxu0 %v11509_v60  ;;  %v11591_v19 = vcombine.high %v1658_v58, %v1666_v18  ;;  %v1673_v60 = vld [vmem:[%s13585_s30 + $0xf30] sm:$0xff]  ;;  %v1746_v25 = vld [vmem:[%s13585_s30 + $0x1178] sm:$0xff]  ;;  %v11654_v18 = vcombine.low %v1722_v13, %v1730_v14 }
 0x57d   : > { %8536 = vmatprep.subr.bf16.mxu1 %v11511_v16  ;;  %v1681_v16 = vld [vmem:[%s13585_s30 + $0xf70] sm:$0xff] }
 0x57e   : > { %v11604_v50 = vcombine.low %v1673_v60, %v1681_v16 }
 0x57f   : > { %8373 = vmatpush1.bf16.msra.mxu0 %v11508_v36  ;;  %v11605_v36 = vcombine.high %v1673_v60, %v1681_v16  ;;  %v1754_v60 = vld [vmem:[%s13585_s30 + $0x11b8] sm:$0xff] }
 0x580   : > { %8537 = vmatpush1.bf16.msra.mxu1 %v11510_v8  ;;  %8374 = vmatprep.subr.bf16.mxu0 %v11525_v28  ;;  %v11607_v8 = vcombine.high %v1674_v34, %v1682_v0  ;;  %v1689_v28 = vld [vmem:[%s13585_s30 + $0xfb0] sm:$0xff]  ;;  %v11670_v34 = vcombine.low %v1738_v24, %v1746_v25 }
 0x581   : > { %8538 = vmatprep.subr.bf16.mxu1 %v11527_v29  ;;  %v1697_v29 = vld [vmem:[%s13585_s30 + $0xff0] sm:$0xff] }
 0x582   : > { %v11620_v5 = vcombine.low %v1689_v28, %v1697_v29 }
 0x583   : > { %8375 = vmatpush1.bf16.msra.mxu0 %v11524_v27  ;;  %v11621_v27 = vcombine.high %v1689_v28, %v1697_v29 }
 0x584   : > { %8539 = vmatpush1.bf16.msra.mxu1 %v11526_v44  ;;  %8376 = vmatprep.subr.bf16.mxu0 %v11541_v26  ;;  %v11623_v44 = vcombine.high %v1690_v31, %v1698_v33  ;;  %v1705_v26 = vld [vmem:[%s13585_s30 + $0x1030] sm:$0xff] }
 0x585   : > { %8540 = vmatprep.subr.bf16.mxu1 %v11543_v32  ;;  %v1713_v32 = vld [vmem:[%s13585_s30 + $0x1070] sm:$0xff] }
 0x586   : > { %v11636_v51 = vcombine.low %v1705_v26, %v1713_v32 }
 0x587   : > { %8377 = vmatpush1.bf16.msra.mxu0 %v11540_v3  ;;  %v11637_v3 = vcombine.high %v1705_v26, %v1713_v32 }
 0x588   : > { %8541 = vmatpush1.bf16.msra.mxu1 %v11542_v7  ;;  %8378 = vmatprep.subr.bf16.mxu0 %v11557_v10  ;;  %v11639_v7 = vcombine.high %v1706_v46, %v1714_v52  ;;  %v1721_v10 = vld [vmem:[%s13585_s30 + $0x10b0] sm:$0xff] }
 0x589   : > { %8542 = vmatprep.subr.bf16.mxu1 %v11559_v12  ;;  %v1729_v12 = vld [vmem:[%s13585_s30 + $0x10f0] sm:$0xff] }
 0x58a   : > { %v11652_v58 = vcombine.low %v1721_v10, %v1729_v12 }
 0x58b   : > { %8379 = vmatpush1.bf16.msra.mxu0 %v11556_v17  ;;  %v11653_v17 = vcombine.high %v1721_v10, %v1729_v12 }
 0x58c   : > { %8543 = vmatpush1.bf16.msra.mxu1 %v11558_v20  ;;  %8380 = vmatprep.subr.bf16.mxu0 %v11573_v22  ;;  %v1737_v20 = vld [vmem:[%s13585_s30 + $0x1130] sm:$0xff] }
 0x58d   : > { %8544 = vmatprep.subr.bf16.mxu1 %v11575_v23  ;;  %v1745_v22 = vld [vmem:[%s13585_s30 + $0x1170] sm:$0xff]  ;;  %v11655_v23 = vcombine.high %v1722_v13, %v1730_v14 }
 0x58e   : > { %v11668_v16 = vcombine.low %v1737_v20, %v1745_v22  ;;  %v1817_v14 = vld [vmem:[%s13585_s30 + $0x13b0] sm:$0xff] }
 0x58f   : > { %8381 = vmatpush1.bf16.msra.mxu0 %v11572_v62  ;;  %v11669_v62 = vcombine.high %v1737_v20, %v1745_v22  ;;  %v1826_v20 = vld [vmem:[%s13585_s30 + $0x13f8] sm:$0xff] }
 0x590   : > { %8545 = vmatpush1.bf16.msra.mxu1 %v11574_v4  ;;  %8382 = vmatprep.subr.bf16.mxu0 %v11589_v11  ;;  %v11671_v4 = vcombine.high %v1738_v24, %v1746_v25  ;;  %v1753_v11 = vld [vmem:[%s13585_s30 + $0x11b0] sm:$0xff] }
 0x591   : > { %8546 = vmatprep.subr.bf16.mxu1 %v11591_v19  ;;  %v1761_v19 = vld [vmem:[%s13585_s30 + $0x11f0] sm:$0xff] }
 0x592   : > { %v11685_v0 = vcombine.high %v1753_v11, %v1761_v19  ;;  %v11684_v28 = vcombine.low %v1753_v11, %v1761_v19 }
 0x593   : > { %8383 = vmatpush1.bf16.msra.mxu0 %v11588_v43  ;;  %v1769_v43 = vld [vmem:[%s13585_s30 + $0x1230] sm:$0xff] }
 0x594   : > { %8547 = vmatpush1.bf16.msra.mxu1 %v11590_v37  ;;  %8384 = vmatprep.subr.bf16.mxu0 %v11605_v36  ;;  %v1777_v37 = vld [vmem:[%s13585_s30 + $0x1270] sm:$0xff]  ;;  %v1770_v36 = vld [vmem:[%s13585_s30 + $0x1238] sm:$0xff] }
 0x595   : > { %8548 = vmatprep.subr.bf16.mxu1 %v11607_v8  ;;  %v1778_v8 = vld [vmem:[%s13585_s30 + $0x1278] sm:$0xff]  ;;  %v11701_v31 = vcombine.high %v1769_v43, %v1777_v37  ;;  %v11700_v26 = vcombine.low %v1769_v43, %v1777_v37 }
 0x596   : > { %v11703_v33 = vcombine.high %v1770_v36, %v1778_v8  ;;  %v11702_v32 = vcombine.low %v1770_v36, %v1778_v8 }
 0x597   : > { %8385 = vmatpush1.bf16.msra.mxu0 %v11604_v50  ;;  %v1785_v50 = vld [vmem:[%s13585_s30 + $0x12b0] sm:$0xff] }
 0x598   : > { %8549 = vmatpush1.bf16.msra.mxu1 %v11606_v21  ;;  %8386 = vmatprep.subr.bf16.mxu0 %v11621_v27  ;;  %v1793_v21 = vld [vmem:[%s13585_s30 + $0x12f0] sm:$0xff]  ;;  %v1786_v27 = vld [vmem:[%s13585_s30 + $0x12b8] sm:$0xff] }
 0x599   : > { %8550 = vmatprep.subr.bf16.mxu1 %v11623_v44  ;;  %v1794_v44 = vld [vmem:[%s13585_s30 + $0x12f8] sm:$0xff]  ;;  %v11717_v46 = vcombine.high %v1785_v50, %v1793_v21  ;;  %v11716_v10 = vcombine.low %v1785_v50, %v1793_v21 }
 0x59a   : > { %v11719_v52 = vcombine.high %v1786_v27, %v1794_v44  ;;  %v11718_v12 = vcombine.low %v1786_v27, %v1794_v44 }
 0x59b   : > { %8387 = vmatpush1.bf16.msra.mxu0 %v11620_v5  ;;  %v1801_v5 = vld [vmem:[%s13585_s30 + $0x1330] sm:$0xff] }
 0x59c   : > { %8551 = vmatpush1.bf16.msra.mxu1 %v11622_v6  ;;  %8397 = vmatprep.subr.bf16.mxu0 %v11637_v3  ;;  %v1809_v6 = vld [vmem:[%s13585_s30 + $0x1370] sm:$0xff]  ;;  %v1802_v3 = vld [vmem:[%s13585_s30 + $0x1338] sm:$0xff] }
 0x59d   : > { %8561 = vmatprep.subr.bf16.mxu1 %v11639_v7  ;;  %v1810_v7 = vld [vmem:[%s13585_s30 + $0x1378] sm:$0xff]  ;;  %v11732_v22 = vcombine.low %v1801_v5, %v1809_v6 }
 0x59e   : > { %8389 = vmatmul.mubr.bf16.vlgmr.msra.gmra.mrb[20].mxu0 %v13952_v47  ;;  %v11735_v13 = vcombine.high %v1802_v3, %v1810_v7 }
 0x59f   : > { %8553 = vmatmul.mubr.bf16.vlgmr.msra.gmra.mrb[20].mxu1 %v13952_v47  ;;  %8398 = vmatpush1.bf16.msra.mxu0 %v11636_v51  ;;  %v1762_v47 = vld [vmem:[%s13585_s30 + $0x11f8] sm:$0xff]  ;;  %v11733_v51 = vcombine.high %v1801_v5, %v1809_v6 }
 0x5a0   : > { %8429 = vmatprep.mubr.bf16.mxu0 %v13954_v9  ;;  %8562 = vmatpush1.bf16.msra.mxu1 %v11638_v15  ;;  %v11686_v29 = vcombine.low %v1754_v60, %v1762_v47  ;;  %v1825_v15 = vld [vmem:[%s13585_s30 + $0x13f0] sm:$0xff] }
 0x5a1   : > { %8593 = vmatprep.mubr.bf16.mxu1 %v13954_v9  ;;  %8399 = vmatprep.subr.bf16.mxu0 %v11653_v17  ;;  %v11687_v9 = vcombine.high %v1754_v60, %v1762_v47  ;;  %v1818_v17 = vld [vmem:[%s13585_s30 + $0x13b8] sm:$0xff]  ;;  %v11749_v24 = vcombine.high %v1817_v14, %v1825_v15  ;;  %v11748_v11 = vcombine.low %v1817_v14, %v1825_v15 }
 0x5a2   : > { %8563 = vmatprep.subr.bf16.mxu1 %v11655_v23  ;;  %v11734_v23 = vcombine.low %v1802_v3, %v1810_v7  ;;  %v11751_v25 = vcombine.high %v1818_v17, %v1826_v20  ;;  %v11750_v19 = vcombine.low %v1818_v17, %v1826_v20 }
 0x5a3   : > { %8400 = vmatpush1.bf16.msra.mxu0 %v11652_v58  ;;  %v1833_v58 = vld [vmem:[%s13585_s30 + $0x1430] sm:$0xff] }
 0x5a4   : > { %8564 = vmatpush1.bf16.msra.mxu1 %v11654_v18  ;;  %8401 = vmatprep.subr.bf16.mxu0 %v11669_v62  ;;  %v1841_v18 = vld [vmem:[%s13585_s30 + $0x1470] sm:$0xff]  ;;  %v1834_v62 = vld [vmem:[%s13585_s30 + $0x1438] sm:$0xff] }
 0x5a5   : > { %8565 = vmatprep.subr.bf16.mxu1 %v11671_v4  ;;  %v1842_v4 = vld [vmem:[%s13585_s30 + $0x1478] sm:$0xff]  ;;  %v11765_v60 = vcombine.high %v1833_v58, %v1841_v18  ;;  %v11764_v43 = vcombine.low %v1833_v58, %v1841_v18 }
 0x5a6   : > { %v11767_v47 = vcombine.high %v1834_v62, %v1842_v4  ;;  %v11766_v37 = vcombine.low %v1834_v62, %v1842_v4 }
 0x5a7   : > { %8402 = vmatpush1.bf16.msra.mxu0 %v11668_v16  ;;  %v1849_v16 = vld [vmem:[%s13585_s30 + $0x14b0] sm:$0xff] }
 0x5a8   : > { %8566 = vmatpush1.bf16.msra.mxu1 %v11670_v34  ;;  %8403 = vmatprep.subr.bf16.mxu0 %v11685_v0  ;;  %v1857_v34 = vld [vmem:[%s13585_s30 + $0x14f0] sm:$0xff]  ;;  %v1850_v0 = vld [vmem:[%s13585_s30 + $0x14b8] sm:$0xff] }
 0x5a9   : > { %8567 = vmatprep.subr.bf16.mxu1 %v11687_v9  ;;  %v1858_v9 = vld [vmem:[%s13585_s30 + $0x14f8] sm:$0xff]  ;;  %v11781_v36 = vcombine.high %v1849_v16, %v1857_v34  ;;  %v11780_v50 = vcombine.low %v1849_v16, %v1857_v34 }
 0x5aa   : > { %v11783_v8 = vcombine.high %v1850_v0, %v1858_v9  ;;  %v11782_v21 = vcombine.low %v1850_v0, %v1858_v9 }
 0x5ab   : > { %8404 = vmatpush1.bf16.msra.mxu0 %v11684_v28  ;;  %v1865_v28 = vld [vmem:[%s13585_s30 + $0x1530] sm:$0xff] }
 0x5ac   : > { %8568 = vmatpush1.bf16.msra.mxu1 %v11686_v29  ;;  %8405 = vmatprep.subr.bf16.mxu0 %v11701_v31  ;;  %v1873_v29 = vld [vmem:[%s13585_s30 + $0x1570] sm:$0xff]  ;;  %v1866_v31 = vld [vmem:[%s13585_s30 + $0x1538] sm:$0xff] }
 0x5ad   : > { %8569 = vmatprep.subr.bf16.mxu1 %v11703_v33  ;;  %v1874_v33 = vld [vmem:[%s13585_s30 + $0x1578] sm:$0xff]  ;;  %v11797_v27 = vcombine.high %v1865_v28, %v1873_v29  ;;  %v11796_v5 = vcombine.low %v1865_v28, %v1873_v29 }
 0x5ae   : > { %v11799_v44 = vcombine.high %v1866_v31, %v1874_v33  ;;  %v11798_v6 = vcombine.low %v1866_v31, %v1874_v33 }
 0x5af   : > { %8406 = vmatpush1.bf16.msra.mxu0 %v11700_v26  ;;  %v1881_v26 = vld [vmem:[%s13585_s30 + $0x15b0] sm:$0xff] }
 0x5b0   : > { %8570 = vmatpush1.bf16.msra.mxu1 %v11702_v32  ;;  %8407 = vmatprep.subr.bf16.mxu0 %v11717_v46  ;;  %v1889_v32 = vld [vmem:[%s13585_s30 + $0x15f0] sm:$0xff]  ;;  %v1882_v46 = vld [vmem:[%s13585_s30 + $0x15b8] sm:$0xff] }
 0x5b1   : > { %8571 = vmatprep.subr.bf16.mxu1 %v11719_v52  ;;  %v1890_v52 = vld [vmem:[%s13585_s30 + $0x15f8] sm:$0xff]  ;;  %v11813_v3 = vcombine.high %v1881_v26, %v1889_v32  ;;  %v11812_v14 = vcombine.low %v1881_v26, %v1889_v32 }
 0x5b2   : > { %v11815_v7 = vcombine.high %v1882_v46, %v1890_v52  ;;  %v11814_v15 = vcombine.low %v1882_v46, %v1890_v52 }
 0x5b3   : > { %8408 = vmatpush1.bf16.msra.mxu0 %v11716_v10  ;;  %v1897_v10 = vld [vmem:[%s13585_s30 + $0x1630] sm:$0xff] }
 0x5b4   : > { %8572 = vmatpush1.bf16.msra.mxu1 %v11718_v12  ;;  %8409 = vmatprep.subr.bf16.mxu0 %v11733_v51  ;;  %v1905_v12 = vld [vmem:[%s13585_s30 + $0x1670] sm:$0xff]  ;;  %v1898_v51 = vld [vmem:[%s13585_s30 + $0x1638] sm:$0xff] }
 0x5b5   : > { %8573 = vmatprep.subr.bf16.mxu1 %v11735_v13  ;;  %v1906_v13 = vld [vmem:[%s13585_s30 + $0x1678] sm:$0xff]  ;;  %v11829_v17 = vcombine.high %v1897_v10, %v1905_v12  ;;  %v11828_v58 = vcombine.low %v1897_v10, %v1905_v12 }
 0x5b6   : > { %v11831_v20 = vcombine.high %v1898_v51, %v1906_v13  ;;  %v11830_v18 = vcombine.low %v1898_v51, %v1906_v13  ;;  %v1986_v10 = vld [vmem:[%s13585_s30 + $0x18f8] sm:$0xff]  ;;  %v1993_v13 = vld [vmem:[%s13585_s30 + $0x1930] sm:$0xff] }
 0x5b7   : > { %8410 = vmatpush1.bf16.msra.mxu0 %v11732_v22  ;;  %v1913_v22 = vld [vmem:[%s13585_s30 + $0x16b0] sm:$0xff] }
 0x5b8   : > { %8574 = vmatpush1.bf16.msra.mxu1 %v11734_v23  ;;  %8411 = vmatprep.subr.bf16.mxu0 %v11749_v24  ;;  %v1921_v23 = vld [vmem:[%s13585_s30 + $0x16f0] sm:$0xff]  ;;  %v1914_v24 = vld [vmem:[%s13585_s30 + $0x16b8] sm:$0xff] }
 0x5b9   : > { %8575 = vmatprep.subr.bf16.mxu1 %v11751_v25  ;;  %v1922_v25 = vld [vmem:[%s13585_s30 + $0x16f8] sm:$0xff]  ;;  %v11845_v62 = vcombine.high %v1913_v22, %v1921_v23  ;;  %v11844_v16 = vcombine.low %v1913_v22, %v1921_v23 }
 0x5ba   : > { %v11847_v4 = vcombine.high %v1914_v24, %v1922_v25  ;;  %v11846_v34 = vcombine.low %v1914_v24, %v1922_v25 }
 0x5bb   : > { %8412 = vmatpush1.bf16.msra.mxu0 %v11748_v11  ;;  %v1929_v11 = vld [vmem:[%s13585_s30 + $0x1730] sm:$0xff] }
 0x5bc   : > { %8576 = vmatpush1.bf16.msra.mxu1 %v11750_v19  ;;  %8413 = vmatprep.subr.bf16.mxu0 %v11765_v60  ;;  %v1937_v19 = vld [vmem:[%s13585_s30 + $0x1770] sm:$0xff]  ;;  %v1930_v60 = vld [vmem:[%s13585_s30 + $0x1738] sm:$0xff] }
 0x5bd   : > { %8577 = vmatprep.subr.bf16.mxu1 %v11767_v47  ;;  %v1938_v47 = vld [vmem:[%s13585_s30 + $0x1778] sm:$0xff]  ;;  %v11861_v0 = vcombine.high %v1929_v11, %v1937_v19  ;;  %v11860_v28 = vcombine.low %v1929_v11, %v1937_v19 }
 0x5be   : > { %v11863_v9 = vcombine.high %v1930_v60, %v1938_v47  ;;  %v11862_v29 = vcombine.low %v1930_v60, %v1938_v47  ;;  %v2025_v60 = vld [vmem:[%s13585_s30 + $0x1a30] sm:$0xff] }
 0x5bf   : > { %8414 = vmatpush1.bf16.msra.mxu0 %v11764_v43  ;;  %v1945_v43 = vld [vmem:[%s13585_s30 + $0x17b0] sm:$0xff] }
 0x5c0   : > { %8578 = vmatpush1.bf16.msra.mxu1 %v11766_v37  ;;  %8415 = vmatprep.subr.bf16.mxu0 %v11781_v36  ;;  %v1953_v37 = vld [vmem:[%s13585_s30 + $0x17f0] sm:$0xff]  ;;  %v1946_v36 = vld [vmem:[%s13585_s30 + $0x17b8] sm:$0xff] }
 0x5c1   : > { %8579 = vmatprep.subr.bf16.mxu1 %v11783_v8  ;;  %v1954_v8 = vld [vmem:[%s13585_s30 + $0x17f8] sm:$0xff]  ;;  %v11877_v31 = vcombine.high %v1945_v43, %v1953_v37  ;;  %v11876_v26 = vcombine.low %v1945_v43, %v1953_v37  ;;  %v2033_v47 = vld [vmem:[%s13585_s30 + $0x1a70] sm:$0xff] }
 0x5c2   : > { %v11879_v33 = vcombine.high %v1946_v36, %v1954_v8  ;;  %v11878_v32 = vcombine.low %v1946_v36, %v1954_v8  ;;  %v11957_v43 = vcombine.high %v2025_v60, %v2033_v47  ;;  %v2041_v36 = vld [vmem:[%s13585_s30 + $0x1ab0] sm:$0xff] }
 0x5c3   : > { %8416 = vmatpush1.bf16.msra.mxu0 %v11780_v50  ;;  %v1961_v50 = vld [vmem:[%s13585_s30 + $0x1830] sm:$0xff] }
 0x5c4   : > { %8580 = vmatpush1.bf16.msra.mxu1 %v11782_v21  ;;  %8417 = vmatprep.subr.bf16.mxu0 %v11797_v27  ;;  %v1969_v21 = vld [vmem:[%s13585_s30 + $0x1870] sm:$0xff]  ;;  %v1962_v27 = vld [vmem:[%s13585_s30 + $0x1838] sm:$0xff] }
 0x5c5   : > { %8581 = vmatprep.subr.bf16.mxu1 %v11799_v44  ;;  %v1970_v44 = vld [vmem:[%s13585_s30 + $0x1878] sm:$0xff]  ;;  %v11893_v46 = vcombine.high %v1961_v50, %v1969_v21  ;;  %v2049_v8 = vld [vmem:[%s13585_s30 + $0x1af0] sm:$0xff] }
 0x5c6   : > { %v11895_v52 = vcombine.high %v1962_v27, %v1970_v44  ;;  %v11894_v12 = vcombine.low %v1962_v27, %v1970_v44  ;;  %v2057_v27 = vld [vmem:[%s13585_s30 + $0x1b30] sm:$0xff] }
 0x5c7   : > { %8418 = vmatpush1.bf16.msra.mxu0 %v11796_v5  ;;  %v1977_v5 = vld [vmem:[%s13585_s30 + $0x18b0] sm:$0xff] }
 0x5c8   : > { %8582 = vmatpush1.bf16.msra.mxu1 %v11798_v6  ;;  %8419 = vmatprep.subr.bf16.mxu0 %v11813_v3  ;;  %v1985_v6 = vld [vmem:[%s13585_s30 + $0x18f0] sm:$0xff]  ;;  %v11892_v3 = vcombine.low %v1961_v50, %v1969_v21  ;;  %v11973_v50 = vcombine.high %v2041_v36, %v2049_v8 }
 0x5c9   : > { %8583 = vmatprep.subr.bf16.mxu1 %v11815_v7  ;;  %v1978_v7 = vld [vmem:[%s13585_s30 + $0x18b8] sm:$0xff]  ;;  %v11909_v51 = vcombine.high %v1977_v5, %v1985_v6  ;;  %v11908_v22 = vcombine.low %v1977_v5, %v1985_v6  ;;  %v2065_v44 = vld [vmem:[%s13585_s30 + $0x1b70] sm:$0xff] }
 0x5ca   : > { %v11910_v23 = vcombine.low %v1978_v7, %v1986_v10  ;;  %v11989_v5 = vcombine.high %v2057_v27, %v2065_v44 }
 0x5cb   : > { %8420 = vmatpush1.bf16.msra.mxu0 %v11812_v14  ;;  %v2001_v14 = vld [vmem:[%s13585_s30 + $0x1970] sm:$0xff] }
 0x5cc   : > { %8584 = vmatpush1.bf16.msra.mxu1 %v11814_v15  ;;  %8421 = vmatprep.subr.bf16.mxu0 %v11829_v17  ;;  %v11911_v15 = vcombine.high %v1978_v7, %v1986_v10  ;;  %v1994_v17 = vld [vmem:[%s13585_s30 + $0x1938] sm:$0xff]  ;;  %v11925_v24 = vcombine.high %v1993_v13, %v2001_v14  ;;  %v2073_v7 = vld [vmem:[%s13585_s30 + $0x1bb0] sm:$0xff] }
 0x5cd   : > { %8585 = vmatprep.subr.bf16.mxu1 %v11831_v20  ;;  %v2002_v20 = vld [vmem:[%s13585_s30 + $0x1978] sm:$0xff]  ;;  %v2081_v10 = vld [vmem:[%s13585_s30 + $0x1bf0] sm:$0xff] }
 0x5ce   : > { %v11927_v25 = vcombine.high %v1994_v17, %v2002_v20  ;;  %v11926_v11 = vcombine.low %v1994_v17, %v2002_v20  ;;  %v11988_v20 = vcombine.low %v2057_v27, %v2065_v44 }
 0x5cf   : > { %8422 = vmatpush1.bf16.msra.mxu0 %v11828_v58  ;;  %v2009_v58 = vld [vmem:[%s13585_s30 + $0x19b0] sm:$0xff] }
 0x5d0   : > { %8586 = vmatpush1.bf16.msra.mxu1 %v11830_v18  ;;  %8423 = vmatprep.subr.bf16.mxu0 %v11845_v62  ;;  %v2017_v18 = vld [vmem:[%s13585_s30 + $0x19f0] sm:$0xff]  ;;  %v2010_v62 = vld [vmem:[%s13585_s30 + $0x19b8] sm:$0xff] }
 0x5d1   : > { %8587 = vmatprep.subr.bf16.mxu1 %v11847_v4  ;;  %v11924_v4 = vcombine.low %v1993_v13, %v2001_v14  ;;  %v11941_v19 = vcombine.high %v2009_v58, %v2017_v18  ;;  %v2074_v13 = vld [vmem:[%s13585_s30 + $0x1bb8] sm:$0xff] }
 0x5d2   : > { %v2082_v14 = vld [vmem:[%s13585_s30 + $0x1bf8] sm:$0xff] }
 0x5d3   : > { %8424 = vmatpush1.bf16.msra.mxu0 %v11844_v16  ;;  %v2026_v16 = vld [vmem:[%s13585_s30 + $0x1a38] sm:$0xff] }
 0x5d4   : > { %8588 = vmatpush1.bf16.msra.mxu1 %v11846_v34  ;;  %8425 = vmatprep.subr.bf16.mxu0 %v11861_v0  ;;  %v2034_v34 = vld [vmem:[%s13585_s30 + $0x1a78] sm:$0xff]  ;;  %v11940_v0 = vcombine.low %v2009_v58, %v2017_v18  ;;  %v12007_v18 = vcombine.high %v2074_v13, %v2082_v14 }
 0x5d5   : > { %8589 = vmatprep.subr.bf16.mxu1 %v11863_v9  ;;  %v11959_v37 = vcombine.high %v2026_v16, %v2034_v34 }
 0x5d7   : > { %8426 = vmatpush1.bf16.msra.mxu0 %v11860_v28  ;;  %v2042_v28 = vld [vmem:[%s13585_s30 + $0x1ab8] sm:$0xff] }
 0x5d8   : > { %8590 = vmatpush1.bf16.msra.mxu1 %v11862_v29  ;;  %8427 = vmatprep.subr.bf16.mxu0 %v11877_v31  ;;  %v2050_v29 = vld [vmem:[%s13585_s30 + $0x1af8] sm:$0xff]  ;;  %v11956_v31 = vcombine.low %v2025_v60, %v2033_v47 }
 0x5d9   : > { %8591 = vmatprep.subr.bf16.mxu1 %v11879_v33  ;;  %v11958_v33 = vcombine.low %v2026_v16, %v2034_v34  ;;  %v11975_v21 = vcombine.high %v2042_v28, %v2050_v29  ;;  %v2105_v16 = vld [vmem:[%s13585_s30 + $0x1cb0] sm:$0xff] }
 0x5da   : > { %v2113_v34 = vld [vmem:[%s13585_s30 + $0x1cf0] sm:$0xff] }
 0x5db   : > { %8428 = vmatpush1.bf16.msra.mxu0 %v11876_v26  ;;  %v2058_v26 = vld [vmem:[%s13585_s30 + $0x1b38] sm:$0xff] }
 0x5dc   : > { %8592 = vmatpush1.bf16.msra.mxu1 %v11878_v32  ;;  %8438 = vmatprep.subr.bf16.mxu0 %v11893_v46  ;;  %v2066_v32 = vld [vmem:[%s13585_s30 + $0x1b78] sm:$0xff]  ;;  %v11972_v46 = vcombine.low %v2041_v36, %v2049_v8  ;;  %v12037_v36 = vcombine.high %v2105_v16, %v2113_v34 }
 0x5dd   : > { %8602 = vmatprep.subr.bf16.mxu1 %v11895_v52  ;;  %v11974_v52 = vcombine.low %v2042_v28, %v2050_v29  ;;  %v2121_v28 = vld [vmem:[%s13585_s30 + $0x1d30] sm:$0xff] }
 0x5de   : > { %8430 = vmatmul.mubr.bf16.vlgmr.msra.gmra.mrb[20].mxu0 %v14026_v56  ;;  %v2129_v29 = vld [vmem:[%s13585_s30 + $0x1d70] sm:$0xff] }
 0x5df   : > { %8594 = vmatmul.mubr.bf16.vlgmr.msra.gmra.mrb[20].mxu1 %v14026_v56  ;;  %8439 = vmatpush1.bf16.msra.mxu0 %v11892_v3  ;;  %v2018_v56 = vld [vmem:[%s13585_s30 + $0x19f8] sm:$0xff]  ;;  %v11991_v3 = vcombine.high %v2058_v26, %v2066_v32  ;;  %v12053_v27 = vcombine.high %v2121_v28, %v2129_v29 }
 0x5e0   : > { %8470 = vmatprep.mubr.bf16.mxu0 %v14030_v41  ;;  %8603 = vmatpush1.bf16.msra.mxu1 %v11894_v12  ;;  %v11942_v9 = vcombine.low %v2010_v62, %v2018_v56 }
 0x5e1   : > { %8634 = vmatprep.mubr.bf16.mxu1 %v14030_v41  ;;  %8440 = vmatprep.subr.bf16.mxu0 %v11909_v51  ;;  %v11943_v41 = vcombine.high %v2010_v62, %v2018_v56  ;;  %v2089_v62 = vld [vmem:[%s13585_s30 + $0x1c30] sm:$0xff] }
 0x5e2   : > { %8604 = vmatprep.subr.bf16.mxu1 %v11911_v15  ;;  %v2097_v56 = vld [vmem:[%s13585_s30 + $0x1c70] sm:$0xff] }
 0x5e3   : > { %8441 = vmatpush1.bf16.msra.mxu0 %v11908_v22  ;;  %v12021_v60 = vcombine.high %v2089_v62, %v2097_v56 }
 0x5e4   : > { %8605 = vmatpush1.bf16.msra.mxu1 %v11910_v23  ;;  %8442 = vmatprep.subr.bf16.mxu0 %v11925_v24  ;;  %v11990_v24 = vcombine.low %v2058_v26, %v2066_v32  ;;  %v2137_v26 = vld [vmem:[%s13585_s30 + $0x1db0] sm:$0xff] }
 0x5e5   : > { %8606 = vmatprep.subr.bf16.mxu1 %v11927_v25  ;;  %v12005_v25 = vcombine.high %v2073_v7, %v2081_v10  ;;  %v2145_v32 = vld [vmem:[%s13585_s30 + $0x1df0] sm:$0xff] }
 0x5e7   : > { %8443 = vmatpush1.bf16.msra.mxu0 %v11924_v4  ;;  %v2090_v4 = vld [vmem:[%s13585_s30 + $0x1c38] sm:$0xff] }
 0x5e8   : > { %8607 = vmatpush1.bf16.msra.mxu1 %v11926_v11  ;;  %8444 = vmatprep.subr.bf16.mxu0 %v11941_v19  ;;  %v2098_v11 = vld [vmem:[%s13585_s30 + $0x1c78] sm:$0xff]  ;;  %v12004_v19 = vcombine.low %v2073_v7, %v2081_v10  ;;  %v12069_v7 = vcombine.high %v2137_v26, %v2145_v32 }
 0x5e9   : > { %8608 = vmatprep.subr.bf16.mxu1 %v11943_v41  ;;  %v12006_v41 = vcombine.low %v2074_v13, %v2082_v14  ;;  %v12023_v47 = vcombine.high %v2090_v4, %v2098_v11  ;;  %v2153_v13 = vld [vmem:[%s13585_s30 + $0x1e30] sm:$0xff] }
 0x5ea   : > { %v2161_v14 = vld [vmem:[%s13585_s30 + $0x1e70] sm:$0xff] }
 0x5eb   : > { %8445 = vmatpush1.bf16.msra.mxu0 %v11940_v0  ;;  %v2106_v0 = vld [vmem:[%s13585_s30 + $0x1cb8] sm:$0xff] }
 0x5ec   : > { %8609 = vmatpush1.bf16.msra.mxu1 %v11942_v9  ;;  %8446 = vmatprep.subr.bf16.mxu0 %v11957_v43  ;;  %v2114_v9 = vld [vmem:[%s13585_s30 + $0x1cf8] sm:$0xff]  ;;  %v12020_v43 = vcombine.low %v2089_v62, %v2097_v56 }
 0x5ed   : > { %8610 = vmatprep.subr.bf16.mxu1 %v11959_v37  ;;  %v12022_v37 = vcombine.low %v2090_v4, %v2098_v11  ;;  %v12039_v8 = vcombine.high %v2106_v0, %v2114_v9  ;;  %v2170_v62 = vld [vmem:[%s13585_s30 + $0x1eb8] sm:$0xff]  ;;  %v12084_v4 = vcombine.low %v2153_v13, %v2161_v14 }
 0x5ee   : > { %v2178_v56 = vld [vmem:[%s13585_s30 + $0x1ef8] sm:$0xff] }
 0x5ef   : > { %8447 = vmatpush1.bf16.msra.mxu0 %v11956_v31  ;;  %v2122_v31 = vld [vmem:[%s13585_s30 + $0x1d38] sm:$0xff] }
 0x5f0   : > { %8611 = vmatpush1.bf16.msra.mxu1 %v11958_v33  ;;  %8448 = vmatprep.subr.bf16.mxu0 %v11973_v50  ;;  %v2130_v33 = vld [vmem:[%s13585_s30 + $0x1d78] sm:$0xff]  ;;  %v12036_v50 = vcombine.low %v2105_v16, %v2113_v34 }
 0x5f1   : > { %v14889_v6 = vpop.f32.mrb[16].mxu0  ;;  %8612 = vmatprep.subr.bf16.mxu1 %v11975_v21  ;;  %v12038_v21 = vcombine.low %v2106_v0, %v2114_v9  ;;  %v12055_v44 = vcombine.high %v2122_v31, %v2130_v33  ;;  %v2186_v16 = vld [vmem:[%s13585_s30 + $0x1f38] sm:$0xff]  ;;  %v12102_v9 = vcombine.low %v2170_v62, %v2178_v56 }
 0x5f2   : > { %v14893_v12 = vpop.f32.mrb[16].mxu1  ;;  %v14895_v51 = vpop.f32.mrb[17].mxu0  ;;  %v2194_v34 = vld [vmem:[%s13585_s30 + $0x1f78] sm:$0xff]  ;;  %8655 = vst [vmem:[#allocation2 + $0x40] sm:$0xff] (!%p15374_p1), %v14889_v6 }
 0x5f3   : > { %v14899_v15 = vpop.f32.mrb[17].mxu1  ;;  %v8148_v17 = vpop.f32.mrb[18].mxu0  ;;  %8449 = vmatpush1.bf16.msra.mxu0 %v11972_v46  ;;  %v2138_v46 = vld [vmem:[%s13585_s30 + $0x1db8] sm:$0xff]  ;;  %8656 = vst [vmem:[#allocation2 + $0x48] sm:$0xff] (!%p15374_p1), %v14895_v51  ;;  %8657 = vst [vmem:[#allocation2 + $0x50] sm:$0xff] (!%p15374_p1), %v14893_v12 }
 0x5f4   : > { %v8312_v22 = vpop.f32.mrb[18].mxu1  ;;  %8613 = vmatpush1.bf16.msra.mxu1 %v11974_v52  ;;  %v8149_v23 = vpop.f32.mrb[19].mxu0  ;;  %8450 = vmatprep.subr.bf16.mxu0 %v11989_v5  ;;  %v2146_v52 = vld [vmem:[%s13585_s30 + $0x1df8] sm:$0xff]  ;;  %v12052_v5 = vcombine.low %v2121_v28, %v2129_v29  ;;  %8658 = vst [vmem:[#allocation2 + $0x58] sm:$0xff] (!%p15374_p1), %v14899_v15 }
 0x5f5   : > { %v8313_v58 = vpop.f32.mrb[19].mxu1  ;;  %8614 = vmatprep.subr.bf16.mxu1 %v11991_v3  ;;  %v12054_v3 = vcombine.low %v2122_v31, %v2130_v33  ;;  %v12071_v10 = vcombine.high %v2138_v46, %v2146_v52  ;;  %v2154_v17 = vld [vmem:[%s13585_s30 + $0x1e38] sm:$0xff]  ;;  %v12068_v22 = vcombine.low %v2137_v26, %v2145_v32  ;;  %v12070_v23 = vcombine.low %v2138_v46, %v2146_v52 }
 0x5f6   : > { %v2169_v58 = vld [vmem:[%s13585_s30 + $0x1eb0] sm:$0xff]  ;;  %v2202_v28 = vld [vmem:[%s13585_s30 + $0x1fb8] sm:$0xff]  ;;  %v12118_v33 = vcombine.low %v2186_v16, %v2194_v34 }
 0x5f7   : > { %8451 = vmatpush1.bf16.msra.mxu0 %v11988_v20  ;;  %v2162_v20 = vld [vmem:[%s13585_s30 + $0x1e78] sm:$0xff] }
 0x5f8   : > { %8615 = vmatpush1.bf16.msra.mxu1 %v11990_v24  ;;  %8452 = vmatprep.subr.bf16.mxu0 %v12005_v25  ;;  %v12085_v24 = vcombine.high %v2153_v13, %v2161_v14  ;;  %v12087_v25 = vcombine.high %v2154_v17, %v2162_v20  ;;  %v12086_v11 = vcombine.low %v2154_v17, %v2162_v20  ;;  %v2210_v29 = vld [vmem:[%s13585_s30 + $0x1ff8] sm:$0xff] }
 0x5f9   : > { %8616 = vmatprep.subr.bf16.mxu1 %v12007_v18  ;;  %v2177_v18 = vld [vmem:[%s13585_s30 + $0x1ef0] sm:$0xff] }
 0x5fa   : > { %v12100_v0 = vcombine.low %v2169_v58, %v2177_v18 }
 0x5fb   : > { %8453 = vmatpush1.bf16.msra.mxu0 %v12004_v19  ;;  %v12101_v19 = vcombine.high %v2169_v58, %v2177_v18 }
 0x5fc   : > { %8617 = vmatpush1.bf16.msra.mxu1 %v12006_v41  ;;  %8454 = vmatprep.subr.bf16.mxu0 %v12021_v60  ;;  %v12103_v41 = vcombine.high %v2170_v62, %v2178_v56  ;;  %v2185_v60 = vld [vmem:[%s13585_s30 + $0x1f30] sm:$0xff] }
 0x5fd   : > { %8618 = vmatprep.subr.bf16.mxu1 %v12023_v47  ;;  %v2193_v47 = vld [vmem:[%s13585_s30 + $0x1f70] sm:$0xff] }
 0x5fe   : > { %v12116_v31 = vcombine.low %v2185_v60, %v2193_v47 }
 0x5ff   : > { %8455 = vmatpush1.bf16.msra.mxu0 %v12020_v43  ;;  %v12117_v43 = vcombine.high %v2185_v60, %v2193_v47 }
 0x600   : > { %8619 = vmatpush1.bf16.msra.mxu1 %v12022_v37  ;;  %8456 = vmatprep.subr.bf16.mxu0 %v12037_v36  ;;  %v12119_v37 = vcombine.high %v2186_v16, %v2194_v34  ;;  %v2201_v36 = vld [vmem:[%s13585_s30 + $0x1fb0] sm:$0xff] }
 0x601   : > { %8620 = vmatprep.subr.bf16.mxu1 %v12039_v8  ;;  %v2209_v8 = vld [vmem:[%s13585_s30 + $0x1ff0] sm:$0xff] }
 0x603   : > { %8457 = vmatpush1.bf16.msra.mxu0 %v12036_v50  ;;  %v12133_v50 = vcombine.high %v2201_v36, %v2209_v8 }
 0x604   : > { %8621 = vmatpush1.bf16.msra.mxu1 %v12038_v21  ;;  %8458 = vmatprep.subr.bf16.mxu0 %v12053_v27  ;;  %v12135_v21 = vcombine.high %v2202_v28, %v2210_v29  ;;  %v12132_v27 = vcombine.low %v2201_v36, %v2209_v8 }
 0x605   : > { %8622 = vmatprep.subr.bf16.mxu1 %v12055_v44  ;;  %v12134_v44 = vcombine.low %v2202_v28, %v2210_v29 }
 0x607   : > { %8459 = vmatpush1.bf16.msra.mxu0 %v12052_v5 }
 0x608   : > { %8623 = vmatpush1.bf16.msra.mxu1 %v12054_v3  ;;  %8460 = vmatprep.subr.bf16.mxu0 %v12069_v7 }
 0x609   : > { %8624 = vmatprep.subr.bf16.mxu1 %v12071_v10 }
 0x60b   : > { %8461 = vmatpush1.bf16.msra.mxu0 %v12068_v22 }
 0x60c   : > { %8625 = vmatpush1.bf16.msra.mxu1 %v12070_v23  ;;  %8462 = vmatprep.subr.bf16.mxu0 %v12085_v24 }
 0x60d   : > { %8626 = vmatprep.subr.bf16.mxu1 %v12087_v25 }
 0x60f   : > { %8463 = vmatpush1.bf16.msra.mxu0 %v12084_v4 }
 0x610   : > { %8627 = vmatpush1.bf16.msra.mxu1 %v12086_v11  ;;  %8464 = vmatprep.subr.bf16.mxu0 %v12101_v19 }
 0x611   : > { %8628 = vmatprep.subr.bf16.mxu1 %v12103_v41 }
 0x613   : > { %8465 = vmatpush1.bf16.msra.mxu0 %v12100_v0 }
 0x614   : > { %8629 = vmatpush1.bf16.msra.mxu1 %v12102_v9  ;;  %8466 = vmatprep.subr.bf16.mxu0 %v12117_v43 }
 0x615   : > { %8630 = vmatprep.subr.bf16.mxu1 %v12119_v37 }
 0x617   : > { %8467 = vmatpush1.bf16.msra.mxu0 %v12116_v31 }
 0x618   : > { %8631 = vmatpush1.bf16.msra.mxu1 %v12118_v33  ;;  %8468 = vmatprep.subr.bf16.mxu0 %v12133_v50 }
 0x619   : > { %8632 = vmatprep.subr.bf16.mxu1 %v12135_v21 }
 0x61b   : > { %8469 = vmatpush1.bf16.msra.mxu0 %v12132_v27 }
 0x61c   : > { %8633 = vmatpush1.bf16.msra.mxu1 %v12134_v44 }
 0x61e   : > { %8471 = vmatmul.mubr.bf16.vlgmr.msra.gmra.mrb[20].mxu0 %v14099_v35 }
 0x61f   : > { %8635 = vmatmul.mubr.bf16.vlgmr.msra.gmra.mrb[20].mxu1 %v14099_v35 }
 0x6ef   : > { %8646 = sbr.rel (%p15374_p1) target bundleno = 1782 (0x6f6), region = 96 }
 0x6f1   : > { %v14935_v26 = vpop.f32.mrb[20].mxu0 }
 0x6f2   : > { %v14937_v32 = vpop.f32.mrb[20].mxu1  ;;  %v14939_v46 = vpop.f32.mrb[21].mxu0  ;;  %8659 = vst [vmem:[#allocation2 + $0x60] sm:$0xff] (!%p15374_p1), %v14935_v26 }
 0x6f3   : > { %v14941_v52 = vpop.f32.mrb[21].mxu1  ;;  %v8476_v5 = vpop.f32.mrb[22].mxu0  ;;  %8660 = vst [vmem:[#allocation2 + $0x68] sm:$0xff] (!%p15374_p1), %v14939_v46  ;;  %8661 = vst [vmem:[#allocation2 + $0x70] sm:$0xff] (!%p15374_p1), %v14937_v32 }
 0x6f4   : > { %v8640_v3 = vpop.f32.mrb[22].mxu1  ;;  %v8477_v7 = vpop.f32.mrb[23].mxu0  ;;  %8662 = vst [vmem:[#allocation2 + $0x78] sm:$0xff] (!%p15374_p1), %v14941_v52 }
 0x6f5   : > { %v8641_v10 = vpop.f32.mrb[23].mxu1 }
 0x6f6 PF: > { %p12137_p5 = scmp.le.s32.totalorder %s13274_s13, 0 }
 0x6f7   : > { %v8667_v35 = vld [vmem:[#allocation2] sm:$0xff] (!%p12137_p5)  ;;  %v8668_v13 = vld [vmem:[#allocation2 + $0x8] sm:$0xff] (!%p12137_p5)  ;;  %v8669_v14 = vld [vmem:[#allocation2 + $0x10] sm:$0xff] (!%p12137_p5) }
 0x6f8   : > { %8666 = sbr.rel (%p12137_p5) target bundleno = 1794 (0x702), region = 100  ;;  %v8683_v17 = vadd.f32 (!%p12137_p5), %v8667_v35, %v14329_v39  ;;  %v8684_v20 = vadd.f32 (!%p12137_p5), %v8668_v13, %v14335_v49  ;;  %v8685_v22 = vadd.f32 (!%p12137_p5), %v8669_v14, %v14333_v45  ;;  %v8670_v23 = vld [vmem:[#allocation2 + $0x18] sm:$0xff] (!%p12137_p5)  ;;  %v8671_v24 = vld [vmem:[#allocation2 + $0x20] sm:$0xff] (!%p12137_p5)  ;;  %v8672_v25 = vld [vmem:[#allocation2 + $0x28] sm:$0xff] (!%p12137_p5) }
 0x6f9   : > { %v8686_v58 = vadd.f32 (!%p12137_p5), %v8670_v23, %v14339_v48  ;;  %v8687_v18 = vadd.f32 (!%p12137_p5), %v8671_v24, %v14609_v40  ;;  %v8688_v62 = vadd.f32 (!%p12137_p5), %v8672_v25, %v14615_v54  ;;  %v8673_v56 = vld [vmem:[#allocation2 + $0x30] sm:$0xff] (!%p12137_p5)  ;;  %v8674_v4 = vld [vmem:[#allocation2 + $0x38] sm:$0xff] (!%p12137_p5)  ;;  %v8675_v11 = vld [vmem:[#allocation2 + $0x40] sm:$0xff] (!%p12137_p5) }
 0x6fa   : > { %8699 = vst [vmem:[#allocation2] sm:$0xff] (!%p12137_p5), %v8683_v17  ;;  %8700 = vst [vmem:[#allocation2 + $0x8] sm:$0xff] (!%p12137_p5), %v8684_v20  ;;  %v8689_v39 = vadd.f32 (!%p12137_p5), %v8673_v56, %v14613_v30  ;;  %v8690_v49 = vadd.f32 (!%p12137_p5), %v8674_v4, %v14619_v38  ;;  %v8691_v45 = vadd.f32 (!%p12137_p5), %v8675_v11, %v14889_v6  ;;  %v8676_v19 = vld [vmem:[#allocation2 + $0x48] sm:$0xff] (!%p12137_p5)  ;;  %v8677_v41 = vld [vmem:[#allocation2 + $0x50] sm:$0xff] (!%p12137_p5) }
 0x6fb   : > { %8701 = vst [vmem:[#allocation2 + $0x10] sm:$0xff] (!%p12137_p5), %v8685_v22  ;;  %v8678_v60 = vld [vmem:[#allocation2 + $0x58] sm:$0xff] (!%p12137_p5)  ;;  %8702 = vst [vmem:[#allocation2 + $0x18] sm:$0xff] (!%p12137_p5), %v8686_v58  ;;  %v8692_v48 = vadd.f32 (!%p12137_p5), %v8676_v19, %v14895_v51  ;;  %v8693_v40 = vadd.f32 (!%p12137_p5), %v8677_v41, %v14893_v12  ;;  %v8679_v47 = vld [vmem:[#allocation2 + $0x60] sm:$0xff] (!%p12137_p5) }
 0x6fc   : > { %8703 = vst [vmem:[#allocation2 + $0x20] sm:$0xff] (!%p12137_p5), %v8687_v18  ;;  %8704 = vst [vmem:[#allocation2 + $0x28] sm:$0xff] (!%p12137_p5), %v8688_v62  ;;  %v8694_v54 = vadd.f32 (!%p12137_p5), %v8678_v60, %v14899_v15  ;;  %v8680_v16 = vld [vmem:[#allocation2 + $0x68] sm:$0xff] (!%p12137_p5)  ;;  %v8681_v34 = vld [vmem:[#allocation2 + $0x70] sm:$0xff] (!%p12137_p5)  ;;  %v8695_v30 = vadd.f32 (!%p12137_p5), %v8679_v47, %v14935_v26 }
 0x6fd   : > { %8705 = vst [vmem:[#allocation2 + $0x30] sm:$0xff] (!%p12137_p5), %v8689_v39  ;;  %8706 = vst [vmem:[#allocation2 + $0x38] sm:$0xff] (!%p12137_p5), %v8690_v49  ;;  %v8696_v38 = vadd.f32 (!%p12137_p5), %v8680_v16, %v14939_v46  ;;  %v8697_v6 = vadd.f32 (!%p12137_p5), %v8681_v34, %v14937_v32  ;;  %v8682_v0 = vld [vmem:[#allocation2 + $0x78] sm:$0xff] (!%p12137_p5) }
 0x6fe   : > { %8707 = vst [vmem:[#allocation2 + $0x40] sm:$0xff] (!%p12137_p5), %v8691_v45  ;;  %8708 = vst [vmem:[#allocation2 + $0x48] sm:$0xff] (!%p12137_p5), %v8692_v48  ;;  %v8698_v12 = vadd.f32 (!%p12137_p5), %v8682_v0, %v14941_v52 }
 0x6ff   : > { %8709 = vst [vmem:[#allocation2 + $0x50] sm:$0xff] %v8693_v40  ;;  %8710 = vst [vmem:[#allocation2 + $0x58] sm:$0xff] %v8694_v54 }
 0x700   : > { %8711 = vst [vmem:[#allocation2 + $0x60] sm:$0xff] %v8695_v30  ;;  %8712 = vst [vmem:[#allocation2 + $0x68] sm:$0xff] %v8696_v38 }
 0x701   : > { %8713 = vst [vmem:[#allocation2 + $0x70] sm:$0xff] %v8697_v6  ;;  %8714 = vst [vmem:[#allocation2 + $0x78] sm:$0xff] %v8698_v12 }
 0x702 PF: > { %p12138_p11 = scmp.ne.s32.totalorder %s13274_s13, 1 }
 0x703   : > { %v12684_v51 = vld [vmem:[#allocation15 + $0x40] sm:$0xff] (!%p12138_p11)   ;;  %v12688_v37 = vld [vmem:[#allocation15 + $0x48] sm:$0xff] (!%p12138_p11)   ;;  %v12692_v29 = vld [vmem:[#allocation15 + $0x50] sm:$0xff] (!%p12138_p11)  }
 0x704   : > { %8718 = sbr.rel (%p12138_p11) target bundleno = 2243 (0x8c3), region = 104  ;;  %v12685_v15 = vld [vmem:[#allocation15 + $0xc0] sm:$0xff] (!%p12138_p11)   ;;  %12277 = vmatprep.subr.bf16.mxu0 (!%p12138_p11), %v12684_v51  ;;  %v12689_v36 = vld [vmem:[#allocation15 + $0xc8] sm:$0xff] (!%p12138_p11)   ;;  %v12693_v31 = vld [vmem:[#allocation15 + $0xd0] sm:$0xff] (!%p12138_p11)  }
 0x705   : > { %v12686_v9 = vld [vmem:[#allocation15] sm:$0xff] (!%p12138_p11)   ;;  %12299 = vmatprep.subr.bf16.mxu1 (!%p12138_p11), %v12685_v15  ;;  %v12690_v8 = vld [vmem:[#allocation15 + $0x8] sm:$0xff] (!%p12138_p11)   ;;  %v12694_v33 = vld [vmem:[#allocation15 + $0x10] sm:$0xff] (!%p12138_p11)  }
 0x706   : > { %v12687_v43 = vld [vmem:[#allocation15 + $0x80] sm:$0xff] (!%p12138_p11)   ;;  %12278 = vmatpush3.bf16.msra.mxu0 (!%p12138_p11), %v12686_v9  ;;  %v12691_v28 = vld [vmem:[#allocation15 + $0x88] sm:$0xff] (!%p12138_p11)   ;;  %v12695_v50 = vld [vmem:[#allocation15 + $0x90] sm:$0xff] (!%p12138_p11)  }
 0x707   : > { %12300 = vmatpush3.bf16.msra.mxu1 (!%p12138_p11), %v12687_v43  ;;  %12279 = vmatprep.subr.bf16.mxu0 (!%p12138_p11), %v12688_v37  ;;  %v12696_v21 = vld [vmem:[#allocation15 + $0x58] sm:$0xff] (!%p12138_p11)   ;;  %v12700_v32 = vld [vmem:[#allocation15 + $0x60] sm:$0xff] (!%p12138_p11)   ;;  %v12704_v3 = vld [vmem:[#allocation15 + $0x68] sm:$0xff] (!%p12138_p11)  }
 0x708   : > { %12301 = vmatprep.subr.bf16.mxu1 (!%p12138_p11), %v12689_v36  ;;  %v12697_v27 = vld [vmem:[#allocation15 + $0xd8] sm:$0xff] (!%p12138_p11)   ;;  %v12701_v46 = vld [vmem:[#allocation15 + $0xe0] sm:$0xff] (!%p12138_p11)   ;;  %v12705_v7 = vld [vmem:[#allocation15 + $0xe8] sm:$0xff] (!%p12138_p11)  }
 0x709   : > { %v12698_v44 = vld [vmem:[#allocation15 + $0x18] sm:$0xff] (!%p12138_p11)   ;;  %v12702_v52 = vld [vmem:[#allocation15 + $0x20] sm:$0xff] (!%p12138_p11)   ;;  %v12706_v10 = vld [vmem:[#allocation15 + $0x28] sm:$0xff] (!%p12138_p11)  }
 0x70a   : > { %12280 = vmatpush3.bf16.msra.mxu0 (!%p12138_p11), %v12690_v8  ;;  %v12699_v26 = vld [vmem:[#allocation15 + $0x98] sm:$0xff] (!%p12138_p11)   ;;  %v12703_v5 = vld [vmem:[#allocation15 + $0xa0] sm:$0xff] (!%p12138_p11)   ;;  %v12707_v35 = vld [vmem:[#allocation15 + $0xa8] sm:$0xff] (!%p12138_p11)  }
 0x70b   : > { %12302 = vmatpush3.bf16.msra.mxu1 %v12691_v28  ;;  %12281 = vmatprep.subr.bf16.mxu0 %v12692_v29  ;;  %v12708_v13 = vld [vmem:[#allocation15 + $0x70] sm:$0xff]   ;;  %v12712_v22 = vld [vmem:[#allocation15 + $0x78] sm:$0xff]   ;;  %v14981_v18 = vld [vmem:[#allocation2 + $0x8] sm:$0xff] }
 0x70c   : > { %12303 = vmatprep.subr.bf16.mxu1 %v12693_v31  ;;  %v12709_v14 = vld [vmem:[#allocation15 + $0xf0] sm:$0xff]   ;;  %v12713_v23 = vld [vmem:[#allocation15 + $0xf8] sm:$0xff]   ;;  %v14989_v11 = vld [vmem:[#allocation2 + $0x28] sm:$0xff]  ;;  %v8741_v49 = vrot.slane %v14981_v18, 4  ;;  %v15007_v47 = vmul.f32 %v14981_v18, %v14981_v18 }
 0x70d   : > { %v12710_v17 = vld [vmem:[#allocation15 + $0x30] sm:$0xff]   ;;  %v12714_v24 = vld [vmem:[#allocation15 + $0x38] sm:$0xff]   ;;  %v8765_v54 = vrot.slane %v14989_v11, 4  ;;  %v12716_v15 = vld [vmem:[#allocation15 + $0x140] sm:$0xff]  }
 0x70e   : > { %12282 = vmatpush3.bf16.msra.mxu0 %v12694_v33  ;;  %v12711_v20 = vld [vmem:[#allocation15 + $0xb0] sm:$0xff]   ;;  %v12715_v25 = vld [vmem:[#allocation15 + $0xb8] sm:$0xff]   ;;  %v8742_v34 = vadd.f32 %v8741_v49, %v14981_v18  ;;  %v12717_v8 = vld [vmem:[#allocation15 + $0x1c0] sm:$0xff]  }
 0x70f   : > { %12304 = vmatpush3.bf16.msra.mxu1 %v12695_v50  ;;  %12283 = vmatprep.subr.bf16.mxu0 %v12696_v21  ;;  %v14979_v58 = vld [vmem:[#allocation2] sm:$0xff]  ;;  %v14983_v62 = vld [vmem:[#allocation2 + $0x10] sm:$0xff]  ;;  %v14985_v56 = vld [vmem:[#allocation2 + $0x18] sm:$0xff]  ;;  %v8766_v12 = vadd.f32 %v8765_v54, %v14989_v11 }
 0x710   : > { %12305 = vmatprep.subr.bf16.mxu1 %v12697_v27  ;;  %v14987_v4 = vld [vmem:[#allocation2 + $0x20] sm:$0xff]  ;;  %v8735_v39 = vrot.slane %v14979_v58, 4  ;;  %v8747_v45 = vrot.slane %v14983_v62, 4  ;;  %v14996_v19 = vmul.f32 %v14979_v58, %v14979_v58  ;;  %v14998_v41 = vld [vmem:[#allocation2 + $0x30] sm:$0xff]  ;;  %v15000_v60 = vld [vmem:[#allocation2 + $0x38] sm:$0xff]  ;;  %v8753_v48 = vrot.slane %v14985_v56, 4 }
 0x711   : > { %v8759_v40 = vrot.slane %v14987_v4, 4  ;;  %v8771_v38 = vrot.slane %v14998_v41, 4  ;;  %v8777_v51 = vrot.slane %v15000_v60, 4  ;;  %v8743_v43 = vrot.slane %v8742_v34, 2 }
 0x712   : > { %12284 = vmatpush3.bf16.msra.mxu0 %v12698_v44  ;;  %v8736_v16 = vadd.f32 %v8735_v39, %v14979_v58  ;;  %v8748_v30 = vadd.f32 %v8747_v45, %v14983_v62  ;;  %v8754_v6 = vadd.f32 %v8753_v48, %v14985_v56  ;;  %v8767_v31 = vrot.slane %v8766_v12, 2 }
 0x713   : > { %12306 = vmatpush3.bf16.msra.mxu1 %v12699_v26  ;;  %12285 = vmatprep.subr.bf16.mxu0 %v12700_v32  ;;  %v8760_v0 = vadd.f32 %v8759_v40, %v14987_v4  ;;  %v8772_v36 = vadd.f32 %v8771_v38, %v14998_v41  ;;  %v8778_v33 = vadd.f32 %v8777_v51, %v15000_v60 }
 0x714   : > { %12307 = vmatprep.subr.bf16.mxu1 %v12701_v46  ;;  %v8737_v9 = vrot.slane %v8736_v16, 2  ;;  %v8749_v37 = vrot.slane %v8748_v30, 2  ;;  %v8755_v28 = vrot.slane %v8754_v6, 2  ;;  %v8744_v21 = vadd.f32 %v8743_v43, %v8742_v34 }
 0x715   : > { %v8761_v29 = vrot.slane %v8760_v0, 2  ;;  %v8773_v44 = vrot.slane %v8772_v36, 2  ;;  %v8768_v46 = vadd.f32 %v8767_v31, %v8766_v12  ;;  %v8849_v12 = vmul.f32 %v14983_v62, %v14983_v62 }
 0x716   : > { %12286 = vmatpush3.bf16.msra.mxu0 %v12702_v52  ;;  %v8738_v50 = vadd.f32 %v8737_v9, %v8736_v16  ;;  %v8750_v27 = vadd.f32 %v8749_v37, %v8748_v30  ;;  %v8756_v26 = vadd.f32 %v8755_v28, %v8754_v6  ;;  %v8779_v52 = vrot.slane %v8778_v33, 2 }
 0x717   : > { %12308 = vmatpush3.bf16.msra.mxu1 %v12703_v5  ;;  %12287 = vmatprep.subr.bf16.mxu0 %v12704_v3  ;;  %v8762_v32 = vadd.f32 %v8761_v29, %v8760_v0  ;;  %v8745_v3 = vrot.slane %v8744_v21, 1  ;;  %v8850_v51 = vmul.f32 %v14985_v56, %v14985_v56  ;;  %v8852_v43 = vmul.f32 %v14989_v11, %v14989_v11 }
 0x718   : > { %12309 = vmatprep.subr.bf16.mxu1 %v12705_v7  ;;  %v8739_v5 = vrot.slane %v8738_v50, 1  ;;  %v8751_v7 = vrot.slane %v8750_v27, 1  ;;  %v8853_v37 = vmul.f32 %v14998_v41, %v14998_v41  ;;  %v8869_v28 = vrot.slane %v15007_v47, 4 }
 0x719   : > { %v8875_v29 = vrot.slane %v8849_v12, 4  ;;  %v8881_v31 = vrot.slane %v8850_v51, 4 }
 0x71a   : > { %12288 = vmatpush3.bf16.msra.mxu0 %v12706_v10  ;;  %v8774_v10 = vadd.f32 %v8773_v44, %v8772_v36  ;;  %v8854_v36 = vmul.f32 %v15000_v60, %v15000_v60 }
 0x71b   : > { %12310 = vmatpush3.bf16.msra.mxu1 %v12707_v35  ;;  %12289 = vmatprep.subr.bf16.mxu0 %v12708_v13  ;;  %v8757_v35 = vrot.slane %v8756_v26, 1  ;;  %v8763_v13 = vrot.slane %v8762_v32, 1 }
 0x71c   : > { %12311 = vmatprep.subr.bf16.mxu1 %v12709_v14  ;;  %v8769_v14 = vrot.slane %v8768_v46, 1 }
 0x71d   : > { %v8764_v39 = vadd.f32 %v8763_v13, %v8762_v32  ;;  %v8876_v32 = vadd.f32 %v8875_v29, %v8849_v12 }
 0x71e   : > { %12290 = vmatpush3.bf16.msra.mxu0 %v12710_v17  ;;  %v8780_v17 = vadd.f32 %v8779_v52, %v8778_v33  ;;  %v8770_v49 = vadd.f32 %v8769_v14, %v8768_v46  ;;  %v8882_v46 = vadd.f32 %v8881_v31, %v8850_v51 }
 0x71f   : > { %12312 = vmatpush3.bf16.msra.mxu1 %v12711_v20  ;;  %12291 = vmatprep.subr.bf16.mxu0 %v12712_v22  ;;  %v8740_v20 = vadd.f32 %v8739_v5, %v8738_v50  ;;  %v8746_v22 = vadd.f32 %v8745_v3, %v8744_v21  ;;  %v15027_v38 = vmul.f32 0.125, %v8764_v39  ;;  %v8893_v50 = vrot.slane %v8852_v43, 4 }
 0x720   : > { %12313 = vmatprep.subr.bf16.mxu1 %v12713_v23  ;;  %v8752_v23 = vadd.f32 %v8751_v7, %v8750_v27  ;;  %v8781_v45 = vrot.slane %v8780_v17, 1  ;;  %v15029_v6 = vmul.f32 0.125, %v8770_v49  ;;  %v8899_v21 = vrot.slane %v8853_v37, 4 }
 0x721   : > { %v15019_v40 = vmul.f32 0.125, %v8740_v20  ;;  %v15021_v54 = vmul.f32 0.125, %v8746_v22  ;;  %v8905_v27 = vrot.slane %v8854_v36, 4  ;;  %v8894_v5 = vadd.f32 %v8893_v50, %v8852_v43 }
 0x722   : > { %12292 = vmatpush3.bf16.msra.mxu0 %v12714_v24  ;;  %v8775_v24 = vrot.slane %v8774_v10, 1  ;;  %v15023_v16 = vmul.f32 0.125, %v8752_v23  ;;  %v8782_v34 = vadd.f32 %v8781_v45, %v8780_v17  ;;  %v8900_v3 = vadd.f32 %v8899_v21, %v8853_v37 }
 0x723   : > { %12314 = vmatpush3.bf16.msra.mxu1 %v12715_v25  ;;  %12321 = vmatprep.subr.bf16.mxu0 %v12716_v15  ;;  %v8758_v25 = vadd.f32 %v8757_v35, %v8756_v26  ;;  %v8851_v15 = vmul.f32 %v14987_v4, %v14987_v4  ;;  %v8870_v26 = vadd.f32 %v8869_v28, %v15007_v47  ;;  %v8877_v13 = vrot.slane %v8876_v32, 2 }
 0x724   : > { %12343 = vmatprep.subr.bf16.mxu1 %v12717_v8  ;;  %v8776_v48 = vadd.f32 %v8775_v24, %v8774_v10  ;;  %v15039_v9 = vmul.f32 0.125, %v8782_v34  ;;  %v8863_v8 = vrot.slane %v14996_v19, 4  ;;  %v8906_v7 = vadd.f32 %v8905_v27, %v8854_v36 }
 0x725   : > { %v15025_v30 = vmul.f32 0.125, %v8758_v25  ;;  %v8887_v33 = vrot.slane %v8851_v15, 4  ;;  %v8871_v35 = vrot.slane %v8870_v26, 2  ;;  %v8883_v14 = vrot.slane %v8882_v46, 2 }
 0x726   : > { %v15031_v0 = vmul.f32 0.125, %v8776_v48  ;;  %v8864_v44 = vadd.f32 %v8863_v8, %v14996_v19  ;;  %v8895_v20 = vrot.slane %v8894_v5, 2  ;;  %v8901_v22 = vrot.slane %v8900_v3, 2 }
 0x727   : > { %v8888_v52 = vadd.f32 %v8887_v33, %v8851_v15  ;;  %v8907_v23 = vrot.slane %v8906_v7, 2  ;;  %v8872_v25 = vadd.f32 %v8871_v35, %v8870_v26  ;;  %v8878_v39 = vadd.f32 %v8877_v13, %v8876_v32 }
 0x728   : > { %v8865_v10 = vrot.slane %v8864_v44, 2  ;;  %v8884_v19 = vadd.f32 %v8883_v14, %v8882_v46  ;;  %v8896_v47 = vadd.f32 %v8895_v20, %v8894_v5  ;;  %v8902_v45 = vadd.f32 %v8901_v22, %v8900_v3 }
 0x729   : > { %v8889_v17 = vrot.slane %v8888_v52, 2  ;;  %v8908_v48 = vadd.f32 %v8907_v23, %v8906_v7  ;;  %v8873_v12 = vrot.slane %v8872_v25, 1  ;;  %v8879_v51 = vrot.slane %v8878_v39, 1 }
 0x72a   : > { %v8866_v24 = vadd.f32 %v8865_v10, %v8864_v44  ;;  %v8885_v15 = vrot.slane %v8884_v19, 1  ;;  %v8897_v37 = vrot.slane %v8896_v47, 1  ;;  %v8903_v36 = vrot.slane %v8902_v45, 1 }
 0x72b   : > { %v8890_v49 = vadd.f32 %v8889_v17, %v8888_v52  ;;  %v8909_v8 = vrot.slane %v8908_v48, 1  ;;  %v8874_v29 = vadd.f32 %v8873_v12, %v8872_v25  ;;  %v8880_v31 = vadd.f32 %v8879_v51, %v8878_v39 }
 0x72c   : > { %v8867_v34 = vrot.slane %v8866_v24, 1  ;;  %v8886_v33 = vadd.f32 %v8885_v15, %v8884_v19  ;;  %v8898_v21 = vadd.f32 %v8897_v37, %v8896_v47  ;;  %v8904_v27 = vadd.f32 %v8903_v36, %v8902_v45 }
 0x72d   : > { %v8891_v43 = vrot.slane %v8890_v49, 1  ;;  %v8910_v44 = vadd.f32 %v8909_v8, %v8908_v48  ;;  %v8960_v32 = vmul.f32 0.125, %v8874_v29  ;;  %v8961_v46 = vmul.f32 0.125, %v8880_v31 }
 0x72e   : > { %v8868_v28 = vadd.f32 %v8867_v34, %v8866_v24  ;;  %v8962_v52 = vmul.f32 0.125, %v8886_v33  ;;  %v8964_v3 = vmul.f32 0.125, %v8898_v21  ;;  %v8965_v7 = vmul.f32 0.125, %v8904_v27 }
 0x72f   : > { %v8892_v50 = vadd.f32 %v8891_v43, %v8890_v49  ;;  %v8966_v10 = vmul.f32 0.125, %v8910_v44  ;;  %v8975_v35 = vmul.f32 %v15019_v40, %v15019_v40  ;;  %v8976_v13 = vmul.f32 %v15021_v54, %v15021_v54 }
 0x730   : > { %v8959_v26 = vmul.f32 0.125, %v8868_v28  ;;  %v8977_v14 = vmul.f32 %v15023_v16, %v15023_v16  ;;  %v8978_v17 = vmul.f32 %v15025_v30, %v15025_v30  ;;  %v8979_v20 = vmul.f32 %v15027_v38, %v15027_v38 }
 0x731   : > { %v8963_v5 = vmul.f32 0.125, %v8892_v50  ;;  %v8980_v22 = vmul.f32 %v15029_v6, %v15029_v6  ;;  %v8981_v23 = vmul.f32 %v15031_v0, %v15031_v0  ;;  %v8982_v24 = vmul.f32 %v15039_v9, %v15039_v9 }
 0x732   : > { %v8991_v25 = vsub.f32 %v8959_v26, %v8975_v35  ;;  %v8992_v39 = vsub.f32 %v8960_v32, %v8976_v13  ;;  %v8993_v19 = vsub.f32 %v8961_v46, %v8977_v14  ;;  %v8994_v49 = vsub.f32 %v8962_v52, %v8978_v17 }
 0x733   : > { %v8995_v47 = vsub.f32 %v8963_v5, %v8979_v20  ;;  %v8996_v45 = vsub.f32 %v8964_v3, %v8980_v22  ;;  %v8997_v48 = vsub.f32 %v8965_v7, %v8981_v23  ;;  %v8998_v34 = vsub.f32 %v8966_v10, %v8982_v24 }
 0x734   : > { %v9007_v12 = vmax.f32 %v8991_v25, 0.0  ;;  %v9008_v51 = vmax.f32 %v8992_v39, 0.0  ;;  %v9009_v15 = vmax.f32 %v8993_v19, 0.0  ;;  %v9010_v43 = vmax.f32 %v8994_v49, 0.0 }
 0x735   : > { %v9011_v37 = vmax.f32 %v8995_v47, 0.0  ;;  %v9012_v36 = vmax.f32 %v8996_v45, 0.0  ;;  %v9013_v8 = vmax.f32 %v8997_v48, 0.0  ;;  %v9014_v33 = vmax.f32 %v8998_v34, 0.0  ;;  %v9023_v45 = vld [vmem:[#allocation12] sm:$0xff] }
 0x736   : > { %v9025_v28 = vadd.f32 1e-05, %v9007_v12  ;;  %v9026_v29 = vadd.f32 1e-05, %v9008_v51  ;;  %v9027_v31 = vadd.f32 1e-05, %v9009_v15 }
 0x737   : > { %v9028_v50 = vadd.f32 1e-05, %v9010_v43  ;;  %v9029_v21 = vadd.f32 1e-05, %v9011_v37  ;;  %v9030_v27 = vadd.f32 1e-05, %v9012_v36 }
 0x738   : > { %12812 = vrsqrt.f32 %v9025_v28  ;;  %v9031_v44 = vadd.f32 1e-05, %v9013_v8  ;;  %v9032_v26 = vadd.f32 1e-05, %v9014_v33 }
 0x739   : > { %12814 = vrsqrt.f32 %v9026_v29 }
 0x73a   : > { %12816 = vrsqrt.f32 %v9027_v31 }
 0x73b   : > { %12818 = vrsqrt.f32 %v9028_v50 }
 0x73c   : > { %12820 = vrsqrt.f32 %v9029_v21 }
 0x73d   : > { %12822 = vrsqrt.f32 %v9030_v27 }
 0x73e   : > { %12824 = vrsqrt.f32 %v9031_v44 }
 0x73f   : > { %12826 = vrsqrt.f32 %v9032_v26 }
 0x742   : > { %v12813_v32 = vpop.eup %12812 }
 0x743   : > { %v12815_v46 = vpop.eup %12814 }
 0x744   : > { %v12817_v52 = vpop.eup %12816  ;;  %v9073_v5 = vcombine.low %v12813_v32, %v12815_v46 }
 0x745   : > { %v12819_v3 = vpop.eup %12818 }
 0x746   : > { %v12821_v7 = vpop.eup %12820  ;;  %v9074_v10 = vcombine.low %v12817_v52, %v12819_v3  ;;  %v9083_v35 = vrot.slane %v9073_v5, %v13779_v42 }
 0x747   : > { %v12823_v13 = vpop.eup %12822 }
 0x748   : > { %v12825_v14 = vpop.eup %12824  ;;  %v9075_v17 = vcombine.low %v12821_v7, %v12823_v13  ;;  %v9090_v20 = vrot.slane %v9074_v10, %v13779_v42  ;;  %v15100_v13 = vld [vmem:[#allocation2 + $0x40] sm:$0xff] }
 0x749   : > { %v12827_v22 = vpop.eup %12826 }
 0x74a   : > { %v9076_v23 = vcombine.low %v12825_v14, %v12827_v22  ;;  %v9097_v24 = vrot.slane %v9075_v17, %v13779_v42  ;;  %v9105_v25 = vcombine.low %v9083_v35, %v9090_v20  ;;  %v15105_v17 = vld [vmem:[#allocation2 + $0x50] sm:$0xff]  ;;  %v15107_v20 = vld [vmem:[#allocation2 + $0x58] sm:$0xff] }
 0x74b   : > { %v15116_v22 = vld [vmem:[#allocation2 + $0x70] sm:$0xff] }
 0x74c   : > { %v9104_v39 = vrot.slane %v9076_v23, %v13779_v42  ;;  %v9113_v49 = vrot.slane %v9105_v25, %v13779_v42  ;;  %v8795_v23 = vrot.slane %v15105_v17, 4 }
 0x74e   : > { %v9106_v19 = vcombine.low %v9097_v24, %v9104_v39 }
 0x750   : > { %v9120_v47 = vrot.slane %v9106_v19, %v13779_v42 }
 0x752   : > { %v9121_v48 = vcombine.low %v9113_v49, %v9120_v47  ;;  %v9175_v47 = vld [vmem:[#allocation14] sm:$0xff] }
 0x754   : > { %v9173_v34 = vmul.f32 %v9121_v48, %v9023_v45  ;;  %v8796_v45 = vadd.f32 %v8795_v23, %v15105_v17 }
 0x756   : > { %v9182_v12 = vrot.slane %v9173_v34, %v13793_v53  ;;  %v9186_v51 = vrot.slane %v9173_v34, %v13796_v55  ;;  %v9190_v15 = vrot.slane %v9173_v34, %v13799_v57  ;;  %v9194_v43 = vrot.slane %v9173_v34, %v13802_v59 }
 0x757   : > { %v9198_v37 = vrot.slane %v9173_v34, %v13805_v61  ;;  %v9202_v36 = vrot.slane %v9173_v34, %v13808_v63  ;;  %v9206_v8 = vrot.slane %v9173_v34, %v13811_v1  ;;  %v9210_v28 = vrot.slane %v9173_v34, %v13814_v2 }
 0x758   : > { %v9259_v29 = vmul.f32 %v9182_v12, %v15019_v40  ;;  %v9260_v31 = vmul.f32 %v9186_v51, %v15021_v54  ;;  %v9261_v33 = vmul.f32 %v9190_v15, %v15023_v16  ;;  %v9262_v50 = vmul.f32 %v9194_v43, %v15025_v30 }
 0x759   : > { %v9263_v21 = vmul.f32 %v9198_v37, %v15027_v38  ;;  %v9264_v27 = vmul.f32 %v9202_v36, %v15029_v6  ;;  %v9265_v44 = vmul.f32 %v9206_v8, %v15031_v0  ;;  %v9266_v26 = vmul.f32 %v9210_v28, %v15039_v9 }
 0x75a   : > { %v9291_v32 = vcombine.low %v9259_v29, %v9260_v31  ;;  %v9292_v46 = vcombine.low %v9261_v33, %v9262_v50  ;;  %v9394_v16 = vmul.f32 %v9186_v51, %v14981_v18  ;;  %v9396_v30 = vmul.f32 %v9194_v43, %v14985_v56  ;;  %v15102_v18 = vld [vmem:[#allocation2 + $0x48] sm:$0xff] }
 0x75b   : > { %v9293_v52 = vcombine.low %v9263_v21, %v9264_v27  ;;  %v9294_v5 = vcombine.low %v9265_v44, %v9266_v26  ;;  %v9393_v0 = vmul.f32 %v9182_v12, %v14979_v58  ;;  %v9395_v9 = vmul.f32 %v9190_v15, %v14983_v62  ;;  %v15109_v58 = vld [vmem:[#allocation2 + $0x60] sm:$0xff] }
 0x75c   : > { %v9301_v40 = vrot.slane %v9291_v32, %v13779_v42  ;;  %v9308_v54 = vrot.slane %v9292_v46, %v13779_v42  ;;  %v9398_v7 = vmul.f32 %v9202_v36, %v14989_v11  ;;  %v9400_v10 = vmul.f32 %v9210_v28, %v15000_v60 }
 0x75d   : > { %v9315_v38 = vrot.slane %v9293_v52, %v13779_v42  ;;  %v9322_v6 = vrot.slane %v9294_v5, %v13779_v42  ;;  %v9397_v35 = vmul.f32 %v9198_v37, %v14987_v4  ;;  %v9399_v14 = vmul.f32 %v9206_v8, %v14998_v41  ;;  %v15114_v4 = vld [vmem:[#allocation2 + $0x68] sm:$0xff] }
 0x75e   : > { %v9323_v3 = vcombine.low %v9301_v40, %v9308_v54  ;;  %v8783_v62 = vrot.slane %v15100_v13, 4  ;;  %v8789_v11 = vrot.slane %v15102_v18, 4  ;;  %v8801_v41 = vrot.slane %v15107_v20, 4 }
 0x75f   : > { %v9324_v56 = vcombine.low %v9315_v38, %v9322_v6  ;;  %v8807_v24 = vrot.slane %v15109_v58, 4  ;;  %v8813_v49 = vrot.slane %v15114_v4, 4  ;;  %v8819_v12 = vrot.slane %v15116_v22, 4 }
 0x760   : > { %v9331_v60 = vrot.slane %v9323_v3, %v13779_v42  ;;  %v8784_v39 = vadd.f32 %v8783_v62, %v15100_v13  ;;  %v8790_v19 = vadd.f32 %v8789_v11, %v15102_v18  ;;  %v8802_v48 = vadd.f32 %v8801_v41, %v15107_v20 }
 0x761   : > { %v9338_v25 = vrot.slane %v9324_v56, %v13779_v42  ;;  %v8808_v34 = vadd.f32 %v8807_v24, %v15109_v58  ;;  %v8814_v37 = vadd.f32 %v8813_v49, %v15114_v4  ;;  %v8797_v36 = vrot.slane %v8796_v45, 2 }
 0x762   : > { %v8785_v15 = vrot.slane %v8784_v39, 2  ;;  %v8791_v43 = vrot.slane %v8790_v19, 2  ;;  %v8803_v8 = vrot.slane %v8802_v48, 2  ;;  %v15132_v29 = vmul.f32 %v15100_v13, %v15100_v13 }
 0x763   : > { %v9339_v51 = vcombine.low %v9331_v60, %v9338_v25  ;;  %v8809_v28 = vrot.slane %v8808_v34, 2  ;;  %v8820_v21 = vadd.f32 %v8819_v12, %v15116_v22  ;;  %v8798_v27 = vadd.f32 %v8797_v36, %v8796_v45  ;;  %v12718_v45 = vld [vmem:[#allocation15 + $0x100] sm:$0xff]  }
 0x764   : > { %v8786_v33 = vadd.f32 %v8785_v15, %v8784_v39  ;;  %v8792_v50 = vadd.f32 %v8791_v43, %v8790_v19  ;;  %v15135_v44 = vadd.f32 %v8803_v8, %v8802_v48  ;;  %v8815_v32 = vrot.slane %v8814_v37, 2  ;;  %v12719_v48 = vld [vmem:[#allocation15 + $0x180] sm:$0xff]  }
 0x765   : > { %v9391_v31 = vsub.f32 %v9175_v47, %v9339_v51  ;;  %v15137_v26 = vadd.f32 %v8809_v28, %v8808_v34  ;;  %v12720_v34 = vld [vmem:[#allocation15 + $0x148] sm:$0xff]   ;;  %v8821_v43 = vrot.slane %v8820_v21, 2 }
 0x766   : > { %v12722_v28 = vld [vmem:[#allocation15 + $0x108] sm:$0xff]  }
 0x767   : > { %v9418_v46 = vrot.slane %v9391_v31, %v13796_v55  ;;  %v9426_v52 = vrot.slane %v9391_v31, %v13802_v59  ;;  %v9414_v5 = vrot.slane %v9391_v31, %v13793_v53  ;;  %v9422_v40 = vrot.slane %v9391_v31, %v13799_v57 }
 0x768   : > { %v9434_v54 = vrot.slane %v9391_v31, %v13808_v63  ;;  %v9442_v38 = vrot.slane %v9391_v31, %v13814_v2  ;;  %v9430_v6 = vrot.slane %v9391_v31, %v13805_v61  ;;  %v9438_v3 = vrot.slane %v9391_v31, %v13811_v1  ;;  %v12723_v31 = vld [vmem:[#allocation15 + $0x188] sm:$0xff]  }
 0x769   : > { %v9492_v56 = vadd.f32 %v9418_v46, %v9394_v16  ;;  %v9494_v62 = vadd.f32 %v9426_v52, %v9396_v30  ;;  %v9491_v11 = vadd.f32 %v9414_v5, %v9393_v0  ;;  %v9493_v60 = vadd.f32 %v9422_v40, %v9395_v9 }
 0x76a   : > { %v9496_v23 = vadd.f32 %v9434_v54, %v9398_v7  ;;  %v9498_v41 = vadd.f32 %v9442_v38, %v9400_v10  ;;  %v9495_v24 = vadd.f32 %v9430_v6, %v9397_v35  ;;  %v15147_v25 = vadd.f32 %v9438_v3, %v9399_v14  ;;  %v15149_v7 = vld [vmem:[#allocation2 + $0x78] sm:$0xff]  ;;  %v12721_v10 = vld [vmem:[#allocation15 + $0x1c8] sm:$0xff]  }
 0x76b   : > { %v9508_v39 = vmax.f32 %v9492_v56, 0.0  ;;  %v9510_v19 = vmax.f32 %v9494_v62, 0.0  ;;  %v9507_v49 = vmax.f32 %v9491_v11, 0.0  ;;  %v9509_v47 = vmax.f32 %v9493_v60, 0.0  ;;  %v12724_v54 = vld [vmem:[#allocation15 + $0x150] sm:$0xff]  }
 0x76c   : > { %v9512_v12 = vmax.f32 %v9496_v23, 0.0  ;;  %v9514_v51 = vmax.f32 %v9498_v41, 0.0  ;;  %v9511_v15 = vmax.f32 %v9495_v24, 0.0  ;;  %v9513_v8 = vmax.f32 %v15147_v25, 0.0  ;;  %v12725_v62 = vld [vmem:[#allocation15 + $0x1d0] sm:$0xff]  }
 0x76d   : > { %v9524_v16 = vpack.c.bf16 %v9508_v39, %v9508_v39  ;;  %v9526_v30 = vpack.c.bf16 %v9510_v19, %v9510_v19  ;;  %v9523_v0 = vpack.c.bf16 %v9507_v49, %v9507_v49  ;;  %v9525_v9 = vpack.c.bf16 %v9509_v47, %v9509_v47  ;;  %v12728_v47 = vld [vmem:[#allocation15 + $0x158] sm:$0xff]  }
 0x76e   : > { %v9528_v35 = vpack.c.bf16 %v9512_v12, %v9512_v12  ;;  %v9530_v14 = vpack.c.bf16 %v9514_v51, %v9514_v51  ;;  %v15151_v36 = vpack.c.bf16 %v9511_v15, %v9511_v15  ;;  %v8787_v46 = vrot.slane %v8786_v33, 1 }
 0x76f   : > { %10602 = vmatprep.mubr.bf16.mxu0 %v9524_v16  ;;  %10642 = vmatprep.mubr.bf16.mxu1 %v9526_v30  ;;  %v8793_v52 = vrot.slane %v8792_v50, 1  ;;  %v8799_v5 = vrot.slane %v8798_v27, 1  ;;  %v8805_v40 = vrot.slane %v15135_v44, 1  ;;  %v8811_v38 = vrot.slane %v15137_v26, 1 }
 0x770   : > { %10603 = vmatmul.mubr.bf16.vlgmr.msra.gmra.mrb[0].mxu0 %v9523_v0  ;;  %10643 = vmatmul.mubr.bf16.vlgmr.msra.gmra.mrb[0].mxu1 %v9525_v9  ;;  %v8816_v6 = vadd.f32 %v8815_v32, %v8814_v37  ;;  %v8822_v3 = vadd.f32 %v8821_v43, %v8820_v21  ;;  %v8825_v56 = vrot.slane %v15149_v7, 4  ;;  %v8788_v11 = vadd.f32 %v8787_v46, %v8786_v33  ;;  %v12726_v37 = vld [vmem:[#allocation15 + $0x110] sm:$0xff]  }
 0x771   : > { %12322 = vmatpush3.bf16.msra.mxu0 %v12718_v45  ;;  %12344 = vmatpush3.bf16.msra.mxu1 %v12719_v48  ;;  %v8794_v60 = vadd.f32 %v8793_v52, %v8792_v50  ;;  %v8800_v23 = vadd.f32 %v8799_v5, %v8798_v27  ;;  %v8911_v41 = vrot.slane %v15132_v29, 4  ;;  %v8806_v24 = vadd.f32 %v8805_v40, %v15135_v44  ;;  %v12727_v27 = vld [vmem:[#allocation15 + $0x190] sm:$0xff]   ;;  %v12732_v52 = vld [vmem:[#allocation15 + $0x160] sm:$0xff]  }
 0x772   : > { %12323 = vmatprep.subr.bf16.mxu0 %v12720_v34  ;;  %12345 = vmatprep.subr.bf16.mxu1 %v12721_v10  ;;  %v8812_v39 = vadd.f32 %v8811_v38, %v15137_v26  ;;  %v8817_v19 = vrot.slane %v8816_v6, 1  ;;  %v8823_v49 = vrot.slane %v8822_v3, 1  ;;  %v8826_v21 = vadd.f32 %v8825_v56, %v15149_v7  ;;  %v12729_v34 = vld [vmem:[#allocation15 + $0x1d8] sm:$0xff]  }
 0x773   : > { %10682 = vmatprep.mubr.bf16.mxu0 %v9528_v35  ;;  %10722 = vmatprep.mubr.bf16.mxu1 %v9530_v14  ;;  %v15161_v32 = vmul.f32 0.125, %v8788_v11  ;;  %v15163_v33 = vmul.f32 0.125, %v8794_v60  ;;  %v15165_v50 = vmul.f32 0.125, %v8800_v23  ;;  %v15167_v44 = vmul.f32 0.125, %v8806_v24  ;;  %v12730_v10 = vld [vmem:[#allocation15 + $0x118] sm:$0xff]   ;;  %v12734_v24 = vld [vmem:[#allocation15 + $0x120] sm:$0xff]  }
 0x774   : > { %v8818_v45 = vadd.f32 %v8817_v19, %v8816_v6  ;;  %v8824_v48 = vadd.f32 %v8823_v49, %v8822_v3  ;;  %v15169_v26 = vmul.f32 0.125, %v8812_v39  ;;  %v8827_v12 = vrot.slane %v8826_v21, 2  ;;  %v12731_v35 = vld [vmem:[#allocation15 + $0x198] sm:$0xff]  }
 0x775   : > { %12324 = vmatpush3.bf16.msra.mxu0 %v12722_v28  ;;  %12346 = vmatpush3.bf16.msra.mxu1 %v12723_v31  ;;  %v8856_v51 = vmul.f32 %v15102_v18, %v15102_v18  ;;  %v8857_v15 = vmul.f32 %v15105_v17, %v15105_v17  ;;  %v8858_v43 = vmul.f32 %v15107_v20, %v15107_v20 }
 0x776   : > { %12325 = vmatprep.subr.bf16.mxu0 %v12724_v54  ;;  %12347 = vmatprep.subr.bf16.mxu1 %v12725_v62  ;;  %v15177_v16 = vmul.f32 0.125, %v8818_v45  ;;  %v15179_v30 = vmul.f32 0.125, %v8824_v48  ;;  %v8859_v0 = vmul.f32 %v15109_v58, %v15109_v58  ;;  %v8860_v9 = vmul.f32 %v15114_v4, %v15114_v4  ;;  %v12733_v62 = vld [vmem:[#allocation15 + $0x1e0] sm:$0xff]  }
 0x777   : > { %v8828_v14 = vadd.f32 %v8827_v12, %v8826_v21  ;;  %v8861_v28 = vmul.f32 %v15116_v22, %v15116_v22  ;;  %v8862_v31 = vmul.f32 %v15149_v7, %v15149_v7  ;;  %v8912_v46 = vadd.f32 %v8911_v41, %v15132_v29  ;;  %v12735_v29 = vld [vmem:[#allocation15 + $0x1a0] sm:$0xff]   ;;  %v12736_v21 = vld [vmem:[#allocation15 + $0x168] sm:$0xff]  }
 0x778   : > { %v8917_v5 = vrot.slane %v8856_v51, 4  ;;  %v8923_v40 = vrot.slane %v8857_v15, 4  ;;  %v8929_v54 = vrot.slane %v8858_v43, 4  ;;  %v8935_v38 = vrot.slane %v8859_v0, 4 }
 0x779   : > { %12326 = vmatpush3.bf16.msra.mxu0 %v12726_v37  ;;  %12348 = vmatpush3.bf16.msra.mxu1 %v12727_v27  ;;  %v8829_v58 = vrot.slane %v8828_v14, 1  ;;  %v8913_v6 = vrot.slane %v8912_v46, 2  ;;  %v8941_v3 = vrot.slane %v8860_v9, 4  ;;  %v8947_v56 = vrot.slane %v8861_v28, 4 }
 0x77a   : > { %12327 = vmatprep.subr.bf16.mxu0 %v12728_v47  ;;  %12349 = vmatprep.subr.bf16.mxu1 %v12729_v34  ;;  %v8918_v22 = vadd.f32 %v8917_v5, %v8856_v51  ;;  %v8924_v11 = vadd.f32 %v8923_v40, %v8857_v15  ;;  %v8930_v60 = vadd.f32 %v8929_v54, %v8858_v43  ;;  %v8953_v23 = vrot.slane %v8862_v31, 4  ;;  %v12737_v15 = vld [vmem:[#allocation15 + $0x1e8] sm:$0xff]  }
 0x77b   : > { %v8830_v41 = vadd.f32 %v8829_v58, %v8828_v14  ;;  %v8914_v39 = vadd.f32 %v8913_v6, %v8912_v46  ;;  %v8936_v19 = vadd.f32 %v8935_v38, %v8859_v0  ;;  %v8942_v49 = vadd.f32 %v8941_v3, %v8860_v9  ;;  %v12738_v9 = vld [vmem:[#allocation15 + $0x128] sm:$0xff]  }
 0x77c   : > { %v8919_v37 = vrot.slane %v8918_v22, 2  ;;  %v8925_v27 = vrot.slane %v8924_v11, 2  ;;  %v8931_v45 = vrot.slane %v8930_v60, 2  ;;  %v8948_v48 = vadd.f32 %v8947_v56, %v8861_v28  ;;  %v12739_v5 = vld [vmem:[#allocation15 + $0x1a8] sm:$0xff]  }
 0x77d   : > { %12328 = vmatpush3.bf16.msra.mxu0 %v12730_v10  ;;  %12350 = vmatpush3.bf16.msra.mxu1 %v12731_v35  ;;  %v15190_v47 = vmul.f32 0.125, %v8830_v41  ;;  %v8915_v34 = vrot.slane %v8914_v39, 1  ;;  %v8937_v12 = vrot.slane %v8936_v19, 2  ;;  %v8943_v51 = vrot.slane %v8942_v49, 2  ;;  %v12740_v10 = vld [vmem:[#allocation15 + $0x170] sm:$0xff]  }
 0x77e   : > { %12329 = vmatprep.subr.bf16.mxu0 %v12732_v52  ;;  %12351 = vmatprep.subr.bf16.mxu1 %v12733_v62  ;;  %v8920_v43 = vadd.f32 %v8919_v37, %v8918_v22  ;;  %v8926_v14 = vadd.f32 %v8925_v27, %v8924_v11  ;;  %v8932_v46 = vadd.f32 %v8931_v45, %v8930_v60  ;;  %v8949_v0 = vrot.slane %v8948_v48, 2  ;;  %v12741_v11 = vld [vmem:[#allocation15 + $0x1f0] sm:$0xff]  }
 0x77f   : > { %v8916_v40 = vadd.f32 %v8915_v34, %v8914_v39  ;;  %v8938_v54 = vadd.f32 %v8937_v12, %v8936_v19  ;;  %v8944_v38 = vadd.f32 %v8943_v51, %v8942_v49  ;;  %v8954_v28 = vadd.f32 %v8953_v23, %v8862_v31  ;;  %v12742_v49 = vld [vmem:[#allocation15 + $0x130] sm:$0xff]  }
 0x780   : > { %v8921_v35 = vrot.slane %v8920_v43, 1  ;;  %v8927_v58 = vrot.slane %v8926_v14, 1  ;;  %v8933_v6 = vrot.slane %v8932_v46, 1  ;;  %v8950_v3 = vadd.f32 %v8949_v0, %v8948_v48 }
 0x781   : > { %12330 = vmatpush3.bf16.msra.mxu0 %v12734_v24  ;;  %12352 = vmatpush3.bf16.msra.mxu1 %v12735_v29  ;;  %v8939_v52 = vrot.slane %v8938_v54, 1  ;;  %v8945_v56 = vrot.slane %v8944_v38, 1  ;;  %v8955_v62 = vrot.slane %v8954_v28, 2  ;;  %v8967_v22 = vmul.f32 0.125, %v8916_v40  ;;  %v12743_v24 = vld [vmem:[#allocation15 + $0x1b0] sm:$0xff]  }
 0x782   : > { %12331 = vmatprep.subr.bf16.mxu0 %v12736_v21  ;;  %12353 = vmatprep.subr.bf16.mxu1 %v12737_v15  ;;  %v8922_v60 = vadd.f32 %v8921_v35, %v8920_v43  ;;  %v8928_v41 = vadd.f32 %v8927_v58, %v8926_v14  ;;  %v8934_v39 = vadd.f32 %v8933_v6, %v8932_v46  ;;  %v8951_v19 = vrot.slane %v8950_v3, 1  ;;  %v12744_v21 = vld [vmem:[#allocation15 + $0x178] sm:$0xff]  }
 0x783   : > { %v8940_v31 = vadd.f32 %v8939_v52, %v8938_v54  ;;  %v8946_v23 = vadd.f32 %v8945_v56, %v8944_v38  ;;  %v8956_v37 = vadd.f32 %v8955_v62, %v8954_v28  ;;  %v8983_v27 = vmul.f32 %v15161_v32, %v15161_v32  ;;  %v12745_v14 = vld [vmem:[#allocation15 + $0x1f8] sm:$0xff]  }
 0x784   : > { %v8952_v29 = vadd.f32 %v8951_v19, %v8950_v3  ;;  %v8968_v45 = vmul.f32 0.125, %v8922_v60  ;;  %v8969_v48 = vmul.f32 0.125, %v8928_v41  ;;  %v8970_v34 = vmul.f32 0.125, %v8934_v39  ;;  %v12746_v3 = vld [vmem:[#allocation15 + $0x138] sm:$0xff]   ;;  %v12748_v41 = vld [vmem:[#allocation15 + $0x240] sm:$0xff]  }
 0x785   : > { %12332 = vmatpush3.bf16.msra.mxu0 %v12738_v9  ;;  %12354 = vmatpush3.bf16.msra.mxu1 %v12739_v5  ;;  %v8957_v12 = vrot.slane %v8956_v37, 1  ;;  %v8971_v51 = vmul.f32 0.125, %v8940_v31  ;;  %v8972_v15 = vmul.f32 0.125, %v8946_v23  ;;  %v8984_v43 = vmul.f32 %v15163_v33, %v15163_v33  ;;  %v12747_v52 = vld [vmem:[#allocation15 + $0x1b8] sm:$0xff]   ;;  %v12749_v39 = vld [vmem:[#allocation15 + $0x2c0] sm:$0xff]  }
 0x786   : > { %12333 = vmatprep.subr.bf16.mxu0 %v12740_v10  ;;  %12355 = vmatprep.subr.bf16.mxu1 %v12741_v11  ;;  %v8973_v46 = vmul.f32 0.125, %v8952_v29  ;;  %v8985_v0 = vmul.f32 %v15165_v50, %v15165_v50  ;;  %v8986_v40 = vmul.f32 %v15167_v44, %v15167_v44  ;;  %v8987_v9 = vmul.f32 %v15169_v26, %v15169_v26 }
 0x787   : > { %v8958_v5 = vadd.f32 %v8957_v12, %v8956_v37  ;;  %v8988_v54 = vmul.f32 %v15177_v16, %v15177_v16  ;;  %v8989_v38 = vmul.f32 %v15179_v30, %v15179_v30  ;;  %v8990_v28 = vmul.f32 %v15190_v47, %v15190_v47  ;;  %v12751_v12 = vld [vmem:[#allocation15 + $0x280] sm:$0xff]  }
 0x788   : > { %v8999_v10 = vsub.f32 %v8967_v22, %v8983_v27  ;;  %v9000_v35 = vsub.f32 %v8968_v45, %v8984_v43  ;;  %v9001_v58 = vsub.f32 %v8969_v48, %v8985_v0  ;;  %v9002_v6 = vsub.f32 %v8970_v34, %v8986_v40  ;;  %v12752_v43 = vld [vmem:[#allocation15 + $0x248] sm:$0xff]  }
 0x789   : > { %12334 = vmatpush3.bf16.msra.mxu0 %v12742_v49  ;;  %12356 = vmatpush3.bf16.msra.mxu1 %v12743_v24  ;;  %v8974_v56 = vmul.f32 0.125, %v8958_v5  ;;  %v9003_v62 = vsub.f32 %v8971_v51, %v8987_v9  ;;  %v9004_v11 = vsub.f32 %v8972_v15, %v8988_v54  ;;  %v9005_v60 = vsub.f32 %v8973_v46, %v8989_v38  ;;  %v12755_v40 = vld [vmem:[#allocation15 + $0x288] sm:$0xff]   ;;  %v12756_v5 = vld [vmem:[#allocation15 + $0x250] sm:$0xff]  }
 0x78a   : > { %12335 = vmatprep.subr.bf16.mxu0 %v12744_v21  ;;  %12357 = vmatprep.subr.bf16.mxu1 %v12745_v14  ;;  %v9015_v19 = vmax.f32 %v8999_v10, 0.0  ;;  %v9016_v31 = vmax.f32 %v9000_v35, 0.0  ;;  %v9017_v23 = vmax.f32 %v9001_v58, 0.0  ;;  %v9018_v37 = vmax.f32 %v9002_v6, 0.0  ;;  %v12750_v21 = vld [vmem:[#allocation15 + $0x200] sm:$0xff]   ;;  %v12753_v14 = vld [vmem:[#allocation15 + $0x2c8] sm:$0xff]  }
 0x78b   : > { %v9006_v22 = vsub.f32 %v8974_v56, %v8990_v28  ;;  %v9019_v27 = vmax.f32 %v9003_v62, 0.0  ;;  %v9020_v29 = vmax.f32 %v9004_v11, 0.0  ;;  %v9021_v45 = vmax.f32 %v9005_v60, 0.0  ;;  %v12757_v54 = vld [vmem:[#allocation15 + $0x2d0] sm:$0xff]   ;;  %v12760_v28 = vld [vmem:[#allocation15 + $0x258] sm:$0xff]   ;;  %v12764_v56 = vld [vmem:[#allocation15 + $0x260] sm:$0xff]  }
 0x78c   : > { %v9529_v49 = vpack.c.bf16 %v9513_v8, %v9513_v8  ;;  %v9033_v24 = vadd.f32 1e-05, %v9015_v19  ;;  %v9034_v48 = vadd.f32 1e-05, %v9016_v31  ;;  %v9035_v34 = vadd.f32 1e-05, %v9017_v23 }
 0x78d   : > { %12336 = vmatpush3.bf16.msra.mxu0 %v12746_v3  ;;  %12358 = vmatpush3.bf16.msra.mxu1 %v12747_v52  ;;  %v9022_v51 = vmax.f32 %v9006_v22, 0.0  ;;  %v9036_v15 = vadd.f32 1e-05, %v9018_v37  ;;  %v9037_v46 = vadd.f32 1e-05, %v9019_v27  ;;  %v12754_v8 = vld [vmem:[#allocation15 + $0x208] sm:$0xff]  }
 0x78e   : > { %12365 = vmatprep.subr.bf16.mxu0 %v12748_v41  ;;  %12387 = vmatprep.subr.bf16.mxu1 %v12749_v39  ;;  %12828 = vrsqrt.f32 %v9033_v24  ;;  %v9038_v0 = vadd.f32 1e-05, %v9020_v29  ;;  %v9039_v25 = vadd.f32 1e-05, %v9021_v45  ;;  %v12758_v38 = vld [vmem:[#allocation15 + $0x210] sm:$0xff]   ;;  %v12761_v10 = vld [vmem:[#allocation15 + $0x2d8] sm:$0xff]  }
 0x78f   : > { %12830 = vrsqrt.f32 %v9034_v48  ;;  %v9040_v9 = vadd.f32 1e-05, %v9022_v51  ;;  %v12762_v6 = vld [vmem:[#allocation15 + $0x218] sm:$0xff]   ;;  %v12765_v62 = vld [vmem:[#allocation15 + $0x2e0] sm:$0xff]   ;;  %v12768_v27 = vld [vmem:[#allocation15 + $0x268] sm:$0xff]  }
 0x790   : > { %10683 = vmatmul.mubr.bf16.vlgmr.msra.gmra.mrb[4].mxu0 %v15151_v36  ;;  %10723 = vmatmul.mubr.bf16.vlgmr.msra.gmra.mrb[4].mxu1 %v9529_v49  ;;  %12832 = vrsqrt.f32 %v9035_v34  ;;  %v12759_v36 = vld [vmem:[#allocation15 + $0x290] sm:$0xff]   ;;  %v12763_v3 = vld [vmem:[#allocation15 + $0x298] sm:$0xff]   ;;  %v12766_v23 = vld [vmem:[#allocation15 + $0x220] sm:$0xff]  }
 0x791   : > { %12366 = vmatpush3.bf16.msra.mxu0 %v12750_v21  ;;  %12388 = vmatpush3.bf16.msra.mxu1 %v12751_v12  ;;  %12834 = vrsqrt.f32 %v9036_v15  ;;  %v12767_v37 = vld [vmem:[#allocation15 + $0x2a0] sm:$0xff]   ;;  %v12769_v29 = vld [vmem:[#allocation15 + $0x2e8] sm:$0xff]   ;;  %v12772_v15 = vld [vmem:[#allocation15 + $0x270] sm:$0xff]  }
 0x792   : > { %12367 = vmatprep.subr.bf16.mxu0 %v12752_v43  ;;  %12389 = vmatprep.subr.bf16.mxu1 %v12753_v14  ;;  %12836 = vrsqrt.f32 %v9037_v46  ;;  %v12770_v12 = vld [vmem:[#allocation15 + $0x228] sm:$0xff]   ;;  %v12773_v43 = vld [vmem:[#allocation15 + $0x2f0] sm:$0xff]  }
 0x793   : > { %12838 = vrsqrt.f32 %v9038_v0  ;;  %v12771_v51 = vld [vmem:[#allocation15 + $0x2a8] sm:$0xff]  }
 0x794   : > { %12840 = vrsqrt.f32 %v9039_v25  ;;  %v12774_v25 = vld [vmem:[#allocation15 + $0x230] sm:$0xff]  }
 0x795   : > { %12368 = vmatpush3.bf16.msra.mxu0 %v12754_v8  ;;  %12390 = vmatpush3.bf16.msra.mxu1 %v12755_v40  ;;  %12842 = vrsqrt.f32 %v9040_v9  ;;  %v12775_v8 = vld [vmem:[#allocation15 + $0x2b0] sm:$0xff]   ;;  %v12776_v40 = vld [vmem:[#allocation15 + $0x278] sm:$0xff]  }
 0x796   : > { %12369 = vmatprep.subr.bf16.mxu0 %v12756_v5  ;;  %12391 = vmatprep.subr.bf16.mxu1 %v12757_v54  ;;  %v12777_v9 = vld [vmem:[#allocation15 + $0x2f8] sm:$0xff]   ;;  %v9024_v54 = vld [vmem:[#allocation12 + $0x8] sm:$0xff] }
 0x798   : > { %v12829_v35 = vpop.eup %12828 }
 0x799   : > { %v12831_v58 = vpop.eup %12830  ;;  %12370 = vmatpush3.bf16.msra.mxu0 %v12758_v38  ;;  %12392 = vmatpush3.bf16.msra.mxu1 %v12759_v36  ;;  %v12778_v36 = vld [vmem:[#allocation15 + $0x238] sm:$0xff]  }
 0x79a   : > { %v12833_v52 = vpop.eup %12832  ;;  %12371 = vmatprep.subr.bf16.mxu0 %v12760_v28  ;;  %12393 = vmatprep.subr.bf16.mxu1 %v12761_v10  ;;  %v9122_v11 = vcombine.low %v12829_v35, %v12831_v58  ;;  %v12779_v28 = vld [vmem:[#allocation15 + $0x2b8] sm:$0xff]   ;;  %v12780_v35 = vld [vmem:[#allocation15 + $0x340] sm:$0xff]  }
 0x79b   : > { %v12835_v60 = vpop.eup %12834  ;;  %v12781_v58 = vld [vmem:[#allocation15 + $0x3c0] sm:$0xff]  }
 0x79c   : > { %v12837_v41 = vpop.eup %12836  ;;  %v9123_v39 = vcombine.low %v12833_v52, %v12835_v60  ;;  %v9132_v19 = vrot.slane %v9122_v11, %v13779_v42 }
 0x79d   : > { %v12839_v31 = vpop.eup %12838  ;;  %12372 = vmatpush3.bf16.msra.mxu0 %v12762_v6  ;;  %12394 = vmatpush3.bf16.msra.mxu1 %v12763_v3 }
 0x79e   : > { %v12841_v22 = vpop.eup %12840  ;;  %12373 = vmatprep.subr.bf16.mxu0 %v12764_v56  ;;  %12395 = vmatprep.subr.bf16.mxu1 %v12765_v62  ;;  %v9124_v45 = vcombine.low %v12837_v41, %v12839_v31  ;;  %v9139_v49 = vrot.slane %v9123_v39, %v13779_v42 }
 0x79f   : > { %v12843_v24 = vpop.eup %12842 }
 0x7a0   : > { %v9125_v48 = vcombine.low %v12841_v22, %v12843_v24  ;;  %v9146_v34 = vrot.slane %v9124_v45, %v13779_v42  ;;  %v9154_v21 = vcombine.low %v9132_v19, %v9139_v49 }
 0x7a1   : > { %12374 = vmatpush3.bf16.msra.mxu0 %v12766_v23  ;;  %12396 = vmatpush3.bf16.msra.mxu1 %v12767_v37 }
 0x7a2   : > { %12375 = vmatprep.subr.bf16.mxu0 %v12768_v27  ;;  %12397 = vmatprep.subr.bf16.mxu1 %v12769_v29  ;;  %v9153_v14 = vrot.slane %v9125_v48, %v13779_v42  ;;  %v9162_v0 = vrot.slane %v9154_v21, %v13779_v42  ;;  %v9176_v21 = vld [vmem:[#allocation14 + $0x8] sm:$0xff] }
 0x7a4   : > { %v9155_v46 = vcombine.low %v9146_v34, %v9153_v14 }
 0x7a5   : > { %12376 = vmatpush3.bf16.msra.mxu0 %v12770_v12  ;;  %12398 = vmatpush3.bf16.msra.mxu1 %v12771_v51 }
 0x7a6   : > { %12377 = vmatprep.subr.bf16.mxu0 %v12772_v15  ;;  %12399 = vmatprep.subr.bf16.mxu1 %v12773_v43  ;;  %v9169_v5 = vrot.slane %v9155_v46, %v13779_v42 }
 0x7a8   : > { %v9170_v38 = vcombine.low %v9162_v0, %v9169_v5 }
 0x7a9   : > { %12378 = vmatpush3.bf16.msra.mxu0 %v12774_v25  ;;  %12400 = vmatpush3.bf16.msra.mxu1 %v12775_v8 }
 0x7aa   : > { %12379 = vmatprep.subr.bf16.mxu0 %v12776_v40  ;;  %12401 = vmatprep.subr.bf16.mxu1 %v12777_v9  ;;  %v9174_v10 = vmul.f32 %v9170_v38, %v9024_v54 }
 0x7ac   : > { %v9214_v6 = vrot.slane %v9174_v10, %v13793_v53  ;;  %v9218_v3 = vrot.slane %v9174_v10, %v13796_v55  ;;  %v9222_v52 = vrot.slane %v9174_v10, %v13799_v57  ;;  %v9226_v56 = vrot.slane %v9174_v10, %v13802_v59 }
 0x7ad   : > { %12380 = vmatpush3.bf16.msra.mxu0 %v12778_v36  ;;  %12402 = vmatpush3.bf16.msra.mxu1 %v12779_v28  ;;  %v15223_v62 = vrot.slane %v9174_v10, %v13805_v61  ;;  %v9234_v11 = vrot.slane %v9174_v10, %v13808_v63  ;;  %v15227_v60 = vrot.slane %v9174_v10, %v13811_v1 }
 0x7ae   : > { %v9242_v41 = vrot.slane %v9174_v10, %v13814_v2  ;;  %v9267_v39 = vmul.f32 %v9214_v6, %v15161_v32  ;;  %v9268_v19 = vmul.f32 %v9218_v3, %v15163_v33  ;;  %v9269_v31 = vmul.f32 %v9222_v52, %v15165_v50  ;;  %12409 = vmatprep.subr.bf16.mxu0 %v12780_v35 }
 0x7af   : > { %v9270_v23 = vmul.f32 %v9226_v56, %v15167_v44  ;;  %v9271_v37 = vmul.f32 %v15223_v62, %v15169_v26  ;;  %v9272_v22 = vmul.f32 %v9234_v11, %v15177_v16  ;;  %v9273_v27 = vmul.f32 %v15227_v60, %v15179_v30  ;;  %12431 = vmatprep.subr.bf16.mxu1 %v12781_v58  ;;  %v12783_v58 = vld [vmem:[#allocation15 + $0x380] sm:$0xff]  }
 0x7b0   : > { %v9274_v29 = vmul.f32 %v9242_v41, %v15190_v47  ;;  %v9340_v45 = vcombine.low %v9267_v39, %v9268_v19  ;;  %v9402_v12 = vmul.f32 %v9218_v3, %v15102_v18  ;;  %v9404_v15 = vmul.f32 %v9226_v56, %v15107_v20  ;;  %v12786_v56 = vld [vmem:[#allocation15 + $0x308] sm:$0xff]   ;;  %v12789_v39 = vld [vmem:[#allocation15 + $0x3d0] sm:$0xff]  }
 0x7b1   : > { %v9341_v32 = vcombine.low %v9269_v31, %v9270_v23  ;;  %v9342_v49 = vcombine.low %v9271_v37, %v9272_v22  ;;  %v9401_v43 = vmul.f32 %v9214_v6, %v15100_v13  ;;  %v9403_v14 = vmul.f32 %v9222_v52, %v15105_v17  ;;  %v12784_v6 = vld [vmem:[#allocation15 + $0x348] sm:$0xff]   ;;  %v12790_v19 = vld [vmem:[#allocation15 + $0x310] sm:$0xff]   ;;  %v12792_v23 = vld [vmem:[#allocation15 + $0x358] sm:$0xff]  }
 0x7b2   : > { %v9343_v33 = vcombine.low %v9273_v27, %v9274_v29  ;;  %v9350_v50 = vrot.slane %v9340_v45, %v13779_v42  ;;  %v9406_v46 = vmul.f32 %v9234_v11, %v15114_v4  ;;  %v9408_v0 = vmul.f32 %v9242_v41, %v15149_v7  ;;  %v12787_v11 = vld [vmem:[#allocation15 + $0x388] sm:$0xff]   ;;  %v12788_v41 = vld [vmem:[#allocation15 + $0x350] sm:$0xff]   ;;  %v12793_v37 = vld [vmem:[#allocation15 + $0x3d8] sm:$0xff]  }
 0x7b3   : > { %v9357_v24 = vrot.slane %v9341_v32, %v13779_v42  ;;  %v9364_v44 = vrot.slane %v9342_v49, %v13779_v42  ;;  %v12791_v31 = vld [vmem:[#allocation15 + $0x390] sm:$0xff]   ;;  %v12794_v22 = vld [vmem:[#allocation15 + $0x318] sm:$0xff]   ;;  %v12796_v29 = vld [vmem:[#allocation15 + $0x360] sm:$0xff]  }
 0x7b4   : > { %v9371_v26 = vrot.slane %v9343_v33, %v13779_v42  ;;  %v12795_v27 = vld [vmem:[#allocation15 + $0x398] sm:$0xff]   ;;  %v12797_v45 = vld [vmem:[#allocation15 + $0x3e0] sm:$0xff]   ;;  %v12800_v33 = vld [vmem:[#allocation15 + $0x368] sm:$0xff]  }
 0x7b5   : > { %v9372_v48 = vcombine.low %v9350_v50, %v9357_v24  ;;  %v12798_v32 = vld [vmem:[#allocation15 + $0x320] sm:$0xff]   ;;  %v12801_v50 = vld [vmem:[#allocation15 + $0x3e8] sm:$0xff]  }
 0x7b6   : > { %v9373_v16 = vcombine.low %v9364_v44, %v9371_v26  ;;  %v12799_v49 = vld [vmem:[#allocation15 + $0x3a0] sm:$0xff]  }
 0x7b7   : > { %v9380_v34 = vrot.slane %v9372_v48, %v13779_v42  ;;  %v12844_v24 = vld [vmem:[#allocation2 + $0x60] sm:$0xff]  ;;  %v12845_v48 = vld [vmem:[#allocation2 + $0x70] sm:$0xff] }
 0x7b8   : > { %v9387_v30 = vrot.slane %v9373_v16, %v13779_v42  ;;  %v9405_v44 = vmul.f32 %v12844_v24, %v15223_v62  ;;  %v9407_v16 = vmul.f32 %v12845_v48, %v15227_v60  ;;  %v12806_v62 = vld [vmem:[#allocation15 + $0x330] sm:$0xff]   ;;  %v12808_v60 = vld [vmem:[#allocation15 + $0x378] sm:$0xff]  }
 0x7ba   : > { %v9388_v47 = vcombine.low %v9380_v34, %v9387_v30  ;;  %v12802_v30 = vld [vmem:[#allocation15 + $0x328] sm:$0xff]  }
 0x7bc   : > { %v15247_v51 = vsub.f32 %v9176_v21, %v9388_v47  ;;  %v12803_v21 = vld [vmem:[#allocation15 + $0x3a8] sm:$0xff]   ;;  %v12804_v47 = vld [vmem:[#allocation15 + $0x370] sm:$0xff]  }
 0x7be   : > { %v9450_v25 = vrot.slane %v15247_v51, %v13796_v55  ;;  %v9458_v42 = vrot.slane %v15247_v51, %v13802_v59  ;;  %v9446_v18 = vrot.slane %v15247_v51, %v13793_v53  ;;  %v9454_v20 = vrot.slane %v15247_v51, %v13799_v57 }
 0x7bf   : > { %v9466_v13 = vrot.slane %v15247_v51, %v13808_v63  ;;  %v9474_v17 = vrot.slane %v15247_v51, %v13814_v2  ;;  %v12782_v63 = vld [vmem:[#allocation15 + $0x300] sm:$0xff]   ;;  %v12785_v2 = vld [vmem:[#allocation15 + $0x3c8] sm:$0xff]   ;;  %v9462_v26 = vrot.slane %v15247_v51, %v13805_v61  ;;  %v9470_v34 = vrot.slane %v15247_v51, %v13811_v1  ;;  %v12807_v61 = vld [vmem:[#allocation15 + $0x3b0] sm:$0xff]  }
 0x7c0   : > { %v9500_v4 = vadd.f32 %v9450_v25, %v9402_v12  ;;  %v9502_v7 = vadd.f32 %v9458_v42, %v9404_v15  ;;  %v9499_v8 = vadd.f32 %v9446_v18, %v9401_v43  ;;  %v9501_v40 = vadd.f32 %v9454_v20, %v9403_v14  ;;  %v12805_v12 = vld [vmem:[#allocation15 + $0x3f0] sm:$0xff]   ;;  %v12809_v14 = vld [vmem:[#allocation15 + $0x3f8] sm:$0xff]  }
 0x7c1   : > { %v9504_v55 = vadd.f32 %v9466_v13, %v9406_v46  ;;  %v9506_v9 = vadd.f32 %v9474_v17, %v9408_v0  ;;  %v9503_v15 = vadd.f32 %v9462_v26, %v9405_v44  ;;  %v9505_v43 = vadd.f32 %v9470_v34, %v9407_v16  ;;  %v12810_v51 = vld [vmem:[#allocation15 + $0x338] sm:$0xff]   ;;  %v12139_v13 = vld [vmem:[#allocation17] ss:$0 sm:$0xff] }
 0x7c2   : > { %v9516_v5 = vmax.f32 %v9500_v4, 0.0  ;;  %v9518_v59 = vmax.f32 %v9502_v7, 0.0  ;;  %v9515_v54 = vmax.f32 %v9499_v8, 0.0  ;;  %v9517_v38 = vmax.f32 %v9501_v40, 0.0  ;;  %v12811_v0 = vld [vmem:[#allocation15 + $0x3b8] sm:$0xff]  }
 0x7c3   : > { %v9520_v53 = vmax.f32 %v9504_v55, 0.0  ;;  %v9522_v36 = vmax.f32 %v9506_v9, 0.0  ;;  %v9519_v46 = vmax.f32 %v9503_v15, 0.0  ;;  %v9521_v1 = vmax.f32 %v9505_v43, 0.0 }
 0x7c4   : > { %v9532_v28 = vpack.c.bf16 %v9516_v5, %v9516_v5  ;;  %v9534_v57 = vpack.c.bf16 %v9518_v59, %v9518_v59  ;;  %v9531_v10 = vpack.c.bf16 %v9515_v54, %v9515_v54  ;;  %v9533_v35 = vpack.c.bf16 %v9517_v38, %v9517_v38 }
 0x7c5   : > { %v9536_v3 = vpack.c.bf16 %v9520_v53, %v9520_v53  ;;  %v9538_v52 = vpack.c.bf16 %v9522_v36, %v9522_v36  ;;  %v9535_v25 = vpack.c.bf16 %v9519_v46, %v9519_v46  ;;  %v9537_v42 = vpack.c.bf16 %v9521_v1, %v9521_v1 }
 0x7c6   : > { %10762 = vmatprep.mubr.bf16.mxu0 %v9532_v28  ;;  %10802 = vmatprep.mubr.bf16.mxu1 %v9534_v57 }
 0x7c7   : > { %10763 = vmatmul.mubr.bf16.vlgmr.msra.gmra.mrb[8].mxu0 %v9531_v10  ;;  %10803 = vmatmul.mubr.bf16.vlgmr.msra.gmra.mrb[8].mxu1 %v9533_v35 }
 0x7c8   : > { %12410 = vmatpush3.bf16.msra.mxu0 %v12782_v63  ;;  %12432 = vmatpush3.bf16.msra.mxu1 %v12783_v58 }
 0x7c9   : > { %12411 = vmatprep.subr.bf16.mxu0 %v12784_v6  ;;  %12433 = vmatprep.subr.bf16.mxu1 %v12785_v2 }
 0x7ca   : > { %10842 = vmatprep.mubr.bf16.mxu0 %v9536_v3  ;;  %10882 = vmatprep.mubr.bf16.mxu1 %v9538_v52 }
 0x7cc   : > { %12412 = vmatpush3.bf16.msra.mxu0 %v12786_v56  ;;  %12434 = vmatpush3.bf16.msra.mxu1 %v12787_v11 }
 0x7cd   : > { %12413 = vmatprep.subr.bf16.mxu0 %v12788_v41  ;;  %12435 = vmatprep.subr.bf16.mxu1 %v12789_v39 }
 0x7d0   : > { %12414 = vmatpush3.bf16.msra.mxu0 %v12790_v19  ;;  %12436 = vmatpush3.bf16.msra.mxu1 %v12791_v31 }
 0x7d1   : > { %12415 = vmatprep.subr.bf16.mxu0 %v12792_v23  ;;  %12437 = vmatprep.subr.bf16.mxu1 %v12793_v37 }
 0x7d4   : > { %12416 = vmatpush3.bf16.msra.mxu0 %v12794_v22  ;;  %12438 = vmatpush3.bf16.msra.mxu1 %v12795_v27 }
 0x7d5   : > { %12417 = vmatprep.subr.bf16.mxu0 %v12796_v29  ;;  %12439 = vmatprep.subr.bf16.mxu1 %v12797_v45 }
 0x7d8   : > { %12418 = vmatpush3.bf16.msra.mxu0 %v12798_v32  ;;  %12440 = vmatpush3.bf16.msra.mxu1 %v12799_v49 }
 0x7d9   : > { %12419 = vmatprep.subr.bf16.mxu0 %v12800_v33  ;;  %12441 = vmatprep.subr.bf16.mxu1 %v12801_v50 }
 0x7dc   : > { %12420 = vmatpush3.bf16.msra.mxu0 %v12802_v30  ;;  %12442 = vmatpush3.bf16.msra.mxu1 %v12803_v21 }
 0x7dd   : > { %12421 = vmatprep.subr.bf16.mxu0 %v12804_v47  ;;  %12443 = vmatprep.subr.bf16.mxu1 %v12805_v12 }
 0x7e0   : > { %12422 = vmatpush3.bf16.msra.mxu0 %v12806_v62  ;;  %12444 = vmatpush3.bf16.msra.mxu1 %v12807_v61 }
 0x7e1   : > { %12423 = vmatprep.subr.bf16.mxu0 %v12808_v60  ;;  %12445 = vmatprep.subr.bf16.mxu1 %v12809_v14 }
 0x7e4   : > { %12424 = vmatpush3.bf16.msra.mxu0 %v12810_v51  ;;  %12446 = vmatpush3.bf16.msra.mxu1 %v12811_v0 }
 0x7e7   : > { %10843 = vmatmul.mubr.bf16.vlgmr.msra.gmra.mrb[12].mxu0 %v9535_v25  ;;  %10883 = vmatmul.mubr.bf16.vlgmr.msra.gmra.mrb[12].mxu1 %v9537_v42 }
 0x843   : > { %v12293_v18 = vpop.f32.mrb[0].mxu0  ;;  %v12315_v20 = vpop.f32.mrb[0].mxu1 }
 0x844   : > { %v12294_v17 = vpop.f32.mrb[1].mxu0  ;;  %v12316_v4 = vpop.f32.mrb[1].mxu1 }
 0x845   : > { %v12295_v7 = vadd.f32 %v12294_v17, %v12293_v18  ;;  %v12317_v8 = vadd.f32 %v12316_v4, %v12315_v20  ;;  %v12296_v40 = vpop.f32.mrb[2].mxu0  ;;  %v12318_v55 = vpop.f32.mrb[2].mxu1 }
 0x846   : > { %v12297_v9 = vpop.f32.mrb[3].mxu0  ;;  %v12319_v5 = vpop.f32.mrb[3].mxu1 }
 0x847   : > { %v10605_v59 = vadd.f32 %v12295_v7, %v12139_v13 }
 0x849   : > { %v10645_v54 = vadd.f32 %v12317_v8, %v10605_v59 }
 0x863   : > { %v12337_v38 = vpop.f32.mrb[4].mxu0  ;;  %v12359_v53 = vpop.f32.mrb[4].mxu1 }
 0x864   : > { %v12338_v36 = vpop.f32.mrb[5].mxu0  ;;  %v12360_v28 = vpop.f32.mrb[5].mxu1 }
 0x865   : > { %v12339_v57 = vadd.f32 %v12338_v36, %v12337_v38  ;;  %v12361_v10 = vadd.f32 %v12360_v28, %v12359_v53  ;;  %v12340_v35 = vpop.f32.mrb[6].mxu0  ;;  %v12362_v63 = vpop.f32.mrb[6].mxu1 }
 0x866   : > { %v12341_v58 = vpop.f32.mrb[7].mxu0  ;;  %v12363_v6 = vpop.f32.mrb[7].mxu1 }
 0x867   : > { %v10685_v2 = vadd.f32 %v12339_v57, %v10645_v54 }
 0x869   : > { %v10725_v3 = vadd.f32 %v12361_v10, %v10685_v2 }
 0x89a   : > { %v12381_v52 = vpop.f32.mrb[8].mxu0  ;;  %v12403_v56 = vpop.f32.mrb[8].mxu1 }
 0x89b   : > { %v12382_v11 = vpop.f32.mrb[9].mxu0  ;;  %v12404_v41 = vpop.f32.mrb[9].mxu1 }
 0x89c   : > { %v12383_v39 = vadd.f32 %v12382_v11, %v12381_v52  ;;  %v12405_v19 = vadd.f32 %v12404_v41, %v12403_v56  ;;  %v12384_v31 = vpop.f32.mrb[10].mxu0  ;;  %v12406_v23 = vpop.f32.mrb[10].mxu1 }
 0x89d   : > { %v12385_v37 = vpop.f32.mrb[11].mxu0  ;;  %v12407_v22 = vpop.f32.mrb[11].mxu1 }
 0x89e   : > { %v10765_v27 = vadd.f32 %v12383_v39, %v10725_v3 }
 0x8a0   : > { %v10805_v29 = vadd.f32 %v12405_v19, %v10765_v27 }
 0x8ba   : > { %v12425_v45 = vpop.f32.mrb[12].mxu0  ;;  %v12447_v32 = vpop.f32.mrb[12].mxu1 }
 0x8bb   : > { %v12426_v49 = vpop.f32.mrb[13].mxu0  ;;  %v12448_v33 = vpop.f32.mrb[13].mxu1 }
 0x8bc   : > { %v12427_v50 = vadd.f32 %v12426_v49, %v12425_v45  ;;  %v12449_v24 = vadd.f32 %v12448_v33, %v12447_v32  ;;  %v12428_v44 = vpop.f32.mrb[14].mxu0  ;;  %v12450_v26 = vpop.f32.mrb[14].mxu1 }
 0x8bd   : > { %v12429_v48 = vpop.f32.mrb[15].mxu0  ;;  %v12451_v16 = vpop.f32.mrb[15].mxu1 }
 0x8be   : > { %v10845_v34 = vadd.f32 %v12427_v50, %v10805_v29 }
 0x8c0   : > { %v10885_v30 = vadd.f32 %v12449_v24, %v10845_v34 }
 0x8c2   : > { %10890 = vst [vmem:[#allocation18] sm:$0xff] %v10885_v30 }
 0x8c3 PF: > { %p12621_p12 = scmp.eq.s32.totalorder %s13274_s13, 1  ;;  %s13204_s1 = smov [#allocation18]  }
 0x8c4   : > { %s10898_s12 = sshll.u32 %s13204_s1, 4  ;;  %s10899_s12 = int_to_ptr.vmem [resolvable:$true] %s10898_s12 }
 0x8c5   : > { %s13106_s28 = scalar_lea.vmem %s10899_s12, 128  ;;  %p13113_p0 = scmp.lt.s32.totalorder %s10899_s12, %s10899_s12 }
 0x8c6   : > { %p13107_p3 = scmp.ne.s32.totalorder %s10899_s12, %s13106_s28  ;;  %p13114_p6 = scmp.lt.s32.totalorder %s13106_s28, %s13106_s28 }
 0x8c8   : > { %p13108_p7 = pnand %p13107_p3, %p12621_p12  ;;  %p13115_p8 = por %p13114_p6, %p13113_p0 }
 0x8ca   : > { %p13109_p13 = pneg %p13108_p7 }
 0x8cc   : > { %p13116_p4 = pnand %p13115_p8, %p13109_p13 }
 0x8ce   : > { %13119 = shalt.err (!%p13116_p4)
}
 0x8cf   : > { %s15375_s9 = sld [smem:[#allocation32_spill]] }
 0x8d5   : > { %s13120_s20 = scalar_lea.hbm %s15375_s9, 128 }
 0x8d6   : > { %p13121_p10 = scmp.ne.s32.totalorder %s15375_s9, %s13120_s20  ;;  %p13126_p1 = scmp.lt.u32.totalorder %s13120_s20, %s15375_s9 }
 0x8d8   : > { %p13122_p9 = pnand %p13121_p10, %p12621_p12 }
 0x8da   : > { %p13123_p2 = pneg %p13122_p9 }
 0x8dc   : > { %p13128_p5 = pnand %p13126_p1, %p13123_p2 }
 0x8de   : > { %13131 = shalt.err (!%p13128_p5)
}
 0x8df   : > { %12578 = dma.vmem_to_hbm [thread:$0]  (%p12621_p12), %s10899_s12, 128, %s15375_s9, [#allocation5]  }
 0x8e0   : > { %13169 = dma.done.wait (%p12621_p12), [#allocation5], 128  }
 0x8e1   : > { %13171 = vsyncadd (%p12621_p12), [#allocation5], 4294967168 }
 0x8e2 PF: > { %s15376_s12 = sld [smem:[#allocation27_spill]]  ;;  %s15377_s14 = sld [smem:[#allocation25_spill]] }
 0x8e3   : > { %s15378_s11 = sld [smem:[#allocation28_spill]]  ;;  %s15379_s30 = smov %s13178_s10 }
 0x8e8   : > { %p26_p11 = scmp.ge.s32.totalorder %s15376_s12, 4   ;;  %s15380_s10 = smov %s15377_s14 }
 0x8ea   :  { %28 = sbr.rel (!%p26_p11) target bundleno = 14 (0xe), region = 161 }
 0x8f1   :  { %10911 = vsyncpa [#allocation4], 1 }
 0x8f2   :  { %10913 = vsyncpa [#allocation4 + $0x1], 1 }
 0x8f3   :  { %10914 = vsyncpa [#allocation7], 1 }
 0x8f4   :  { %10916 = vsyncpa [#allocation7 + $0x1], 1 }
 0x8f5   :  { %10917 = vsyncpa [#allocation10], 1 }
 0x8f6   :  { %10919 = vsyncpa [#allocation10 + $0x1], 1 }
 0x8f7   :  { %10920 = vsyncpa [#allocation13], 1 }
 0x8f8   :  { %10921 = vsyncpa [#allocation16], 1 }
 0x8f9   :  { %10922 = vsyncpa [#allocation5], 1 }
 0x8fa   :  { %10924 = vsyncpa [#allocation5 + $0x1], 1 }

</bundles_post_ra>
